<compile_context>
chip_gen: v5e
topology: v5e:2x2
jax: 0.10.0
libtpu: 0.0.40
codegen_flags: <defaults>
</compile_context>

<pallas_src>
import functools

import numpy as np
import jax
import jax.numpy as jnp
from jax import lax
from jax.experimental import pallas as pl
from jax.experimental.pallas import tpu as pltpu


# ----------------------------- Pallas kernels -----------------------------

def _mm_bias_act_kernel(x_ref, w_ref, b_ref, o_ref, *, leaky):
    # x: f32, w: bf16 (upcast -> f32 MXU matmul; M is tiny so f32 MXU is fine)
    acc = jnp.dot(x_ref[...], w_ref[...].astype(jnp.float32),
                  preferred_element_type=jnp.float32)
    acc = acc + b_ref[...]
    if leaky:
        acc = jnp.where(acc >= 0, acc, 0.01 * acc)     # LeakyReLU, slope 0.01
    o_ref[...] = acc.astype(o_ref.dtype)


def conv_mm(patches, w, b, *, leaky):
    """Single-step fused matmul + bias + LeakyReLU (conv layers).

    Conv weights here are only KB-scale, so a full-block grid=(1,) call is
    already optimal (nothing worth pipelining)."""
    M, K = patches.shape
    K2, N = w.shape
    assert K == K2
    kernel = functools.partial(_mm_bias_act_kernel, leaky=leaky)
    cost = pl.CostEstimate(
        flops=2 * M * K * N,
        transcendentals=0,
        bytes_accessed=M * K * 4 + K * N * 2 + N * 4 + M * N * 4,
    )
    return pl.pallas_call(
        kernel,
        out_shape=jax.ShapeDtypeStruct((M, N), jnp.float32),
        grid=(1,),
        in_specs=[
            pl.BlockSpec((M, K), lambda i: (0, 0)),
            pl.BlockSpec((K, N), lambda i: (0, 0)),
            pl.BlockSpec((1, N), lambda i: (0, 0)),
        ],
        out_specs=pl.BlockSpec((M, N), lambda i: (0, 0)),
        compiler_params=pltpu.CompilerParams(
            dimension_semantics=("arbitrary",)),
        cost_estimate=cost,
    )(patches, w, b)


def _linear_kernel(x_ref, w_ref, b_ref, o_ref):
    acc = jnp.dot(x_ref[...], w_ref[...].astype(jnp.float32),
                  preferred_element_type=jnp.float32)
    o_ref[...] = (acc + b_ref[...]).astype(o_ref.dtype)


def linear_fused(flat, wl, bl, *, tn=256):
    """Both branches' Linear layers in one pallas_call.

    flat: (2, Mb, K) f32   wl: (2, K, 512) bf16   bl: (2, 1, 512) f32
    grid = (branch, N_tiles); both axes "parallel" -> megacore sharding on v7x;
    the (K, tn) bf16 weight tiles (~1.6 MB) are double-buffered / pipelined.
    """
    B, Mb, K = flat.shape
    _, K2, N = wl.shape
    assert K == K2 and N % tn == 0
    cost = pl.CostEstimate(
        flops=2 * B * Mb * K * N,
        transcendentals=0,
        bytes_accessed=B * (Mb * K * 4 + K * N * 2 + N * 4 + Mb * N * 4),
    )
    return pl.pallas_call(
        _linear_kernel,
        out_shape=jax.ShapeDtypeStruct((B, Mb, N), jnp.float32),
        grid=(B, N // tn),
        in_specs=[
            pl.BlockSpec((None, Mb, K), lambda b, j: (b, 0, 0)),
            pl.BlockSpec((None, K, tn), lambda b, j: (b, 0, j)),
            pl.BlockSpec((None, 1, tn), lambda b, j: (b, 0, j)),
        ],
        out_specs=pl.BlockSpec((None, Mb, tn), lambda b, j: (b, 0, j)),
        compiler_params=pltpu.CompilerParams(
            dimension_semantics=("parallel", "parallel")),
        cost_estimate=cost,
    )(flat, wl, bl)


# ----------------------------- im2col (wrapper glue) -----------------------------

def _pad_rows(a, mult=8):
    pad = (-a.shape[0]) % mult
    if pad:
        a = jnp.pad(a, ((0, pad), (0, 0)))
    return a


def im2col_single_channel(x, k):
    """x: (N, H, W) -> (N*Ho*Wo, k*k); columns ordered (di, dj)."""
    N, H, W = x.shape
    Ho, Wo = H - k + 1, W - k + 1
    wins = jnp.stack([x[:, di:di + Ho, dj:dj + Wo]
                      for di in range(k) for dj in range(k)], axis=-1)  # (N,Ho,Wo,k*k)
    return wins.reshape(N * Ho * Wo, k * k)


def im2col_nhwc(h, k):
    """h: (N, H, W, C) -> (N*Ho*Wo, C*k*k); columns ordered (c, di, dj), c outer
    (matches OIHW weight flattening)."""
    N, H, W, C = h.shape
    Ho, Wo = H - k + 1, W - k + 1
    wins = jnp.stack([h[:, di:di + Ho, dj:dj + Wo, :]
                      for di in range(k) for dj in range(k)], axis=-1)  # (N,Ho,Wo,C,k*k)
    return wins.reshape(N * Ho * Wo, C * k * k)


# ----------------------------- RND forward -----------------------------

# TODO(synk): a fully fused single-kernel version (in-kernel im2col with
# VMEM-resident conv activations) is left out; it needs in-kernel relayouts
# (non-8-aligned reshapes across sublanes) that are risky to lower, and at
# these sizes the 3-call fused pipeline is already launch/DMA-lean.

def rnd_forward(x, fused_params):
    (w1, b1), (w2, b2), (wl, bl) = fused_params
    B = x.shape[0]
    S = x.shape[-1]
    s1, s2 = S - 7, S - 9            # conv1 / conv2 output spatial sizes

    # ---- conv1: both branches in one matmul (output cols [pred 0:32 | targ 32:64])
    p1 = im2col_single_channel(x[:, 0], 8)          # (B*s1*s1, 64)
    m1 = p1.shape[0]
    h1 = conv_mm(_pad_rows(p1), w1, b1, leaky=True)[:m1]
    h1 = h1.reshape(B, s1, s1, 64)                  # NHWC-ish, no NCHW round trip

    # ---- conv2: block-diagonal weight -> one matmul, lane-dense 128-wide output
    p2 = jnp.concatenate([im2col_nhwc(h1[..., :32], 3),
                          im2col_nhwc(h1[..., 32:], 3)], axis=1)  # (B*s2*s2, 576)
    m2 = p2.shape[0]
    h2 = conv_mm(_pad_rows(p2), w2, b2, leaky=True)[:m2]          # (B*s2*s2, 128)

    # ---- flatten in NHWC order (wl rows were permuted at init to match)
    flat = jnp.stack([h2[:, :64].reshape(B, s2 * s2 * 64),
                      h2[:, 64:].reshape(B, s2 * s2 * 64)], axis=0)  # (2, B, 3136)

    out = linear_fused(flat, wl, bl)                # (2, B, 512)
    return out[0], out[1]                           # (predict_feature, target_feature)


# ----------------------------- param init & packing -----------------------------

def _round_bf16(a):
    return a.astype(jnp.bfloat16).astype(jnp.float32)


def orthogonal(key, rows, cols, gain):
    big, small = max(rows, cols), min(rows, cols)
    a = jax.random.normal(key, (big, small), dtype=jnp.float32)
    q, r = jnp.linalg.qr(a)
    q = q * jnp.sign(jnp.diagonal(r))
    if rows < cols:
        q = q.T
    return (gain * q[:rows, :cols]).astype(jnp.float32)


def init_branch(key, input_size):
    """Canonical PyTorch-layout params; weight values bf16-rounded once here so
    the Pallas (bf16-stored) path and the f32 reference use identical values."""
    s = input_size - 9
    k1, k2, k3 = jax.random.split(key, 3)
    gain = float(np.sqrt(2))
    w1 = _round_bf16(orthogonal(k1, 32, 1 * 8 * 8, gain)).reshape(32, 1, 8, 8)
    b1 = jnp.zeros((32,), jnp.float32)
    w2 = _round_bf16(orthogonal(k2, 64, 32 * 3 * 3, gain)).reshape(64, 32, 3, 3)
    b2 = jnp.zeros((64,), jnp.float32)
    wl = _round_bf16(orthogonal(k3, 512, 64 * s * s, gain).T)   # (in_features, 512)
    bl = jnp.zeros((512,), jnp.float32)
    return (w1, b1), (w2, b2), (wl, bl)


def prepare_fused_params(pred_params, targ_params, s):
    """Pack both branches' weights for the fused kernels (bf16 storage)."""
    (w1p, b1p), (w2p, b2p), (wlp, blp) = pred_params
    (w1t, b1t), (w2t, b2t), (wlt, blt) = targ_params

    # conv1: concat along Cout -> (64, 64) matmul weight, output cols [pred|targ]
    w1 = jnp.concatenate([w1p.reshape(32, 64), w1t.reshape(32, 64)], axis=0).T
    b1 = jnp.concatenate([b1p, b1t])[None, :]                    # (1, 64)

    # conv2: block-diagonal -> single matmul, 128-lane output [pred 0:64 | targ 64:128]
    w2p_m = w2p.reshape(64, 288).T                               # rows (c, di, dj)
    w2t_m = w2t.reshape(64, 288).T
    z = jnp.zeros((288, 64), jnp.float32)
    w2 = jnp.concatenate([jnp.concatenate([w2p_m, z], axis=1),
                          jnp.concatenate([z, w2t_m], axis=1)], axis=0)  # (576, 128)
    b2 = jnp.concatenate([b2p, b2t])[None, :]                    # (1, 128)

    # linear: permute rows (c, oi, oj) -> (oi, oj, c) to match the NHWC flatten
    # order used by the kernel path (done once at init, free).
    def perm(wl):                                                # wl: (64*s*s, 512)
        return wl.reshape(64, s, s, 512).transpose(1, 2, 0, 3).reshape(64 * s * s, 512)

    wl = jnp.stack([perm(wlp), perm(wlt)], axis=0)               # (2, 3136, 512)
    bl = jnp.stack([blp, blt], axis=0)[:, None, :]               # (2, 1, 512)

    cast = lambda a: a.astype(jnp.bfloat16)   # bf16 storage halves weight DMA
    return (cast(w1), b1), (cast(w2), b2), (cast(wl), bl)


# ----------------------------- pure-JAX reference (PyTorch semantics) -----------------------------

def _ref_branch(x, params):
    (w1, b1), (w2, b2), (wl, bl) = params
    dn = ("NCHW", "OIHW", "NCHW")
    h = lax.conv_general_dilated(x, w1, (1, 1), "VALID", dimension_numbers=dn,
                                 precision=lax.Precision.HIGHEST)
    h = h + b1[None, :, None, None]
    h = jnp.where(h >= 0, h, 0.01 * h)
    h = lax.conv_general_dilated(h, w2, (1, 1), "VALID", dimension_numbers=dn,
                                 precision=lax.Precision.HIGHEST)
    h = h + b2[None, :, None, None]
    h = jnp.where(h >= 0, h, 0.01 * h)
    flat = h.reshape(h.shape[0], -1)          # channel-major flatten (PyTorch)
    return jnp.dot(flat, wl, precision=lax.Precision.HIGHEST) + bl


# ----------------------------- main -----------------------------

if __name__ == "__main__":
    input_size = 16                 # spatial size S; flatten dim = 64*(S-9)^2 = 3136
    key = jax.random.PRNGKey(0)
    kx, kp, kt = jax.random.split(key, 3)

    next_obs = jax.random.normal(kx, (2, 1, input_size, input_size), dtype=jnp.float32)
    pred_params = init_branch(kp, input_size)
    targ_params = init_branch(kt, input_size)
    fused_params = prepare_fused_params(pred_params, targ_params, input_size - 9)

    pred, targ = jax.jit(rnd_forward)(next_obs, fused_params)
    jax.block_until_ready((pred, targ))
    assert pred.shape == (2, 512) and targ.shape == (2, 512)
    assert pred.dtype == jnp.float32 and targ.dtype == jnp.float32

    # sanity check vs pure-JAX reference (same bf16-rounded weight values;
    # loose tolerance only for MXU vs XLA accumulation-order differences)
    pred_ref = _ref_branch(next_obs, pred_params)
    targ_ref = _ref_branch(next_obs, targ_params)
    np.testing.assert_allclose(np.asarray(pred), np.asarray(pred_ref), rtol=1e-2, atol=1e-2)
    np.testing.assert_allclose(np.asarray(targ), np.asarray(targ_ref), rtol=1e-2, atol=1e-2)

    print("KERNEL_OK")
</pallas_src>

<mosaic_0001>
module attributes {stable_mosaic.version = 11 : i64} {
  func.func @_mm_bias_act_kernel(%arg0: i32, %arg1: memref<168x64xf32, #tpu.memory_space<vmem>>, %arg2: memref<64x64xbf16, #tpu.memory_space<vmem>>, %arg3: memref<1x64xf32, #tpu.memory_space<vmem>>, %arg4: memref<168x64xf32, #tpu.memory_space<vmem>>) attributes {dimension_semantics = [#tpu.dimension_semantics<arbitrary>], iteration_bounds = array<i64: 1>, scalar_prefetch = 0 : i64, scratch_operands = 0 : i64, tpu.core_type = #tpu.core_type<tc>, window_params = [{pipeline_mode = #tpu.pipeline_mode<synchronous>, transform_indices = @transform_0, window_bounds = array<i64: 168, 64>}, {pipeline_mode = #tpu.pipeline_mode<synchronous>, transform_indices = @transform_1, window_bounds = array<i64: 64, 64>}, {pipeline_mode = #tpu.pipeline_mode<synchronous>, transform_indices = @transform_2, window_bounds = array<i64: 1, 64>}, {pipeline_mode = #tpu.pipeline_mode<synchronous>, transform_indices = @transform_3, window_bounds = array<i64: 168, 64>}]} {
    %c0 = arith.constant 0 : index
    %c0_0 = arith.constant 0 : index
    %0 = vector.load %arg1[%c0, %c0_0] : memref<168x64xf32, #tpu.memory_space<vmem>>, vector<168x64xf32>
    %c0_1 = arith.constant 0 : index
    %c0_2 = arith.constant 0 : index
    %1 = vector.load %arg2[%c0_1, %c0_2] : memref<64x64xbf16, #tpu.memory_space<vmem>>, vector<64x64xbf16>
    %2 = arith.extf %1 : vector<64x64xbf16> to vector<64x64xf32>
    %cst = arith.constant dense<0.000000e+00> : vector<168x64xf32>
    %3 = tpu.matmul %0, %2, %cst {dimension_numbers = #tpu.dot_dimension_numbers<[1], [0], [0], [1], [0, 0, 1, 1], [], []>} : vector<168x64xf32>, vector<64x64xf32>, vector<168x64xf32> -> vector<168x64xf32>
    %c0_3 = arith.constant 0 : index
    %c0_4 = arith.constant 0 : index
    %4 = vector.load %arg3[%c0_3, %c0_4] : memref<1x64xf32, #tpu.memory_space<vmem>>, vector<1x64xf32>
    %5 = vector.broadcast %4 : vector<1x64xf32> to vector<168x64xf32>
    %6 = arith.addf %3, %5 : vector<168x64xf32>
    %cst_5 = arith.constant 0.000000e+00 : f32
    %7 = vector.broadcast %cst_5 : f32 to vector<168x64xf32>
    %8 = arith.cmpf oge, %6, %7 : vector<168x64xf32>
    %cst_6 = arith.constant 0.00999999977 : f32
    %9 = vector.broadcast %cst_6 : f32 to vector<168x64xf32>
    %10 = arith.mulf %9, %6 : vector<168x64xf32>
    %11 = arith.select %8, %6, %10 : vector<168x64xi1>, vector<168x64xf32>
    %c0_7 = arith.constant 0 : index
    %c0_8 = arith.constant 0 : index
    %12 = vector.load %arg4[%c0_7, %c0_8] : memref<168x64xf32, #tpu.memory_space<vmem>>, vector<168x64xf32>
    tpu.vector_store %arg4[%c0_7, %c0_8], %11 {strides = array<i32>} : memref<168x64xf32, #tpu.memory_space<vmem>>, vector<168x64xf32>,
    return
  }
  func.func @transform_0(%arg0: i32) -> (i32, i32) {
    %c0_i32 = arith.constant 0 : i32
    %c0_i32_0 = arith.constant 0 : i32
    %c0_i32_1 = arith.constant 0 : i32
    return %c0_i32, %c0_i32_0 : i32, i32
  }
  func.func @transform_1(%arg0: i32) -> (i32, i32) {
    %c0_i32 = arith.constant 0 : i32
    %c0_i32_0 = arith.constant 0 : i32
    %c0_i32_1 = arith.constant 0 : i32
    return %c0_i32, %c0_i32_0 : i32, i32
  }
  func.func @transform_2(%arg0: i32) -> (i32, i32) {
    %c0_i32 = arith.constant 0 : i32
    %c0_i32_0 = arith.constant 0 : i32
    %c0_i32_1 = arith.constant 0 : i32
    return %c0_i32, %c0_i32_0 : i32, i32
  }
  func.func @transform_3(%arg0: i32) -> (i32, i32) {
    %c0_i32 = arith.constant 0 : i32
    %c0_i32_0 = arith.constant 0 : i32
    %c0_i32_1 = arith.constant 0 : i32
    return %c0_i32, %c0_i32_0 : i32, i32
  }
}

module attributes {stable_mosaic.version = 11 : i64} {
  func.func @_mm_bias_act_kernel(%arg0: i32, %arg1: memref<104x576xf32, #tpu.memory_space<vmem>>, %arg2: memref<576x128xbf16, #tpu.memory_space<vmem>>, %arg3: memref<1x128xf32, #tpu.memory_space<vmem>>, %arg4: memref<104x128xf32, #tpu.memory_space<vmem>>) attributes {dimension_semantics = [#tpu.dimension_semantics<arbitrary>], iteration_bounds = array<i64: 1>, scalar_prefetch = 0 : i64, scratch_operands = 0 : i64, tpu.core_type = #tpu.core_type<tc>, window_params = [{pipeline_mode = #tpu.pipeline_mode<synchronous>, transform_indices = @transform_0, window_bounds = array<i64: 104, 576>}, {pipeline_mode = #tpu.pipeline_mode<synchronous>, transform_indices = @transform_1, window_bounds = array<i64: 576, 128>}, {pipeline_mode = #tpu.pipeline_mode<synchronous>, transform_indices = @transform_2, window_bounds = array<i64: 1, 128>}, {pipeline_mode = #tpu.pipeline_mode<synchronous>, transform_indices = @transform_3, window_bounds = array<i64: 104, 128>}]} {
    %c0 = arith.constant 0 : index
    %c0_0 = arith.constant 0 : index
    %0 = vector.load %arg1[%c0, %c0_0] : memref<104x576xf32, #tpu.memory_space<vmem>>, vector<104x576xf32>
    %c0_1 = arith.constant 0 : index
    %c0_2 = arith.constant 0 : index
    %1 = vector.load %arg2[%c0_1, %c0_2] : memref<576x128xbf16, #tpu.memory_space<vmem>>, vector<576x128xbf16>
    %2 = arith.extf %1 : vector<576x128xbf16> to vector<576x128xf32>
    %cst = arith.constant dense<0.000000e+00> : vector<104x128xf32>
    %3 = tpu.matmul %0, %2, %cst {dimension_numbers = #tpu.dot_dimension_numbers<[1], [0], [0], [1], [0, 0, 1, 1], [], []>} : vector<104x576xf32>, vector<576x128xf32>, vector<104x128xf32> -> vector<104x128xf32>
    %c0_3 = arith.constant 0 : index
    %c0_4 = arith.constant 0 : index
    %4 = vector.load %arg3[%c0_3, %c0_4] : memref<1x128xf32, #tpu.memory_space<vmem>>, vector<1x128xf32>
    %5 = vector.broadcast %4 : vector<1x128xf32> to vector<104x128xf32>
    %6 = arith.addf %3, %5 : vector<104x128xf32>
    %cst_5 = arith.constant 0.000000e+00 : f32
    %7 = vector.broadcast %cst_5 : f32 to vector<104x128xf32>
    %8 = arith.cmpf oge, %6, %7 : vector<104x128xf32>
    %cst_6 = arith.constant 0.00999999977 : f32
    %9 = vector.broadcast %cst_6 : f32 to vector<104x128xf32>
    %10 = arith.mulf %9, %6 : vector<104x128xf32>
    %11 = arith.select %8, %6, %10 : vector<104x128xi1>, vector<104x128xf32>
    %c0_7 = arith.constant 0 : index
    %c0_8 = arith.constant 0 : index
    %12 = vector.load %arg4[%c0_7, %c0_8] : memref<104x128xf32, #tpu.memory_space<vmem>>, vector<104x128xf32>
    tpu.vector_store %arg4[%c0_7, %c0_8], %11 {strides = array<i32>} : memref<104x128xf32, #tpu.memory_space<vmem>>, vector<104x128xf32>,
    return
  }
  func.func @transform_0(%arg0: i32) -> (i32, i32) {
    %c0_i32 = arith.constant 0 : i32
    %c0_i32_0 = arith.constant 0 : i32
    %c0_i32_1 = arith.constant 0 : i32
    return %c0_i32, %c0_i32_0 : i32, i32
  }
  func.func @transform_1(%arg0: i32) -> (i32, i32) {
    %c0_i32 = arith.constant 0 : i32
    %c0_i32_0 = arith.constant 0 : i32
    %c0_i32_1 = arith.constant 0 : i32
    return %c0_i32, %c0_i32_0 : i32, i32
  }
  func.func @transform_2(%arg0: i32) -> (i32, i32) {
    %c0_i32 = arith.constant 0 : i32
    %c0_i32_0 = arith.constant 0 : i32
    %c0_i32_1 = arith.constant 0 : i32
    return %c0_i32, %c0_i32_0 : i32, i32
  }
  func.func @transform_3(%arg0: i32) -> (i32, i32) {
    %c0_i32 = arith.constant 0 : i32
    %c0_i32_0 = arith.constant 0 : i32
    %c0_i32_1 = arith.constant 0 : i32
    return %c0_i32, %c0_i32_0 : i32, i32
  }
}

module attributes {stable_mosaic.version = 11 : i64} {
  func.func @_linear_kernel(%arg0: i32, %arg1: i32, %arg2: memref<1x2x3136xf32, #tpu.memory_space<vmem>>, %arg3: memref<1x3136x256xbf16, #tpu.memory_space<vmem>>, %arg4: memref<1x1x256xf32, #tpu.memory_space<vmem>>, %arg5: memref<1x2x256xf32, #tpu.memory_space<vmem>>) attributes {dimension_semantics = [#tpu.dimension_semantics<parallel>, #tpu.dimension_semantics<parallel>], iteration_bounds = array<i64: 2, 2>, scalar_prefetch = 0 : i64, scratch_operands = 0 : i64, tpu.core_type = #tpu.core_type<tc>, window_params = [{transform_indices = @transform_0, window_bounds = array<i64: 1, 2, 3136>}, {transform_indices = @transform_1, window_bounds = array<i64: 1, 3136, 256>}, {transform_indices = @transform_2, window_bounds = array<i64: 1, 1, 256>}, {transform_indices = @transform_3, window_bounds = array<i64: 1, 2, 256>}]} {
    %c0 = arith.constant 0 : index
    %c0_0 = arith.constant 0 : index
    %c0_1 = arith.constant 0 : index
    %0 = vector.load %arg2[%c0, %c0_0, %c0_1] : memref<1x2x3136xf32, #tpu.memory_space<vmem>>, vector<1x2x3136xf32>
    %1 = vector.shape_cast %0 : vector<1x2x3136xf32> to vector<2x3136xf32>
    %c0_2 = arith.constant 0 : index
    %c0_3 = arith.constant 0 : index
    %c0_4 = arith.constant 0 : index
    %2 = vector.load %arg3[%c0_2, %c0_3, %c0_4] : memref<1x3136x256xbf16, #tpu.memory_space<vmem>>, vector<1x3136x256xbf16>
    %3 = vector.shape_cast %2 : vector<1x3136x256xbf16> to vector<3136x256xbf16>
    %4 = arith.extf %3 : vector<3136x256xbf16> to vector<3136x256xf32>
    %cst = arith.constant dense<0.000000e+00> : vector<2x256xf32>
    %5 = tpu.matmul %1, %4, %cst {dimension_numbers = #tpu.dot_dimension_numbers<[1], [0], [0], [1], [0, 0, 1, 1], [], []>} : vector<2x3136xf32>, vector<3136x256xf32>, vector<2x256xf32> -> vector<2x256xf32>
    %c0_5 = arith.constant 0 : index
    %c0_6 = arith.constant 0 : index
    %c0_7 = arith.constant 0 : index
    %6 = vector.load %arg4[%c0_5, %c0_6, %c0_7] : memref<1x1x256xf32, #tpu.memory_space<vmem>>, vector<1x1x256xf32>
    %7 = vector.shape_cast %6 : vector<1x1x256xf32> to vector<1x256xf32>
    %8 = vector.broadcast %7 : vector<1x256xf32> to vector<2x256xf32>
    %9 = arith.addf %5, %8 : vector<2x256xf32>
    %c0_8 = arith.constant 0 : index
    %c0_9 = arith.constant 0 : index
    %c0_10 = arith.constant 0 : index
    %10 = vector.load %arg5[%c0_8, %c0_9, %c0_10] : memref<1x2x256xf32, #tpu.memory_space<vmem>>, vector<1x2x256xf32>
    %11 = vector.shape_cast %10 : vector<1x2x256xf32> to vector<2x256xf32>
    %12 = vector.shape_cast %9 : vector<2x256xf32> to vector<1x2x256xf32>
    tpu.vector_store %arg5[%c0_8, %c0_9, %c0_10], %12 {strides = array<i32>} : memref<1x2x256xf32, #tpu.memory_space<vmem>>, vector<1x2x256xf32>,
    return
  }
  func.func @transform_0(%arg0: i32, %arg1: i32) -> (i32, i32, i32) {
    %c0_i32 = arith.constant 0 : i32
    %c0_i32_0 = arith.constant 0 : i32
    %c0_i32_1 = arith.constant 0 : i32
    return %arg0, %c0_i32, %c0_i32_0 : i32, i32, i32
  }
  func.func @transform_1(%arg0: i32, %arg1: i32) -> (i32, i32, i32) {
    %c0_i32 = arith.constant 0 : i32
    %c0_i32_0 = arith.constant 0 : i32
    return %arg0, %c0_i32, %arg1 : i32, i32, i32
  }
  func.func @transform_2(%arg0: i32, %arg1: i32) -> (i32, i32, i32) {
    %c0_i32 = arith.constant 0 : i32
    %c0_i32_0 = arith.constant 0 : i32
    return %arg0, %c0_i32, %arg1 : i32, i32, i32
  }
  func.func @transform_3(%arg0: i32, %arg1: i32) -> (i32, i32, i32) {
    %c0_i32 = arith.constant 0 : i32
    %c0_i32_0 = arith.constant 0 : i32
    return %arg0, %c0_i32, %arg1 : i32, i32, i32
  }
}

</mosaic_0001>

<bundles_post_ra>
// kernel: rnd_forward.3
= control target key start
LH: loop header
LB: loop body
LE: loop exit
PB: predicated region body
PF: predicated region fallthrough
CT: control target
= control target key end

     0   :  { %vm55_vm0 = vcmask 523264   ;;  %s578_s1 = inlined_call_operand.vmem [shape: bf16[64,64], index: 1, kind: input, shape index: {}]   ;;  %s579_s2 = inlined_call_operand.vmem [shape: f32[1,64], index: 2, kind: input, shape index: {}]   ;;  %s580_s0 = inlined_call_operand.vmem [shape: f32[168,64], index: 0, kind: input, shape index: {}]   ;;  %s581_s3 = inlined_call_operand.vmem [shape: f32[168,64], index: 3, kind: output, shape index: {}]  }
   0x1   :  { %v326_v0 = vld [vmem:[%s578_s1 + $0x18] sm:$0xff]   ;;  %v325_v1 = vld [vmem:[%s578_s1 + $0x10] sm:$0xff]   ;;  %v324_v5 = vld [vmem:[%s578_s1 + $0x8] sm:$0xff]  }
   0x2   :  { %v323_v2 = vunpack.c.h.bf16 %v326_v0  ;;  %v322_v3 = vunpack.c.l.bf16 %v326_v0  ;;  %v319_v4 = vunpack.c.h.bf16 %v325_v1  ;;  %v318_v6 = vunpack.c.l.bf16 %v325_v1  ;;  %v309_v8 = vld [vmem:[%s578_s1] sm:$0xff]   ;;  %v24_v12 = vld [vmem:[%s580_s0 + $0x50] sm:$0xff]  ;;  %v19_v15 = vld [vmem:[%s580_s0 + $0x28] sm:$0xff] }
   0x3   :  { %v315_v7 = vunpack.c.h.bf16 %v324_v5  ;;  %v314_v9 = vunpack.c.l.bf16 %v324_v5  ;;  %v311_v10 = vunpack.c.h.bf16 %v309_v8  ;;  %v310_v11 = vunpack.c.l.bf16 %v309_v8  ;;  %v30_v13 = vld [vmem:[%s580_s0 + $0x80] sm:$0xff]  ;;  %v25_v16 = vld [vmem:[%s580_s0 + $0x58] sm:$0xff]  ;;  %v31_v17 = vld [vmem:[%s580_s0 + $0x88] sm:$0xff] }
   0x4   :  { %328 = vmatpush.msra.mxu2 %v323_v2  ;;  %329 = vmatpush.msra.mxu3 %v323_v2  ;;  %v14_v14 = vld [vmem:[%s580_s0] sm:$0xff]  ;;  %v15_v18 = vld [vmem:[%s580_s0 + $0x8] sm:$0xff]  ;;  %v20_v19 = vld [vmem:[%s580_s0 + $0x30] sm:$0xff] }
   0x5   :  { %127 = vmatpush.msra.mxu0 %v323_v2  ;;  %327 = vmatpush.msra.mxu1 %v323_v2  ;;  %v26_v20 = vld [vmem:[%s580_s0 + $0x60] sm:$0xff]  ;;  %v32_v21 = vld [vmem:[%s580_s0 + $0x90] sm:$0xff]  ;;  %v21_v23 = vld [vmem:[%s580_s0 + $0x38] sm:$0xff] }
   0x6   :  { %331 = vmatpush.msra.mxu2 %v322_v3  ;;  %332 = vmatpush.msra.mxu3 %v322_v3  ;;  %v16_v22 = vld [vmem:[%s580_s0 + $0x10] sm:$0xff]  ;;  %v27_v24 = vld [vmem:[%s580_s0 + $0x68] sm:$0xff]  ;;  %v33_v25 = vld [vmem:[%s580_s0 + $0x98] sm:$0xff] }
   0x7   :  { %128 = vmatpush.msra.mxu0 %v322_v3  ;;  %330 = vmatpush.msra.mxu1 %v322_v3  ;;  %v17_v26 = vld [vmem:[%s580_s0 + $0x18] sm:$0xff]  ;;  %v22_v27 = vld [vmem:[%s580_s0 + $0x40] sm:$0xff]  ;;  %v28_v28 = vld [vmem:[%s580_s0 + $0x70] sm:$0xff] }
   0x8   :  { %334 = vmatpush.msra.mxu2 %v319_v4  ;;  %335 = vmatpush.msra.mxu3 %v319_v4  ;;  %v34_v29 = vld [vmem:[%s580_s0 + $0xa0] sm:$0xff]  ;;  %v23_v31 = vld [vmem:[%s580_s0 + $0x48] sm:$0xff]  ;;  %v29_v32 = vld [vmem:[%s580_s0 + $0x78] sm:$0xff] }
   0x9   :  { %129 = vmatpush.msra.mxu0 %v319_v4  ;;  %333 = vmatpush.msra.mxu1 %v319_v4  ;;  %v18_v30 = vld [vmem:[%s580_s0 + $0x20] sm:$0xff] }
   0xa   :  { %337 = vmatpush.msra.mxu2 %v318_v6  ;;  %338 = vmatpush.msra.mxu3 %v318_v6  ;;  %v471_v33 = vld [vmem:[%s579_s2] ss:$0 sm:$0xff] }
   0xb   :  { %130 = vmatpush.msra.mxu0 %v318_v6  ;;  %336 = vmatpush.msra.mxu1 %v318_v6 }
   0xc   :  { %340 = vmatpush.msra.mxu2 %v315_v7  ;;  %341 = vmatpush.msra.mxu3 %v315_v7 }
   0xd   :  { %131 = vmatpush.msra.mxu0 %v315_v7  ;;  %339 = vmatpush.msra.mxu1 %v315_v7 }
   0xe   :  { %343 = vmatpush.msra.mxu2 %v314_v9  ;;  %344 = vmatpush.msra.mxu3 %v314_v9 }
   0xf   :  { %132 = vmatpush.msra.mxu0 %v314_v9  ;;  %342 = vmatpush.msra.mxu1 %v314_v9 }
  0x10   :  { %346 = vmatpush.msra.mxu2 %v311_v10  ;;  %347 = vmatpush.msra.mxu3 %v311_v10 }
  0x11   :  { %133 = vmatpush.msra.mxu0 %v311_v10  ;;  %345 = vmatpush.msra.mxu1 %v311_v10 }
  0x12   :  { %349 = vmatpush.msra.mxu2 %v310_v11  ;;  %350 = vmatpush.msra.mxu3 %v310_v11 }
  0x13   :  { %297 = vmatmul.msk.f32.vlgmr.msra.gmra.mxu2 %vm55_vm0, %v24_v12  ;;  %303 = vmatmul.msk.f32.vlgmr.msra.gmra.mxu3 %vm55_vm0, %v30_v13 }
  0x14   :  { %134 = vmatpush.msra.mxu0 %v310_v11  ;;  %348 = vmatpush.msra.mxu1 %v310_v11 }
  0x15   :  { %287 = vmatmul.msk.f32.vlgmr.msra.gmra.mxu0 %vm55_vm0, %v14_v14  ;;  %292 = vmatmul.msk.f32.vlgmr.msra.gmra.mxu1 %vm55_vm0, %v19_v15 }
  0x1b   :  { %298 = vmatmul.msk.f32.gmra.mxu2 %vm55_vm0, %v25_v16  ;;  %304 = vmatmul.msk.f32.gmra.mxu3 %vm55_vm0, %v31_v17 }
  0x1d   :  { %288 = vmatmul.msk.f32.gmra.mxu0 %vm55_vm0, %v15_v18  ;;  %293 = vmatmul.msk.f32.gmra.mxu1 %vm55_vm0, %v20_v19 }
  0x23   :  { %299 = vmatmul.msk.f32.gmra.mxu2 %vm55_vm0, %v26_v20  ;;  %305 = vmatmul.msk.f32.gmra.mxu3 %vm55_vm0, %v32_v21 }
  0x25   :  { %289 = vmatmul.msk.f32.gmra.mxu0 %vm55_vm0, %v16_v22  ;;  %294 = vmatmul.msk.f32.gmra.mxu1 %vm55_vm0, %v21_v23 }
  0x2b   :  { %300 = vmatmul.msk.f32.gmra.mxu2 %vm55_vm0, %v27_v24  ;;  %306 = vmatmul.msk.f32.gmra.mxu3 %vm55_vm0, %v33_v25 }
  0x2d   :  { %290 = vmatmul.msk.f32.gmra.mxu0 %vm55_vm0, %v17_v26  ;;  %295 = vmatmul.msk.f32.gmra.mxu1 %vm55_vm0, %v22_v27 }
  0x33   :  { %301 = vmatmul.msk.f32.gmra.mxu2 %vm55_vm0, %v28_v28  ;;  %307 = vmatmul.msk.f32.gmra.mxu3 %vm55_vm0, %v34_v29 }
  0x35   :  { %291 = vmatmul.msk.f32.gmra.mxu0 %vm55_vm0, %v18_v30  ;;  %296 = vmatmul.msk.f32.gmra.mxu1 %vm55_vm0, %v23_v31 }
  0x3b   :  { %302 = vmatmul.msk.f32.gmra.mxu2 %vm55_vm0, %v29_v32 }
  0x92   :  { %v136_v34 = vpop.f32.mrf.mxu0  ;;  %v151_v35 = vpop.f32.mrf.mxu1 }
  0x93   :  { %v137_v36 = vadd.f32 %v471_v33, %v136_v34  ;;  %v152_v37 = vadd.f32 %v471_v33, %v151_v35 }
  0x95   :  { %vm199_vm1 = vcmp.ge.f32.partialorder %v137_v36, 0.0  ;;  %v220_v38 = vmul.f32 0.01, %v137_v36  ;;  %vm204_vm2 = vcmp.ge.f32.partialorder %v152_v37, 0.0  ;;  %v225_v39 = vmul.f32 0.01, %v152_v37 }
  0x96   :  { %v166_v40 = vpop.f32.mrf.mxu2  ;;  %v184_v41 = vpop.f32.mrf.mxu3 }
  0x97   :  { %v167_v42 = vadd.f32 %v471_v33, %v166_v40  ;;  %v241_v43 = vsel %vm199_vm1, %v137_v36, %v220_v38  ;;  %v246_v44 = vsel %vm204_vm2, %v152_v37, %v225_v39  ;;  %v185_v45 = vadd.f32 %v471_v33, %v184_v41 }
  0x98   :  { %262 = vst.msk [vmem:[%s581_s3] sm:$0xff] %vm55_vm0, %v241_v43 }
  0x99   :  { %vm209_vm3 = vcmp.ge.f32.partialorder %v167_v42, 0.0  ;;  %v230_v46 = vmul.f32 0.01, %v167_v42  ;;  %267 = vst.msk [vmem:[%s581_s3 + $0x28] sm:$0xff] %vm55_vm0, %v246_v44  ;;  %vm215_vm4 = vcmp.ge.f32.partialorder %v185_v45, 0.0 }
  0x9a   :  { %v236_v47 = vmul.f32 0.01, %v185_v45  ;;  %v139_v48 = vpop.f32.mrf.mxu0  ;;  %v154_v49 = vpop.f32.mrf.mxu1 }
  0x9b   :  { %v251_v50 = vsel %vm209_vm3, %v167_v42, %v230_v46  ;;  %v140_v51 = vadd.f32 %v471_v33, %v139_v48  ;;  %v155_v52 = vadd.f32 %v471_v33, %v154_v49 }
  0x9c   :  { %272 = vst.msk [vmem:[%s581_s3 + $0x50] sm:$0xff] %vm55_vm0, %v251_v50  ;;  %v257_v53 = vsel %vm215_vm4, %v185_v45, %v236_v47 }
  0x9d   :  { %278 = vst.msk [vmem:[%s581_s3 + $0x80] sm:$0xff] %vm55_vm0, %v257_v53  ;;  %vm200_vm5 = vcmp.ge.f32.partialorder %v140_v51, 0.0  ;;  %v221_v54 = vmul.f32 0.01, %v140_v51  ;;  %vm205_vm6 = vcmp.ge.f32.partialorder %v155_v52, 0.0 }
  0x9e   :  { %v169_v55 = vpop.f32.mrf.mxu2  ;;  %v226_v56 = vmul.f32 0.01, %v155_v52  ;;  %v187_v57 = vpop.f32.mrf.mxu3 }
  0x9f   :  { %v170_v58 = vadd.f32 %v471_v33, %v169_v55  ;;  %v242_v59 = vsel %vm200_vm5, %v140_v51, %v221_v54  ;;  %v188_v60 = vadd.f32 %v471_v33, %v187_v57 }
  0xa0   :  { %263 = vst.msk [vmem:[%s581_s3 + $0x8] sm:$0xff] %vm55_vm0, %v242_v59  ;;  %v247_v61 = vsel %vm205_vm6, %v155_v52, %v226_v56 }
  0xa1   :  { %vm210_vm7 = vcmp.ge.f32.partialorder %v170_v58, 0.0  ;;  %v231_v62 = vmul.f32 0.01, %v170_v58  ;;  %268 = vst.msk [vmem:[%s581_s3 + $0x30] sm:$0xff] %vm55_vm0, %v247_v61  ;;  %vm216_vm8 = vcmp.ge.f32.partialorder %v188_v60, 0.0 }
  0xa2   :  { %v237_v63 = vmul.f32 0.01, %v188_v60  ;;  %v142_v0 = vpop.f32.mrf.mxu0  ;;  %v157_v1 = vpop.f32.mrf.mxu1 }
  0xa3   :  { %v252_v2 = vsel %vm210_vm7, %v170_v58, %v231_v62  ;;  %v143_v3 = vadd.f32 %v471_v33, %v142_v0  ;;  %v158_v4 = vadd.f32 %v471_v33, %v157_v1 }
  0xa4   :  { %273 = vst.msk [vmem:[%s581_s3 + $0x58] sm:$0xff] %vm55_vm0, %v252_v2  ;;  %v258_v5 = vsel %vm216_vm8, %v188_v60, %v237_v63 }
  0xa5   :  { %279 = vst.msk [vmem:[%s581_s3 + $0x88] sm:$0xff] %vm55_vm0, %v258_v5  ;;  %vm201_vm9 = vcmp.ge.f32.partialorder %v143_v3, 0.0  ;;  %v222_v6 = vmul.f32 0.01, %v143_v3  ;;  %vm206_vm10 = vcmp.ge.f32.partialorder %v158_v4, 0.0 }
  0xa6   :  { %v172_v7 = vpop.f32.mrf.mxu2  ;;  %v227_v8 = vmul.f32 0.01, %v158_v4  ;;  %v190_v9 = vpop.f32.mrf.mxu3 }
  0xa7   :  { %v173_v10 = vadd.f32 %v471_v33, %v172_v7  ;;  %v243_v11 = vsel %vm201_vm9, %v143_v3, %v222_v6  ;;  %v191_v12 = vadd.f32 %v471_v33, %v190_v9 }
  0xa8   :  { %264 = vst.msk [vmem:[%s581_s3 + $0x10] sm:$0xff] %vm55_vm0, %v243_v11  ;;  %v248_v13 = vsel %vm206_vm10, %v158_v4, %v227_v8 }
  0xa9   :  { %vm211_vm11 = vcmp.ge.f32.partialorder %v173_v10, 0.0  ;;  %v232_v14 = vmul.f32 0.01, %v173_v10  ;;  %269 = vst.msk [vmem:[%s581_s3 + $0x38] sm:$0xff] %vm55_vm0, %v248_v13  ;;  %vm217_vm12 = vcmp.ge.f32.partialorder %v191_v12, 0.0 }
  0xaa   :  { %v238_v15 = vmul.f32 0.01, %v191_v12  ;;  %v145_v16 = vpop.f32.mrf.mxu0  ;;  %v160_v17 = vpop.f32.mrf.mxu1 }
  0xab   :  { %v253_v18 = vsel %vm211_vm11, %v173_v10, %v232_v14  ;;  %v146_v19 = vadd.f32 %v471_v33, %v145_v16  ;;  %v161_v20 = vadd.f32 %v471_v33, %v160_v17 }
  0xac   :  { %274 = vst.msk [vmem:[%s581_s3 + $0x60] sm:$0xff] %vm55_vm0, %v253_v18  ;;  %v259_v21 = vsel %vm217_vm12, %v191_v12, %v238_v15 }
  0xad   :  { %280 = vst.msk [vmem:[%s581_s3 + $0x90] sm:$0xff] %vm55_vm0, %v259_v21  ;;  %vm202_vm13 = vcmp.ge.f32.partialorder %v146_v19, 0.0  ;;  %v223_v22 = vmul.f32 0.01, %v146_v19  ;;  %vm207_vm14 = vcmp.ge.f32.partialorder %v161_v20, 0.0 }
  0xae   :  { %v175_v23 = vpop.f32.mrf.mxu2  ;;  %v228_v24 = vmul.f32 0.01, %v161_v20  ;;  %v193_v25 = vpop.f32.mrf.mxu3 }
  0xaf   :  { %v176_v26 = vadd.f32 %v471_v33, %v175_v23  ;;  %v244_v27 = vsel %vm202_vm13, %v146_v19, %v223_v22  ;;  %v194_v28 = vadd.f32 %v471_v33, %v193_v25 }
  0xb0   :  { %265 = vst.msk [vmem:[%s581_s3 + $0x18] sm:$0xff] %vm55_vm0, %v244_v27  ;;  %v249_v29 = vsel %vm207_vm14, %v161_v20, %v228_v24 }
  0xb1   :  { %vm212_vm15 = vcmp.ge.f32.partialorder %v176_v26, 0.0  ;;  %v233_v30 = vmul.f32 0.01, %v176_v26  ;;  %270 = vst.msk [vmem:[%s581_s3 + $0x40] sm:$0xff] %vm55_vm0, %v249_v29  ;;  %vm218_vm1 = vcmp.ge.f32.partialorder %v194_v28, 0.0 }
  0xb2   :  { %v239_v31 = vmul.f32 0.01, %v194_v28  ;;  %v148_v32 = vpop.f32.mrf.mxu0  ;;  %v163_v34 = vpop.f32.mrf.mxu1 }
  0xb3   :  { %v254_v35 = vsel %vm212_vm15, %v176_v26, %v233_v30  ;;  %v149_v36 = vadd.f32 %v471_v33, %v148_v32  ;;  %v164_v37 = vadd.f32 %v471_v33, %v163_v34 }
  0xb4   :  { %275 = vst.msk [vmem:[%s581_s3 + $0x68] sm:$0xff] %vm55_vm0, %v254_v35  ;;  %v260_v38 = vsel %vm218_vm1, %v194_v28, %v239_v31 }
  0xb5   :  { %281 = vst.msk [vmem:[%s581_s3 + $0x98] sm:$0xff] %vm55_vm0, %v260_v38  ;;  %vm203_vm2 = vcmp.ge.f32.partialorder %v149_v36, 0.0  ;;  %v224_v39 = vmul.f32 0.01, %v149_v36  ;;  %vm208_vm3 = vcmp.ge.f32.partialorder %v164_v37, 0.0 }
  0xb6   :  { %v178_v40 = vpop.f32.mrf.mxu2  ;;  %v229_v41 = vmul.f32 0.01, %v164_v37  ;;  %v196_v42 = vpop.f32.mrf.mxu3 }
  0xb7   :  { %v179_v43 = vadd.f32 %v471_v33, %v178_v40  ;;  %v245_v44 = vsel %vm203_vm2, %v149_v36, %v224_v39  ;;  %v197_v45 = vadd.f32 %v471_v33, %v196_v42 }
  0xb8   :  { %266 = vst.msk [vmem:[%s581_s3 + $0x20] sm:$0xff] %vm55_vm0, %v245_v44  ;;  %v250_v46 = vsel %vm208_vm3, %v164_v37, %v229_v41 }
  0xb9   :  { %vm213_vm4 = vcmp.ge.f32.partialorder %v179_v43, 0.0  ;;  %v234_v47 = vmul.f32 0.01, %v179_v43  ;;  %271 = vst.msk [vmem:[%s581_s3 + $0x48] sm:$0xff] %vm55_vm0, %v250_v46  ;;  %vm219_vm5 = vcmp.ge.f32.partialorder %v197_v45, 0.0 }
  0xba   :  { %v240_v48 = vmul.f32 0.01, %v197_v45 }
  0xbb   :  { %v255_v49 = vsel %vm213_vm4, %v179_v43, %v234_v47 }
  0xbc   :  { %276 = vst.msk [vmem:[%s581_s3 + $0x70] sm:$0xff] %vm55_vm0, %v255_v49  ;;  %v261_v50 = vsel %vm219_vm5, %v197_v45, %v240_v48 }
  0xbd   :  { %282 = vst.msk [vmem:[%s581_s3 + $0xa0] sm:$0xff] %vm55_vm0, %v261_v50 }
  0xbe   :  { %v181_v51 = vpop.f32.mrf.mxu2 }
  0xbf   :  { %v182_v52 = vadd.f32 %v471_v33, %v181_v51 }
  0xc1   :  { %vm214_vm6 = vcmp.ge.f32.partialorder %v182_v52, 0.0  ;;  %v235_v53 = vmul.f32 0.01, %v182_v52 }
  0xc3   :  { %v256_v54 = vsel %vm214_vm6, %v182_v52, %v235_v53 }
  0xc4   :  { %277 = vst.msk [vmem:[%s581_s3 + $0x78] sm:$0xff] %vm55_vm0, %v256_v54 }

// kernel: rnd_forward.4
= control target key start
LH: loop header
LB: loop body
LE: loop exit
PB: predicated region body
PF: predicated region fallthrough
CT: control target
= control target key end

     0   :  { %vm227_vm0 = vcmask 523264   ;;  %s1264_s1 = inlined_call_operand.vmem [shape: bf16[576,128], index: 1, kind: input, shape index: {}]   ;;  %s1265_s0 = inlined_call_operand.vmem [shape: f32[104,576], index: 0, kind: input, shape index: {}]   ;;  %s1266_s2 = inlined_call_operand.vmem [shape: f32[1,128], index: 2, kind: input, shape index: {}]   ;;  %s1267_s3 = inlined_call_operand.vmem [shape: f32[104,128], index: 3, kind: output, shape index: {}]  }
   0x1   :  { %v766_v0 = vld [vmem:[%s1264_s1 + $0x38] sm:$0xff]   ;;  %v765_v1 = vld [vmem:[%s1264_s1 + $0x30] sm:$0xff]   ;;  %v764_v5 = vld [vmem:[%s1264_s1 + $0x28] sm:$0xff]  }
   0x2   :  { %v647_v2 = vunpack.c.h.bf16 %v766_v0  ;;  %v646_v3 = vunpack.c.l.bf16 %v766_v0  ;;  %v643_v4 = vunpack.c.h.bf16 %v765_v1  ;;  %v642_v6 = vunpack.c.l.bf16 %v765_v1  ;;  %v763_v8 = vld [vmem:[%s1264_s1 + $0x20] sm:$0xff]   ;;  %v762_v11 = vld [vmem:[%s1264_s1 + $0x18] sm:$0xff]   ;;  %v761_v14 = vld [vmem:[%s1264_s1 + $0x10] sm:$0xff]  }
   0x3   :  { %v639_v7 = vunpack.c.h.bf16 %v764_v5  ;;  %v638_v9 = vunpack.c.l.bf16 %v764_v5  ;;  %v635_v10 = vunpack.c.h.bf16 %v763_v8  ;;  %v634_v12 = vunpack.c.l.bf16 %v763_v8  ;;  %v760_v17 = vld [vmem:[%s1264_s1 + $0x8] sm:$0xff]   ;;  %v617_v20 = vld [vmem:[%s1264_s1] sm:$0xff]   ;;  %v782_v23 = vld [vmem:[%s1264_s1 + $0xb8] sm:$0xff]  }
   0x4   :  { %795 = vmatpush.msra.mxu1 %v647_v2  ;;  %796 = vmatpush.msra.mxu2 %v647_v2  ;;  %v631_v13 = vunpack.c.h.bf16 %v762_v11  ;;  %v630_v15 = vunpack.c.l.bf16 %v762_v11  ;;  %v627_v16 = vunpack.c.h.bf16 %v761_v14  ;;  %v626_v18 = vunpack.c.l.bf16 %v761_v14  ;;  %v774_v24 = vld [vmem:[%s1264_s1 + $0x78] sm:$0xff]   ;;  %v34_v26 = vld [vmem:[%s1265_s0 + $0xa0] sm:$0xff]  ;;  %v781_v31 = vld [vmem:[%s1264_s1 + $0xb0] sm:$0xff]  }
   0x5   :  { %797 = vmatpush.msra.mxu3 %v647_v2  ;;  %267 = vmatpush.msra.mxu0 %v647_v2  ;;  %v623_v19 = vunpack.c.h.bf16 %v760_v17  ;;  %v622_v21 = vunpack.c.l.bf16 %v760_v17  ;;  %v619_v22 = vunpack.c.h.bf16 %v617_v20  ;;  %v618_v25 = vunpack.c.l.bf16 %v617_v20  ;;  %v54_v27 = vld [vmem:[%s1265_s0 + $0x140] sm:$0xff]  ;;  %v790_v30 = vld [vmem:[%s1264_s1 + $0xf8] sm:$0xff]   ;;  %v773_v32 = vld [vmem:[%s1264_s1 + $0x70] sm:$0xff]  }
   0x6   :  { %798 = vmatpush.msra.mxu1 %v646_v3  ;;  %799 = vmatpush.msra.mxu2 %v646_v3  ;;  %v711_v28 = vunpack.c.h.bf16 %v782_v23  ;;  %v679_v29 = vunpack.c.h.bf16 %v774_v24  ;;  %v710_v33 = vunpack.c.l.bf16 %v782_v23  ;;  %v678_v34 = vunpack.c.l.bf16 %v774_v24  ;;  %v794_v35 = vld [vmem:[%s1264_s1 + $0x118] sm:$0xff]   ;;  %v789_v39 = vld [vmem:[%s1264_s1 + $0xf0] sm:$0xff]   ;;  %v14_v40 = vld [vmem:[%s1265_s0] sm:$0xff] }
   0x7   :  { %800 = vmatpush.msra.mxu3 %v646_v3  ;;  %268 = vmatpush.msra.mxu0 %v646_v3  ;;  %v743_v36 = vunpack.c.h.bf16 %v790_v30  ;;  %v707_v37 = vunpack.c.h.bf16 %v781_v31  ;;  %v675_v38 = vunpack.c.h.bf16 %v773_v32  ;;  %v742_v41 = vunpack.c.l.bf16 %v790_v30  ;;  %v772_v42 = vld [vmem:[%s1264_s1 + $0x68] sm:$0xff]   ;;  %v771_v54 = vld [vmem:[%s1264_s1 + $0x60] sm:$0xff]   ;;  %v793_v60 = vld [vmem:[%s1264_s1 + $0x110] sm:$0xff]  }
   0x8   :  { %801 = vmatpush.msra.mxu1 %v643_v4  ;;  %802 = vmatpush.msra.mxu2 %v643_v4  ;;  %v759_v43 = vunpack.c.h.bf16 %v794_v35  ;;  %v706_v44 = vunpack.c.l.bf16 %v781_v31  ;;  %v674_v45 = vunpack.c.l.bf16 %v773_v32  ;;  %v780_v46 = vld [vmem:[%s1264_s1 + $0xa8] sm:$0xff]   ;;  %v739_v47 = vunpack.c.h.bf16 %v789_v39  ;;  %v779_v56 = vld [vmem:[%s1264_s1 + $0xa0] sm:$0xff]   ;;  %v778_v3 = vld [vmem:[%s1264_s1 + $0x98] sm:$0xff]  }
   0x9   :  { %803 = vmatpush.msra.mxu3 %v643_v4  ;;  %269 = vmatpush.msra.mxu0 %v643_v4  ;;  %v39_v48 = vld [vmem:[%s1265_s0 + $0xc8] sm:$0xff]  ;;  %v671_v49 = vunpack.c.h.bf16 %v772_v42  ;;  %v703_v52 = vunpack.c.h.bf16 %v780_v46  ;;  %v738_v53 = vunpack.c.l.bf16 %v789_v39  ;;  %v670_v55 = vunpack.c.l.bf16 %v772_v42  ;;  %v787_v62 = vld [vmem:[%s1264_s1 + $0xe0] sm:$0xff]   ;;  %v770_v4 = vld [vmem:[%s1264_s1 + $0x58] sm:$0xff]  }
   0xa   :  { %804 = vmatpush.msra.mxu1 %v642_v6  ;;  %805 = vmatpush.msra.mxu2 %v642_v6  ;;  %v788_v50 = vld [vmem:[%s1264_s1 + $0xe8] sm:$0xff]   ;;  %v758_v57 = vunpack.c.l.bf16 %v794_v35  ;;  %v702_v58 = vunpack.c.l.bf16 %v780_v46  ;;  %v667_v61 = vunpack.c.h.bf16 %v771_v54  ;;  %v699_v63 = vunpack.c.h.bf16 %v779_v56  ;;  %v44_v8 = vld [vmem:[%s1265_s0 + $0xf0] sm:$0xff]  ;;  %v49_v32 = vld [vmem:[%s1265_s0 + $0x118] sm:$0xff] }
   0xb   :  { %806 = vmatpush.msra.mxu3 %v642_v6  ;;  %270 = vmatpush.msra.mxu0 %v642_v6  ;;  %v59_v51 = vld [vmem:[%s1265_s0 + $0x168] sm:$0xff]  ;;  %v735_v59 = vunpack.c.h.bf16 %v788_v50  ;;  %v734_v0 = vunpack.c.l.bf16 %v788_v50  ;;  %v666_v2 = vunpack.c.l.bf16 %v771_v54  ;;  %v755_v5 = vunpack.c.h.bf16 %v793_v60  ;;  %v777_v14 = vld [vmem:[%s1264_s1 + $0x90] sm:$0xff]   ;;  %v69_v35 = vld [vmem:[%s1265_s0 + $0x1b8] sm:$0xff] }
   0xc   :  { %807 = vmatpush.msra.mxu1 %v639_v7  ;;  %808 = vmatpush.msra.mxu2 %v639_v7  ;;  %v19_v1 = vld [vmem:[%s1265_s0 + $0x28] sm:$0xff]  ;;  %v698_v6 = vunpack.c.l.bf16 %v779_v56  ;;  %v663_v11 = vunpack.c.h.bf16 %v770_v4  ;;  %v694_v17 = vunpack.c.l.bf16 %v778_v3  ;;  %v785_v23 = vld [vmem:[%s1264_s1 + $0xd0] sm:$0xff]   ;;  %v783_v46 = vld [vmem:[%s1264_s1 + $0xc0] sm:$0xff]  }
   0xd   :  { %809 = vmatpush.msra.mxu3 %v639_v7  ;;  %271 = vmatpush.msra.mxu0 %v639_v7  ;;  %v731_v7 = vunpack.c.h.bf16 %v787_v62  ;;  %v24_v24 = vld [vmem:[%s1265_s0 + $0x50] sm:$0xff]  ;;  %v776_v30 = vld [vmem:[%s1264_s1 + $0x88] sm:$0xff]   ;;  %v723_v31 = vunpack.c.h.bf16 %v785_v23  ;;  %v791_v50 = vld [vmem:[%s1264_s1 + $0x100] sm:$0xff]   ;;  %v714_v56 = vunpack.c.l.bf16 %v783_v46 }
   0xe   :  { %810 = vmatpush.msra.mxu1 %v638_v9  ;;  %811 = vmatpush.msra.mxu2 %v638_v9  ;;  %v686_v42 = vunpack.c.l.bf16 %v776_v30  ;;  %v15_v54 = vld [vmem:[%s1265_s0 + $0x8] sm:$0xff] }
   0xf   :  { %812 = vmatpush.msra.mxu3 %v638_v9  ;;  %272 = vmatpush.msra.mxu0 %v638_v9  ;;  %v64_v9 = vld [vmem:[%s1265_s0 + $0x190] sm:$0xff] }
  0x10   :  { %813 = vmatpush.msra.mxu1 %v635_v10  ;;  %814 = vmatpush.msra.mxu2 %v635_v10 }
  0x11   :  { %815 = vmatpush.msra.mxu3 %v635_v10  ;;  %273 = vmatpush.msra.mxu0 %v635_v10  ;;  %v695_v10 = vunpack.c.h.bf16 %v778_v3  ;;  %v27_v3 = vld [vmem:[%s1265_s0 + $0x68] sm:$0xff] }
  0x12   :  { %816 = vmatpush.msra.mxu1 %v634_v12  ;;  %817 = vmatpush.msra.mxu2 %v634_v12 }
  0x13   :  { %818 = vmatpush.msra.mxu3 %v634_v12  ;;  %274 = vmatpush.msra.mxu0 %v634_v12  ;;  %v786_v12 = vld [vmem:[%s1264_s1 + $0xd8] sm:$0xff]  }
  0x14   :  { %819 = vmatpush.msra.mxu1 %v631_v13  ;;  %820 = vmatpush.msra.mxu2 %v631_v13  ;;  %v727_v20 = vunpack.c.h.bf16 %v786_v12 }
  0x15   :  { %821 = vmatpush.msra.mxu3 %v631_v13  ;;  %275 = vmatpush.msra.mxu0 %v631_v13  ;;  %v730_v13 = vunpack.c.l.bf16 %v787_v62  ;;  %v21_v62 = vld [vmem:[%s1265_s0 + $0x38] sm:$0xff] }
  0x16   :  { %822 = vmatpush.msra.mxu1 %v630_v15  ;;  %823 = vmatpush.msra.mxu2 %v630_v15 }
  0x17   :  { %824 = vmatpush.msra.mxu3 %v630_v15  ;;  %276 = vmatpush.msra.mxu0 %v630_v15  ;;  %v769_v15 = vld [vmem:[%s1264_s1 + $0x50] sm:$0xff]  }
  0x18   :  { %825 = vmatpush.msra.mxu1 %v627_v16  ;;  %826 = vmatpush.msra.mxu2 %v627_v16 }
  0x19   :  { %827 = vmatpush.msra.mxu3 %v627_v16  ;;  %277 = vmatpush.msra.mxu0 %v627_v16  ;;  %v754_v16 = vunpack.c.l.bf16 %v793_v60  ;;  %v18_v60 = vld [vmem:[%s1265_s0 + $0x20] sm:$0xff] }
  0x1a   :  { %828 = vmatpush.msra.mxu1 %v626_v18  ;;  %829 = vmatpush.msra.mxu2 %v626_v18 }
  0x1b   :  { %830 = vmatpush.msra.mxu3 %v626_v18  ;;  %278 = vmatpush.msra.mxu0 %v626_v18  ;;  %v662_v18 = vunpack.c.l.bf16 %v770_v4  ;;  %v28_v4 = vld [vmem:[%s1265_s0 + $0x70] sm:$0xff] }
  0x1c   :  { %831 = vmatpush.msra.mxu1 %v623_v19  ;;  %832 = vmatpush.msra.mxu2 %v623_v19 }
  0x1d   :  { %833 = vmatpush.msra.mxu3 %v623_v19  ;;  %279 = vmatpush.msra.mxu0 %v623_v19  ;;  %v792_v19 = vld [vmem:[%s1264_s1 + $0x108] sm:$0xff]  }
  0x1e   :  { %834 = vmatpush.msra.mxu1 %v622_v21  ;;  %835 = vmatpush.msra.mxu2 %v622_v21 }
  0x1f   :  { %836 = vmatpush.msra.mxu3 %v622_v21  ;;  %280 = vmatpush.msra.mxu0 %v622_v21  ;;  %v691_v21 = vunpack.c.h.bf16 %v777_v14 }
  0x20   :  { %837 = vmatpush.msra.mxu1 %v619_v22  ;;  %838 = vmatpush.msra.mxu2 %v619_v22 }
  0x21   :  { %839 = vmatpush.msra.mxu3 %v619_v22  ;;  %281 = vmatpush.msra.mxu0 %v619_v22  ;;  %v659_v22 = vunpack.c.h.bf16 %v769_v15 }
  0x22   :  { %840 = vmatpush.msra.mxu1 %v618_v25  ;;  %841 = vmatpush.msra.mxu2 %v618_v25 }
  0x23   :  { %295 = vmatmul.f32.vlgmr.msra.gmra.mxu1 %v34_v26  ;;  %307 = vmatmul.f32.vlgmr.msra.gmra.mxu2 %v54_v27  ;;  %v768_v26 = vld [vmem:[%s1264_s1 + $0x48] sm:$0xff]   ;;  %v751_v27 = vunpack.c.h.bf16 %v792_v19 }
  0x24   :  { %379 = vmatpush.msrb.mxu2 %v711_v28  ;;  %323 = vmatpush.msrb.mxu1 %v679_v29  ;;  %v690_v28 = vunpack.c.l.bf16 %v777_v14  ;;  %v658_v29 = vunpack.c.l.bf16 %v769_v15  ;;  %v654_v39 = vunpack.c.l.bf16 %v768_v26  ;;  %v41_v14 = vld [vmem:[%s1265_s0 + $0xd8] sm:$0xff]  ;;  %v42_v15 = vld [vmem:[%s1265_s0 + $0xe0] sm:$0xff] }
  0x25   :  { %842 = vmatpush.msra.mxu3 %v618_v25  ;;  %282 = vmatpush.msra.mxu0 %v618_v25  ;;  %v726_v25 = vunpack.c.l.bf16 %v786_v12  ;;  %v38_v12 = vld [vmem:[%s1265_s0 + $0xc0] sm:$0xff] }
  0x26   :  { %380 = vmatpush.msrb.mxu2 %v710_v33  ;;  %324 = vmatpush.msrb.mxu1 %v678_v34  ;;  %v655_v33 = vunpack.c.h.bf16 %v768_v26  ;;  %v784_v34 = vld [vmem:[%s1264_s1 + $0xc8] sm:$0xff]   ;;  %v56_v26 = vld [vmem:[%s1265_s0 + $0x150] sm:$0xff] }
  0x27   :  { %435 = vmatpush.msrb.mxu3 %v743_v36  ;;  %283 = vmatmul.f32.vlgmr.msra.gmra.mxu0 %v14_v40  ;;  %v687_v36 = vunpack.c.h.bf16 %v776_v30  ;;  %v775_v40 = vld [vmem:[%s1264_s1 + $0x80] sm:$0xff]   ;;  %v61_v30 = vld [vmem:[%s1265_s0 + $0x178] sm:$0xff] }
  0x28   :  { %381 = vmatpush.msrb.mxu2 %v707_v37  ;;  %325 = vmatpush.msrb.mxu1 %v675_v38  ;;  %v722_v37 = vunpack.c.l.bf16 %v785_v23  ;;  %v767_v38 = vld [vmem:[%s1264_s1 + $0x40] sm:$0xff]   ;;  %v52_v23 = vld [vmem:[%s1265_s0 + $0x130] sm:$0xff] }
  0x29   :  { %436 = vmatpush.msrb.mxu3 %v742_v41  ;;  %499 = vmatpush.msrb.mxu0 %v759_v43  ;;  %v74_v41 = vld [vmem:[%s1265_s0 + $0x1e0] sm:$0xff]  ;;  %v719_v43 = vunpack.c.h.bf16 %v784_v34 }
  0x2a   :  { %382 = vmatpush.msrb.mxu2 %v706_v44  ;;  %326 = vmatpush.msrb.mxu1 %v674_v45  ;;  %v651_v44 = vunpack.c.h.bf16 %v767_v38  ;;  %v750_v45 = vunpack.c.l.bf16 %v792_v19  ;;  %v47_v19 = vld [vmem:[%s1265_s0 + $0x108] sm:$0xff] }
  0x2b   :  { %437 = vmatpush.msrb.mxu3 %v739_v47  ;;  %298 = vmatmul.f32.gmra.mxu1 %v39_v48  ;;  %v683_v47 = vunpack.c.h.bf16 %v775_v40  ;;  %v718_v48 = vunpack.c.l.bf16 %v784_v34  ;;  %v66_v34 = vld [vmem:[%s1265_s0 + $0x1a0] sm:$0xff] }
  0x2c   :  { %310 = vmatmul.f32.gmra.mxu2 %v59_v51  ;;  %327 = vmatpush.msrb.mxu1 %v671_v49  ;;  %v650_v49 = vunpack.c.l.bf16 %v767_v38  ;;  %v682_v51 = vunpack.c.l.bf16 %v775_v40  ;;  %v71_v38 = vld [vmem:[%s1265_s0 + $0x1c8] sm:$0xff] }
  0x2d   :  { %383 = vmatpush.msrb.mxu2 %v703_v52  ;;  %438 = vmatpush.msrb.mxu3 %v738_v53  ;;  %v715_v52 = vunpack.c.h.bf16 %v783_v46  ;;  %v29_v53 = vld [vmem:[%s1265_s0 + $0x78] sm:$0xff]  ;;  %v1181_v46 = vld [vmem:[%s1266_s2] ss:$0 sm:$0xff] }
  0x2e   :  { %328 = vmatpush.msrb.mxu1 %v670_v55  ;;  %500 = vmatpush.msrb.mxu0 %v758_v57  ;;  %v16_v55 = vld [vmem:[%s1265_s0 + $0x10] sm:$0xff]  ;;  %v747_v57 = vunpack.c.h.bf16 %v791_v50 }
  0x2f   :  { %384 = vmatpush.msrb.mxu2 %v702_v58  ;;  %439 = vmatpush.msrb.mxu3 %v735_v59  ;;  %v17_v58 = vld [vmem:[%s1265_s0 + $0x18] sm:$0xff]  ;;  %v746_v59 = vunpack.c.l.bf16 %v791_v50  ;;  %v78_v50 = vld [vmem:[%s1265_s0 + $0x200] sm:$0xff] }
  0x30   :  { %329 = vmatpush.msrb.mxu1 %v667_v61  ;;  %286 = vmatmul.f32.gmra.mxu0 %v19_v1  ;;  %v20_v61 = vld [vmem:[%s1265_s0 + $0x30] sm:$0xff]  ;;  %v25_v1 = vld [vmem:[%s1265_s0 + $0x58] sm:$0xff] }
  0x31   :  { %385 = vmatpush.msrb.mxu2 %v699_v63  ;;  %440 = vmatpush.msrb.mxu3 %v734_v0  ;;  %v22_v63 = vld [vmem:[%s1265_s0 + $0x40] sm:$0xff]  ;;  %v23_v0 = vld [vmem:[%s1265_s0 + $0x48] sm:$0xff] }
  0x32   :  { %330 = vmatpush.msrb.mxu1 %v666_v2  ;;  %501 = vmatpush.msrb.mxu0 %v755_v5  ;;  %v26_v2 = vld [vmem:[%s1265_s0 + $0x60] sm:$0xff] }
  0x33   :  { %386 = vmatpush.msrb.mxu2 %v698_v6  ;;  %441 = vmatpush.msrb.mxu3 %v731_v7  ;;  %v30_v5 = vld [vmem:[%s1265_s0 + $0x80] sm:$0xff]  ;;  %v31_v6 = vld [vmem:[%s1265_s0 + $0x88] sm:$0xff]  ;;  %v32_v7 = vld [vmem:[%s1265_s0 + $0x90] sm:$0xff] }
  0x34   :  { %301 = vmatmul.f32.gmra.mxu1 %v44_v8  ;;  %313 = vmatmul.f32.gmra.mxu2 %v64_v9  ;;  %v33_v8 = vld [vmem:[%s1265_s0 + $0x98] sm:$0xff]  ;;  %v35_v9 = vld [vmem:[%s1265_s0 + $0xa8] sm:$0xff] }
  0x35   :  { %387 = vmatpush.msrb.mxu2 %v695_v10  ;;  %331 = vmatpush.msrb.mxu1 %v663_v11  ;;  %v36_v10 = vld [vmem:[%s1265_s0 + $0xb0] sm:$0xff]  ;;  %v37_v11 = vld [vmem:[%s1265_s0 + $0xb8] sm:$0xff] }
  0x36   :  { %442 = vmatpush.msrb.mxu3 %v730_v13  ;;  %502 = vmatpush.msrb.mxu0 %v754_v16  ;;  %v40_v13 = vld [vmem:[%s1265_s0 + $0xd0] sm:$0xff]  ;;  %v43_v16 = vld [vmem:[%s1265_s0 + $0xe8] sm:$0xff] }
  0x37   :  { %388 = vmatpush.msrb.mxu2 %v694_v17  ;;  %332 = vmatpush.msrb.mxu1 %v662_v18  ;;  %v45_v17 = vld [vmem:[%s1265_s0 + $0xf8] sm:$0xff]  ;;  %v46_v18 = vld [vmem:[%s1265_s0 + $0x100] sm:$0xff] }
  0x38   :  { %443 = vmatpush.msrb.mxu3 %v727_v20  ;;  %289 = vmatmul.f32.gmra.mxu0 %v24_v24  ;;  %v48_v20 = vld [vmem:[%s1265_s0 + $0x110] sm:$0xff]  ;;  %v53_v24 = vld [vmem:[%s1265_s0 + $0x138] sm:$0xff] }
  0x39   :  { %389 = vmatpush.msrb.mxu2 %v691_v21  ;;  %333 = vmatpush.msrb.mxu1 %v659_v22  ;;  %v50_v21 = vld [vmem:[%s1265_s0 + $0x120] sm:$0xff]  ;;  %v51_v22 = vld [vmem:[%s1265_s0 + $0x128] sm:$0xff] }
  0x3a   :  { %444 = vmatpush.msrb.mxu3 %v726_v25  ;;  %503 = vmatpush.msrb.mxu0 %v751_v27  ;;  %v55_v25 = vld [vmem:[%s1265_s0 + $0x148] sm:$0xff]  ;;  %v57_v27 = vld [vmem:[%s1265_s0 + $0x158] sm:$0xff] }
  0x3b   :  { %390 = vmatpush.msrb.mxu2 %v690_v28  ;;  %334 = vmatpush.msrb.mxu1 %v658_v29  ;;  %v58_v28 = vld [vmem:[%s1265_s0 + $0x160] sm:$0xff]  ;;  %v60_v29 = vld [vmem:[%s1265_s0 + $0x170] sm:$0xff] }
  0x3c   :  { %445 = vmatpush.msrb.mxu3 %v723_v31  ;;  %304 = vmatmul.f32.gmra.mxu1 %v49_v32  ;;  %v62_v31 = vld [vmem:[%s1265_s0 + $0x180] sm:$0xff]  ;;  %v63_v32 = vld [vmem:[%s1265_s0 + $0x188] sm:$0xff] }
  0x3d   :  { %316 = vmatmul.f32.gmra.mxu2 %v69_v35  ;;  %335 = vmatpush.msrb.mxu1 %v655_v33  ;;  %v65_v33 = vld [vmem:[%s1265_s0 + $0x198] sm:$0xff]  ;;  %v67_v35 = vld [vmem:[%s1265_s0 + $0x1a8] sm:$0xff] }
  0x3e   :  { %391 = vmatpush.msrb.mxu2 %v687_v36  ;;  %446 = vmatpush.msrb.mxu3 %v722_v37  ;;  %v68_v36 = vld [vmem:[%s1265_s0 + $0x1b0] sm:$0xff]  ;;  %v70_v37 = vld [vmem:[%s1265_s0 + $0x1c0] sm:$0xff] }
  0x3f   :  { %319 = vmatmul.f32.vlgmr.msra.gmra.mxu3 %v74_v41  ;;  %336 = vmatpush.msrb.mxu1 %v654_v39  ;;  %v72_v39 = vld [vmem:[%s1265_s0 + $0x1d0] sm:$0xff]  ;;  %v73_v41 = vld [vmem:[%s1265_s0 + $0x1d8] sm:$0xff] }
  0x40   :  { %392 = vmatpush.msrb.mxu2 %v686_v42  ;;  %447 = vmatpush.msrb.mxu3 %v719_v43  ;;  %v75_v42 = vld [vmem:[%s1265_s0 + $0x1e8] sm:$0xff]  ;;  %v76_v43 = vld [vmem:[%s1265_s0 + $0x1f0] sm:$0xff] }
  0x41   :  { %337 = vmatpush.msrb.mxu1 %v651_v44  ;;  %504 = vmatpush.msrb.mxu0 %v750_v45  ;;  %v77_v44 = vld [vmem:[%s1265_s0 + $0x1f8] sm:$0xff] }
  0x42   :  { %393 = vmatpush.msrb.mxu2 %v683_v47  ;;  %448 = vmatpush.msrb.mxu3 %v718_v48 }
  0x43   :  { %338 = vmatpush.msrb.mxu1 %v650_v49  ;;  %292 = vmatmul.f32.gmra.mxu0 %v29_v53 }
  0x44   :  { %394 = vmatpush.msrb.mxu2 %v682_v51  ;;  %449 = vmatpush.msrb.mxu3 %v715_v52 }
  0x45   :  { %339 = vmatmul.f32.vlgmr.msrb.gmra.mxu1 %v15_v54  ;;  %395 = vmatmul.f32.vlgmr.msrb.gmra.mxu2 %v16_v55 }
  0x46   :  { %450 = vmatpush.msrb.mxu3 %v714_v56  ;;  %505 = vmatpush.msrb.mxu0 %v747_v57 }
  0x47   :  { %451 = vmatmul.f32.vlgmr.msrb.gmra.mxu3 %v17_v58 }
  0x48   :  { %506 = vmatpush.msrb.mxu0 %v746_v59 }
  0x4b   :  { %603 = vmatmul.msk.f32.vlgmr.msrb.gmra.mxu0 %vm227_vm0, %v18_v60 }
  0x4d   :  { %342 = vmatmul.f32.gmra.mxu1 %v20_v61  ;;  %398 = vmatmul.f32.gmra.mxu2 %v21_v62 }
  0x4f   :  { %454 = vmatmul.f32.gmra.mxu3 %v22_v63 }
  0x53   :  { %604 = vmatmul.msk.f32.gmra.mxu0 %vm227_vm0, %v23_v0 }
  0x55   :  { %345 = vmatmul.f32.gmra.mxu1 %v25_v1  ;;  %401 = vmatmul.f32.gmra.mxu2 %v26_v2 }
  0x57   :  { %457 = vmatmul.f32.gmra.mxu3 %v27_v3 }
  0x5b   :  { %605 = vmatmul.msk.f32.gmra.mxu0 %vm227_vm0, %v28_v4 }
  0x5d   :  { %348 = vmatmul.f32.gmra.mxu1 %v30_v5  ;;  %404 = vmatmul.f32.gmra.mxu2 %v31_v6 }
  0x5f   :  { %460 = vmatmul.f32.gmra.mxu3 %v32_v7 }
  0x63   :  { %606 = vmatmul.msk.f32.gmra.mxu0 %vm227_vm0, %v33_v8 }
  0x65   :  { %351 = vmatmul.f32.gmra.mxu1 %v35_v9  ;;  %407 = vmatmul.f32.gmra.mxu2 %v36_v10 }
  0x67   :  { %463 = vmatmul.f32.gmra.mxu3 %v37_v11 }
  0x6b   :  { %607 = vmatmul.msk.f32.gmra.mxu0 %vm227_vm0, %v38_v12 }
  0x6d   :  { %354 = vmatmul.f32.gmra.mxu1 %v40_v13  ;;  %410 = vmatmul.f32.gmra.mxu2 %v41_v14 }
  0x6f   :  { %466 = vmatmul.f32.gmra.mxu3 %v42_v15 }
  0x73   :  { %608 = vmatmul.msk.f32.gmra.mxu0 %vm227_vm0, %v43_v16 }
  0x75   :  { %357 = vmatmul.f32.gmra.mxu1 %v45_v17  ;;  %413 = vmatmul.f32.gmra.mxu2 %v46_v18 }
  0x77   :  { %469 = vmatmul.f32.gmra.mxu3 %v47_v19 }
  0x7b   :  { %609 = vmatmul.msk.f32.gmra.mxu0 %vm227_vm0, %v48_v20 }
  0x7d   :  { %360 = vmatmul.f32.gmra.mxu1 %v50_v21  ;;  %416 = vmatmul.f32.gmra.mxu2 %v51_v22 }
  0x7f   :  { %472 = vmatmul.f32.gmra.mxu3 %v52_v23 }
  0x83   :  { %610 = vmatmul.msk.f32.gmra.mxu0 %vm227_vm0, %v53_v24 }
  0x85   :  { %363 = vmatmul.f32.gmra.mxu1 %v55_v25  ;;  %419 = vmatmul.f32.gmra.mxu2 %v56_v26 }
  0x87   :  { %475 = vmatmul.f32.gmra.mxu3 %v57_v27 }
  0x8b   :  { %611 = vmatmul.msk.f32.gmra.mxu0 %vm227_vm0, %v58_v28 }
  0x8d   :  { %366 = vmatmul.f32.gmra.mxu1 %v60_v29  ;;  %422 = vmatmul.f32.gmra.mxu2 %v61_v30 }
  0x8f   :  { %478 = vmatmul.f32.gmra.mxu3 %v62_v31 }
  0x93   :  { %612 = vmatmul.msk.f32.gmra.mxu0 %vm227_vm0, %v63_v32 }
  0x95   :  { %369 = vmatmul.f32.gmra.mxu1 %v65_v33  ;;  %425 = vmatmul.f32.gmra.mxu2 %v66_v34 }
  0x97   :  { %481 = vmatmul.f32.gmra.mxu3 %v67_v35 }
  0x9b   :  { %613 = vmatmul.msk.f32.gmra.mxu0 %vm227_vm0, %v68_v36 }
  0x9d   :  { %372 = vmatmul.f32.gmra.mxu1 %v70_v37  ;;  %428 = vmatmul.f32.gmra.mxu2 %v71_v38 }
  0x9f   :  { %484 = vmatmul.f32.gmra.mxu3 %v72_v39 }
  0xa0   :  { %v1163_v40 = vpop.f32.mrf.mxu1 }
  0xa3   :  { %614 = vmatmul.msk.f32.gmra.mxu0 %vm227_vm0, %v73_v41 }
  0xa4   :  { %v284_v45 = vpop.f32.mrf.mxu0 }
  0xa5   :  { %375 = vmatmul.f32.gmra.mxu1 %v75_v42  ;;  %431 = vmatmul.f32.gmra.mxu2 %v76_v43  ;;  %v285_v1 = vadd.f32 %v1181_v46, %v284_v45  ;;  %v297_v43 = vadd.f32 %v1181_v46, %v1163_v40 }
  0xa6   :  { %v308_v47 = vpop.f32.mrf.mxu2 }
  0xa7   :  { %487 = vmatmul.f32.gmra.mxu3 %v77_v44  ;;  %v1184_v48 = vadd.f32 %v1181_v46, %v308_v47 }
  0xa8   :  { %v1186_v49 = vpop.f32.mrf.mxu1 }
  0xab   :  { %615 = vmatmul.msk.f32.gmra.mxu0 %vm227_vm0, %v78_v50 }
  0xad   :  { %v287_v51 = vpop.f32.mrf.mxu0 }
  0xae   :  { %v288_v9 = vadd.f32 %v1181_v46, %v287_v51 }
  0xaf   :  { %v311_v52 = vpop.f32.mrf.mxu2 }
  0xb0   :  { %v1193_v53 = vadd.f32 %v1181_v46, %v311_v52 }
  0xb1   :  { %v1195_v54 = vpop.f32.mrf.mxu1 }
  0xb5   :  { %v290_v55 = vpop.f32.mrf.mxu0 }
  0xb6   :  { %v291_v20 = vadd.f32 %v1181_v46, %v290_v55 }
  0xb7   :  { %v314_v56 = vpop.f32.mrf.mxu2 }
  0xb8   :  { %v1198_v57 = vadd.f32 %v1181_v46, %v314_v56 }
  0xb9   :  { %v1200_v58 = vpop.f32.mrf.mxu1 }
  0xc0   :  { %v317_v59 = vpop.f32.mrf.mxu2  ;;  %v293_v60 = vpop.f32.mrf.mxu0 }
  0xc1   :  { %v1203_v61 = vadd.f32 %v1181_v46, %v317_v59  ;;  %v294_v31 = vadd.f32 %v1181_v46, %v293_v60 }
  0xc2   :  { %v320_v62 = vpop.f32.mrf.mxu3  ;;  %v340_v63 = vpop.f32.mrf.mxu1 }
  0xc3   :  { %v1206_v0 = vadd.f32 %v1181_v46, %v320_v62  ;;  %v341_v2 = vadd.f32 %v340_v63, %v285_v1  ;;  %v300_v62 = vadd.f32 %v1181_v46, %v1186_v49 }
  0xc8   :  { %v396_v3 = vpop.f32.mrf.mxu2  ;;  %v508_v4 = vpop.f32.mrf.mxu0 }
  0xc9   :  { %v397_v5 = vadd.f32 %v396_v3, %v341_v2 }
  0xca   :  { %v343_v6 = vpop.f32.mrf.mxu1  ;;  %v452_v7 = vpop.f32.mrf.mxu3 }
  0xcb   :  { %v453_v8 = vadd.f32 %v452_v7, %v397_v5  ;;  %v344_v11 = vadd.f32 %v343_v6, %v288_v9  ;;  %v303_v9 = vadd.f32 %v1181_v46, %v1195_v54 }
  0xcd   :  { %v509_v10 = vadd.f32 %v508_v4, %v453_v8 }
  0xcf   :  { %vm547_vm1 = vcmp.ge.f32.partialorder %v509_v10, 0.0  ;;  %v560_v12 = vmul.f32 0.01, %v509_v10 }
  0xd0   :  { %v399_v13 = vpop.f32.mrf.mxu2  ;;  %v511_v14 = vpop.f32.mrf.mxu0 }
  0xd1   :  { %v573_v15 = vsel %vm547_vm1, %v509_v10, %v560_v12  ;;  %v400_v16 = vadd.f32 %v399_v13, %v344_v11 }
  0xd2   :  { %586 = vst [vmem:[%s1267_s3] sm:$0xff] %v573_v15  ;;  %v346_v17 = vpop.f32.mrf.mxu1  ;;  %v455_v18 = vpop.f32.mrf.mxu3 }
  0xd3   :  { %v456_v19 = vadd.f32 %v455_v18, %v400_v16  ;;  %v347_v22 = vadd.f32 %v346_v17, %v291_v20 }
  0xd5   :  { %v512_v21 = vadd.f32 %v511_v14, %v456_v19  ;;  %v306_v19 = vadd.f32 %v1181_v46, %v1200_v58 }
  0xd7   :  { %vm548_vm2 = vcmp.ge.f32.partialorder %v512_v21, 0.0  ;;  %v561_v23 = vmul.f32 0.01, %v512_v21 }
  0xd8   :  { %v402_v24 = vpop.f32.mrf.mxu2  ;;  %v514_v25 = vpop.f32.mrf.mxu0 }
  0xd9   :  { %v574_v26 = vsel %vm548_vm2, %v512_v21, %v561_v23  ;;  %v403_v27 = vadd.f32 %v402_v24, %v347_v22 }
  0xda   :  { %587 = vst [vmem:[%s1267_s3 + $0x8] sm:$0xff] %v574_v26  ;;  %v349_v28 = vpop.f32.mrf.mxu1  ;;  %v458_v29 = vpop.f32.mrf.mxu3 }
  0xdb   :  { %v459_v30 = vadd.f32 %v458_v29, %v403_v27  ;;  %v350_v33 = vadd.f32 %v349_v28, %v294_v31 }
  0xdd   :  { %v515_v32 = vadd.f32 %v514_v25, %v459_v30 }
  0xdf   :  { %vm549_vm3 = vcmp.ge.f32.partialorder %v515_v32, 0.0  ;;  %v562_v34 = vmul.f32 0.01, %v515_v32 }
  0xe0   :  { %v405_v35 = vpop.f32.mrf.mxu2  ;;  %v517_v36 = vpop.f32.mrf.mxu0 }
  0xe1   :  { %v575_v37 = vsel %vm549_vm3, %v515_v32, %v562_v34  ;;  %v406_v38 = vadd.f32 %v405_v35, %v350_v33 }
  0xe2   :  { %588 = vst [vmem:[%s1267_s3 + $0x10] sm:$0xff] %v575_v37  ;;  %v352_v39 = vpop.f32.mrf.mxu1  ;;  %v461_v41 = vpop.f32.mrf.mxu3 }
  0xe3   :  { %v462_v42 = vadd.f32 %v461_v41, %v406_v38  ;;  %v353_v45 = vadd.f32 %v352_v39, %v297_v43 }
  0xe5   :  { %v518_v44 = vadd.f32 %v517_v36, %v462_v42 }
  0xe7   :  { %vm550_vm4 = vcmp.ge.f32.partialorder %v518_v44, 0.0  ;;  %v563_v47 = vmul.f32 0.01, %v518_v44 }
  0xe8   :  { %v408_v50 = vpop.f32.mrf.mxu2  ;;  %v520_v51 = vpop.f32.mrf.mxu0 }
  0xe9   :  { %v576_v52 = vsel %vm550_vm4, %v518_v44, %v563_v47  ;;  %v409_v55 = vadd.f32 %v408_v50, %v353_v45 }
  0xea   :  { %589 = vst [vmem:[%s1267_s3 + $0x18] sm:$0xff] %v576_v52  ;;  %v355_v56 = vpop.f32.mrf.mxu1  ;;  %v464_v59 = vpop.f32.mrf.mxu3 }
  0xeb   :  { %v465_v60 = vadd.f32 %v464_v59, %v409_v55  ;;  %v356_v40 = vadd.f32 %v355_v56, %v300_v62 }
  0xed   :  { %v521_v63 = vadd.f32 %v520_v51, %v465_v60 }
  0xef   :  { %vm551_vm5 = vcmp.ge.f32.partialorder %v521_v63, 0.0  ;;  %v564_v1 = vmul.f32 0.01, %v521_v63 }
  0xf0   :  { %v411_v2 = vpop.f32.mrf.mxu2  ;;  %v523_v3 = vpop.f32.mrf.mxu0 }
  0xf1   :  { %v577_v4 = vsel %vm551_vm5, %v521_v63, %v564_v1  ;;  %v412_v5 = vadd.f32 %v411_v2, %v356_v40 }
  0xf2   :  { %590 = vst [vmem:[%s1267_s3 + $0x20] sm:$0xff] %v577_v4  ;;  %v358_v6 = vpop.f32.mrf.mxu1  ;;  %v467_v7 = vpop.f32.mrf.mxu3 }
  0xf3   :  { %v468_v8 = vadd.f32 %v467_v7, %v412_v5  ;;  %v359_v49 = vadd.f32 %v358_v6, %v303_v9 }
  0xf5   :  { %v524_v10 = vadd.f32 %v523_v3, %v468_v8 }
  0xf7   :  { %vm552_vm6 = vcmp.ge.f32.partialorder %v524_v10, 0.0  ;;  %v565_v11 = vmul.f32 0.01, %v524_v10 }
  0xf8   :  { %v414_v12 = vpop.f32.mrf.mxu2  ;;  %v526_v13 = vpop.f32.mrf.mxu0 }
  0xf9   :  { %v578_v14 = vsel %vm552_vm6, %v524_v10, %v565_v11  ;;  %v415_v15 = vadd.f32 %v414_v12, %v359_v49 }
  0xfa   :  { %591 = vst [vmem:[%s1267_s3 + $0x28] sm:$0xff] %v578_v14  ;;  %v361_v16 = vpop.f32.mrf.mxu1  ;;  %v470_v17 = vpop.f32.mrf.mxu3 }
  0xfb   :  { %v471_v18 = vadd.f32 %v470_v17, %v415_v15  ;;  %v362_v54 = vadd.f32 %v361_v16, %v306_v19 }
  0xfd   :  { %v527_v20 = vadd.f32 %v526_v13, %v471_v18 }
  0xff   :  { %vm553_vm7 = vcmp.ge.f32.partialorder %v527_v20, 0.0  ;;  %v566_v21 = vmul.f32 0.01, %v527_v20 }
 0x100   :  { %v417_v22 = vpop.f32.mrf.mxu2  ;;  %v529_v23 = vpop.f32.mrf.mxu0 }
 0x101   :  { %v579_v24 = vsel %vm553_vm7, %v527_v20, %v566_v21  ;;  %v418_v25 = vadd.f32 %v417_v22, %v362_v54 }
 0x102   :  { %592 = vst [vmem:[%s1267_s3 + $0x30] sm:$0xff] %v579_v24  ;;  %v364_v26 = vpop.f32.mrf.mxu1  ;;  %v473_v27 = vpop.f32.mrf.mxu3 }
 0x103   :  { %v474_v28 = vadd.f32 %v473_v27, %v418_v25  ;;  %v365_v30 = vadd.f32 %v364_v26, %v1184_v48 }
 0x105   :  { %v530_v29 = vadd.f32 %v529_v23, %v474_v28 }
 0x107   :  { %vm554_vm8 = vcmp.ge.f32.partialorder %v530_v29, 0.0  ;;  %v567_v46 = vmul.f32 0.01, %v530_v29 }
 0x108   :  { %v420_v58 = vpop.f32.mrf.mxu2  ;;  %v532_v31 = vpop.f32.mrf.mxu0 }
 0x109   :  { %v580_v32 = vsel %vm554_vm8, %v530_v29, %v567_v46  ;;  %v421_v33 = vadd.f32 %v420_v58, %v365_v30 }
 0x10a   :  { %593 = vst [vmem:[%s1267_s3 + $0x38] sm:$0xff] %v580_v32  ;;  %v367_v34 = vpop.f32.mrf.mxu1  ;;  %v476_v35 = vpop.f32.mrf.mxu3 }
 0x10b   :  { %v477_v36 = vadd.f32 %v476_v35, %v421_v33  ;;  %v368_v38 = vadd.f32 %v367_v34, %v1193_v53 }
 0x10d   :  { %v533_v37 = vadd.f32 %v532_v31, %v477_v36 }
 0x10f   :  { %vm555_vm9 = vcmp.ge.f32.partialorder %v533_v37, 0.0  ;;  %v568_v39 = vmul.f32 0.01, %v533_v37 }
 0x110   :  { %v423_v41 = vpop.f32.mrf.mxu2  ;;  %v535_v48 = vpop.f32.mrf.mxu0 }
 0x111   :  { %v581_v42 = vsel %vm555_vm9, %v533_v37, %v568_v39  ;;  %v424_v43 = vadd.f32 %v423_v41, %v368_v38 }
 0x112   :  { %594 = vst [vmem:[%s1267_s3 + $0x40] sm:$0xff] %v581_v42  ;;  %v370_v44 = vpop.f32.mrf.mxu1  ;;  %v479_v45 = vpop.f32.mrf.mxu3 }
 0x113   :  { %v480_v47 = vadd.f32 %v479_v45, %v424_v43  ;;  %v371_v51 = vadd.f32 %v370_v44, %v1198_v57 }
 0x115   :  { %v536_v50 = vadd.f32 %v535_v48, %v480_v47 }
 0x117   :  { %vm556_vm10 = vcmp.ge.f32.partialorder %v536_v50, 0.0  ;;  %v569_v52 = vmul.f32 0.01, %v536_v50 }
 0x118   :  { %v426_v55 = vpop.f32.mrf.mxu2  ;;  %v538_v53 = vpop.f32.mrf.mxu0 }
 0x119   :  { %v582_v56 = vsel %vm556_vm10, %v536_v50, %v569_v52  ;;  %v427_v59 = vadd.f32 %v426_v55, %v371_v51 }
 0x11a   :  { %595 = vst [vmem:[%s1267_s3 + $0x48] sm:$0xff] %v582_v56  ;;  %v373_v60 = vpop.f32.mrf.mxu1  ;;  %v482_v62 = vpop.f32.mrf.mxu3 }
 0x11b   :  { %v483_v63 = vadd.f32 %v482_v62, %v427_v59  ;;  %v374_v1 = vadd.f32 %v373_v60, %v1203_v61 }
 0x11d   :  { %v539_v40 = vadd.f32 %v538_v53, %v483_v63 }
 0x11f   :  { %vm557_vm11 = vcmp.ge.f32.partialorder %v539_v40, 0.0  ;;  %v570_v2 = vmul.f32 0.01, %v539_v40 }
 0x120   :  { %v429_v3 = vpop.f32.mrf.mxu2  ;;  %v541_v57 = vpop.f32.mrf.mxu0 }
 0x121   :  { %v583_v4 = vsel %vm557_vm11, %v539_v40, %v570_v2  ;;  %v430_v5 = vadd.f32 %v429_v3, %v374_v1 }
 0x122   :  { %596 = vst [vmem:[%s1267_s3 + $0x50] sm:$0xff] %v583_v4  ;;  %v485_v6 = vpop.f32.mrf.mxu3  ;;  %v376_v8 = vpop.f32.mrf.mxu1 }
 0x123   :  { %v486_v7 = vadd.f32 %v485_v6, %v430_v5  ;;  %v377_v10 = vadd.f32 %v376_v8, %v1206_v0 }
 0x125   :  { %v542_v9 = vadd.f32 %v541_v57, %v486_v7 }
 0x127   :  { %vm558_vm12 = vcmp.ge.f32.partialorder %v542_v9, 0.0  ;;  %v571_v49 = vmul.f32 0.01, %v542_v9 }
 0x128   :  { %v432_v11 = vpop.f32.mrf.mxu2  ;;  %v544_v14 = vpop.f32.mrf.mxu0 }
 0x129   :  { %v584_v61 = vsel %vm558_vm12, %v542_v9, %v571_v49  ;;  %v433_v12 = vadd.f32 %v432_v11, %v377_v10 }
 0x12a   :  { %597 = vst [vmem:[%s1267_s3 + $0x58] sm:$0xff] %v584_v61  ;;  %v488_v13 = vpop.f32.mrf.mxu3 }
 0x12b   :  { %v489_v15 = vadd.f32 %v488_v13, %v433_v12 }
 0x12d   :  { %v545_v16 = vadd.f32 %v544_v14, %v489_v15 }
 0x12f   :  { %vm559_vm13 = vcmp.ge.f32.partialorder %v545_v16, 0.0  ;;  %v572_v17 = vmul.f32 0.01, %v545_v16 }
 0x131   :  { %v585_v18 = vsel %vm559_vm13, %v545_v16, %v572_v17 }
 0x132   :  { %598 = vst [vmem:[%s1267_s3 + $0x60] sm:$0xff] %v585_v18 }

// kernel: rnd_forward.5
= control target key start
LH: loop header
LB: loop body
LE: loop exit
PB: predicated region body
PF: predicated region fallthrough
CT: control target
= control target key end

     0   :  { %s6398_s12 = smov 0   ;;  %s6400_s13 = smov 0   ;;  %s8193_s0 = inlined_call_operand.vmem [shape: f32[2,2,3136], index: 0, kind: input, shape index: {}]   ;;  %s8194_s1 = inlined_call_operand.vmem [shape: bf16[2,3136,512], index: 1, kind: input, shape index: {}]   ;;  %s8195_s2 = inlined_call_operand.vmem [shape: f32[2,1,512], index: 2, kind: input, shape index: {}]   ;;  %s8196_s3 = inlined_call_operand.vmem [shape: f32[2,2,512], index: 3, kind: output, shape index: {}]  }
   0x1   :  { %s6402_s14 = smov 0   ;;  %s6404_s15 = smov 0  }
   0x2   :  { %s6406_s16 = smov 0   ;;  %s6408_s17 = smov 0  }
   0x3   :  { %s6410_s18 = smov 0  }
   0x4 LB: > { %s22_s19 = sadd.s32 1, %s6368_s16  ;;  %s25_s20 = sadd.s32 1, %s6372_s17  ;;  %s6376_s18 = sphi %s6410_s18, %s13_s18   ;;  %s6372_s17 = sphi %s6408_s17, %s8202_s17   ;;  %s6368_s16 = sphi %s6406_s16, %s8201_s16   ;;  %s6364_s15 = sphi %s6404_s15, %s8200_s15   ;;  %s6360_s14 = sphi %s6402_s14, %s8199_s14   ;;  %s6356_s13 = sphi %s6400_s13, %s8198_s13   ;;  %s6352_s12 = sphi %s6398_s12, %s8197_s12  }
   0x5   : > { %p23_p0 = scmp.ge.s32.totalorder %s22_s19, 2  ;;  %p67_p1 = scmp.ne.s32.totalorder %s6356_s13, %s6352_s12 }
   0x6   : > { %p68_p2 = scmp.eq.s32.totalorder %s6376_s18, 0  ;;  %s60_s24 = sadd.s32 1, %s6356_s13 }
   0x7   : > { %s8204_s19 = smov (%p23_p0, %s22_s19), 0  ;;  %s8206_s20 = smov (!%p23_p0, %s25_s20), %s6372_s17 }
   0x8   : > { %p69_p3 = por %p68_p2, %p67_p1  ;;  %p27_p4 = scmp.ge.s32.totalorder %s8206_s20, 2 }
   0x9   : > { %s56_s21 = ssub.s32 %s6368_s16, %s8204_s19  ;;  %p5851_p6 = scmp.ge.s32.totalorder %s6376_s18, 4 }
   0xa   : > { %s8208_s20 = smov (%p27_p4, %s8206_s20), 0 }
   0xb   : > { %s55_s22 = ssub.s32 %s6372_s17, %s8208_s20  ;;  %149 = sbr.rel (%p5851_p6) target bundleno = 416 (0x1a0), region = 16 }
   0xc   : > { %s57_s23 = sor.u32 %s56_s21, %s55_s22 }
   0xd   : > { %p58_p5 = scmp.eq.s32.totalorder %s57_s23, 0 }
   0xf   : > { %s6449_s25 = scalar_select %p58_p5, %s6356_s13, %s60_s24  }
  0x10   : > { %160 = sbr.rel (!%p69_p3) target bundleno = 416 (0x1a0), region = 24  ;;  %s162_s26 = sand.u32 (%p69_p3), 1, %s6356_s13  }
  0x11   : > { %s5865_s27 = smul.u32 (%p69_p3), 3136, %s162_s26  ;;  %s5852_s28 = sshll.u32 (%p69_p3), %s6368_s16, 1 }
  0x12   : > { %s5866_s29 = smul.u32 (%p69_p3), 1568, %s6372_s17 }
  0x13   : > { %s6463_s8 = scalar_lea.vmem (%p69_p3), [#allocation2], %s5865_s27 }
  0x14   : > { %s167_s30 = sadd.s32 (%p69_p3), %s5866_s29, %s5852_s28 }
  0x15   : > { %s5853_s4 = sshll.u32 %s167_s30, 2 }
  0x16   : > { %s6458_s7 = scalar_lea.vmem %s8194_s1, %s5853_s4 }
  0x17   : > { %v981_v0 = vld [vmem:[%s6458_s7] sm:$0xff]  ;;  %v983_v1 = vld [vmem:[%s6458_s7 + $0x10] sm:$0xff] }
  0x18   : > { %v985_v2 = vld [vmem:[%s6458_s7 + $0x20] sm:$0xff]  ;;  %982 = vst [vmem:[%s6463_s8] sm:$0xff] %v981_v0  ;;  %v987_v3 = vld [vmem:[%s6458_s7 + $0x30] sm:$0xff] }
  0x19   : > { %984 = vst [vmem:[%s6463_s8 + $0x8] sm:$0xff] %v983_v1  ;;  %v989_v4 = vld [vmem:[%s6458_s7 + $0x40] sm:$0xff]  ;;  %v991_v5 = vld [vmem:[%s6458_s7 + $0x50] sm:$0xff] }
  0x1a   : > { %986 = vst [vmem:[%s6463_s8 + $0x10] sm:$0xff] %v985_v2  ;;  %v993_v6 = vld [vmem:[%s6458_s7 + $0x60] sm:$0xff]  ;;  %v995_v7 = vld [vmem:[%s6458_s7 + $0x70] sm:$0xff] }
  0x1b   : > { %988 = vst [vmem:[%s6463_s8 + $0x18] sm:$0xff] %v987_v3  ;;  %v997_v8 = vld [vmem:[%s6458_s7 + $0x80] sm:$0xff]  ;;  %v999_v9 = vld [vmem:[%s6458_s7 + $0x90] sm:$0xff] }
  0x1c   : > { %990 = vst [vmem:[%s6463_s8 + $0x20] sm:$0xff] %v989_v4  ;;  %v1001_v10 = vld [vmem:[%s6458_s7 + $0xa0] sm:$0xff]  ;;  %v1003_v11 = vld [vmem:[%s6458_s7 + $0xb0] sm:$0xff] }
  0x1d   : > { %992 = vst [vmem:[%s6463_s8 + $0x28] sm:$0xff] %v991_v5  ;;  %v1005_v12 = vld [vmem:[%s6458_s7 + $0xc0] sm:$0xff]  ;;  %v1007_v13 = vld [vmem:[%s6458_s7 + $0xd0] sm:$0xff] }
  0x1e   : > { %994 = vst [vmem:[%s6463_s8 + $0x30] sm:$0xff] %v993_v6  ;;  %v1009_v14 = vld [vmem:[%s6458_s7 + $0xe0] sm:$0xff]  ;;  %v1011_v15 = vld [vmem:[%s6458_s7 + $0xf0] sm:$0xff] }
  0x1f   : > { %996 = vst [vmem:[%s6463_s8 + $0x38] sm:$0xff] %v995_v7  ;;  %v1013_v16 = vld [vmem:[%s6458_s7 + $0x100] sm:$0xff]  ;;  %v1015_v17 = vld [vmem:[%s6458_s7 + $0x110] sm:$0xff] }
  0x20   : > { %998 = vst [vmem:[%s6463_s8 + $0x40] sm:$0xff] %v997_v8  ;;  %v1017_v18 = vld [vmem:[%s6458_s7 + $0x120] sm:$0xff]  ;;  %v1019_v19 = vld [vmem:[%s6458_s7 + $0x130] sm:$0xff] }
  0x21   : > { %1000 = vst [vmem:[%s6463_s8 + $0x48] sm:$0xff] %v999_v9  ;;  %v1021_v20 = vld [vmem:[%s6458_s7 + $0x140] sm:$0xff]  ;;  %v1023_v21 = vld [vmem:[%s6458_s7 + $0x150] sm:$0xff] }
  0x22   : > { %1002 = vst [vmem:[%s6463_s8 + $0x50] sm:$0xff] %v1001_v10  ;;  %v1025_v22 = vld [vmem:[%s6458_s7 + $0x160] sm:$0xff]  ;;  %v1027_v23 = vld [vmem:[%s6458_s7 + $0x170] sm:$0xff] }
  0x23   : > { %1004 = vst [vmem:[%s6463_s8 + $0x58] sm:$0xff] %v1003_v11  ;;  %v1029_v24 = vld [vmem:[%s6458_s7 + $0x180] sm:$0xff]  ;;  %v1031_v25 = vld [vmem:[%s6458_s7 + $0x190] sm:$0xff] }
  0x24   : > { %1006 = vst [vmem:[%s6463_s8 + $0x60] sm:$0xff] %v1005_v12  ;;  %v1033_v26 = vld [vmem:[%s6458_s7 + $0x1a0] sm:$0xff]  ;;  %v1035_v27 = vld [vmem:[%s6458_s7 + $0x1b0] sm:$0xff] }
  0x25   : > { %1008 = vst [vmem:[%s6463_s8 + $0x68] sm:$0xff] %v1007_v13  ;;  %v1037_v28 = vld [vmem:[%s6458_s7 + $0x1c0] sm:$0xff]  ;;  %v1039_v29 = vld [vmem:[%s6458_s7 + $0x1d0] sm:$0xff] }
  0x26   : > { %1010 = vst [vmem:[%s6463_s8 + $0x70] sm:$0xff] %v1009_v14  ;;  %v1041_v30 = vld [vmem:[%s6458_s7 + $0x1e0] sm:$0xff]  ;;  %v1043_v31 = vld [vmem:[%s6458_s7 + $0x1f0] sm:$0xff] }
  0x27   : > { %1012 = vst [vmem:[%s6463_s8 + $0x78] sm:$0xff] %v1011_v15  ;;  %v1045_v32 = vld [vmem:[%s6458_s7 + $0x200] sm:$0xff]  ;;  %v1047_v33 = vld [vmem:[%s6458_s7 + $0x210] sm:$0xff] }
  0x28   : > { %1014 = vst [vmem:[%s6463_s8 + $0x80] sm:$0xff] %v1013_v16  ;;  %v1049_v34 = vld [vmem:[%s6458_s7 + $0x220] sm:$0xff]  ;;  %v1051_v35 = vld [vmem:[%s6458_s7 + $0x230] sm:$0xff] }
  0x29   : > { %1016 = vst [vmem:[%s6463_s8 + $0x88] sm:$0xff] %v1015_v17  ;;  %v1053_v36 = vld [vmem:[%s6458_s7 + $0x240] sm:$0xff]  ;;  %v1055_v37 = vld [vmem:[%s6458_s7 + $0x250] sm:$0xff] }
  0x2a   : > { %1018 = vst [vmem:[%s6463_s8 + $0x90] sm:$0xff] %v1017_v18  ;;  %v1057_v38 = vld [vmem:[%s6458_s7 + $0x260] sm:$0xff]  ;;  %v1059_v39 = vld [vmem:[%s6458_s7 + $0x270] sm:$0xff] }
  0x2b   : > { %1020 = vst [vmem:[%s6463_s8 + $0x98] sm:$0xff] %v1019_v19  ;;  %v1061_v40 = vld [vmem:[%s6458_s7 + $0x280] sm:$0xff]  ;;  %v1063_v41 = vld [vmem:[%s6458_s7 + $0x290] sm:$0xff] }
  0x2c   : > { %1022 = vst [vmem:[%s6463_s8 + $0xa0] sm:$0xff] %v1021_v20  ;;  %v1065_v42 = vld [vmem:[%s6458_s7 + $0x2a0] sm:$0xff]  ;;  %v1067_v43 = vld [vmem:[%s6458_s7 + $0x2b0] sm:$0xff] }
  0x2d   : > { %1024 = vst [vmem:[%s6463_s8 + $0xa8] sm:$0xff] %v1023_v21  ;;  %v1069_v44 = vld [vmem:[%s6458_s7 + $0x2c0] sm:$0xff]  ;;  %v1071_v45 = vld [vmem:[%s6458_s7 + $0x2d0] sm:$0xff] }
  0x2e   : > { %1026 = vst [vmem:[%s6463_s8 + $0xb0] sm:$0xff] %v1025_v22  ;;  %v1073_v46 = vld [vmem:[%s6458_s7 + $0x2e0] sm:$0xff]  ;;  %v1075_v47 = vld [vmem:[%s6458_s7 + $0x2f0] sm:$0xff] }
  0x2f   : > { %1028 = vst [vmem:[%s6463_s8 + $0xb8] sm:$0xff] %v1027_v23  ;;  %v1077_v48 = vld [vmem:[%s6458_s7 + $0x300] sm:$0xff]  ;;  %v1079_v49 = vld [vmem:[%s6458_s7 + $0x310] sm:$0xff] }
  0x30   : > { %1030 = vst [vmem:[%s6463_s8 + $0xc0] sm:$0xff] %v1029_v24  ;;  %v1081_v50 = vld [vmem:[%s6458_s7 + $0x320] sm:$0xff]  ;;  %v1083_v51 = vld [vmem:[%s6458_s7 + $0x330] sm:$0xff] }
  0x31   : > { %1032 = vst [vmem:[%s6463_s8 + $0xc8] sm:$0xff] %v1031_v25  ;;  %v1085_v52 = vld [vmem:[%s6458_s7 + $0x340] sm:$0xff]  ;;  %v1087_v53 = vld [vmem:[%s6458_s7 + $0x350] sm:$0xff] }
  0x32   : > { %1034 = vst [vmem:[%s6463_s8 + $0xd0] sm:$0xff] %v1033_v26  ;;  %v1089_v54 = vld [vmem:[%s6458_s7 + $0x360] sm:$0xff]  ;;  %v1091_v55 = vld [vmem:[%s6458_s7 + $0x370] sm:$0xff] }
  0x33   : > { %1036 = vst [vmem:[%s6463_s8 + $0xd8] sm:$0xff] %v1035_v27  ;;  %v1093_v56 = vld [vmem:[%s6458_s7 + $0x380] sm:$0xff]  ;;  %v1095_v57 = vld [vmem:[%s6458_s7 + $0x390] sm:$0xff] }
  0x34   : > { %1038 = vst [vmem:[%s6463_s8 + $0xe0] sm:$0xff] %v1037_v28  ;;  %v1097_v58 = vld [vmem:[%s6458_s7 + $0x3a0] sm:$0xff]  ;;  %v1099_v59 = vld [vmem:[%s6458_s7 + $0x3b0] sm:$0xff] }
  0x35   : > { %1040 = vst [vmem:[%s6463_s8 + $0xe8] sm:$0xff] %v1039_v29  ;;  %v1101_v60 = vld [vmem:[%s6458_s7 + $0x3c0] sm:$0xff]  ;;  %v1103_v61 = vld [vmem:[%s6458_s7 + $0x3d0] sm:$0xff] }
  0x36   : > { %1042 = vst [vmem:[%s6463_s8 + $0xf0] sm:$0xff] %v1041_v30  ;;  %v1105_v62 = vld [vmem:[%s6458_s7 + $0x3e0] sm:$0xff]  ;;  %v1107_v63 = vld [vmem:[%s6458_s7 + $0x3f0] sm:$0xff] }
  0x37   : > { %1044 = vst [vmem:[%s6463_s8 + $0xf8] sm:$0xff] %v1043_v31  ;;  %v1109_v0 = vld [vmem:[%s6458_s7 + $0x400] sm:$0xff]  ;;  %v1111_v1 = vld [vmem:[%s6458_s7 + $0x410] sm:$0xff] }
  0x38   : > { %1046 = vst [vmem:[%s6463_s8 + $0x100] sm:$0xff] %v1045_v32  ;;  %v1113_v2 = vld [vmem:[%s6458_s7 + $0x420] sm:$0xff]  ;;  %v1115_v3 = vld [vmem:[%s6458_s7 + $0x430] sm:$0xff] }
  0x39   : > { %1048 = vst [vmem:[%s6463_s8 + $0x108] sm:$0xff] %v1047_v33  ;;  %v1117_v4 = vld [vmem:[%s6458_s7 + $0x440] sm:$0xff]  ;;  %v1119_v5 = vld [vmem:[%s6458_s7 + $0x450] sm:$0xff] }
  0x3a   : > { %1050 = vst [vmem:[%s6463_s8 + $0x110] sm:$0xff] %v1049_v34  ;;  %v1121_v6 = vld [vmem:[%s6458_s7 + $0x460] sm:$0xff]  ;;  %v1123_v7 = vld [vmem:[%s6458_s7 + $0x470] sm:$0xff] }
  0x3b   : > { %1052 = vst [vmem:[%s6463_s8 + $0x118] sm:$0xff] %v1051_v35  ;;  %v1125_v8 = vld [vmem:[%s6458_s7 + $0x480] sm:$0xff]  ;;  %v1127_v9 = vld [vmem:[%s6458_s7 + $0x490] sm:$0xff] }
  0x3c   : > { %1054 = vst [vmem:[%s6463_s8 + $0x120] sm:$0xff] %v1053_v36  ;;  %v1129_v10 = vld [vmem:[%s6458_s7 + $0x4a0] sm:$0xff]  ;;  %v1131_v11 = vld [vmem:[%s6458_s7 + $0x4b0] sm:$0xff] }
  0x3d   : > { %1056 = vst [vmem:[%s6463_s8 + $0x128] sm:$0xff] %v1055_v37  ;;  %v1133_v12 = vld [vmem:[%s6458_s7 + $0x4c0] sm:$0xff]  ;;  %v1135_v13 = vld [vmem:[%s6458_s7 + $0x4d0] sm:$0xff] }
  0x3e   : > { %1058 = vst [vmem:[%s6463_s8 + $0x130] sm:$0xff] %v1057_v38  ;;  %v1137_v14 = vld [vmem:[%s6458_s7 + $0x4e0] sm:$0xff]  ;;  %v1139_v15 = vld [vmem:[%s6458_s7 + $0x4f0] sm:$0xff] }
  0x3f   : > { %1060 = vst [vmem:[%s6463_s8 + $0x138] sm:$0xff] %v1059_v39  ;;  %v1141_v16 = vld [vmem:[%s6458_s7 + $0x500] sm:$0xff]  ;;  %v1143_v17 = vld [vmem:[%s6458_s7 + $0x510] sm:$0xff] }
  0x40   : > { %1062 = vst [vmem:[%s6463_s8 + $0x140] sm:$0xff] %v1061_v40  ;;  %v1145_v18 = vld [vmem:[%s6458_s7 + $0x520] sm:$0xff]  ;;  %v1147_v19 = vld [vmem:[%s6458_s7 + $0x530] sm:$0xff] }
  0x41   : > { %1064 = vst [vmem:[%s6463_s8 + $0x148] sm:$0xff] %v1063_v41  ;;  %v1149_v20 = vld [vmem:[%s6458_s7 + $0x540] sm:$0xff]  ;;  %v1151_v21 = vld [vmem:[%s6458_s7 + $0x550] sm:$0xff] }
  0x42   : > { %1066 = vst [vmem:[%s6463_s8 + $0x150] sm:$0xff] %v1065_v42  ;;  %v1153_v22 = vld [vmem:[%s6458_s7 + $0x560] sm:$0xff]  ;;  %v1155_v23 = vld [vmem:[%s6458_s7 + $0x570] sm:$0xff] }
  0x43   : > { %1068 = vst [vmem:[%s6463_s8 + $0x158] sm:$0xff] %v1067_v43  ;;  %v1157_v24 = vld [vmem:[%s6458_s7 + $0x580] sm:$0xff]  ;;  %v1159_v25 = vld [vmem:[%s6458_s7 + $0x590] sm:$0xff] }
  0x44   : > { %1070 = vst [vmem:[%s6463_s8 + $0x160] sm:$0xff] %v1069_v44  ;;  %v1161_v26 = vld [vmem:[%s6458_s7 + $0x5a0] sm:$0xff]  ;;  %v1163_v27 = vld [vmem:[%s6458_s7 + $0x5b0] sm:$0xff] }
  0x45   : > { %1072 = vst [vmem:[%s6463_s8 + $0x168] sm:$0xff] %v1071_v45  ;;  %v1165_v28 = vld [vmem:[%s6458_s7 + $0x5c0] sm:$0xff]  ;;  %v1167_v29 = vld [vmem:[%s6458_s7 + $0x5d0] sm:$0xff] }
  0x46   : > { %1074 = vst [vmem:[%s6463_s8 + $0x170] sm:$0xff] %v1073_v46  ;;  %v1169_v30 = vld [vmem:[%s6458_s7 + $0x5e0] sm:$0xff]  ;;  %v1171_v31 = vld [vmem:[%s6458_s7 + $0x5f0] sm:$0xff] }
  0x47   : > { %1076 = vst [vmem:[%s6463_s8 + $0x178] sm:$0xff] %v1075_v47  ;;  %v1173_v32 = vld [vmem:[%s6458_s7 + $0x600] sm:$0xff]  ;;  %v1175_v33 = vld [vmem:[%s6458_s7 + $0x610] sm:$0xff] }
  0x48   : > { %1078 = vst [vmem:[%s6463_s8 + $0x180] sm:$0xff] %v1077_v48  ;;  %v1177_v34 = vld [vmem:[%s6458_s7 + $0x620] sm:$0xff]  ;;  %v1179_v35 = vld [vmem:[%s6458_s7 + $0x630] sm:$0xff] }
  0x49   : > { %1080 = vst [vmem:[%s6463_s8 + $0x188] sm:$0xff] %v1079_v49  ;;  %v1181_v36 = vld [vmem:[%s6458_s7 + $0x640] sm:$0xff]  ;;  %v1183_v37 = vld [vmem:[%s6458_s7 + $0x650] sm:$0xff] }
  0x4a   : > { %1082 = vst [vmem:[%s6463_s8 + $0x190] sm:$0xff] %v1081_v50  ;;  %v1185_v38 = vld [vmem:[%s6458_s7 + $0x660] sm:$0xff]  ;;  %v1187_v39 = vld [vmem:[%s6458_s7 + $0x670] sm:$0xff] }
  0x4b   : > { %1084 = vst [vmem:[%s6463_s8 + $0x198] sm:$0xff] %v1083_v51  ;;  %v1189_v40 = vld [vmem:[%s6458_s7 + $0x680] sm:$0xff]  ;;  %v1191_v41 = vld [vmem:[%s6458_s7 + $0x690] sm:$0xff] }
  0x4c   : > { %1086 = vst [vmem:[%s6463_s8 + $0x1a0] sm:$0xff] %v1085_v52  ;;  %v1193_v42 = vld [vmem:[%s6458_s7 + $0x6a0] sm:$0xff]  ;;  %v1195_v43 = vld [vmem:[%s6458_s7 + $0x6b0] sm:$0xff] }
  0x4d   : > { %1088 = vst [vmem:[%s6463_s8 + $0x1a8] sm:$0xff] %v1087_v53  ;;  %v1197_v44 = vld [vmem:[%s6458_s7 + $0x6c0] sm:$0xff]  ;;  %v1199_v45 = vld [vmem:[%s6458_s7 + $0x6d0] sm:$0xff] }
  0x4e   : > { %1090 = vst [vmem:[%s6463_s8 + $0x1b0] sm:$0xff] %v1089_v54  ;;  %v1201_v46 = vld [vmem:[%s6458_s7 + $0x6e0] sm:$0xff]  ;;  %v1203_v47 = vld [vmem:[%s6458_s7 + $0x6f0] sm:$0xff] }
  0x4f   : > { %1092 = vst [vmem:[%s6463_s8 + $0x1b8] sm:$0xff] %v1091_v55  ;;  %v1205_v48 = vld [vmem:[%s6458_s7 + $0x700] sm:$0xff]  ;;  %v1207_v49 = vld [vmem:[%s6458_s7 + $0x710] sm:$0xff] }
  0x50   : > { %1094 = vst [vmem:[%s6463_s8 + $0x1c0] sm:$0xff] %v1093_v56  ;;  %v1209_v50 = vld [vmem:[%s6458_s7 + $0x720] sm:$0xff]  ;;  %v1211_v51 = vld [vmem:[%s6458_s7 + $0x730] sm:$0xff] }
  0x51   : > { %1096 = vst [vmem:[%s6463_s8 + $0x1c8] sm:$0xff] %v1095_v57  ;;  %v1213_v52 = vld [vmem:[%s6458_s7 + $0x740] sm:$0xff]  ;;  %v1215_v53 = vld [vmem:[%s6458_s7 + $0x750] sm:$0xff] }
  0x52   : > { %1098 = vst [vmem:[%s6463_s8 + $0x1d0] sm:$0xff] %v1097_v58  ;;  %v1217_v54 = vld [vmem:[%s6458_s7 + $0x760] sm:$0xff]  ;;  %v1219_v55 = vld [vmem:[%s6458_s7 + $0x770] sm:$0xff] }
  0x53   : > { %1100 = vst [vmem:[%s6463_s8 + $0x1d8] sm:$0xff] %v1099_v59  ;;  %v1221_v56 = vld [vmem:[%s6458_s7 + $0x780] sm:$0xff]  ;;  %v1223_v57 = vld [vmem:[%s6458_s7 + $0x790] sm:$0xff] }
  0x54   : > { %1102 = vst [vmem:[%s6463_s8 + $0x1e0] sm:$0xff] %v1101_v60  ;;  %v1225_v58 = vld [vmem:[%s6458_s7 + $0x7a0] sm:$0xff]  ;;  %v1227_v59 = vld [vmem:[%s6458_s7 + $0x7b0] sm:$0xff] }
  0x55   : > { %1104 = vst [vmem:[%s6463_s8 + $0x1e8] sm:$0xff] %v1103_v61  ;;  %v1229_v60 = vld [vmem:[%s6458_s7 + $0x7c0] sm:$0xff]  ;;  %v1231_v61 = vld [vmem:[%s6458_s7 + $0x7d0] sm:$0xff] }
  0x56   : > { %1106 = vst [vmem:[%s6463_s8 + $0x1f0] sm:$0xff] %v1105_v62  ;;  %v1233_v62 = vld [vmem:[%s6458_s7 + $0x7e0] sm:$0xff] }
  0x57   : > { %1108 = vst [vmem:[%s6463_s8 + $0x1f8] sm:$0xff] %v1107_v63  ;;  %v1235_v63 = vld [vmem:[%s6458_s7 + $0x7f0] sm:$0xff] }
  0x58   : > { %1110 = vst [vmem:[%s6463_s8 + $0x200] sm:$0xff] %v1109_v0  ;;  %v1237_v0 = vld [vmem:[%s6458_s7 + $0x800] sm:$0xff] }
  0x59   : > { %1112 = vst [vmem:[%s6463_s8 + $0x208] sm:$0xff] %v1111_v1  ;;  %v1239_v1 = vld [vmem:[%s6458_s7 + $0x810] sm:$0xff] }
  0x5a   : > { %1114 = vst [vmem:[%s6463_s8 + $0x210] sm:$0xff] %v1113_v2  ;;  %v1241_v2 = vld [vmem:[%s6458_s7 + $0x820] sm:$0xff] }
  0x5b   : > { %1116 = vst [vmem:[%s6463_s8 + $0x218] sm:$0xff] %v1115_v3  ;;  %v1243_v3 = vld [vmem:[%s6458_s7 + $0x830] sm:$0xff] }
  0x5c   : > { %1118 = vst [vmem:[%s6463_s8 + $0x220] sm:$0xff] %v1117_v4  ;;  %v1245_v4 = vld [vmem:[%s6458_s7 + $0x840] sm:$0xff] }
  0x5d   : > { %1120 = vst [vmem:[%s6463_s8 + $0x228] sm:$0xff] %v1119_v5  ;;  %v1247_v5 = vld [vmem:[%s6458_s7 + $0x850] sm:$0xff] }
  0x5e   : > { %1122 = vst [vmem:[%s6463_s8 + $0x230] sm:$0xff] %v1121_v6  ;;  %v1249_v6 = vld [vmem:[%s6458_s7 + $0x860] sm:$0xff] }
  0x5f   : > { %1124 = vst [vmem:[%s6463_s8 + $0x238] sm:$0xff] %v1123_v7  ;;  %v1251_v7 = vld [vmem:[%s6458_s7 + $0x870] sm:$0xff] }
  0x60   : > { %1126 = vst [vmem:[%s6463_s8 + $0x240] sm:$0xff] %v1125_v8  ;;  %v1253_v8 = vld [vmem:[%s6458_s7 + $0x880] sm:$0xff] }
  0x61   : > { %1128 = vst [vmem:[%s6463_s8 + $0x248] sm:$0xff] %v1127_v9  ;;  %v1255_v9 = vld [vmem:[%s6458_s7 + $0x890] sm:$0xff] }
  0x62   : > { %1130 = vst [vmem:[%s6463_s8 + $0x250] sm:$0xff] %v1129_v10  ;;  %v1257_v10 = vld [vmem:[%s6458_s7 + $0x8a0] sm:$0xff] }
  0x63   : > { %1132 = vst [vmem:[%s6463_s8 + $0x258] sm:$0xff] %v1131_v11  ;;  %v1259_v11 = vld [vmem:[%s6458_s7 + $0x8b0] sm:$0xff] }
  0x64   : > { %1134 = vst [vmem:[%s6463_s8 + $0x260] sm:$0xff] %v1133_v12  ;;  %v1261_v12 = vld [vmem:[%s6458_s7 + $0x8c0] sm:$0xff] }
  0x65   : > { %1136 = vst [vmem:[%s6463_s8 + $0x268] sm:$0xff] %v1135_v13  ;;  %v1263_v13 = vld [vmem:[%s6458_s7 + $0x8d0] sm:$0xff] }
  0x66   : > { %1138 = vst [vmem:[%s6463_s8 + $0x270] sm:$0xff] %v1137_v14  ;;  %v1265_v14 = vld [vmem:[%s6458_s7 + $0x8e0] sm:$0xff] }
  0x67   : > { %1140 = vst [vmem:[%s6463_s8 + $0x278] sm:$0xff] %v1139_v15  ;;  %v1267_v15 = vld [vmem:[%s6458_s7 + $0x8f0] sm:$0xff] }
  0x68   : > { %1142 = vst [vmem:[%s6463_s8 + $0x280] sm:$0xff] %v1141_v16  ;;  %v1269_v16 = vld [vmem:[%s6458_s7 + $0x900] sm:$0xff] }
  0x69   : > { %1144 = vst [vmem:[%s6463_s8 + $0x288] sm:$0xff] %v1143_v17  ;;  %v1271_v17 = vld [vmem:[%s6458_s7 + $0x910] sm:$0xff] }
  0x6a   : > { %1146 = vst [vmem:[%s6463_s8 + $0x290] sm:$0xff] %v1145_v18  ;;  %v1273_v18 = vld [vmem:[%s6458_s7 + $0x920] sm:$0xff] }
  0x6b   : > { %1148 = vst [vmem:[%s6463_s8 + $0x298] sm:$0xff] %v1147_v19  ;;  %v1275_v19 = vld [vmem:[%s6458_s7 + $0x930] sm:$0xff] }
  0x6c   : > { %1150 = vst [vmem:[%s6463_s8 + $0x2a0] sm:$0xff] %v1149_v20  ;;  %v1277_v20 = vld [vmem:[%s6458_s7 + $0x940] sm:$0xff] }
  0x6d   : > { %1152 = vst [vmem:[%s6463_s8 + $0x2a8] sm:$0xff] %v1151_v21  ;;  %v1279_v21 = vld [vmem:[%s6458_s7 + $0x950] sm:$0xff] }
  0x6e   : > { %1154 = vst [vmem:[%s6463_s8 + $0x2b0] sm:$0xff] %v1153_v22  ;;  %v1281_v22 = vld [vmem:[%s6458_s7 + $0x960] sm:$0xff] }
  0x6f   : > { %1156 = vst [vmem:[%s6463_s8 + $0x2b8] sm:$0xff] %v1155_v23  ;;  %v1283_v23 = vld [vmem:[%s6458_s7 + $0x970] sm:$0xff] }
  0x70   : > { %1158 = vst [vmem:[%s6463_s8 + $0x2c0] sm:$0xff] %v1157_v24  ;;  %v1285_v24 = vld [vmem:[%s6458_s7 + $0x980] sm:$0xff] }
  0x71   : > { %1160 = vst [vmem:[%s6463_s8 + $0x2c8] sm:$0xff] %v1159_v25  ;;  %v1287_v25 = vld [vmem:[%s6458_s7 + $0x990] sm:$0xff] }
  0x72   : > { %1162 = vst [vmem:[%s6463_s8 + $0x2d0] sm:$0xff] %v1161_v26  ;;  %v1289_v26 = vld [vmem:[%s6458_s7 + $0x9a0] sm:$0xff] }
  0x73   : > { %1164 = vst [vmem:[%s6463_s8 + $0x2d8] sm:$0xff] %v1163_v27  ;;  %v1291_v27 = vld [vmem:[%s6458_s7 + $0x9b0] sm:$0xff] }
  0x74   : > { %1166 = vst [vmem:[%s6463_s8 + $0x2e0] sm:$0xff] %v1165_v28  ;;  %v1293_v28 = vld [vmem:[%s6458_s7 + $0x9c0] sm:$0xff] }
  0x75   : > { %1168 = vst [vmem:[%s6463_s8 + $0x2e8] sm:$0xff] %v1167_v29  ;;  %v1295_v29 = vld [vmem:[%s6458_s7 + $0x9d0] sm:$0xff] }
  0x76   : > { %1170 = vst [vmem:[%s6463_s8 + $0x2f0] sm:$0xff] %v1169_v30  ;;  %v1297_v30 = vld [vmem:[%s6458_s7 + $0x9e0] sm:$0xff] }
  0x77   : > { %1172 = vst [vmem:[%s6463_s8 + $0x2f8] sm:$0xff] %v1171_v31  ;;  %v1299_v31 = vld [vmem:[%s6458_s7 + $0x9f0] sm:$0xff] }
  0x78   : > { %1174 = vst [vmem:[%s6463_s8 + $0x300] sm:$0xff] %v1173_v32  ;;  %v1301_v32 = vld [vmem:[%s6458_s7 + $0xa00] sm:$0xff] }
  0x79   : > { %1176 = vst [vmem:[%s6463_s8 + $0x308] sm:$0xff] %v1175_v33  ;;  %v1303_v33 = vld [vmem:[%s6458_s7 + $0xa10] sm:$0xff] }
  0x7a   : > { %1178 = vst [vmem:[%s6463_s8 + $0x310] sm:$0xff] %v1177_v34  ;;  %v1305_v34 = vld [vmem:[%s6458_s7 + $0xa20] sm:$0xff] }
  0x7b   : > { %1180 = vst [vmem:[%s6463_s8 + $0x318] sm:$0xff] %v1179_v35  ;;  %v1307_v35 = vld [vmem:[%s6458_s7 + $0xa30] sm:$0xff] }
  0x7c   : > { %1182 = vst [vmem:[%s6463_s8 + $0x320] sm:$0xff] %v1181_v36  ;;  %v1309_v36 = vld [vmem:[%s6458_s7 + $0xa40] sm:$0xff] }
  0x7d   : > { %1184 = vst [vmem:[%s6463_s8 + $0x328] sm:$0xff] %v1183_v37  ;;  %v1311_v37 = vld [vmem:[%s6458_s7 + $0xa50] sm:$0xff] }
  0x7e   : > { %1186 = vst [vmem:[%s6463_s8 + $0x330] sm:$0xff] %v1185_v38  ;;  %v1313_v38 = vld [vmem:[%s6458_s7 + $0xa60] sm:$0xff] }
  0x7f   : > { %1188 = vst [vmem:[%s6463_s8 + $0x338] sm:$0xff] %v1187_v39  ;;  %v1315_v39 = vld [vmem:[%s6458_s7 + $0xa70] sm:$0xff] }
  0x80   : > { %1190 = vst [vmem:[%s6463_s8 + $0x340] sm:$0xff] %v1189_v40  ;;  %v1317_v40 = vld [vmem:[%s6458_s7 + $0xa80] sm:$0xff] }
  0x81   : > { %1192 = vst [vmem:[%s6463_s8 + $0x348] sm:$0xff] %v1191_v41  ;;  %v1319_v41 = vld [vmem:[%s6458_s7 + $0xa90] sm:$0xff] }
  0x82   : > { %1194 = vst [vmem:[%s6463_s8 + $0x350] sm:$0xff] %v1193_v42  ;;  %v1321_v42 = vld [vmem:[%s6458_s7 + $0xaa0] sm:$0xff] }
  0x83   : > { %1196 = vst [vmem:[%s6463_s8 + $0x358] sm:$0xff] %v1195_v43  ;;  %v1323_v43 = vld [vmem:[%s6458_s7 + $0xab0] sm:$0xff] }
  0x84   : > { %1198 = vst [vmem:[%s6463_s8 + $0x360] sm:$0xff] %v1197_v44  ;;  %v1325_v44 = vld [vmem:[%s6458_s7 + $0xac0] sm:$0xff] }
  0x85   : > { %1200 = vst [vmem:[%s6463_s8 + $0x368] sm:$0xff] %v1199_v45  ;;  %v1327_v45 = vld [vmem:[%s6458_s7 + $0xad0] sm:$0xff] }
  0x86   : > { %1202 = vst [vmem:[%s6463_s8 + $0x370] sm:$0xff] %v1201_v46  ;;  %v1329_v46 = vld [vmem:[%s6458_s7 + $0xae0] sm:$0xff] }
  0x87   : > { %1204 = vst [vmem:[%s6463_s8 + $0x378] sm:$0xff] %v1203_v47  ;;  %v1331_v47 = vld [vmem:[%s6458_s7 + $0xaf0] sm:$0xff] }
  0x88   : > { %1206 = vst [vmem:[%s6463_s8 + $0x380] sm:$0xff] %v1205_v48  ;;  %v1333_v48 = vld [vmem:[%s6458_s7 + $0xb00] sm:$0xff] }
  0x89   : > { %1208 = vst [vmem:[%s6463_s8 + $0x388] sm:$0xff] %v1207_v49  ;;  %v1335_v49 = vld [vmem:[%s6458_s7 + $0xb10] sm:$0xff] }
  0x8a   : > { %1210 = vst [vmem:[%s6463_s8 + $0x390] sm:$0xff] %v1209_v50  ;;  %v1337_v50 = vld [vmem:[%s6458_s7 + $0xb20] sm:$0xff] }
  0x8b   : > { %1212 = vst [vmem:[%s6463_s8 + $0x398] sm:$0xff] %v1211_v51  ;;  %v1339_v51 = vld [vmem:[%s6458_s7 + $0xb30] sm:$0xff] }
  0x8c   : > { %1214 = vst [vmem:[%s6463_s8 + $0x3a0] sm:$0xff] %v1213_v52  ;;  %v1341_v52 = vld [vmem:[%s6458_s7 + $0xb40] sm:$0xff] }
  0x8d   : > { %1216 = vst [vmem:[%s6463_s8 + $0x3a8] sm:$0xff] %v1215_v53  ;;  %v1343_v53 = vld [vmem:[%s6458_s7 + $0xb50] sm:$0xff] }
  0x8e   : > { %1218 = vst [vmem:[%s6463_s8 + $0x3b0] sm:$0xff] %v1217_v54  ;;  %v1345_v54 = vld [vmem:[%s6458_s7 + $0xb60] sm:$0xff] }
  0x8f   : > { %1220 = vst [vmem:[%s6463_s8 + $0x3b8] sm:$0xff] %v1219_v55  ;;  %v1347_v55 = vld [vmem:[%s6458_s7 + $0xb70] sm:$0xff] }
  0x90   : > { %1222 = vst [vmem:[%s6463_s8 + $0x3c0] sm:$0xff] %v1221_v56  ;;  %v1349_v56 = vld [vmem:[%s6458_s7 + $0xb80] sm:$0xff] }
  0x91   : > { %1224 = vst [vmem:[%s6463_s8 + $0x3c8] sm:$0xff] %v1223_v57  ;;  %v1351_v57 = vld [vmem:[%s6458_s7 + $0xb90] sm:$0xff] }
  0x92   : > { %1226 = vst [vmem:[%s6463_s8 + $0x3d0] sm:$0xff] %v1225_v58  ;;  %v1353_v58 = vld [vmem:[%s6458_s7 + $0xba0] sm:$0xff] }
  0x93   : > { %1228 = vst [vmem:[%s6463_s8 + $0x3d8] sm:$0xff] %v1227_v59  ;;  %v1355_v59 = vld [vmem:[%s6458_s7 + $0xbb0] sm:$0xff] }
  0x94   : > { %1230 = vst [vmem:[%s6463_s8 + $0x3e0] sm:$0xff] %v1229_v60  ;;  %v1357_v60 = vld [vmem:[%s6458_s7 + $0xbc0] sm:$0xff] }
  0x95   : > { %1232 = vst [vmem:[%s6463_s8 + $0x3e8] sm:$0xff] %v1231_v61  ;;  %v1359_v61 = vld [vmem:[%s6458_s7 + $0xbd0] sm:$0xff] }
  0x96   : > { %1234 = vst [vmem:[%s6463_s8 + $0x3f0] sm:$0xff] %v1233_v62  ;;  %v1361_v62 = vld [vmem:[%s6458_s7 + $0xbe0] sm:$0xff] }
  0x97   : > { %1236 = vst [vmem:[%s6463_s8 + $0x3f8] sm:$0xff] %v1235_v63  ;;  %v1363_v63 = vld [vmem:[%s6458_s7 + $0xbf0] sm:$0xff] }
  0x98   : > { %1238 = vst [vmem:[%s6463_s8 + $0x400] sm:$0xff] %v1237_v0  ;;  %v1365_v0 = vld [vmem:[%s6458_s7 + $0xc00] sm:$0xff] }
  0x99   : > { %1240 = vst [vmem:[%s6463_s8 + $0x408] sm:$0xff] %v1239_v1  ;;  %v1367_v1 = vld [vmem:[%s6458_s7 + $0xc10] sm:$0xff] }
  0x9a   : > { %1242 = vst [vmem:[%s6463_s8 + $0x410] sm:$0xff] %v1241_v2  ;;  %v1369_v2 = vld [vmem:[%s6458_s7 + $0xc20] sm:$0xff] }
  0x9b   : > { %1244 = vst [vmem:[%s6463_s8 + $0x418] sm:$0xff] %v1243_v3  ;;  %v1371_v3 = vld [vmem:[%s6458_s7 + $0xc30] sm:$0xff] }
  0x9c   : > { %1246 = vst [vmem:[%s6463_s8 + $0x420] sm:$0xff] %v1245_v4  ;;  %v1373_v4 = vld [vmem:[%s6458_s7 + $0xc40] sm:$0xff] }
  0x9d   : > { %1248 = vst [vmem:[%s6463_s8 + $0x428] sm:$0xff] %v1247_v5  ;;  %v1375_v5 = vld [vmem:[%s6458_s7 + $0xc50] sm:$0xff] }
  0x9e   : > { %1250 = vst [vmem:[%s6463_s8 + $0x430] sm:$0xff] %v1249_v6  ;;  %v1377_v6 = vld [vmem:[%s6458_s7 + $0xc60] sm:$0xff] }
  0x9f   : > { %1252 = vst [vmem:[%s6463_s8 + $0x438] sm:$0xff] %v1251_v7  ;;  %v1379_v7 = vld [vmem:[%s6458_s7 + $0xc70] sm:$0xff] }
  0xa0   : > { %1254 = vst [vmem:[%s6463_s8 + $0x440] sm:$0xff] %v1253_v8  ;;  %v1381_v8 = vld [vmem:[%s6458_s7 + $0xc80] sm:$0xff] }
  0xa1   : > { %1256 = vst [vmem:[%s6463_s8 + $0x448] sm:$0xff] %v1255_v9  ;;  %v1383_v9 = vld [vmem:[%s6458_s7 + $0xc90] sm:$0xff] }
  0xa2   : > { %1258 = vst [vmem:[%s6463_s8 + $0x450] sm:$0xff] %v1257_v10  ;;  %v1385_v10 = vld [vmem:[%s6458_s7 + $0xca0] sm:$0xff] }
  0xa3   : > { %1260 = vst [vmem:[%s6463_s8 + $0x458] sm:$0xff] %v1259_v11  ;;  %v1387_v11 = vld [vmem:[%s6458_s7 + $0xcb0] sm:$0xff] }
  0xa4   : > { %1262 = vst [vmem:[%s6463_s8 + $0x460] sm:$0xff] %v1261_v12  ;;  %v1389_v12 = vld [vmem:[%s6458_s7 + $0xcc0] sm:$0xff] }
  0xa5   : > { %1264 = vst [vmem:[%s6463_s8 + $0x468] sm:$0xff] %v1263_v13  ;;  %v1391_v13 = vld [vmem:[%s6458_s7 + $0xcd0] sm:$0xff] }
  0xa6   : > { %1266 = vst [vmem:[%s6463_s8 + $0x470] sm:$0xff] %v1265_v14  ;;  %v1393_v14 = vld [vmem:[%s6458_s7 + $0xce0] sm:$0xff] }
  0xa7   : > { %1268 = vst [vmem:[%s6463_s8 + $0x478] sm:$0xff] %v1267_v15  ;;  %v1395_v15 = vld [vmem:[%s6458_s7 + $0xcf0] sm:$0xff] }
  0xa8   : > { %1270 = vst [vmem:[%s6463_s8 + $0x480] sm:$0xff] %v1269_v16  ;;  %v1397_v16 = vld [vmem:[%s6458_s7 + $0xd00] sm:$0xff] }
  0xa9   : > { %1272 = vst [vmem:[%s6463_s8 + $0x488] sm:$0xff] %v1271_v17  ;;  %v1399_v17 = vld [vmem:[%s6458_s7 + $0xd10] sm:$0xff] }
  0xaa   : > { %1274 = vst [vmem:[%s6463_s8 + $0x490] sm:$0xff] %v1273_v18  ;;  %v1401_v18 = vld [vmem:[%s6458_s7 + $0xd20] sm:$0xff] }
  0xab   : > { %1276 = vst [vmem:[%s6463_s8 + $0x498] sm:$0xff] %v1275_v19  ;;  %v1403_v19 = vld [vmem:[%s6458_s7 + $0xd30] sm:$0xff] }
  0xac   : > { %1278 = vst [vmem:[%s6463_s8 + $0x4a0] sm:$0xff] %v1277_v20  ;;  %v1405_v20 = vld [vmem:[%s6458_s7 + $0xd40] sm:$0xff] }
  0xad   : > { %1280 = vst [vmem:[%s6463_s8 + $0x4a8] sm:$0xff] %v1279_v21  ;;  %v1407_v21 = vld [vmem:[%s6458_s7 + $0xd50] sm:$0xff] }
  0xae   : > { %1282 = vst [vmem:[%s6463_s8 + $0x4b0] sm:$0xff] %v1281_v22  ;;  %v1409_v22 = vld [vmem:[%s6458_s7 + $0xd60] sm:$0xff] }
  0xaf   : > { %1284 = vst [vmem:[%s6463_s8 + $0x4b8] sm:$0xff] %v1283_v23  ;;  %v1411_v23 = vld [vmem:[%s6458_s7 + $0xd70] sm:$0xff] }
  0xb0   : > { %1286 = vst [vmem:[%s6463_s8 + $0x4c0] sm:$0xff] %v1285_v24  ;;  %v1413_v24 = vld [vmem:[%s6458_s7 + $0xd80] sm:$0xff] }
  0xb1   : > { %1288 = vst [vmem:[%s6463_s8 + $0x4c8] sm:$0xff] %v1287_v25  ;;  %v1415_v25 = vld [vmem:[%s6458_s7 + $0xd90] sm:$0xff] }
  0xb2   : > { %1290 = vst [vmem:[%s6463_s8 + $0x4d0] sm:$0xff] %v1289_v26  ;;  %v1417_v26 = vld [vmem:[%s6458_s7 + $0xda0] sm:$0xff] }
  0xb3   : > { %1292 = vst [vmem:[%s6463_s8 + $0x4d8] sm:$0xff] %v1291_v27  ;;  %v1419_v27 = vld [vmem:[%s6458_s7 + $0xdb0] sm:$0xff] }
  0xb4   : > { %1294 = vst [vmem:[%s6463_s8 + $0x4e0] sm:$0xff] %v1293_v28  ;;  %v1421_v28 = vld [vmem:[%s6458_s7 + $0xdc0] sm:$0xff] }
  0xb5   : > { %1296 = vst [vmem:[%s6463_s8 + $0x4e8] sm:$0xff] %v1295_v29  ;;  %v1423_v29 = vld [vmem:[%s6458_s7 + $0xdd0] sm:$0xff] }
  0xb6   : > { %1298 = vst [vmem:[%s6463_s8 + $0x4f0] sm:$0xff] %v1297_v30  ;;  %v1425_v30 = vld [vmem:[%s6458_s7 + $0xde0] sm:$0xff] }
  0xb7   : > { %1300 = vst [vmem:[%s6463_s8 + $0x4f8] sm:$0xff] %v1299_v31  ;;  %v1427_v31 = vld [vmem:[%s6458_s7 + $0xdf0] sm:$0xff] }
  0xb8   : > { %1302 = vst [vmem:[%s6463_s8 + $0x500] sm:$0xff] %v1301_v32  ;;  %v1429_v32 = vld [vmem:[%s6458_s7 + $0xe00] sm:$0xff] }
  0xb9   : > { %1304 = vst [vmem:[%s6463_s8 + $0x508] sm:$0xff] %v1303_v33  ;;  %v1431_v33 = vld [vmem:[%s6458_s7 + $0xe10] sm:$0xff] }
  0xba   : > { %1306 = vst [vmem:[%s6463_s8 + $0x510] sm:$0xff] %v1305_v34  ;;  %v1433_v34 = vld [vmem:[%s6458_s7 + $0xe20] sm:$0xff] }
  0xbb   : > { %1308 = vst [vmem:[%s6463_s8 + $0x518] sm:$0xff] %v1307_v35  ;;  %v1435_v35 = vld [vmem:[%s6458_s7 + $0xe30] sm:$0xff] }
  0xbc   : > { %1310 = vst [vmem:[%s6463_s8 + $0x520] sm:$0xff] %v1309_v36  ;;  %v1437_v36 = vld [vmem:[%s6458_s7 + $0xe40] sm:$0xff] }
  0xbd   : > { %1312 = vst [vmem:[%s6463_s8 + $0x528] sm:$0xff] %v1311_v37  ;;  %v1439_v37 = vld [vmem:[%s6458_s7 + $0xe50] sm:$0xff] }
  0xbe   : > { %1314 = vst [vmem:[%s6463_s8 + $0x530] sm:$0xff] %v1313_v38  ;;  %v1441_v38 = vld [vmem:[%s6458_s7 + $0xe60] sm:$0xff] }
  0xbf   : > { %1316 = vst [vmem:[%s6463_s8 + $0x538] sm:$0xff] %v1315_v39  ;;  %v1443_v39 = vld [vmem:[%s6458_s7 + $0xe70] sm:$0xff] }
  0xc0   : > { %1318 = vst [vmem:[%s6463_s8 + $0x540] sm:$0xff] %v1317_v40  ;;  %v1445_v40 = vld [vmem:[%s6458_s7 + $0xe80] sm:$0xff] }
  0xc1   : > { %1320 = vst [vmem:[%s6463_s8 + $0x548] sm:$0xff] %v1319_v41  ;;  %v1447_v41 = vld [vmem:[%s6458_s7 + $0xe90] sm:$0xff] }
  0xc2   : > { %1322 = vst [vmem:[%s6463_s8 + $0x550] sm:$0xff] %v1321_v42  ;;  %v1449_v42 = vld [vmem:[%s6458_s7 + $0xea0] sm:$0xff] }
  0xc3   : > { %1324 = vst [vmem:[%s6463_s8 + $0x558] sm:$0xff] %v1323_v43  ;;  %v1451_v43 = vld [vmem:[%s6458_s7 + $0xeb0] sm:$0xff] }
  0xc4   : > { %1326 = vst [vmem:[%s6463_s8 + $0x560] sm:$0xff] %v1325_v44  ;;  %v1453_v44 = vld [vmem:[%s6458_s7 + $0xec0] sm:$0xff] }
  0xc5   : > { %1328 = vst [vmem:[%s6463_s8 + $0x568] sm:$0xff] %v1327_v45  ;;  %v1455_v45 = vld [vmem:[%s6458_s7 + $0xed0] sm:$0xff] }
  0xc6   : > { %1330 = vst [vmem:[%s6463_s8 + $0x570] sm:$0xff] %v1329_v46  ;;  %v1457_v46 = vld [vmem:[%s6458_s7 + $0xee0] sm:$0xff] }
  0xc7   : > { %1332 = vst [vmem:[%s6463_s8 + $0x578] sm:$0xff] %v1331_v47  ;;  %v1459_v47 = vld [vmem:[%s6458_s7 + $0xef0] sm:$0xff] }
  0xc8   : > { %1334 = vst [vmem:[%s6463_s8 + $0x580] sm:$0xff] %v1333_v48  ;;  %v1461_v48 = vld [vmem:[%s6458_s7 + $0xf00] sm:$0xff] }
  0xc9   : > { %1336 = vst [vmem:[%s6463_s8 + $0x588] sm:$0xff] %v1335_v49  ;;  %v1463_v49 = vld [vmem:[%s6458_s7 + $0xf10] sm:$0xff] }
  0xca   : > { %1338 = vst [vmem:[%s6463_s8 + $0x590] sm:$0xff] %v1337_v50  ;;  %v1465_v50 = vld [vmem:[%s6458_s7 + $0xf20] sm:$0xff] }
  0xcb   : > { %1340 = vst [vmem:[%s6463_s8 + $0x598] sm:$0xff] %v1339_v51  ;;  %v1467_v51 = vld [vmem:[%s6458_s7 + $0xf30] sm:$0xff] }
  0xcc   : > { %1342 = vst [vmem:[%s6463_s8 + $0x5a0] sm:$0xff] %v1341_v52  ;;  %v1469_v52 = vld [vmem:[%s6458_s7 + $0xf40] sm:$0xff] }
  0xcd   : > { %1344 = vst [vmem:[%s6463_s8 + $0x5a8] sm:$0xff] %v1343_v53  ;;  %v1471_v53 = vld [vmem:[%s6458_s7 + $0xf50] sm:$0xff] }
  0xce   : > { %1346 = vst [vmem:[%s6463_s8 + $0x5b0] sm:$0xff] %v1345_v54  ;;  %v1473_v54 = vld [vmem:[%s6458_s7 + $0xf60] sm:$0xff] }
  0xcf   : > { %1348 = vst [vmem:[%s6463_s8 + $0x5b8] sm:$0xff] %v1347_v55  ;;  %v1475_v55 = vld [vmem:[%s6458_s7 + $0xf70] sm:$0xff] }
  0xd0   : > { %1350 = vst [vmem:[%s6463_s8 + $0x5c0] sm:$0xff] %v1349_v56  ;;  %v1477_v56 = vld [vmem:[%s6458_s7 + $0xf80] sm:$0xff] }
  0xd1   : > { %1352 = vst [vmem:[%s6463_s8 + $0x5c8] sm:$0xff] %v1351_v57  ;;  %v1479_v57 = vld [vmem:[%s6458_s7 + $0xf90] sm:$0xff] }
  0xd2   : > { %1354 = vst [vmem:[%s6463_s8 + $0x5d0] sm:$0xff] %v1353_v58  ;;  %v1481_v58 = vld [vmem:[%s6458_s7 + $0xfa0] sm:$0xff] }
  0xd3   : > { %1356 = vst [vmem:[%s6463_s8 + $0x5d8] sm:$0xff] %v1355_v59  ;;  %v1483_v59 = vld [vmem:[%s6458_s7 + $0xfb0] sm:$0xff] }
  0xd4   : > { %1358 = vst [vmem:[%s6463_s8 + $0x5e0] sm:$0xff] %v1357_v60  ;;  %v1485_v60 = vld [vmem:[%s6458_s7 + $0xfc0] sm:$0xff] }
  0xd5   : > { %1360 = vst [vmem:[%s6463_s8 + $0x5e8] sm:$0xff] %v1359_v61  ;;  %v1487_v61 = vld [vmem:[%s6458_s7 + $0xfd0] sm:$0xff] }
  0xd6   : > { %1362 = vst [vmem:[%s6463_s8 + $0x5f0] sm:$0xff] %v1361_v62  ;;  %v1489_v62 = vld [vmem:[%s6458_s7 + $0xfe0] sm:$0xff] }
  0xd7   : > { %1364 = vst [vmem:[%s6463_s8 + $0x5f8] sm:$0xff] %v1363_v63  ;;  %v1491_v63 = vld [vmem:[%s6458_s7 + $0xff0] sm:$0xff] }
  0xd8   : > { %1366 = vst [vmem:[%s6463_s8 + $0x600] sm:$0xff] %v1365_v0  ;;  %v1493_v0 = vld [vmem:[%s6458_s7 + $0x1000] sm:$0xff] }
  0xd9   : > { %1368 = vst [vmem:[%s6463_s8 + $0x608] sm:$0xff] %v1367_v1  ;;  %v1495_v1 = vld [vmem:[%s6458_s7 + $0x1010] sm:$0xff] }
  0xda   : > { %1370 = vst [vmem:[%s6463_s8 + $0x610] sm:$0xff] %v1369_v2  ;;  %v1497_v2 = vld [vmem:[%s6458_s7 + $0x1020] sm:$0xff] }
  0xdb   : > { %1372 = vst [vmem:[%s6463_s8 + $0x618] sm:$0xff] %v1371_v3  ;;  %v1499_v3 = vld [vmem:[%s6458_s7 + $0x1030] sm:$0xff] }
  0xdc   : > { %1374 = vst [vmem:[%s6463_s8 + $0x620] sm:$0xff] %v1373_v4  ;;  %v1501_v4 = vld [vmem:[%s6458_s7 + $0x1040] sm:$0xff] }
  0xdd   : > { %1376 = vst [vmem:[%s6463_s8 + $0x628] sm:$0xff] %v1375_v5  ;;  %v1503_v5 = vld [vmem:[%s6458_s7 + $0x1050] sm:$0xff] }
  0xde   : > { %1378 = vst [vmem:[%s6463_s8 + $0x630] sm:$0xff] %v1377_v6  ;;  %v1505_v6 = vld [vmem:[%s6458_s7 + $0x1060] sm:$0xff] }
  0xdf   : > { %1380 = vst [vmem:[%s6463_s8 + $0x638] sm:$0xff] %v1379_v7  ;;  %v1507_v7 = vld [vmem:[%s6458_s7 + $0x1070] sm:$0xff] }
  0xe0   : > { %1382 = vst [vmem:[%s6463_s8 + $0x640] sm:$0xff] %v1381_v8  ;;  %v1509_v8 = vld [vmem:[%s6458_s7 + $0x1080] sm:$0xff] }
  0xe1   : > { %1384 = vst [vmem:[%s6463_s8 + $0x648] sm:$0xff] %v1383_v9  ;;  %v1511_v9 = vld [vmem:[%s6458_s7 + $0x1090] sm:$0xff] }
  0xe2   : > { %1386 = vst [vmem:[%s6463_s8 + $0x650] sm:$0xff] %v1385_v10  ;;  %v1513_v10 = vld [vmem:[%s6458_s7 + $0x10a0] sm:$0xff] }
  0xe3   : > { %1388 = vst [vmem:[%s6463_s8 + $0x658] sm:$0xff] %v1387_v11  ;;  %v1515_v11 = vld [vmem:[%s6458_s7 + $0x10b0] sm:$0xff] }
  0xe4   : > { %1390 = vst [vmem:[%s6463_s8 + $0x660] sm:$0xff] %v1389_v12  ;;  %v1517_v12 = vld [vmem:[%s6458_s7 + $0x10c0] sm:$0xff] }
  0xe5   : > { %1392 = vst [vmem:[%s6463_s8 + $0x668] sm:$0xff] %v1391_v13  ;;  %v1519_v13 = vld [vmem:[%s6458_s7 + $0x10d0] sm:$0xff] }
  0xe6   : > { %1394 = vst [vmem:[%s6463_s8 + $0x670] sm:$0xff] %v1393_v14  ;;  %v1521_v14 = vld [vmem:[%s6458_s7 + $0x10e0] sm:$0xff] }
  0xe7   : > { %1396 = vst [vmem:[%s6463_s8 + $0x678] sm:$0xff] %v1395_v15  ;;  %v1523_v15 = vld [vmem:[%s6458_s7 + $0x10f0] sm:$0xff] }
  0xe8   : > { %1398 = vst [vmem:[%s6463_s8 + $0x680] sm:$0xff] %v1397_v16  ;;  %v1525_v16 = vld [vmem:[%s6458_s7 + $0x1100] sm:$0xff] }
  0xe9   : > { %1400 = vst [vmem:[%s6463_s8 + $0x688] sm:$0xff] %v1399_v17  ;;  %v1527_v17 = vld [vmem:[%s6458_s7 + $0x1110] sm:$0xff] }
  0xea   : > { %1402 = vst [vmem:[%s6463_s8 + $0x690] sm:$0xff] %v1401_v18  ;;  %v1529_v18 = vld [vmem:[%s6458_s7 + $0x1120] sm:$0xff] }
  0xeb   : > { %1404 = vst [vmem:[%s6463_s8 + $0x698] sm:$0xff] %v1403_v19  ;;  %v1531_v19 = vld [vmem:[%s6458_s7 + $0x1130] sm:$0xff] }
  0xec   : > { %1406 = vst [vmem:[%s6463_s8 + $0x6a0] sm:$0xff] %v1405_v20  ;;  %v1533_v20 = vld [vmem:[%s6458_s7 + $0x1140] sm:$0xff] }
  0xed   : > { %1408 = vst [vmem:[%s6463_s8 + $0x6a8] sm:$0xff] %v1407_v21  ;;  %v1535_v21 = vld [vmem:[%s6458_s7 + $0x1150] sm:$0xff] }
  0xee   : > { %1410 = vst [vmem:[%s6463_s8 + $0x6b0] sm:$0xff] %v1409_v22  ;;  %v1537_v22 = vld [vmem:[%s6458_s7 + $0x1160] sm:$0xff] }
  0xef   : > { %1412 = vst [vmem:[%s6463_s8 + $0x6b8] sm:$0xff] %v1411_v23  ;;  %v1539_v23 = vld [vmem:[%s6458_s7 + $0x1170] sm:$0xff] }
  0xf0   : > { %1414 = vst [vmem:[%s6463_s8 + $0x6c0] sm:$0xff] %v1413_v24  ;;  %v1541_v24 = vld [vmem:[%s6458_s7 + $0x1180] sm:$0xff] }
  0xf1   : > { %1416 = vst [vmem:[%s6463_s8 + $0x6c8] sm:$0xff] %v1415_v25  ;;  %v1543_v25 = vld [vmem:[%s6458_s7 + $0x1190] sm:$0xff] }
  0xf2   : > { %1418 = vst [vmem:[%s6463_s8 + $0x6d0] sm:$0xff] %v1417_v26  ;;  %v1545_v26 = vld [vmem:[%s6458_s7 + $0x11a0] sm:$0xff] }
  0xf3   : > { %1420 = vst [vmem:[%s6463_s8 + $0x6d8] sm:$0xff] %v1419_v27  ;;  %v1547_v27 = vld [vmem:[%s6458_s7 + $0x11b0] sm:$0xff] }
  0xf4   : > { %1422 = vst [vmem:[%s6463_s8 + $0x6e0] sm:$0xff] %v1421_v28  ;;  %v1549_v28 = vld [vmem:[%s6458_s7 + $0x11c0] sm:$0xff] }
  0xf5   : > { %1424 = vst [vmem:[%s6463_s8 + $0x6e8] sm:$0xff] %v1423_v29  ;;  %v1551_v29 = vld [vmem:[%s6458_s7 + $0x11d0] sm:$0xff] }
  0xf6   : > { %1426 = vst [vmem:[%s6463_s8 + $0x6f0] sm:$0xff] %v1425_v30  ;;  %v1553_v30 = vld [vmem:[%s6458_s7 + $0x11e0] sm:$0xff] }
  0xf7   : > { %1428 = vst [vmem:[%s6463_s8 + $0x6f8] sm:$0xff] %v1427_v31  ;;  %v1555_v31 = vld [vmem:[%s6458_s7 + $0x11f0] sm:$0xff] }
  0xf8   : > { %1430 = vst [vmem:[%s6463_s8 + $0x700] sm:$0xff] %v1429_v32  ;;  %v1557_v32 = vld [vmem:[%s6458_s7 + $0x1200] sm:$0xff] }
  0xf9   : > { %1432 = vst [vmem:[%s6463_s8 + $0x708] sm:$0xff] %v1431_v33  ;;  %v1559_v33 = vld [vmem:[%s6458_s7 + $0x1210] sm:$0xff] }
  0xfa   : > { %1434 = vst [vmem:[%s6463_s8 + $0x710] sm:$0xff] %v1433_v34  ;;  %v1561_v34 = vld [vmem:[%s6458_s7 + $0x1220] sm:$0xff] }
  0xfb   : > { %1436 = vst [vmem:[%s6463_s8 + $0x718] sm:$0xff] %v1435_v35  ;;  %v1563_v35 = vld [vmem:[%s6458_s7 + $0x1230] sm:$0xff] }
  0xfc   : > { %1438 = vst [vmem:[%s6463_s8 + $0x720] sm:$0xff] %v1437_v36  ;;  %v1565_v36 = vld [vmem:[%s6458_s7 + $0x1240] sm:$0xff] }
  0xfd   : > { %1440 = vst [vmem:[%s6463_s8 + $0x728] sm:$0xff] %v1439_v37  ;;  %v1567_v37 = vld [vmem:[%s6458_s7 + $0x1250] sm:$0xff] }
  0xfe   : > { %1442 = vst [vmem:[%s6463_s8 + $0x730] sm:$0xff] %v1441_v38  ;;  %v1569_v38 = vld [vmem:[%s6458_s7 + $0x1260] sm:$0xff] }
  0xff   : > { %1444 = vst [vmem:[%s6463_s8 + $0x738] sm:$0xff] %v1443_v39  ;;  %v1571_v39 = vld [vmem:[%s6458_s7 + $0x1270] sm:$0xff] }
 0x100   : > { %1446 = vst [vmem:[%s6463_s8 + $0x740] sm:$0xff] %v1445_v40  ;;  %v1573_v40 = vld [vmem:[%s6458_s7 + $0x1280] sm:$0xff] }
 0x101   : > { %1448 = vst [vmem:[%s6463_s8 + $0x748] sm:$0xff] %v1447_v41  ;;  %v1575_v41 = vld [vmem:[%s6458_s7 + $0x1290] sm:$0xff] }
 0x102   : > { %1450 = vst [vmem:[%s6463_s8 + $0x750] sm:$0xff] %v1449_v42  ;;  %v1577_v42 = vld [vmem:[%s6458_s7 + $0x12a0] sm:$0xff] }
 0x103   : > { %1452 = vst [vmem:[%s6463_s8 + $0x758] sm:$0xff] %v1451_v43  ;;  %v1579_v43 = vld [vmem:[%s6458_s7 + $0x12b0] sm:$0xff] }
 0x104   : > { %1454 = vst [vmem:[%s6463_s8 + $0x760] sm:$0xff] %v1453_v44  ;;  %v1581_v44 = vld [vmem:[%s6458_s7 + $0x12c0] sm:$0xff] }
 0x105   : > { %1456 = vst [vmem:[%s6463_s8 + $0x768] sm:$0xff] %v1455_v45  ;;  %v1583_v45 = vld [vmem:[%s6458_s7 + $0x12d0] sm:$0xff] }
 0x106   : > { %1458 = vst [vmem:[%s6463_s8 + $0x770] sm:$0xff] %v1457_v46  ;;  %v1585_v46 = vld [vmem:[%s6458_s7 + $0x12e0] sm:$0xff] }
 0x107   : > { %1460 = vst [vmem:[%s6463_s8 + $0x778] sm:$0xff] %v1459_v47  ;;  %v1587_v47 = vld [vmem:[%s6458_s7 + $0x12f0] sm:$0xff] }
 0x108   : > { %1462 = vst [vmem:[%s6463_s8 + $0x780] sm:$0xff] %v1461_v48  ;;  %v1589_v48 = vld [vmem:[%s6458_s7 + $0x1300] sm:$0xff] }
 0x109   : > { %1464 = vst [vmem:[%s6463_s8 + $0x788] sm:$0xff] %v1463_v49  ;;  %v1591_v49 = vld [vmem:[%s6458_s7 + $0x1310] sm:$0xff] }
 0x10a   : > { %1466 = vst [vmem:[%s6463_s8 + $0x790] sm:$0xff] %v1465_v50  ;;  %v1593_v50 = vld [vmem:[%s6458_s7 + $0x1320] sm:$0xff] }
 0x10b   : > { %1468 = vst [vmem:[%s6463_s8 + $0x798] sm:$0xff] %v1467_v51  ;;  %v1595_v51 = vld [vmem:[%s6458_s7 + $0x1330] sm:$0xff] }
 0x10c   : > { %1470 = vst [vmem:[%s6463_s8 + $0x7a0] sm:$0xff] %v1469_v52  ;;  %v1597_v52 = vld [vmem:[%s6458_s7 + $0x1340] sm:$0xff] }
 0x10d   : > { %1472 = vst [vmem:[%s6463_s8 + $0x7a8] sm:$0xff] %v1471_v53  ;;  %v1599_v53 = vld [vmem:[%s6458_s7 + $0x1350] sm:$0xff] }
 0x10e   : > { %1474 = vst [vmem:[%s6463_s8 + $0x7b0] sm:$0xff] %v1473_v54  ;;  %v1601_v54 = vld [vmem:[%s6458_s7 + $0x1360] sm:$0xff] }
 0x10f   : > { %1476 = vst [vmem:[%s6463_s8 + $0x7b8] sm:$0xff] %v1475_v55  ;;  %v1603_v55 = vld [vmem:[%s6458_s7 + $0x1370] sm:$0xff] }
 0x110   : > { %1478 = vst [vmem:[%s6463_s8 + $0x7c0] sm:$0xff] %v1477_v56  ;;  %v1605_v56 = vld [vmem:[%s6458_s7 + $0x1380] sm:$0xff] }
 0x111   : > { %1480 = vst [vmem:[%s6463_s8 + $0x7c8] sm:$0xff] %v1479_v57  ;;  %v1607_v57 = vld [vmem:[%s6458_s7 + $0x1390] sm:$0xff] }
 0x112   : > { %1482 = vst [vmem:[%s6463_s8 + $0x7d0] sm:$0xff] %v1481_v58  ;;  %v1609_v58 = vld [vmem:[%s6458_s7 + $0x13a0] sm:$0xff] }
 0x113   : > { %1484 = vst [vmem:[%s6463_s8 + $0x7d8] sm:$0xff] %v1483_v59  ;;  %v1611_v59 = vld [vmem:[%s6458_s7 + $0x13b0] sm:$0xff] }
 0x114   : > { %1486 = vst [vmem:[%s6463_s8 + $0x7e0] sm:$0xff] %v1485_v60  ;;  %v1613_v60 = vld [vmem:[%s6458_s7 + $0x13c0] sm:$0xff] }
 0x115   : > { %1488 = vst [vmem:[%s6463_s8 + $0x7e8] sm:$0xff] %v1487_v61  ;;  %v1615_v61 = vld [vmem:[%s6458_s7 + $0x13d0] sm:$0xff] }
 0x116   : > { %1490 = vst [vmem:[%s6463_s8 + $0x7f0] sm:$0xff] %v1489_v62  ;;  %v1617_v62 = vld [vmem:[%s6458_s7 + $0x13e0] sm:$0xff] }
 0x117   : > { %1492 = vst [vmem:[%s6463_s8 + $0x7f8] sm:$0xff] %v1491_v63  ;;  %v1619_v63 = vld [vmem:[%s6458_s7 + $0x13f0] sm:$0xff] }
 0x118   : > { %1494 = vst [vmem:[%s6463_s8 + $0x800] sm:$0xff] %v1493_v0  ;;  %v1621_v0 = vld [vmem:[%s6458_s7 + $0x1400] sm:$0xff] }
 0x119   : > { %1496 = vst [vmem:[%s6463_s8 + $0x808] sm:$0xff] %v1495_v1  ;;  %v1623_v1 = vld [vmem:[%s6458_s7 + $0x1410] sm:$0xff] }
 0x11a   : > { %1498 = vst [vmem:[%s6463_s8 + $0x810] sm:$0xff] %v1497_v2  ;;  %v1625_v2 = vld [vmem:[%s6458_s7 + $0x1420] sm:$0xff] }
 0x11b   : > { %1500 = vst [vmem:[%s6463_s8 + $0x818] sm:$0xff] %v1499_v3  ;;  %v1627_v3 = vld [vmem:[%s6458_s7 + $0x1430] sm:$0xff] }
 0x11c   : > { %1502 = vst [vmem:[%s6463_s8 + $0x820] sm:$0xff] %v1501_v4  ;;  %v1629_v4 = vld [vmem:[%s6458_s7 + $0x1440] sm:$0xff] }
 0x11d   : > { %1504 = vst [vmem:[%s6463_s8 + $0x828] sm:$0xff] %v1503_v5  ;;  %v1631_v5 = vld [vmem:[%s6458_s7 + $0x1450] sm:$0xff] }
 0x11e   : > { %1506 = vst [vmem:[%s6463_s8 + $0x830] sm:$0xff] %v1505_v6  ;;  %v1633_v6 = vld [vmem:[%s6458_s7 + $0x1460] sm:$0xff] }
 0x11f   : > { %1508 = vst [vmem:[%s6463_s8 + $0x838] sm:$0xff] %v1507_v7  ;;  %v1635_v7 = vld [vmem:[%s6458_s7 + $0x1470] sm:$0xff] }
 0x120   : > { %1510 = vst [vmem:[%s6463_s8 + $0x840] sm:$0xff] %v1509_v8  ;;  %v1637_v8 = vld [vmem:[%s6458_s7 + $0x1480] sm:$0xff] }
 0x121   : > { %1512 = vst [vmem:[%s6463_s8 + $0x848] sm:$0xff] %v1511_v9  ;;  %v1639_v9 = vld [vmem:[%s6458_s7 + $0x1490] sm:$0xff] }
 0x122   : > { %1514 = vst [vmem:[%s6463_s8 + $0x850] sm:$0xff] %v1513_v10  ;;  %v1641_v10 = vld [vmem:[%s6458_s7 + $0x14a0] sm:$0xff] }
 0x123   : > { %1516 = vst [vmem:[%s6463_s8 + $0x858] sm:$0xff] %v1515_v11  ;;  %v1643_v11 = vld [vmem:[%s6458_s7 + $0x14b0] sm:$0xff] }
 0x124   : > { %1518 = vst [vmem:[%s6463_s8 + $0x860] sm:$0xff] %v1517_v12  ;;  %v1645_v12 = vld [vmem:[%s6458_s7 + $0x14c0] sm:$0xff] }
 0x125   : > { %1520 = vst [vmem:[%s6463_s8 + $0x868] sm:$0xff] %v1519_v13  ;;  %v1647_v13 = vld [vmem:[%s6458_s7 + $0x14d0] sm:$0xff] }
 0x126   : > { %1522 = vst [vmem:[%s6463_s8 + $0x870] sm:$0xff] %v1521_v14  ;;  %v1649_v14 = vld [vmem:[%s6458_s7 + $0x14e0] sm:$0xff] }
 0x127   : > { %1524 = vst [vmem:[%s6463_s8 + $0x878] sm:$0xff] %v1523_v15  ;;  %v1651_v15 = vld [vmem:[%s6458_s7 + $0x14f0] sm:$0xff] }
 0x128   : > { %1526 = vst [vmem:[%s6463_s8 + $0x880] sm:$0xff] %v1525_v16  ;;  %v1653_v16 = vld [vmem:[%s6458_s7 + $0x1500] sm:$0xff] }
 0x129   : > { %1528 = vst [vmem:[%s6463_s8 + $0x888] sm:$0xff] %v1527_v17  ;;  %v1655_v17 = vld [vmem:[%s6458_s7 + $0x1510] sm:$0xff] }
 0x12a   : > { %1530 = vst [vmem:[%s6463_s8 + $0x890] sm:$0xff] %v1529_v18  ;;  %v1657_v18 = vld [vmem:[%s6458_s7 + $0x1520] sm:$0xff] }
 0x12b   : > { %1532 = vst [vmem:[%s6463_s8 + $0x898] sm:$0xff] %v1531_v19  ;;  %v1659_v19 = vld [vmem:[%s6458_s7 + $0x1530] sm:$0xff] }
 0x12c   : > { %1534 = vst [vmem:[%s6463_s8 + $0x8a0] sm:$0xff] %v1533_v20  ;;  %v1661_v20 = vld [vmem:[%s6458_s7 + $0x1540] sm:$0xff] }
 0x12d   : > { %1536 = vst [vmem:[%s6463_s8 + $0x8a8] sm:$0xff] %v1535_v21  ;;  %v1663_v21 = vld [vmem:[%s6458_s7 + $0x1550] sm:$0xff] }
 0x12e   : > { %1538 = vst [vmem:[%s6463_s8 + $0x8b0] sm:$0xff] %v1537_v22  ;;  %v1665_v22 = vld [vmem:[%s6458_s7 + $0x1560] sm:$0xff] }
 0x12f   : > { %1540 = vst [vmem:[%s6463_s8 + $0x8b8] sm:$0xff] %v1539_v23  ;;  %v1667_v23 = vld [vmem:[%s6458_s7 + $0x1570] sm:$0xff] }
 0x130   : > { %1542 = vst [vmem:[%s6463_s8 + $0x8c0] sm:$0xff] %v1541_v24  ;;  %v1669_v24 = vld [vmem:[%s6458_s7 + $0x1580] sm:$0xff] }
 0x131   : > { %1544 = vst [vmem:[%s6463_s8 + $0x8c8] sm:$0xff] %v1543_v25  ;;  %v1671_v25 = vld [vmem:[%s6458_s7 + $0x1590] sm:$0xff] }
 0x132   : > { %1546 = vst [vmem:[%s6463_s8 + $0x8d0] sm:$0xff] %v1545_v26  ;;  %v1673_v26 = vld [vmem:[%s6458_s7 + $0x15a0] sm:$0xff] }
 0x133   : > { %1548 = vst [vmem:[%s6463_s8 + $0x8d8] sm:$0xff] %v1547_v27  ;;  %v1675_v27 = vld [vmem:[%s6458_s7 + $0x15b0] sm:$0xff] }
 0x134   : > { %1550 = vst [vmem:[%s6463_s8 + $0x8e0] sm:$0xff] %v1549_v28  ;;  %v1677_v28 = vld [vmem:[%s6458_s7 + $0x15c0] sm:$0xff] }
 0x135   : > { %1552 = vst [vmem:[%s6463_s8 + $0x8e8] sm:$0xff] %v1551_v29  ;;  %v1679_v29 = vld [vmem:[%s6458_s7 + $0x15d0] sm:$0xff] }
 0x136   : > { %1554 = vst [vmem:[%s6463_s8 + $0x8f0] sm:$0xff] %v1553_v30  ;;  %v1681_v30 = vld [vmem:[%s6458_s7 + $0x15e0] sm:$0xff] }
 0x137   : > { %1556 = vst [vmem:[%s6463_s8 + $0x8f8] sm:$0xff] %v1555_v31  ;;  %v1683_v31 = vld [vmem:[%s6458_s7 + $0x15f0] sm:$0xff] }
 0x138   : > { %1558 = vst [vmem:[%s6463_s8 + $0x900] sm:$0xff] %v1557_v32  ;;  %v1685_v32 = vld [vmem:[%s6458_s7 + $0x1600] sm:$0xff] }
 0x139   : > { %1560 = vst [vmem:[%s6463_s8 + $0x908] sm:$0xff] %v1559_v33  ;;  %v1687_v33 = vld [vmem:[%s6458_s7 + $0x1610] sm:$0xff] }
 0x13a   : > { %1562 = vst [vmem:[%s6463_s8 + $0x910] sm:$0xff] %v1561_v34  ;;  %v1689_v34 = vld [vmem:[%s6458_s7 + $0x1620] sm:$0xff] }
 0x13b   : > { %1564 = vst [vmem:[%s6463_s8 + $0x918] sm:$0xff] %v1563_v35  ;;  %v1691_v35 = vld [vmem:[%s6458_s7 + $0x1630] sm:$0xff] }
 0x13c   : > { %1566 = vst [vmem:[%s6463_s8 + $0x920] sm:$0xff] %v1565_v36  ;;  %v1693_v36 = vld [vmem:[%s6458_s7 + $0x1640] sm:$0xff] }
 0x13d   : > { %1568 = vst [vmem:[%s6463_s8 + $0x928] sm:$0xff] %v1567_v37  ;;  %v1695_v37 = vld [vmem:[%s6458_s7 + $0x1650] sm:$0xff] }
 0x13e   : > { %1570 = vst [vmem:[%s6463_s8 + $0x930] sm:$0xff] %v1569_v38  ;;  %v1697_v38 = vld [vmem:[%s6458_s7 + $0x1660] sm:$0xff] }
 0x13f   : > { %1572 = vst [vmem:[%s6463_s8 + $0x938] sm:$0xff] %v1571_v39  ;;  %v1699_v39 = vld [vmem:[%s6458_s7 + $0x1670] sm:$0xff] }
 0x140   : > { %1574 = vst [vmem:[%s6463_s8 + $0x940] sm:$0xff] %v1573_v40  ;;  %v1701_v40 = vld [vmem:[%s6458_s7 + $0x1680] sm:$0xff] }
 0x141   : > { %1576 = vst [vmem:[%s6463_s8 + $0x948] sm:$0xff] %v1575_v41  ;;  %v1703_v41 = vld [vmem:[%s6458_s7 + $0x1690] sm:$0xff] }
 0x142   : > { %1578 = vst [vmem:[%s6463_s8 + $0x950] sm:$0xff] %v1577_v42  ;;  %v1705_v42 = vld [vmem:[%s6458_s7 + $0x16a0] sm:$0xff] }
 0x143   : > { %1580 = vst [vmem:[%s6463_s8 + $0x958] sm:$0xff] %v1579_v43  ;;  %v1707_v43 = vld [vmem:[%s6458_s7 + $0x16b0] sm:$0xff] }
 0x144   : > { %1582 = vst [vmem:[%s6463_s8 + $0x960] sm:$0xff] %v1581_v44  ;;  %v1709_v44 = vld [vmem:[%s6458_s7 + $0x16c0] sm:$0xff] }
 0x145   : > { %1584 = vst [vmem:[%s6463_s8 + $0x968] sm:$0xff] %v1583_v45  ;;  %v1711_v45 = vld [vmem:[%s6458_s7 + $0x16d0] sm:$0xff] }
 0x146   : > { %1586 = vst [vmem:[%s6463_s8 + $0x970] sm:$0xff] %v1585_v46  ;;  %v1713_v46 = vld [vmem:[%s6458_s7 + $0x16e0] sm:$0xff] }
 0x147   : > { %1588 = vst [vmem:[%s6463_s8 + $0x978] sm:$0xff] %v1587_v47  ;;  %v1715_v47 = vld [vmem:[%s6458_s7 + $0x16f0] sm:$0xff] }
 0x148   : > { %1590 = vst [vmem:[%s6463_s8 + $0x980] sm:$0xff] %v1589_v48  ;;  %v1717_v48 = vld [vmem:[%s6458_s7 + $0x1700] sm:$0xff] }
 0x149   : > { %1592 = vst [vmem:[%s6463_s8 + $0x988] sm:$0xff] %v1591_v49  ;;  %v1719_v49 = vld [vmem:[%s6458_s7 + $0x1710] sm:$0xff] }
 0x14a   : > { %1594 = vst [vmem:[%s6463_s8 + $0x990] sm:$0xff] %v1593_v50  ;;  %v1721_v50 = vld [vmem:[%s6458_s7 + $0x1720] sm:$0xff] }
 0x14b   : > { %1596 = vst [vmem:[%s6463_s8 + $0x998] sm:$0xff] %v1595_v51  ;;  %v1723_v51 = vld [vmem:[%s6458_s7 + $0x1730] sm:$0xff] }
 0x14c   : > { %1598 = vst [vmem:[%s6463_s8 + $0x9a0] sm:$0xff] %v1597_v52  ;;  %v1725_v52 = vld [vmem:[%s6458_s7 + $0x1740] sm:$0xff] }
 0x14d   : > { %1600 = vst [vmem:[%s6463_s8 + $0x9a8] sm:$0xff] %v1599_v53  ;;  %v1727_v53 = vld [vmem:[%s6458_s7 + $0x1750] sm:$0xff] }
 0x14e   : > { %1602 = vst [vmem:[%s6463_s8 + $0x9b0] sm:$0xff] %v1601_v54  ;;  %v1729_v54 = vld [vmem:[%s6458_s7 + $0x1760] sm:$0xff] }
 0x14f   : > { %1604 = vst [vmem:[%s6463_s8 + $0x9b8] sm:$0xff] %v1603_v55  ;;  %v1731_v55 = vld [vmem:[%s6458_s7 + $0x1770] sm:$0xff] }
 0x150   : > { %1606 = vst [vmem:[%s6463_s8 + $0x9c0] sm:$0xff] %v1605_v56  ;;  %v1733_v56 = vld [vmem:[%s6458_s7 + $0x1780] sm:$0xff] }
 0x151   : > { %1608 = vst [vmem:[%s6463_s8 + $0x9c8] sm:$0xff] %v1607_v57  ;;  %v1735_v57 = vld [vmem:[%s6458_s7 + $0x1790] sm:$0xff] }
 0x152   : > { %1610 = vst [vmem:[%s6463_s8 + $0x9d0] sm:$0xff] %v1609_v58  ;;  %v1737_v58 = vld [vmem:[%s6458_s7 + $0x17a0] sm:$0xff] }
 0x153   : > { %1612 = vst [vmem:[%s6463_s8 + $0x9d8] sm:$0xff] %v1611_v59  ;;  %v1739_v59 = vld [vmem:[%s6458_s7 + $0x17b0] sm:$0xff] }
 0x154   : > { %1614 = vst [vmem:[%s6463_s8 + $0x9e0] sm:$0xff] %v1613_v60  ;;  %v1741_v60 = vld [vmem:[%s6458_s7 + $0x17c0] sm:$0xff] }
 0x155   : > { %1616 = vst [vmem:[%s6463_s8 + $0x9e8] sm:$0xff] %v1615_v61  ;;  %v1743_v61 = vld [vmem:[%s6458_s7 + $0x17d0] sm:$0xff] }
 0x156   : > { %1618 = vst [vmem:[%s6463_s8 + $0x9f0] sm:$0xff] %v1617_v62  ;;  %v1745_v62 = vld [vmem:[%s6458_s7 + $0x17e0] sm:$0xff] }
 0x157   : > { %1620 = vst [vmem:[%s6463_s8 + $0x9f8] sm:$0xff] %v1619_v63  ;;  %v1747_v63 = vld [vmem:[%s6458_s7 + $0x17f0] sm:$0xff] }
 0x158   : > { %1622 = vst [vmem:[%s6463_s8 + $0xa00] sm:$0xff] %v1621_v0  ;;  %v1749_v0 = vld [vmem:[%s6458_s7 + $0x1800] sm:$0xff] }
 0x159   : > { %1624 = vst [vmem:[%s6463_s8 + $0xa08] sm:$0xff] %v1623_v1  ;;  %v1751_v1 = vld [vmem:[%s6458_s7 + $0x1810] sm:$0xff] }
 0x15a   : > { %1626 = vst [vmem:[%s6463_s8 + $0xa10] sm:$0xff] %v1625_v2  ;;  %v1753_v2 = vld [vmem:[%s6458_s7 + $0x1820] sm:$0xff] }
 0x15b   : > { %1628 = vst [vmem:[%s6463_s8 + $0xa18] sm:$0xff] %v1627_v3  ;;  %v1755_v3 = vld [vmem:[%s6458_s7 + $0x1830] sm:$0xff] }
 0x15c   : > { %1630 = vst [vmem:[%s6463_s8 + $0xa20] sm:$0xff] %v1629_v4  ;;  %v1757_v4 = vld [vmem:[%s6458_s7 + $0x1840] sm:$0xff] }
 0x15d   : > { %1632 = vst [vmem:[%s6463_s8 + $0xa28] sm:$0xff] %v1631_v5  ;;  %v1759_v5 = vld [vmem:[%s6458_s7 + $0x1850] sm:$0xff] }
 0x15e   : > { %1634 = vst [vmem:[%s6463_s8 + $0xa30] sm:$0xff] %v1633_v6  ;;  %v1761_v6 = vld [vmem:[%s6458_s7 + $0x1860] sm:$0xff] }
 0x15f   : > { %1636 = vst [vmem:[%s6463_s8 + $0xa38] sm:$0xff] %v1635_v7  ;;  %v1763_v7 = vld [vmem:[%s6458_s7 + $0x1870] sm:$0xff] }
 0x160   : > { %1638 = vst [vmem:[%s6463_s8 + $0xa40] sm:$0xff] %v1637_v8 }
 0x161   : > { %1640 = vst [vmem:[%s6463_s8 + $0xa48] sm:$0xff] %v1639_v9 }
 0x162   : > { %1642 = vst [vmem:[%s6463_s8 + $0xa50] sm:$0xff] %v1641_v10 }
 0x163   : > { %1644 = vst [vmem:[%s6463_s8 + $0xa58] sm:$0xff] %v1643_v11 }
 0x164   : > { %1646 = vst [vmem:[%s6463_s8 + $0xa60] sm:$0xff] %v1645_v12 }
 0x165   : > { %1648 = vst [vmem:[%s6463_s8 + $0xa68] sm:$0xff] %v1647_v13 }
 0x166   : > { %1650 = vst [vmem:[%s6463_s8 + $0xa70] sm:$0xff] %v1649_v14 }
 0x167   : > { %1652 = vst [vmem:[%s6463_s8 + $0xa78] sm:$0xff] %v1651_v15 }
 0x168   : > { %1654 = vst [vmem:[%s6463_s8 + $0xa80] sm:$0xff] %v1653_v16 }
 0x169   : > { %1656 = vst [vmem:[%s6463_s8 + $0xa88] sm:$0xff] %v1655_v17 }
 0x16a   : > { %1658 = vst [vmem:[%s6463_s8 + $0xa90] sm:$0xff] %v1657_v18 }
 0x16b   : > { %1660 = vst [vmem:[%s6463_s8 + $0xa98] sm:$0xff] %v1659_v19 }
 0x16c   : > { %1662 = vst [vmem:[%s6463_s8 + $0xaa0] sm:$0xff] %v1661_v20 }
 0x16d   : > { %1664 = vst [vmem:[%s6463_s8 + $0xaa8] sm:$0xff] %v1663_v21 }
 0x16e   : > { %1666 = vst [vmem:[%s6463_s8 + $0xab0] sm:$0xff] %v1665_v22 }
 0x16f   : > { %1668 = vst [vmem:[%s6463_s8 + $0xab8] sm:$0xff] %v1667_v23 }
 0x170   : > { %1670 = vst [vmem:[%s6463_s8 + $0xac0] sm:$0xff] %v1669_v24 }
 0x171   : > { %1672 = vst [vmem:[%s6463_s8 + $0xac8] sm:$0xff] %v1671_v25 }
 0x172   : > { %1674 = vst [vmem:[%s6463_s8 + $0xad0] sm:$0xff] %v1673_v26 }
 0x173   : > { %1676 = vst [vmem:[%s6463_s8 + $0xad8] sm:$0xff] %v1675_v27 }
 0x174   : > { %1678 = vst [vmem:[%s6463_s8 + $0xae0] sm:$0xff] %v1677_v28 }
 0x175   : > { %1680 = vst [vmem:[%s6463_s8 + $0xae8] sm:$0xff] %v1679_v29 }
 0x176   : > { %1682 = vst [vmem:[%s6463_s8 + $0xaf0] sm:$0xff] %v1681_v30 }
 0x177   : > { %1684 = vst [vmem:[%s6463_s8 + $0xaf8] sm:$0xff] %v1683_v31 }
 0x178   : > { %1686 = vst [vmem:[%s6463_s8 + $0xb00] sm:$0xff] %v1685_v32 }
 0x179   : > { %1688 = vst [vmem:[%s6463_s8 + $0xb08] sm:$0xff] %v1687_v33 }
 0x17a   : > { %1690 = vst [vmem:[%s6463_s8 + $0xb10] sm:$0xff] %v1689_v34 }
 0x17b   : > { %1692 = vst [vmem:[%s6463_s8 + $0xb18] sm:$0xff] %v1691_v35 }
 0x17c   : > { %1694 = vst [vmem:[%s6463_s8 + $0xb20] sm:$0xff] %v1693_v36 }
 0x17d   : > { %1696 = vst [vmem:[%s6463_s8 + $0xb28] sm:$0xff] %v1695_v37 }
 0x17e   : > { %1698 = vst [vmem:[%s6463_s8 + $0xb30] sm:$0xff] %v1697_v38 }
 0x17f   : > { %1700 = vst [vmem:[%s6463_s8 + $0xb38] sm:$0xff] %v1699_v39 }
 0x180   : > { %1702 = vst [vmem:[%s6463_s8 + $0xb40] sm:$0xff] %v1701_v40 }
 0x181   : > { %1704 = vst [vmem:[%s6463_s8 + $0xb48] sm:$0xff] %v1703_v41 }
 0x182   : > { %1706 = vst [vmem:[%s6463_s8 + $0xb50] sm:$0xff] %v1705_v42 }
 0x183   : > { %1708 = vst [vmem:[%s6463_s8 + $0xb58] sm:$0xff] %v1707_v43 }
 0x184   : > { %1710 = vst [vmem:[%s6463_s8 + $0xb60] sm:$0xff] %v1709_v44 }
 0x185   : > { %1712 = vst [vmem:[%s6463_s8 + $0xb68] sm:$0xff] %v1711_v45 }
 0x186   : > { %1714 = vst [vmem:[%s6463_s8 + $0xb70] sm:$0xff] %v1713_v46 }
 0x187   : > { %1716 = vst [vmem:[%s6463_s8 + $0xb78] sm:$0xff] %v1715_v47 }
 0x188   : > { %1718 = vst [vmem:[%s6463_s8 + $0xb80] sm:$0xff] %v1717_v48 }
 0x189   : > { %1720 = vst [vmem:[%s6463_s8 + $0xb88] sm:$0xff] %v1719_v49 }
 0x18a   : > { %1722 = vst [vmem:[%s6463_s8 + $0xb90] sm:$0xff] %v1721_v50 }
 0x18b   : > { %1724 = vst [vmem:[%s6463_s8 + $0xb98] sm:$0xff] %v1723_v51 }
 0x18c   : > { %1726 = vst [vmem:[%s6463_s8 + $0xba0] sm:$0xff] %v1725_v52 }
 0x18d   : > { %1728 = vst [vmem:[%s6463_s8 + $0xba8] sm:$0xff] %v1727_v53 }
 0x18e   : > { %1730 = vst [vmem:[%s6463_s8 + $0xbb0] sm:$0xff] %v1729_v54 }
 0x18f   : > { %1732 = vst [vmem:[%s6463_s8 + $0xbb8] sm:$0xff] %v1731_v55 }
 0x190   : > { %1734 = vst [vmem:[%s6463_s8 + $0xbc0] sm:$0xff] %v1733_v56 }
 0x191   : > { %1736 = vst [vmem:[%s6463_s8 + $0xbc8] sm:$0xff] %v1735_v57 }
 0x192   : > { %1738 = vst [vmem:[%s6463_s8 + $0xbd0] sm:$0xff] %v1737_v58 }
 0x193   : > { %1740 = vst [vmem:[%s6463_s8 + $0xbd8] sm:$0xff] %v1739_v59 }
 0x194   : > { %1742 = vst [vmem:[%s6463_s8 + $0xbe0] sm:$0xff] %v1741_v60 }
 0x195   : > { %1744 = vst [vmem:[%s6463_s8 + $0xbe8] sm:$0xff] %v1743_v61 }
 0x196   : > { %1746 = vst [vmem:[%s6463_s8 + $0xbf0] sm:$0xff] %v1745_v62 }
 0x197   : > { %1748 = vst [vmem:[%s6463_s8 + $0xbf8] sm:$0xff] %v1747_v63 }
 0x198   : > { %1750 = vst [vmem:[%s6463_s8 + $0xc00] sm:$0xff] %v1749_v0 }
 0x199   : > { %1752 = vst [vmem:[%s6463_s8 + $0xc08] sm:$0xff] %v1751_v1 }
 0x19a   : > { %1754 = vst [vmem:[%s6463_s8 + $0xc10] sm:$0xff] %v1753_v2 }
 0x19b   : > { %1756 = vst [vmem:[%s6463_s8 + $0xc18] sm:$0xff] %v1755_v3 }
 0x19c   : > { %1758 = vst [vmem:[%s6463_s8 + $0xc20] sm:$0xff] %v1757_v4 }
 0x19d   : > { %1760 = vst [vmem:[%s6463_s8 + $0xc28] sm:$0xff] %v1759_v5 }
 0x19e   : > { %1762 = vst [vmem:[%s6463_s8 + $0xc30] sm:$0xff] %v1761_v6 }
 0x19f   : > { %1764 = vst [vmem:[%s6463_s8 + $0xc38] sm:$0xff] %v1763_v7 }
 0x1a0 PF: > { %p5854_p7 = scmp.ge.s32.totalorder %s6376_s18, 1  ;;  %p3384_p8 = scmp.lt.s32.totalorder %s6376_s18, 5 }
 0x1a2   : > { %p3385_p9 = pnand %p5854_p7, %p3384_p8 }
 0x1a3   : > { %s3391_s9 = sand.u32 (!%p3385_p9), 1, %s6352_s12   ;;  %p3431_p10 = scmp.lt.s32.totalorder (!%p3385_p9), %s6364_s15, 1 }
 0x1a4   : > { %3388 = sbr.rel (%p3385_p9) target bundleno = 985 (0x3d9), region = 80  ;;  %s5856_s24 = sshll.u32 (!%p3385_p9), %s6360_s14, 1 }
 0x1a5   : > { %s5867_s10 = smul.u32 (!%p3385_p9), 3136, %s3391_s9  ;;  %p3440_p11 = scmp.lt.s32.totalorder (!%p3385_p9), %s5856_s24, 3 }
 0x1a7   : > { %s7249_s11 = scalar_lea.vmem (!%p3385_p9), [#allocation2], %s5867_s10 }
 0x1a9   : > { %v3478_v8 = vld [vmem:[%s7249_s11 + $0x78] sm:$0xff]  ;;  %v3477_v13 = vld [vmem:[%s7249_s11 + $0x70] sm:$0xff]  ;;  %v3476_v19 = vld [vmem:[%s7249_s11 + $0x68] sm:$0xff]  ;;  %s8210_s15 = smov (!%p3431_p10, %s6364_s15), 1  ;;  %vm4709_vm0 = vcmask 523264   ;;  %s8212_s24 = smov (!%p3440_p11, %s5856_s24), 3 }
 0x1aa   : > { %v3494_v9 = vld [vmem:[%s7249_s11 + $0xf8] sm:$0xff]  ;;  %v3885_v11 = vunpack.c.l.bf16 %v3478_v8  ;;  %v3493_v14 = vld [vmem:[%s7249_s11 + $0xf0] sm:$0xff]  ;;  %v3883_v17 = vunpack.c.l.bf16 %v3477_v13  ;;  %v3492_v20 = vld [vmem:[%s7249_s11 + $0xe8] sm:$0xff]  ;;  %v3881_v27 = vunpack.c.l.bf16 %v3476_v19  ;;  %s5868_s12 = smul.u32 50, %s8210_s15  ;;  %s5857_s26 = sshll.u32 %s8210_s15, 2  ;;  %vm5715_vm1 = vcmask 1041408  }
 0x1ab   : > { %v3510_v10 = vld [vmem:[%s7249_s11 + $0x178] sm:$0xff]  ;;  %v3917_v12 = vunpack.c.l.bf16 %v3494_v9  ;;  %v3509_v15 = vld [vmem:[%s7249_s11 + $0x170] sm:$0xff]  ;;  %v3915_v21 = vunpack.c.l.bf16 %v3493_v14  ;;  %v3508_v23 = vld [vmem:[%s7249_s11 + $0x168] sm:$0xff]  ;;  %v3913_v30 = vunpack.c.l.bf16 %v3492_v20  ;;  %s8138_s27 = sadd.s32 %s5857_s26, %s8212_s24 }
 0x1ac   : > { %v3949_v16 = vunpack.c.l.bf16 %v3510_v10  ;;  %v3526_v18 = vld [vmem:[%s7249_s11 + $0x1f8] sm:$0xff]  ;;  %4712 = vmatpush.msra.mxu0 %v3885_v11  ;;  %v3947_v22 = vunpack.c.l.bf16 %v3509_v15  ;;  %v3525_v24 = vld [vmem:[%s7249_s11 + $0x1f0] sm:$0xff]  ;;  %v3475_v25 = vld [vmem:[%s7249_s11 + $0x60] sm:$0xff]  ;;  %v3945_v31 = vunpack.c.l.bf16 %v3508_v23  ;;  %s7343_s23 = scalar_lea.vmem %s8193_s0, %s5868_s12  ;;  %s3444_s30 = scalar_lea.vmem %s8195_s2, %s8138_s27 }
 0x1ad   : > { %4732 = vmatpush.msra.mxu1 %v3917_v12  ;;  %v3981_v26 = vunpack.c.l.bf16 %v3526_v18  ;;  %v3491_v28 = vld [vmem:[%s7249_s11 + $0xe0] sm:$0xff]  ;;  %v3524_v32 = vld [vmem:[%s7249_s11 + $0x1e8] sm:$0xff]  ;;  %v3474_v33 = vld [vmem:[%s7249_s11 + $0x58] sm:$0xff]  ;;  %v3979_v34 = vunpack.c.l.bf16 %v3525_v24  ;;  %v3879_v35 = vunpack.c.l.bf16 %v3475_v25  ;;  %s5860_s14 = sshll.u32 %s8138_s27, 1 }
 0x1ae   : > { %4752 = vmatpush.msra.mxu2 %v3949_v16  ;;  %v3507_v29 = vld [vmem:[%s7249_s11 + $0x160] sm:$0xff]  ;;  %4713 = vmatpush.msra.mxu0 %v3883_v17  ;;  %v3490_v36 = vld [vmem:[%s7249_s11 + $0xd8] sm:$0xff]  ;;  %v3911_v38 = vunpack.c.l.bf16 %v3491_v28  ;;  %v3473_v41 = vld [vmem:[%s7249_s11 + $0x50] sm:$0xff]  ;;  %v3977_v42 = vunpack.c.l.bf16 %v3524_v32  ;;  %v3877_v43 = vunpack.c.l.bf16 %v3474_v33  ;;  %s3454_s5 = scalar_lea.vmem %s8196_s3, %s5860_s14 }
 0x1af   : > { %4733 = vmatpush.msra.mxu1 %v3915_v21  ;;  %4772 = vmatpush.msra.mxu3 %v3981_v26  ;;  %v3506_v37 = vld [vmem:[%s7249_s11 + $0x158] sm:$0xff]  ;;  %v3943_v39 = vunpack.c.l.bf16 %v3507_v29  ;;  %v3523_v40 = vld [vmem:[%s7249_s11 + $0x1e0] sm:$0xff]  ;;  %v3489_v44 = vld [vmem:[%s7249_s11 + $0xd0] sm:$0xff]  ;;  %v3909_v46 = vunpack.c.l.bf16 %v3490_v36  ;;  %v3875_v51 = vunpack.c.l.bf16 %v3473_v41 }
 0x1b0   : > { %4753 = vmatpush.msra.mxu2 %v3947_v22  ;;  %4714 = vmatpush.msra.mxu0 %v3881_v27  ;;  %v3505_v45 = vld [vmem:[%s7249_s11 + $0x150] sm:$0xff]  ;;  %v3941_v47 = vunpack.c.l.bf16 %v3506_v37  ;;  %v3522_v48 = vld [vmem:[%s7249_s11 + $0x1d8] sm:$0xff]  ;;  %v3472_v49 = vld [vmem:[%s7249_s11 + $0x48] sm:$0xff]  ;;  %v3975_v50 = vunpack.c.l.bf16 %v3523_v40  ;;  %v3907_v54 = vunpack.c.l.bf16 %v3489_v44 }
 0x1b1   : > { %4734 = vmatpush.msra.mxu1 %v3913_v30  ;;  %4773 = vmatpush.msra.mxu3 %v3979_v34  ;;  %v3488_v52 = vld [vmem:[%s7249_s11 + $0xc8] sm:$0xff]  ;;  %v3939_v55 = vunpack.c.l.bf16 %v3505_v45  ;;  %v3521_v56 = vld [vmem:[%s7249_s11 + $0x1d0] sm:$0xff]  ;;  %v3471_v57 = vld [vmem:[%s7249_s11 + $0x40] sm:$0xff]  ;;  %v3973_v58 = vunpack.c.l.bf16 %v3522_v48  ;;  %v3873_v59 = vunpack.c.l.bf16 %v3472_v49 }
 0x1b2   : > { %4754 = vmatpush.msra.mxu2 %v3945_v31  ;;  %4715 = vmatpush.msra.mxu0 %v3879_v35  ;;  %v3504_v53 = vld [vmem:[%s7249_s11 + $0x148] sm:$0xff]  ;;  %v3487_v60 = vld [vmem:[%s7249_s11 + $0xc0] sm:$0xff]  ;;  %v3905_v62 = vunpack.c.l.bf16 %v3488_v52  ;;  %v3470_v1 = vld [vmem:[%s7249_s11 + $0x38] sm:$0xff]  ;;  %v3971_v2 = vunpack.c.l.bf16 %v3521_v56  ;;  %v3871_v3 = vunpack.c.l.bf16 %v3471_v57 }
 0x1b3   : > { %4735 = vmatpush.msra.mxu1 %v3911_v38  ;;  %4774 = vmatpush.msra.mxu3 %v3977_v42  ;;  %v3503_v61 = vld [vmem:[%s7249_s11 + $0x140] sm:$0xff]  ;;  %v3937_v63 = vunpack.c.l.bf16 %v3504_v53  ;;  %v3520_v0 = vld [vmem:[%s7249_s11 + $0x1c8] sm:$0xff]  ;;  %v3486_v4 = vld [vmem:[%s7249_s11 + $0xb8] sm:$0xff]  ;;  %v3903_v6 = vunpack.c.l.bf16 %v3487_v60  ;;  %v3869_v11 = vunpack.c.l.bf16 %v3470_v1 }
 0x1b4   : > { %4755 = vmatpush.msra.mxu2 %v3943_v39  ;;  %4716 = vmatpush.msra.mxu0 %v3877_v43  ;;  %v3502_v5 = vld [vmem:[%s7249_s11 + $0x138] sm:$0xff]  ;;  %v3935_v7 = vunpack.c.l.bf16 %v3503_v61  ;;  %v3519_v8 = vld [vmem:[%s7249_s11 + $0x1c0] sm:$0xff]  ;;  %v3469_v9 = vld [vmem:[%s7249_s11 + $0x30] sm:$0xff]  ;;  %v3969_v10 = vunpack.c.l.bf16 %v3520_v0  ;;  %v3901_v14 = vunpack.c.l.bf16 %v3486_v4 }
 0x1b5   : > { %4736 = vmatpush.msra.mxu1 %v3909_v46  ;;  %4775 = vmatpush.msra.mxu3 %v3975_v50  ;;  %v3485_v12 = vld [vmem:[%s7249_s11 + $0xb0] sm:$0xff]  ;;  %v3933_v15 = vunpack.c.l.bf16 %v3502_v5  ;;  %v3518_v16 = vld [vmem:[%s7249_s11 + $0x1b8] sm:$0xff]  ;;  %v3468_v17 = vld [vmem:[%s7249_s11 + $0x28] sm:$0xff]  ;;  %v3967_v18 = vunpack.c.l.bf16 %v3519_v8  ;;  %v3867_v19 = vunpack.c.l.bf16 %v3469_v9 }
 0x1b6   : > { %4756 = vmatpush.msra.mxu2 %v3941_v47  ;;  %4717 = vmatpush.msra.mxu0 %v3875_v51  ;;  %v3501_v13 = vld [vmem:[%s7249_s11 + $0x130] sm:$0xff]  ;;  %v3484_v20 = vld [vmem:[%s7249_s11 + $0xa8] sm:$0xff]  ;;  %v3899_v22 = vunpack.c.l.bf16 %v3485_v12  ;;  %v3467_v25 = vld [vmem:[%s7249_s11 + $0x20] sm:$0xff]  ;;  %v3965_v26 = vunpack.c.l.bf16 %v3518_v16  ;;  %v3865_v27 = vunpack.c.l.bf16 %v3468_v17 }
 0x1b7   : > { %4737 = vmatpush.msra.mxu1 %v3907_v54  ;;  %4776 = vmatpush.msra.mxu3 %v3973_v58  ;;  %v3500_v21 = vld [vmem:[%s7249_s11 + $0x128] sm:$0xff]  ;;  %v3931_v23 = vunpack.c.l.bf16 %v3501_v13  ;;  %v3517_v24 = vld [vmem:[%s7249_s11 + $0x1b0] sm:$0xff]  ;;  %v3483_v28 = vld [vmem:[%s7249_s11 + $0xa0] sm:$0xff]  ;;  %v3897_v30 = vunpack.c.l.bf16 %v3484_v20  ;;  %v3863_v35 = vunpack.c.l.bf16 %v3467_v25 }
 0x1b8   : > { %4757 = vmatpush.msra.mxu2 %v3939_v55  ;;  %4718 = vmatpush.msra.mxu0 %v3873_v59  ;;  %v3499_v29 = vld [vmem:[%s7249_s11 + $0x120] sm:$0xff]  ;;  %v3929_v31 = vunpack.c.l.bf16 %v3500_v21  ;;  %v3516_v32 = vld [vmem:[%s7249_s11 + $0x1a8] sm:$0xff]  ;;  %v3466_v33 = vld [vmem:[%s7249_s11 + $0x18] sm:$0xff]  ;;  %v3963_v34 = vunpack.c.l.bf16 %v3517_v24  ;;  %v3895_v38 = vunpack.c.l.bf16 %v3483_v28 }
 0x1b9   : > { %4738 = vmatpush.msra.mxu1 %v3905_v62  ;;  %4777 = vmatpush.msra.mxu3 %v3971_v2  ;;  %v3482_v36 = vld [vmem:[%s7249_s11 + $0x98] sm:$0xff]  ;;  %v3927_v39 = vunpack.c.l.bf16 %v3499_v29  ;;  %v3515_v40 = vld [vmem:[%s7249_s11 + $0x1a0] sm:$0xff]  ;;  %v3465_v41 = vld [vmem:[%s7249_s11 + $0x10] sm:$0xff]  ;;  %v3961_v42 = vunpack.c.l.bf16 %v3516_v32  ;;  %v3861_v43 = vunpack.c.l.bf16 %v3466_v33 }
 0x1ba   : > { %4758 = vmatpush.msra.mxu2 %v3937_v63  ;;  %4719 = vmatpush.msra.mxu0 %v3871_v3  ;;  %v3498_v37 = vld [vmem:[%s7249_s11 + $0x118] sm:$0xff]  ;;  %v3481_v44 = vld [vmem:[%s7249_s11 + $0x90] sm:$0xff]  ;;  %v3893_v46 = vunpack.c.l.bf16 %v3482_v36  ;;  %v3464_v49 = vld [vmem:[%s7249_s11 + $0x8] sm:$0xff]  ;;  %v3959_v50 = vunpack.c.l.bf16 %v3515_v40  ;;  %v3859_v51 = vunpack.c.l.bf16 %v3465_v41 }
 0x1bb   : > { %4739 = vmatpush.msra.mxu1 %v3903_v6  ;;  %4778 = vmatpush.msra.mxu3 %v3969_v10  ;;  %v3497_v45 = vld [vmem:[%s7249_s11 + $0x110] sm:$0xff]  ;;  %v3925_v47 = vunpack.c.l.bf16 %v3498_v37  ;;  %v3514_v48 = vld [vmem:[%s7249_s11 + $0x198] sm:$0xff]  ;;  %v3480_v52 = vld [vmem:[%s7249_s11 + $0x88] sm:$0xff]  ;;  %v3891_v54 = vunpack.c.l.bf16 %v3481_v44  ;;  %v3857_v59 = vunpack.c.l.bf16 %v3464_v49 }
 0x1bc   : > { %4759 = vmatpush.msra.mxu2 %v3935_v7  ;;  %4720 = vmatpush.msra.mxu0 %v3869_v11  ;;  %v3496_v53 = vld [vmem:[%s7249_s11 + $0x108] sm:$0xff]  ;;  %v3923_v55 = vunpack.c.l.bf16 %v3497_v45  ;;  %v3513_v56 = vld [vmem:[%s7249_s11 + $0x190] sm:$0xff]  ;;  %v3463_v57 = vld [vmem:[%s7249_s11] sm:$0xff]  ;;  %v3957_v58 = vunpack.c.l.bf16 %v3514_v48  ;;  %v3889_v62 = vunpack.c.l.bf16 %v3480_v52 }
 0x1bd   : > { %4740 = vmatpush.msra.mxu1 %v3901_v14  ;;  %4779 = vmatpush.msra.mxu3 %v3967_v18  ;;  %v3479_v60 = vld [vmem:[%s7249_s11 + $0x80] sm:$0xff]  ;;  %v3921_v63 = vunpack.c.l.bf16 %v3496_v53  ;;  %v3512_v0 = vld [vmem:[%s7249_s11 + $0x188] sm:$0xff]  ;;  %v3542_v1 = vld [vmem:[%s7249_s11 + $0x278] sm:$0xff]  ;;  %v3955_v2 = vunpack.c.l.bf16 %v3513_v56  ;;  %v3855_v3 = vunpack.c.l.bf16 %v3463_v57 }
 0x1be   : > { %4760 = vmatpush.msra.mxu2 %v3933_v15  ;;  %4721 = vmatpush.msra.mxu0 %v3867_v19  ;;  %v3495_v61 = vld [vmem:[%s7249_s11 + $0x100] sm:$0xff]  ;;  %v3558_v4 = vld [vmem:[%s7249_s11 + $0x2f8] sm:$0xff]  ;;  %v3887_v6 = vunpack.c.l.bf16 %v3479_v60  ;;  %v3541_v9 = vld [vmem:[%s7249_s11 + $0x270] sm:$0xff]  ;;  %v3953_v10 = vunpack.c.l.bf16 %v3512_v0  ;;  %v4013_v11 = vunpack.c.l.bf16 %v3542_v1 }
 0x1bf   : > { %4741 = vmatpush.msra.mxu1 %v3899_v22  ;;  %4780 = vmatpush.msra.mxu3 %v3965_v26  ;;  %v3574_v5 = vld [vmem:[%s7249_s11 + $0x378] sm:$0xff]  ;;  %v3919_v7 = vunpack.c.l.bf16 %v3495_v61  ;;  %v3511_v8 = vld [vmem:[%s7249_s11 + $0x180] sm:$0xff]  ;;  %v3557_v12 = vld [vmem:[%s7249_s11 + $0x2f0] sm:$0xff]  ;;  %v4045_v14 = vunpack.c.l.bf16 %v3558_v4  ;;  %v4011_v19 = vunpack.c.l.bf16 %v3541_v9 }
 0x1c0   : > { %4761 = vmatpush.msra.mxu2 %v3931_v23  ;;  %4722 = vmatpush.msra.mxu0 %v3865_v27  ;;  %v3573_v13 = vld [vmem:[%s7249_s11 + $0x370] sm:$0xff]  ;;  %v4077_v15 = vunpack.c.l.bf16 %v3574_v5  ;;  %v3590_v16 = vld [vmem:[%s7249_s11 + $0x3f8] sm:$0xff]  ;;  %v3540_v17 = vld [vmem:[%s7249_s11 + $0x268] sm:$0xff]  ;;  %v3951_v18 = vunpack.c.l.bf16 %v3511_v8  ;;  %v4043_v22 = vunpack.c.l.bf16 %v3557_v12 }
 0x1c1   : > { %4742 = vmatpush.msra.mxu1 %v3897_v30  ;;  %4781 = vmatpush.msra.mxu3 %v3963_v34  ;;  %v3556_v20 = vld [vmem:[%s7249_s11 + $0x2e8] sm:$0xff]  ;;  %v4075_v23 = vunpack.c.l.bf16 %v3573_v13  ;;  %v3589_v24 = vld [vmem:[%s7249_s11 + $0x3f0] sm:$0xff]  ;;  %v3539_v25 = vld [vmem:[%s7249_s11 + $0x260] sm:$0xff]  ;;  %v4109_v26 = vunpack.c.l.bf16 %v3590_v16  ;;  %v4009_v27 = vunpack.c.l.bf16 %v3540_v17 }
 0x1c2   : > { %4762 = vmatpush.msra.mxu2 %v3929_v31  ;;  %4723 = vmatpush.msra.mxu0 %v3863_v35  ;;  %v3572_v21 = vld [vmem:[%s7249_s11 + $0x368] sm:$0xff]  ;;  %v3555_v28 = vld [vmem:[%s7249_s11 + $0x2e0] sm:$0xff]  ;;  %v4041_v30 = vunpack.c.l.bf16 %v3556_v20  ;;  %v3538_v33 = vld [vmem:[%s7249_s11 + $0x258] sm:$0xff]  ;;  %v4107_v34 = vunpack.c.l.bf16 %v3589_v24  ;;  %v4007_v35 = vunpack.c.l.bf16 %v3539_v25 }
 0x1c3   : > { %4743 = vmatpush.msra.mxu1 %v3895_v38  ;;  %4782 = vmatpush.msra.mxu3 %v3961_v42  ;;  %v3571_v29 = vld [vmem:[%s7249_s11 + $0x360] sm:$0xff]  ;;  %v4073_v31 = vunpack.c.l.bf16 %v3572_v21  ;;  %v3588_v32 = vld [vmem:[%s7249_s11 + $0x3e8] sm:$0xff]  ;;  %v3554_v36 = vld [vmem:[%s7249_s11 + $0x2d8] sm:$0xff]  ;;  %v4039_v38 = vunpack.c.l.bf16 %v3555_v28 }
 0x1c4   : > { %4763 = vmatpush.msra.mxu2 %v3927_v39  ;;  %4724 = vmatpush.msra.mxu0 %v3861_v43  ;;  %v3570_v37 = vld [vmem:[%s7249_s11 + $0x358] sm:$0xff]  ;;  %v4071_v39 = vunpack.c.l.bf16 %v3571_v29  ;;  %v3587_v40 = vld [vmem:[%s7249_s11 + $0x3e0] sm:$0xff]  ;;  %v3537_v41 = vld [vmem:[%s7249_s11 + $0x250] sm:$0xff]  ;;  %v4105_v42 = vunpack.c.l.bf16 %v3588_v32  ;;  %v4005_v43 = vunpack.c.l.bf16 %v3538_v33 }
 0x1c5   : > { %4744 = vmatpush.msra.mxu1 %v3893_v46  ;;  %4783 = vmatpush.msra.mxu3 %v3959_v50  ;;  %v3553_v44 = vld [vmem:[%s7249_s11 + $0x2d0] sm:$0xff]  ;;  %v4037_v46 = vunpack.c.l.bf16 %v3554_v36  ;;  %v3586_v48 = vld [vmem:[%s7249_s11 + $0x3d8] sm:$0xff]  ;;  %v3536_v49 = vld [vmem:[%s7249_s11 + $0x248] sm:$0xff]  ;;  %v4003_v52 = vunpack.c.l.bf16 %v3537_v41 }
 0x1c6   : > { %4764 = vmatpush.msra.mxu2 %v3925_v47  ;;  %4725 = vmatpush.msra.mxu0 %v3859_v51  ;;  %v3569_v45 = vld [vmem:[%s7249_s11 + $0x350] sm:$0xff]  ;;  %v4069_v47 = vunpack.c.l.bf16 %v3570_v37  ;;  %v3456_v50 = vld [vmem:[%s7343_s23] sm:$0xff]  ;;  %v4103_v51 = vunpack.c.l.bf16 %v3587_v40  ;;  %v3552_v53 = vld [vmem:[%s7249_s11 + $0x2c8] sm:$0xff]  ;;  %v4101_v60 = vunpack.c.l.bf16 %v3586_v48  ;;  %v4001_v61 = vunpack.c.l.bf16 %v3536_v49 }
 0x1c7   : > { %4745 = vmatpush.msra.mxu1 %v3891_v54  ;;  %4784 = vmatpush.msra.mxu3 %v3957_v58  ;;  %v3568_v54 = vld [vmem:[%s7249_s11 + $0x348] sm:$0xff]  ;;  %4652 = vst [vmem:[#allocation1] ss:$4 sm:$0xff] %v3456_v50  ;;  %v4067_v56 = vunpack.c.l.bf16 %v3569_v45  ;;  %v3585_v57 = vld [vmem:[%s7249_s11 + $0x3d0] sm:$0xff]  ;;  %v3535_v58 = vld [vmem:[%s7249_s11 + $0x240] sm:$0xff]  ;;  %v4033_v1 = vunpack.c.l.bf16 %v3552_v53 }
 0x1c8   : > { %4765 = vmatpush.msra.mxu2 %v3923_v55  ;;  %4726 = vmatpush.msra.mxu0 %v3857_v59  ;;  %v4035_v55 = vunpack.c.l.bf16 %v3553_v44  ;;  %v3551_v59 = vld [vmem:[%s7249_s11 + $0x2c0] sm:$0xff]  ;;  %v3534_v0 = vld [vmem:[%s7249_s11 + $0x238] sm:$0xff]  ;;  %v3533_v8 = vld [vmem:[%s7249_s11 + $0x230] sm:$0xff] }
 0x1c9   : > { %4746 = vmatpush.msra.mxu1 %v3889_v62  ;;  %4785 = vmatpush.msra.mxu3 %v3955_v2  ;;  %v3567_v62 = vld [vmem:[%s7249_s11 + $0x340] sm:$0xff]  ;;  %v4065_v2 = vunpack.c.l.bf16 %v3568_v54  ;;  %v3566_v4 = vld [vmem:[%s7249_s11 + $0x338] sm:$0xff]  ;;  %v3549_v9 = vld [vmem:[%s7249_s11 + $0x2b0] sm:$0xff]  ;;  %v3997_v17 = vunpack.c.l.bf16 %v3534_v0 }
 0x1ca   : > { %4766 = vmatpush.msra.mxu2 %v3921_v63  ;;  %4727 = vmatpush.msra.mxu0 %v3855_v3  ;;  %v3584_v63 = vld [vmem:[%s7249_s11 + $0x3c8] sm:$0xff]  ;;  %v3550_v3 = vld [vmem:[%s7249_s11 + $0x2b8] sm:$0xff]  ;;  %v3583_v5 = vld [vmem:[%s7249_s11 + $0x3c0] sm:$0xff]  ;;  %v4063_v12 = vunpack.c.l.bf16 %v3567_v62 }
 0x1cb   : > { %4747 = vmatpush.msra.mxu1 %v3887_v6  ;;  %4786 = vmatpush.msra.mxu3 %v3953_v10  ;;  %v4099_v6 = vunpack.c.l.bf16 %v3585_v57  ;;  %v3565_v10 = vld [vmem:[%s7249_s11 + $0x330] sm:$0xff]  ;;  %v3582_v13 = vld [vmem:[%s7249_s11 + $0x3b8] sm:$0xff]  ;;  %v4097_v16 = vunpack.c.l.bf16 %v3584_v63  ;;  %v3458_v20 = vld [vmem:[%s7343_s23 + $0x10] sm:$0xff]  ;;  %v4029_v21 = vunpack.c.l.bf16 %v3550_v3 }
 0x1cc   : > { %4767 = vmatpush.msra.mxu2 %v3919_v7  ;;  %4792 = vmatpush.msrb.mxu0 %v4013_v11  ;;  %v3999_v7 = vunpack.c.l.bf16 %v3535_v58  ;;  %v4031_v11 = vunpack.c.l.bf16 %v3551_v59  ;;  %v3531_v32 = vld [vmem:[%s7249_s11 + $0x220] sm:$0xff]  ;;  %v3580_v37 = vld [vmem:[%s7249_s11 + $0x3a8] sm:$0xff]  ;;  %v3529_v44 = vld [vmem:[%s7249_s11 + $0x210] sm:$0xff] }
 0x1cd   : > { %4812 = vmatpush.msrb.mxu1 %v4045_v14  ;;  %4787 = vmatpush.msra.mxu3 %v3951_v18  ;;  %v3532_v14 = vld [vmem:[%s7249_s11 + $0x228] sm:$0xff]  ;;  %v3547_v33 = vld [vmem:[%s7249_s11 + $0x2a0] sm:$0xff]  ;;  %v3561_v48 = vld [vmem:[%s7249_s11 + $0x310] sm:$0xff]  ;;  %v4089_v54 = vunpack.c.l.bf16 %v3580_v37  ;;  %v3987_v63 = vunpack.c.l.bf16 %v3529_v44 }
 0x1ce   : > { %4832 = vmatpush.msrb.mxu2 %v4077_v15  ;;  %4793 = vmatpush.msrb.mxu0 %v4011_v19  ;;  %v3457_v15 = vld [vmem:[%s7343_s23 + $0x8] sm:$0xff]  ;;  %v3548_v18 = vld [vmem:[%s7249_s11 + $0x2a8] sm:$0xff]  ;;  %v7375_v25 = vld.sshfl [vmem:[#allocation1] sm:$0xff pattern:$0x73625140]  ;;  %v3993_v36 = vunpack.c.l.bf16 %v3532_v14  ;;  %v4023_v50 = vunpack.c.l.bf16 %v3547_v33  ;;  %v4051_v3 = vunpack.c.l.bf16 %v3561_v48 }
 0x1cf   : > { %4813 = vmatpush.msrb.mxu1 %v4043_v22  ;;  %4852 = vmatpush.msrb.mxu3 %v4109_v26  ;;  %v3564_v19 = vld [vmem:[%s7249_s11 + $0x328] sm:$0xff]  ;;  %4654 = vst [vmem:[#allocation1 + $0x20] ss:$4 sm:$0xff] %v3457_v15  ;;  %v4061_v22 = vunpack.c.l.bf16 %v3566_v4  ;;  %v4095_v26 = vunpack.c.l.bf16 %v3583_v5  ;;  %v7377_v28 = vld.sshfl [vmem:[#allocation1 + $0x8] sm:$0xff pattern:$0x73625140]  ;;  %v4025_v40 = vunpack.c.l.bf16 %v3548_v18 }
 0x1d0   : > { %4833 = vmatpush.msrb.mxu2 %v4075_v23  ;;  %4794 = vmatpush.msrb.mxu0 %v4009_v27  ;;  %v3581_v23 = vld [vmem:[%s7249_s11 + $0x3b0] sm:$0xff]  ;;  %v7373_v24 = vld.sshfl [vmem:[#allocation1 + $0x10] sm:$0xff pattern:$0x73625140]  ;;  %v3995_v27 = vunpack.c.l.bf16 %v3533_v8  ;;  %v4057_v41 = vunpack.c.l.bf16 %v3564_v19  ;;  %v3527_v5 = vld [vmem:[%s7249_s11 + $0x200] sm:$0xff] }
 0x1d1   : > { %4814 = vmatpush.msrb.mxu1 %v4041_v30  ;;  %4853 = vmatpush.msrb.mxu3 %v4107_v34  ;;  %v7379_v29 = vld.sshfl [vmem:[#allocation1 + $0x18] sm:$0xff pattern:$0x73625140]  ;;  %v4027_v30 = vunpack.c.l.bf16 %v3549_v9  ;;  %v3563_v34 = vld [vmem:[%s7249_s11 + $0x320] sm:$0xff]  ;;  %v4091_v45 = vunpack.c.l.bf16 %v3581_v23  ;;  %v3544_v0 = vld [vmem:[%s7249_s11 + $0x288] sm:$0xff]  ;;  %v3983_v14 = vunpack.c.l.bf16 %v3527_v5 }
 0x1d2   : > { %4834 = vmatpush.msrb.mxu2 %v4073_v31  ;;  %4795 = vmatpush.msrb.mxu0 %v4007_v35  ;;  %v4059_v31 = vunpack.c.l.bf16 %v3565_v10  ;;  %4663 = vst [vmem:[#allocation1] ss:$4 sm:$0xff] %v3458_v20  ;;  %v4093_v35 = vunpack.c.l.bf16 %v3582_v13  ;;  %v3459_v49 = vld [vmem:[%s7343_s23 + $0x18] sm:$0xff]  ;;  %v3543_v8 = vld [vmem:[%s7249_s11 + $0x280] sm:$0xff]  ;;  %v4017_v10 = vunpack.c.l.bf16 %v3544_v0  ;;  %v3606_v15 = vld [vmem:[%s7249_s11 + $0x478] sm:$0xff] }
 0x1d3   : > { %4815 = vmatpush.msrb.mxu1 %v4039_v38  ;;  %4854 = vmatpush.msrb.mxu3 %v4105_v42  ;;  %v3530_v38 = vld [vmem:[%s7249_s11 + $0x218] sm:$0xff]  ;;  %v3577_v4 = vld [vmem:[%s7249_s11 + $0x390] sm:$0xff]  ;;  %v3559_v9 = vld [vmem:[%s7249_s11 + $0x300] sm:$0xff] }
 0x1d4   : > { %4835 = vmatpush.msrb.mxu2 %v4071_v39  ;;  %4796 = vmatpush.msrb.mxu0 %v4005_v43  ;;  %v3546_v39 = vld [vmem:[%s7249_s11 + $0x298] sm:$0xff]  ;;  %v3579_v43 = vld [vmem:[%s7249_s11 + $0x3a0] sm:$0xff]  ;;  %v4083_v13 = vunpack.c.l.bf16 %v3577_v4  ;;  %v4047_v18 = vunpack.c.l.bf16 %v3559_v9  ;;  %v3621_v23 = vld [vmem:[%s7249_s11 + $0x4f0] sm:$0xff] }
 0x1d5   : > { %4816 = vmatpush.msrb.mxu1 %v4037_v46  ;;  %4855 = vmatpush.msrb.mxu3 %v4103_v51  ;;  %v3562_v42 = vld [vmem:[%s7249_s11 + $0x318] sm:$0xff]  ;;  %v3991_v46 = vunpack.c.l.bf16 %v3531_v32  ;;  %v4055_v51 = vunpack.c.l.bf16 %v3563_v34  ;;  %v4021_v58 = vunpack.c.l.bf16 %v3546_v39  ;;  %v4087_v62 = vunpack.c.l.bf16 %v3579_v43  ;;  %v3575_v20 = vld [vmem:[%s7249_s11 + $0x380] sm:$0xff]  ;;  %v3604_v34 = vld [vmem:[%s7249_s11 + $0x468] sm:$0xff] }
 0x1d6   : > { %4836 = vmatpush.msrb.mxu2 %v4069_v47  ;;  %4797 = vmatpush.msrb.mxu0 %v4003_v52  ;;  %v3545_v47 = vld [vmem:[%s7249_s11 + $0x290] sm:$0xff]  ;;  %v7393_v52 = vld.sshfl [vmem:[#allocation1 + $0x30] sm:$0xff pattern:$0x73625140]  ;;  %v4053_v59 = vunpack.c.l.bf16 %v3562_v42  ;;  %v3638_v19 = vld [vmem:[%s7249_s11 + $0x578] sm:$0xff]  ;;  %v4079_v33 = vunpack.c.l.bf16 %v3575_v20  ;;  %v4171_v37 = vunpack.c.l.bf16 %v3621_v23  ;;  %v4137_v43 = vunpack.c.l.bf16 %v3604_v34 }
 0x1d7   : > { %4817 = vmatpush.msrb.mxu1 %v4035_v55  ;;  %4856 = vmatpush.msrb.mxu3 %v4101_v60  ;;  %v7395_v53 = vld.sshfl [vmem:[#allocation1 + $0x20] sm:$0xff pattern:$0x73625140]  ;;  %v3989_v55 = vunpack.c.l.bf16 %v3530_v38  ;;  %v7399_v57 = vld.sshfl [vmem:[#allocation1 + $0x28] sm:$0xff pattern:$0x73625140]  ;;  %v4205_v32 = vunpack.c.l.bf16 %v3638_v19 }
 0x1d8   : > { %4837 = vmatpush.msrb.mxu2 %v4067_v56  ;;  %4798 = vmatpush.msrb.mxu0 %v4001_v61  ;;  %v7397_v56 = vld.sshfl [vmem:[#allocation1 + $0x38] sm:$0xff pattern:$0x73625140]  ;;  %v3578_v60 = vld [vmem:[%s7249_s11 + $0x398] sm:$0xff]  ;;  %v3528_v61 = vld [vmem:[%s7249_s11 + $0x208] sm:$0xff] }
 0x1d9   : > { %4818 = vmatpush.msrb.mxu1 %v4033_v1  ;;  %4857 = vmatpush.msrb.mxu3 %v4099_v6  ;;  %4664 = vst [vmem:[#allocation1 + $0x20] ss:$4 sm:$0xff] %v3459_v49  ;;  %v3560_v1 = vld [vmem:[%s7249_s11 + $0x308] sm:$0xff]  ;;  %v4085_v6 = vunpack.c.l.bf16 %v3578_v60  ;;  %v3653_v39 = vld [vmem:[%s7249_s11 + $0x5f0] sm:$0xff]  ;;  %v3603_v42 = vld [vmem:[%s7249_s11 + $0x460] sm:$0xff] }
 0x1da   : > { %4838 = vmatpush.msrb.mxu2 %v4065_v2  ;;  %4799 = vmatpush.msrb.mxu0 %v3999_v7  ;;  %v4019_v2 = vunpack.c.l.bf16 %v3545_v47  ;;  %v3985_v7 = vunpack.c.l.bf16 %v3528_v61  ;;  %v3636_v38 = vld [vmem:[%s7249_s11 + $0x568] sm:$0xff]  ;;  %v4235_v48 = vunpack.c.l.bf16 %v3653_v39  ;;  %v3651_v60 = vld [vmem:[%s7249_s11 + $0x5e0] sm:$0xff]  ;;  %v3601_v61 = vld [vmem:[%s7249_s11 + $0x450] sm:$0xff] }
 0x1db   : > { %4819 = vmatpush.msrb.mxu1 %v4031_v11  ;;  %4858 = vmatpush.msrb.mxu3 %v4097_v16  ;;  %v4049_v11 = vunpack.c.l.bf16 %v3560_v1  ;;  %v3622_v16 = vld [vmem:[%s7249_s11 + $0x4f8] sm:$0xff]  ;;  %v4201_v47 = vunpack.c.l.bf16 %v3636_v38  ;;  %v3652_v49 = vld [vmem:[%s7249_s11 + $0x5e8] sm:$0xff]  ;;  %v7439_v1 = vld.sshfl [vmem:[#allocation1 + $0x8] sm:$0xff pattern:$0x73625140] }
 0x1dc   : > { %4839 = vmatpush.msrb.mxu2 %v4063_v12  ;;  %4800 = vmatpush.msrb.mxu0 %v3997_v17  ;;  %v3576_v12 = vld [vmem:[%s7249_s11 + $0x388] sm:$0xff]  ;;  %v4015_v17 = vunpack.c.l.bf16 %v3543_v8  ;;  %v3460_v4 = vld [vmem:[%s7343_s23 + $0x20] sm:$0xff]  ;;  %v7443_v5 = vld.sshfl [vmem:[#allocation1 + $0x18] sm:$0xff pattern:$0x73625140] }
 0x1dd   : > { %4820 = vmatpush.msrb.mxu1 %v4029_v21  ;;  %4859 = vmatpush.msrb.mxu3 %v4095_v26  ;;  %v4081_v21 = vunpack.c.l.bf16 %v3576_v12  ;;  %v4141_v26 = vunpack.c.l.bf16 %v3606_v15  ;;  %v7437_v0 = vld.sshfl [vmem:[#allocation1 + $0x10] sm:$0xff pattern:$0x73625140]  ;;  %v3633_v8 = vld [vmem:[%s7249_s11 + $0x550] sm:$0xff]  ;;  %v3650_v9 = vld [vmem:[%s7249_s11 + $0x5d8] sm:$0xff] }
 0x1de   : > { %4840 = vmatpush.msrb.mxu2 %v4061_v22  ;;  %4801 = vmatpush.msrb.mxu0 %v3995_v27  ;;  %v3605_v22 = vld [vmem:[%s7249_s11 + $0x470] sm:$0xff]  ;;  %v4173_v27 = vunpack.c.l.bf16 %v3622_v16  ;;  %v3616_v12 = vld [vmem:[%s7249_s11 + $0x4c8] sm:$0xff]  ;;  %v3599_v19 = vld [vmem:[%s7249_s11 + $0x440] sm:$0xff] }
 0x1df   : > { %4821 = vmatpush.msrb.mxu1 %v4027_v30  ;;  %4860 = vmatpush.msrb.mxu3 %v4093_v35  ;;  %v3637_v30 = vld [vmem:[%s7249_s11 + $0x570] sm:$0xff]  ;;  %v3620_v35 = vld [vmem:[%s7249_s11 + $0x4e8] sm:$0xff]  ;;  %v3615_v20 = vld [vmem:[%s7249_s11 + $0x4c0] sm:$0xff] }
 0x1e0   : > { %4841 = vmatpush.msrb.mxu2 %v4059_v31  ;;  %4802 = vmatpush.msrb.mxu0 %v3993_v36  ;;  %v3654_v31 = vld [vmem:[%s7249_s11 + $0x5f8] sm:$0xff]  ;;  %v4139_v36 = vunpack.c.l.bf16 %v3605_v22  ;;  %v4169_v44 = vunpack.c.l.bf16 %v3620_v35  ;;  %v3632_v15 = vld [vmem:[%s7249_s11 + $0x548] sm:$0xff]  ;;  %v3649_v16 = vld [vmem:[%s7249_s11 + $0x5d0] sm:$0xff]  ;;  %v4161_v22 = vunpack.c.l.bf16 %v3616_v12  ;;  %v4159_v34 = vunpack.c.l.bf16 %v3615_v20 }
 0x1e1   : > { %4822 = vmatpush.msrb.mxu1 %v4025_v40  ;;  %4861 = vmatpush.msrb.mxu3 %v4091_v45  ;;  %v4203_v40 = vunpack.c.l.bf16 %v3637_v30  ;;  %v3619_v45 = vld [vmem:[%s7249_s11 + $0x4e0] sm:$0xff]  ;;  %v4227_v30 = vunpack.c.l.bf16 %v3649_v16  ;;  %v3630_v35 = vld [vmem:[%s7249_s11 + $0x538] sm:$0xff]  ;;  %v3597_v39 = vld [vmem:[%s7249_s11 + $0x430] sm:$0xff] }
 0x1e2   : > { %4842 = vmatpush.msrb.mxu2 %v4057_v41  ;;  %4803 = vmatpush.msrb.mxu0 %v3991_v46  ;;  %v4237_v41 = vunpack.c.l.bf16 %v3654_v31  ;;  %v3635_v46 = vld [vmem:[%s7249_s11 + $0x560] sm:$0xff]  ;;  %v3598_v31 = vld [vmem:[%s7249_s11 + $0x438] sm:$0xff]  ;;  %v3609_v16 = vld [vmem:[%s7249_s11 + $0x490] sm:$0xff] }
 0x1e3   : > { %4823 = vmatpush.msrb.mxu1 %v4023_v50  ;;  %4862 = vmatpush.msrb.mxu3 %v4089_v54  ;;  %v4135_v50 = vunpack.c.l.bf16 %v3603_v42  ;;  %v3618_v54 = vld [vmem:[%s7249_s11 + $0x4d8] sm:$0xff]  ;;  %v3631_v23 = vld [vmem:[%s7249_s11 + $0x540] sm:$0xff] }
 0x1e4   : > { %4843 = vmatpush.msrb.mxu2 %v4055_v51  ;;  %4804 = vmatpush.msrb.mxu0 %v3989_v55  ;;  %v3602_v51 = vld [vmem:[%s7249_s11 + $0x458] sm:$0xff]  ;;  %v3643_v12 = vld [vmem:[%s7249_s11 + $0x5a0] sm:$0xff] }
 0x1e5   : > { %4824 = vmatpush.msrb.mxu1 %v4021_v58  ;;  %4863 = vmatpush.msrb.mxu3 %v4087_v62  ;;  %v3634_v55 = vld [vmem:[%s7249_s11 + $0x558] sm:$0xff]  ;;  %v4167_v58 = vunpack.c.l.bf16 %v3619_v45  ;;  %v4189_v45 = vunpack.c.l.bf16 %v3630_v35  ;;  %v3591_v35 = vld [vmem:[%s7249_s11 + $0x400] sm:$0xff] }
 0x1e6   : > { %4844 = vmatpush.msrb.mxu2 %v4053_v59  ;;  %4805 = vmatpush.msrb.mxu0 %v3987_v63  ;;  %v4199_v59 = vunpack.c.l.bf16 %v3635_v46  ;;  %v7435_v62 = vld.sshfl [vmem:[#allocation1] sm:$0xff pattern:$0x73625140]  ;;  %v4233_v63 = vunpack.c.l.bf16 %v3652_v49  ;;  %v4123_v49 = vunpack.c.l.bf16 %v3597_v39  ;;  %v3623_v39 = vld [vmem:[%s7249_s11 + $0x500] sm:$0xff] }
 0x1e7   : > { %4825 = vmatpush.msrb.mxu1 %v4019_v2  ;;  %4864 = vmatpush.msrb.mxu3 %v4085_v6  ;;  %v4133_v2 = vunpack.c.l.bf16 %v3602_v51  ;;  %v4165_v6 = vunpack.c.l.bf16 %v3618_v54  ;;  %4673 = vst [vmem:[#allocation1] ss:$4 sm:$0xff] %v3460_v4  ;;  %v3628_v51 = vld [vmem:[%s7249_s11 + $0x528] sm:$0xff]  ;;  %v3645_v54 = vld [vmem:[%s7249_s11 + $0x5b0] sm:$0xff]  ;;  %v3642_v20 = vld [vmem:[%s7249_s11 + $0x598] sm:$0xff] }
 0x1e8   : > { %4845 = vmatpush.msrb.mxu2 %v4051_v3  ;;  %4806 = vmatpush.msrb.mxu0 %v3985_v7  ;;  %v3617_v3 = vld [vmem:[%s7249_s11 + $0x4d0] sm:$0xff]  ;;  %v4197_v7 = vunpack.c.l.bf16 %v3634_v55  ;;  %v4185_v4 = vunpack.c.l.bf16 %v3628_v51 }
 0x1e9   : > { %4826 = vmatpush.msrb.mxu1 %v4017_v10  ;;  %4865 = vmatpush.msrb.mxu3 %v4083_v13  ;;  %v4231_v10 = vunpack.c.l.bf16 %v3651_v60  ;;  %v4131_v13 = vunpack.c.l.bf16 %v3601_v61  ;;  %v3611_v60 = vld [vmem:[%s7249_s11 + $0x4a0] sm:$0xff] }
 0x1ea   : > { %4846 = vmatpush.msrb.mxu2 %v4049_v11  ;;  %4807 = vmatpush.msrb.mxu0 %v3983_v14  ;;  %v3600_v11 = vld [vmem:[%s7249_s11 + $0x448] sm:$0xff]  ;;  %v4163_v14 = vunpack.c.l.bf16 %v3617_v3 }
 0x1eb   : > { %4768 = vmatmul.f32.vlgmr.msra.gmra.mxu2 %v7373_v24  ;;  %4827 = vmatpush.msrb.mxu1 %v4015_v17  ;;  %v4195_v17 = vunpack.c.l.bf16 %v3633_v8  ;;  %v3644_v3 = vld [vmem:[%s7249_s11 + $0x5a8] sm:$0xff]  ;;  %v3610_v8 = vld [vmem:[%s7249_s11 + $0x498] sm:$0xff] }
 0x1ec   : > { %4847 = vmatpush.msrb.mxu2 %v4047_v18  ;;  %4866 = vmatpush.msrb.mxu3 %v4081_v21  ;;  %v4229_v18 = vunpack.c.l.bf16 %v3650_v9  ;;  %v4129_v21 = vunpack.c.l.bf16 %v3600_v11  ;;  %v3626_v11 = vld [vmem:[%s7249_s11 + $0x518] sm:$0xff] }
 0x1ed   : > { %4728 = vmatmul.f32.vlgmr.msra.gmra.mxu0 %v7375_v25  ;;  %4748 = vmatmul.f32.vlgmr.msra.gmra.mxu1 %v7377_v28 }
 0x1ee   : > { %4788 = vmatmul.f32.vlgmr.msra.gmra.mxu3 %v7379_v29  ;;  %4872 = vmatpush.msra.mxu0 %v4141_v26  ;;  %v3648_v26 = vld [vmem:[%s7249_s11 + $0x5c8] sm:$0xff] }
 0x1ef   : > { %4892 = vmatpush.msra.mxu1 %v4173_v27  ;;  %4912 = vmatpush.msra.mxu2 %v4205_v32  ;;  %v4193_v27 = vunpack.c.l.bf16 %v3632_v15  ;;  %v3614_v32 = vld [vmem:[%s7249_s11 + $0x4b8] sm:$0xff]  ;;  %v4225_v38 = vunpack.c.l.bf16 %v3648_v26  ;;  %v3593_v15 = vld [vmem:[%s7249_s11 + $0x410] sm:$0xff]  ;;  %v3608_v26 = vld [vmem:[%s7249_s11 + $0x488] sm:$0xff] }
 0x1f0   : > { %4867 = vmatpush.msrb.mxu3 %v4079_v33  ;;  %4873 = vmatpush.msra.mxu0 %v4139_v36  ;;  %v4127_v33 = vunpack.c.l.bf16 %v3599_v19  ;;  %v3647_v36 = vld [vmem:[%s7249_s11 + $0x5c0] sm:$0xff]  ;;  %v4157_v42 = vunpack.c.l.bf16 %v3614_v32  ;;  %v3625_v19 = vld [vmem:[%s7249_s11 + $0x510] sm:$0xff] }
 0x1f1   : > { %4893 = vmatpush.msra.mxu1 %v4171_v37  ;;  %4913 = vmatpush.msra.mxu2 %v4203_v40  ;;  %v4191_v37 = vunpack.c.l.bf16 %v3631_v23  ;;  %v3613_v40 = vld [vmem:[%s7249_s11 + $0x4b0] sm:$0xff]  ;;  %v4223_v46 = vunpack.c.l.bf16 %v3647_v36  ;;  %v3592_v23 = vld [vmem:[%s7249_s11 + $0x408] sm:$0xff]  ;;  %v3607_v36 = vld [vmem:[%s7249_s11 + $0x480] sm:$0xff] }
 0x1f2   : > { %4932 = vmatpush.msra.mxu3 %v4237_v41  ;;  %4874 = vmatpush.msra.mxu0 %v4137_v43  ;;  %v4125_v41 = vunpack.c.l.bf16 %v3598_v31  ;;  %v3629_v43 = vld [vmem:[%s7249_s11 + $0x530] sm:$0xff]  ;;  %v3624_v31 = vld [vmem:[%s7249_s11 + $0x508] sm:$0xff] }
 0x1f3   : > { %4894 = vmatpush.msra.mxu1 %v4169_v44  ;;  %4914 = vmatpush.msra.mxu2 %v4201_v47  ;;  %v3646_v44 = vld [vmem:[%s7249_s11 + $0x5b8] sm:$0xff]  ;;  %v3596_v47 = vld [vmem:[%s7249_s11 + $0x428] sm:$0xff]  ;;  %v4187_v55 = vunpack.c.l.bf16 %v3629_v43  ;;  %v3641_v32 = vld [vmem:[%s7249_s11 + $0x590] sm:$0xff]  ;;  %v4111_v43 = vunpack.c.l.bf16 %v3591_v35 }
 0x1f4   : > { %4933 = vmatpush.msra.mxu3 %v4235_v48  ;;  %4848 = vmatmul.f32.vlgmr.msrb.gmra.mxu2 %v7393_v52  ;;  %v3612_v48 = vld [vmem:[%s7249_s11 + $0x4a8] sm:$0xff]  ;;  %v4121_v61 = vunpack.c.l.bf16 %v3596_v47  ;;  %v4175_v47 = vunpack.c.l.bf16 %v3623_v39  ;;  %v3681_v35 = vld [vmem:[%s7249_s11 + $0x6d0] sm:$0xff] }
 0x1f5   : > { %4875 = vmatpush.msra.mxu0 %v4135_v50  ;;  %4895 = vmatpush.msra.mxu1 %v4167_v58  ;;  %v4155_v50 = vunpack.c.l.bf16 %v3613_v40  ;;  %v4221_v58 = vunpack.c.l.bf16 %v3646_v44  ;;  %v3640_v40 = vld [vmem:[%s7249_s11 + $0x588] sm:$0xff]  ;;  %v4143_v44 = vunpack.c.l.bf16 %v3607_v36  ;;  %v3461_v36 = vld [vmem:[%s7343_s23 + $0x28] sm:$0xff] }
 0x1f6   : > { %4915 = vmatpush.msra.mxu2 %v4199_v59  ;;  %4934 = vmatpush.msra.mxu3 %v4233_v63  ;;  %v3595_v59 = vld [vmem:[%s7249_s11 + $0x420] sm:$0xff]  ;;  %v4153_v63 = vunpack.c.l.bf16 %v3612_v48  ;;  %v4209_v48 = vunpack.c.l.bf16 %v3640_v40  ;;  %v3697_v40 = vld [vmem:[%s7249_s11 + $0x750] sm:$0xff] }
 0x1f7   : > { %4808 = vmatmul.f32.vlgmr.msrb.gmra.mxu0 %v7395_v53  ;;  %4868 = vmatmul.f32.vlgmr.msrb.gmra.mxu3 %v7397_v56  ;;  %v4119_v9 = vunpack.c.l.bf16 %v3595_v59 }
 0x1f8   : > { %4876 = vmatpush.msra.mxu0 %v4133_v2  ;;  %4896 = vmatpush.msra.mxu1 %v4165_v6  ;;  %v3627_v2 = vld [vmem:[%s7249_s11 + $0x520] sm:$0xff]  ;;  %v4219_v6 = vunpack.c.l.bf16 %v3645_v54 }
 0x1f9   : > { %4916 = vmatpush.msra.mxu2 %v4197_v7  ;;  %4935 = vmatpush.msra.mxu3 %v4231_v10  ;;  %v3594_v7 = vld [vmem:[%s7249_s11 + $0x418] sm:$0xff]  ;;  %v4151_v10 = vunpack.c.l.bf16 %v3611_v60 }
 0x1fa   : > { %4828 = vmatmul.f32.vlgmr.msrb.gmra.mxu1 %v7399_v57  ;;  %4877 = vmatpush.msra.mxu0 %v4131_v13  ;;  %v4183_v13 = vunpack.c.l.bf16 %v3627_v2  ;;  %v3668_v2 = vld [vmem:[%s7249_s11 + $0x668] sm:$0xff] }
 0x1fb   : > { %4897 = vmatpush.msra.mxu1 %v4163_v14  ;;  %4917 = vmatpush.msra.mxu2 %v4195_v17  ;;  %v4217_v14 = vunpack.c.l.bf16 %v3644_v3  ;;  %v4117_v17 = vunpack.c.l.bf16 %v3594_v7  ;;  %v3684_v3 = vld [vmem:[%s7249_s11 + $0x6e8] sm:$0xff] }
 0x1fc   : > { %4936 = vmatpush.msra.mxu3 %v4229_v18  ;;  %4878 = vmatpush.msra.mxu0 %v4129_v21  ;;  %v4149_v18 = vunpack.c.l.bf16 %v3610_v8  ;;  %v4181_v21 = vunpack.c.l.bf16 %v3626_v11  ;;  %v3700_v7 = vld [vmem:[%s7249_s11 + $0x768] sm:$0xff]  ;;  %v3717_v8 = vld [vmem:[%s7249_s11 + $0x7f0] sm:$0xff] }
 0x1fd   : > { %4898 = vmatpush.msra.mxu1 %v4161_v22  ;;  %4918 = vmatpush.msra.mxu2 %v4193_v27  ;;  %v4215_v22 = vunpack.c.l.bf16 %v3643_v12  ;;  %v4115_v27 = vunpack.c.l.bf16 %v3593_v15  ;;  %v3683_v12 = vld [vmem:[%s7249_s11 + $0x6e0] sm:$0xff]  ;;  %v4265_v15 = vunpack.c.l.bf16 %v3668_v2 }
 0x1fe   : > { %4937 = vmatpush.msra.mxu3 %v4227_v30  ;;  %4879 = vmatpush.msra.mxu0 %v4127_v33  ;;  %v4147_v30 = vunpack.c.l.bf16 %v3609_v16  ;;  %v4179_v33 = vunpack.c.l.bf16 %v3625_v19  ;;  %v4297_v16 = vunpack.c.l.bf16 %v3684_v3  ;;  %v3698_v19 = vld [vmem:[%s7249_s11 + $0x758] sm:$0xff] }
 0x1ff   : > { %4899 = vmatpush.msra.mxu1 %v4159_v34  ;;  %4919 = vmatpush.msra.mxu2 %v4191_v37  ;;  %v4213_v34 = vunpack.c.l.bf16 %v3642_v20  ;;  %v4113_v37 = vunpack.c.l.bf16 %v3592_v23  ;;  %v4329_v20 = vunpack.c.l.bf16 %v3700_v7  ;;  %v3665_v23 = vld [vmem:[%s7249_s11 + $0x650] sm:$0xff]  ;;  %v3662_v3 = vld [vmem:[%s7249_s11 + $0x638] sm:$0xff] }
 0x200   : > { %4938 = vmatpush.msra.mxu3 %v4225_v38  ;;  %4880 = vmatpush.msra.mxu0 %v4125_v41  ;;  %v4145_v38 = vunpack.c.l.bf16 %v3608_v26  ;;  %v4177_v41 = vunpack.c.l.bf16 %v3624_v31  ;;  %v7516_v26 = vld.sshfl [vmem:[#allocation1 + $0x20] sm:$0xff pattern:$0x73625140]  ;;  %v7518_v31 = vld.sshfl [vmem:[#allocation1 + $0x30] sm:$0xff pattern:$0x73625140] }
 0x201   : > { %4900 = vmatpush.msra.mxu1 %v4157_v42  ;;  %4920 = vmatpush.msra.mxu2 %v4189_v45  ;;  %v4211_v42 = vunpack.c.l.bf16 %v3641_v32  ;;  %v3670_v45 = vld [vmem:[%s7249_s11 + $0x678] sm:$0xff]  ;;  %v7520_v32 = vld.sshfl [vmem:[#allocation1 + $0x28] sm:$0xff pattern:$0x73625140] }
 0x202   : > { %4939 = vmatpush.msra.mxu3 %v4223_v46  ;;  %4881 = vmatpush.msra.mxu0 %v4123_v49  ;;  %v3686_v46 = vld [vmem:[%s7249_s11 + $0x6f8] sm:$0xff]  ;;  %v4269_v51 = vunpack.c.l.bf16 %v3670_v45  ;;  %v3680_v45 = vld [vmem:[%s7249_s11 + $0x6c8] sm:$0xff] }
 0x203   : > { %4901 = vmatpush.msra.mxu1 %v4155_v50  ;;  %4921 = vmatpush.msra.mxu2 %v4187_v55  ;;  %v3702_v49 = vld [vmem:[%s7249_s11 + $0x778] sm:$0xff]  ;;  %v3639_v50 = vld [vmem:[%s7249_s11 + $0x580] sm:$0xff]  ;;  %v4301_v54 = vunpack.c.l.bf16 %v3686_v46  ;;  %v3669_v55 = vld [vmem:[%s7249_s11 + $0x670] sm:$0xff]  ;;  %v4259_v46 = vunpack.c.l.bf16 %v3665_v23 }
 0x204   : > { %4940 = vmatpush.msra.mxu3 %v4221_v58  ;;  %4882 = vmatpush.msra.mxu0 %v4121_v61  ;;  %v3685_v58 = vld [vmem:[%s7249_s11 + $0x6f0] sm:$0xff]  ;;  %v4333_v59 = vunpack.c.l.bf16 %v3702_v49  ;;  %v4207_v60 = vunpack.c.l.bf16 %v3639_v50  ;;  %v4323_v50 = vunpack.c.l.bf16 %v3697_v40  ;;  %v3691_v40 = vld [vmem:[%s7249_s11 + $0x720] sm:$0xff] }
 0x205   : > { %4902 = vmatpush.msra.mxu1 %v4153_v63  ;;  %4922 = vmatpush.msra.mxu2 %v4185_v4  ;;  %v3701_v61 = vld [vmem:[%s7249_s11 + $0x770] sm:$0xff]  ;;  %v3718_v63 = vld [vmem:[%s7249_s11 + $0x7f8] sm:$0xff]  ;;  %v4267_v4 = vunpack.c.l.bf16 %v3669_v55  ;;  %v3679_v55 = vld [vmem:[%s7249_s11 + $0x6c0] sm:$0xff] }
 0x206   : > { %4941 = vmatpush.msra.mxu3 %v4219_v6  ;;  %4883 = vmatpush.msra.mxu0 %v4119_v9  ;;  %v4299_v6 = vunpack.c.l.bf16 %v3685_v58  ;;  %v3667_v9 = vld [vmem:[%s7249_s11 + $0x660] sm:$0xff]  ;;  %v4365_v11 = vunpack.c.l.bf16 %v3718_v63  ;;  %v3713_v49 = vld [vmem:[%s7249_s11 + $0x7d0] sm:$0xff]  ;;  %v4287_v7 = vunpack.c.l.bf16 %v3679_v55 }
 0x207   : > { %4903 = vmatpush.msra.mxu1 %v4151_v10  ;;  %4923 = vmatpush.msra.mxu2 %v4183_v13  ;;  %v4331_v10 = vunpack.c.l.bf16 %v3701_v61  ;;  %v3699_v13 = vld [vmem:[%s7249_s11 + $0x760] sm:$0xff]  ;;  %v3712_v61 = vld [vmem:[%s7249_s11 + $0x7c8] sm:$0xff]  ;;  %v4355_v2 = vunpack.c.l.bf16 %v3713_v49  ;;  %v3673_v55 = vld [vmem:[%s7249_s11 + $0x690] sm:$0xff] }
 0x208   : > { %4942 = vmatpush.msra.mxu3 %v4217_v14  ;;  %4884 = vmatpush.msra.mxu0 %v4117_v17  ;;  %v3716_v14 = vld [vmem:[%s7249_s11 + $0x7e8] sm:$0xff]  ;;  %v3666_v17 = vld [vmem:[%s7249_s11 + $0x658] sm:$0xff]  ;;  %v3707_v49 = vld [vmem:[%s7249_s11 + $0x7a0] sm:$0xff] }
 0x209   : > { %4904 = vmatpush.msra.mxu1 %v4149_v18  ;;  %4924 = vmatpush.msra.mxu2 %v4181_v21  ;;  %v3682_v18 = vld [vmem:[%s7249_s11 + $0x6d8] sm:$0xff]  ;;  %v4363_v21 = vunpack.c.l.bf16 %v3717_v8 }
 0x20a   : > { %4943 = vmatpush.msra.mxu3 %v4215_v22  ;;  %4885 = vmatpush.msra.mxu0 %v4115_v27  ;;  %v3715_v22 = vld [vmem:[%s7249_s11 + $0x7e0] sm:$0xff]  ;;  %v4263_v27 = vunpack.c.l.bf16 %v3667_v9  ;;  %v4293_v39 = vunpack.c.l.bf16 %v3682_v18  ;;  %v3694_v8 = vld [vmem:[%s7249_s11 + $0x738] sm:$0xff] }
 0x20b   : > { %4905 = vmatpush.msra.mxu1 %v4147_v30  ;;  %4925 = vmatpush.msra.mxu2 %v4179_v33  ;;  %v4295_v30 = vunpack.c.l.bf16 %v3683_v12  ;;  %v4327_v33 = vunpack.c.l.bf16 %v3699_v13  ;;  %v3711_v9 = vld [vmem:[%s7249_s11 + $0x7c0] sm:$0xff]  ;;  %v3661_v12 = vld [vmem:[%s7249_s11 + $0x630] sm:$0xff]  ;;  %v4317_v18 = vunpack.c.l.bf16 %v3694_v8  ;;  %v3688_v8 = vld [vmem:[%s7249_s11 + $0x708] sm:$0xff] }
 0x20c   : > { %4944 = vmatpush.msra.mxu3 %v4213_v34  ;;  %4886 = vmatpush.msra.mxu0 %v4113_v37  ;;  %v4361_v34 = vunpack.c.l.bf16 %v3716_v14  ;;  %v7524_v37 = vld.sshfl [vmem:[#allocation1 + $0x38] sm:$0xff pattern:$0x73625140]  ;;  %v4253_v14 = vunpack.c.l.bf16 %v3662_v3  ;;  %v3656_v3 = vld [vmem:[%s7249_s11 + $0x608] sm:$0xff] }
 0x20d   : > { %4906 = vmatpush.msra.mxu1 %v4145_v38  ;;  %4926 = vmatpush.msra.mxu2 %v4177_v41  ;;  %v4261_v38 = vunpack.c.l.bf16 %v3666_v17  ;;  %v3714_v41 = vld [vmem:[%s7249_s11 + $0x7d8] sm:$0xff]  ;;  %4674 = vst [vmem:[#allocation1 + $0x20] ss:$4 sm:$0xff] %v3461_v36  ;;  %v3677_v13 = vld [vmem:[%s7249_s11 + $0x6b0] sm:$0xff]  ;;  %v3675_v36 = vld [vmem:[%s7249_s11 + $0x6a0] sm:$0xff] }
 0x20e   : > { %4945 = vmatpush.msra.mxu3 %v4211_v42  ;;  %4887 = vmatpush.msra.mxu0 %v4111_v43  ;;  %v4325_v42 = vunpack.c.l.bf16 %v3698_v19  ;;  %v4359_v43 = vunpack.c.l.bf16 %v3715_v22  ;;  %v3710_v17 = vld [vmem:[%s7249_s11 + $0x7b8] sm:$0xff]  ;;  %v4351_v19 = vunpack.c.l.bf16 %v3711_v9  ;;  %v4251_v22 = vunpack.c.l.bf16 %v3661_v12  ;;  %v3705_v9 = vld [vmem:[%s7249_s11 + $0x790] sm:$0xff]  ;;  %v3655_v12 = vld [vmem:[%s7249_s11 + $0x600] sm:$0xff] }
 0x20f   : > { %4907 = vmatpush.msra.mxu1 %v4143_v44  ;;  %4927 = vmatpush.msra.mxu2 %v4175_v47  ;;  %v3664_v44 = vld [vmem:[%s7249_s11 + $0x648] sm:$0xff]  ;;  %v4291_v47 = vunpack.c.l.bf16 %v3681_v35  ;;  %v4283_v23 = vunpack.c.l.bf16 %v3677_v13  ;;  %v3659_v35 = vld [vmem:[%s7249_s11 + $0x620] sm:$0xff] }
 0x210   : > { %4946 = vmatpush.msra.mxu3 %v4209_v48  ;;  %4888 = vmatmul.f32.vlgmr.msra.gmra.mxu0 %v7435_v62  ;;  %v3696_v48 = vld [vmem:[%s7249_s11 + $0x748] sm:$0xff]  ;;  %v4257_v58 = vunpack.c.l.bf16 %v3664_v44  ;;  %v3658_v44 = vld [vmem:[%s7249_s11 + $0x618] sm:$0xff]  ;;  %v3671_v13 = vld [vmem:[%s7249_s11 + $0x680] sm:$0xff] }
 0x211   : > { %4928 = vmatmul.f32.vlgmr.msra.gmra.mxu2 %v7437_v0  ;;  %4952 = vmatpush.msrb.mxu0 %v4269_v51  ;;  %v4357_v51 = vunpack.c.l.bf16 %v3714_v41  ;;  %v4321_v63 = vunpack.c.l.bf16 %v3696_v48  ;;  %v3708_v41 = vld [vmem:[%s7249_s11 + $0x7a8] sm:$0xff]  ;;  %v3690_v48 = vld [vmem:[%s7249_s11 + $0x718] sm:$0xff] }
 0x212   : > { %4972 = vmatpush.msrb.mxu1 %v4301_v54  ;;  %4992 = vmatpush.msrb.mxu2 %v4333_v59  ;;  %v3663_v54 = vld [vmem:[%s7249_s11 + $0x640] sm:$0xff]  ;;  %v4289_v59 = vunpack.c.l.bf16 %v3680_v45  ;;  %v3674_v45 = vld [vmem:[%s7249_s11 + $0x698] sm:$0xff] }
 0x213   : > { %4947 = vmatpush.msra.mxu3 %v4207_v60  ;;  %4908 = vmatmul.f32.vlgmr.msra.gmra.mxu1 %v7439_v1  ;;  %v3695_v60 = vld [vmem:[%s7249_s11 + $0x740] sm:$0xff] }
 0x214   : > { %4948 = vmatmul.f32.vlgmr.msra.gmra.mxu3 %v7443_v5  ;;  %4953 = vmatpush.msrb.mxu0 %v4267_v4  ;;  %v3678_v4 = vld [vmem:[%s7249_s11 + $0x6b8] sm:$0xff] }
 0x215   : > { %4973 = vmatpush.msrb.mxu1 %v4299_v6  ;;  %4993 = vmatpush.msrb.mxu2 %v4331_v10  ;;  %v4255_v6 = vunpack.c.l.bf16 %v3663_v54  ;;  %v4319_v10 = vunpack.c.l.bf16 %v3695_v60  ;;  %v3657_v54 = vld [vmem:[%s7249_s11 + $0x610] sm:$0xff] }
 0x216   : > { %5012 = vmatpush.msrb.mxu3 %v4365_v11  ;;  %4954 = vmatpush.msrb.mxu0 %v4265_v15  ;;  %v4353_v11 = vunpack.c.l.bf16 %v3712_v61  ;;  %v4285_v15 = vunpack.c.l.bf16 %v3678_v4  ;;  %v3689_v60 = vld [vmem:[%s7249_s11 + $0x710] sm:$0xff]  ;;  %v3706_v61 = vld [vmem:[%s7249_s11 + $0x798] sm:$0xff]  ;;  %v3672_v4 = vld [vmem:[%s7249_s11 + $0x688] sm:$0xff] }
 0x217   : > { %4974 = vmatpush.msrb.mxu1 %v4297_v16  ;;  %4994 = vmatpush.msrb.mxu2 %v4329_v20  ;;  %v3693_v16 = vld [vmem:[%s7249_s11 + $0x730] sm:$0xff]  ;;  %v3660_v20 = vld [vmem:[%s7249_s11 + $0x628] sm:$0xff] }
 0x218   : > { %5013 = vmatpush.msrb.mxu3 %v4363_v21  ;;  %4955 = vmatpush.msrb.mxu0 %v4263_v27  ;;  %v3676_v21 = vld [vmem:[%s7249_s11 + $0x6a8] sm:$0xff] }
 0x219   : > { %4975 = vmatpush.msrb.mxu1 %v4295_v30  ;;  %4995 = vmatpush.msrb.mxu2 %v4327_v33  ;;  %v3692_v27 = vld [vmem:[%s7249_s11 + $0x728] sm:$0xff]  ;;  %v3709_v30 = vld [vmem:[%s7249_s11 + $0x7b0] sm:$0xff]  ;;  %v4315_v33 = vunpack.c.l.bf16 %v3693_v16  ;;  %v3687_v16 = vld [vmem:[%s7249_s11 + $0x700] sm:$0xff] }
 0x21a   : > { %5014 = vmatpush.msrb.mxu3 %v4361_v34  ;;  %4956 = vmatpush.msrb.mxu0 %v4261_v38  ;;  %v4349_v34 = vunpack.c.l.bf16 %v3710_v17  ;;  %v4249_v38 = vunpack.c.l.bf16 %v3660_v20  ;;  %v3704_v17 = vld [vmem:[%s7249_s11 + $0x788] sm:$0xff]  ;;  %v4239_v20 = vunpack.c.l.bf16 %v3655_v12 }
 0x21b   : > { %4976 = vmatpush.msrb.mxu1 %v4293_v39  ;;  %4996 = vmatpush.msrb.mxu2 %v4325_v42  ;;  %v4281_v39 = vunpack.c.l.bf16 %v3676_v21  ;;  %v4313_v42 = vunpack.c.l.bf16 %v3692_v27  ;;  %v4271_v21 = vunpack.c.l.bf16 %v3671_v13  ;;  %v4303_v27 = vunpack.c.l.bf16 %v3687_v16  ;;  %v7595_v13 = vld.sshfl [vmem:[#allocation1] sm:$0xff pattern:$0x73625140] }
 0x21c   : > { %5015 = vmatpush.msrb.mxu3 %v4359_v43  ;;  %4957 = vmatpush.msrb.mxu0 %v4259_v46  ;;  %v4347_v43 = vunpack.c.l.bf16 %v3709_v30  ;;  %v4247_v46 = vunpack.c.l.bf16 %v3659_v35  ;;  %v4337_v30 = vunpack.c.l.bf16 %v3704_v17  ;;  %v7599_v17 = vld.sshfl [vmem:[#allocation1 + $0x8] sm:$0xff pattern:$0x73625140] }
 0x21d   : > { %4977 = vmatpush.msrb.mxu1 %v4291_v47  ;;  %4997 = vmatpush.msrb.mxu2 %v4323_v50  ;;  %v4279_v47 = vunpack.c.l.bf16 %v3675_v36  ;;  %v4311_v50 = vunpack.c.l.bf16 %v3691_v40 }
 0x21e   : > { %5016 = vmatpush.msrb.mxu3 %v4357_v51  ;;  %4958 = vmatpush.msrb.mxu0 %v4257_v58  ;;  %v4345_v51 = vunpack.c.l.bf16 %v3708_v41  ;;  %v4245_v58 = vunpack.c.l.bf16 %v3658_v44  ;;  %v3732_v44 = vld [vmem:[%s7249_s11 + $0x868] sm:$0xff] }
 0x21f   : > { %4978 = vmatpush.msrb.mxu1 %v4289_v59  ;;  %4998 = vmatpush.msrb.mxu2 %v4321_v63  ;;  %v4277_v59 = vunpack.c.l.bf16 %v3674_v45  ;;  %v4309_v63 = vunpack.c.l.bf16 %v3690_v48  ;;  %v3748_v45 = vld [vmem:[%s7249_s11 + $0x8e8] sm:$0xff] }
 0x220   : > { %5017 = vmatpush.msrb.mxu3 %v4355_v2  ;;  %4959 = vmatpush.msrb.mxu0 %v4255_v6  ;;  %v4343_v2 = vunpack.c.l.bf16 %v3707_v49  ;;  %v4243_v6 = vunpack.c.l.bf16 %v3657_v54  ;;  %v3764_v48 = vld [vmem:[%s7249_s11 + $0x968] sm:$0xff]  ;;  %v3781_v49 = vld [vmem:[%s7249_s11 + $0x9f0] sm:$0xff] }
 0x221   : > { %4979 = vmatpush.msrb.mxu1 %v4287_v7  ;;  %4999 = vmatpush.msrb.mxu2 %v4319_v10  ;;  %v4275_v7 = vunpack.c.l.bf16 %v3673_v55  ;;  %v4307_v10 = vunpack.c.l.bf16 %v3689_v60  ;;  %v3780_v60 = vld [vmem:[%s7249_s11 + $0x9e8] sm:$0xff] }
 0x222   : > { %5018 = vmatpush.msrb.mxu3 %v4353_v11  ;;  %4960 = vmatpush.msrb.mxu0 %v4253_v14  ;;  %v4341_v11 = vunpack.c.l.bf16 %v3706_v61  ;;  %v4241_v14 = vunpack.c.l.bf16 %v3656_v3  ;;  %v4393_v61 = vunpack.c.l.bf16 %v3732_v44  ;;  %v3746_v3 = vld [vmem:[%s7249_s11 + $0x8d8] sm:$0xff]  ;;  %v4489_v16 = vunpack.c.l.bf16 %v3780_v60 }
 0x223   : > { %4980 = vmatpush.msrb.mxu1 %v4285_v15  ;;  %5000 = vmatpush.msrb.mxu2 %v4317_v18  ;;  %v4273_v15 = vunpack.c.l.bf16 %v3672_v4  ;;  %v4305_v18 = vunpack.c.l.bf16 %v3688_v8  ;;  %v3762_v4 = vld [vmem:[%s7249_s11 + $0x958] sm:$0xff]  ;;  %v3779_v8 = vld [vmem:[%s7249_s11 + $0x9e0] sm:$0xff] }
 0x224   : > { %5019 = vmatpush.msrb.mxu3 %v4351_v19  ;;  %4961 = vmatpush.msrb.mxu0 %v4251_v22  ;;  %v4339_v19 = vunpack.c.l.bf16 %v3705_v9  ;;  %v3734_v22 = vld [vmem:[%s7249_s11 + $0x878] sm:$0xff]  ;;  %v3729_v9 = vld [vmem:[%s7249_s11 + $0x850] sm:$0xff] }
 0x225   : > { %4981 = vmatpush.msrb.mxu1 %v4283_v23  ;;  %5001 = vmatpush.msrb.mxu2 %v4315_v33  ;;  %v3750_v23 = vld [vmem:[%s7249_s11 + $0x8f8] sm:$0xff]  ;;  %v4397_v35 = vunpack.c.l.bf16 %v3734_v22 }
 0x226   : > { %5020 = vmatpush.msrb.mxu3 %v4349_v34  ;;  %4962 = vmatpush.msrb.mxu0 %v4249_v38  ;;  %v3766_v33 = vld [vmem:[%s7249_s11 + $0x978] sm:$0xff]  ;;  %v3703_v34 = vld [vmem:[%s7249_s11 + $0x780] sm:$0xff]  ;;  %v4429_v36 = vunpack.c.l.bf16 %v3750_v23  ;;  %v3733_v38 = vld [vmem:[%s7249_s11 + $0x870] sm:$0xff]  ;;  %v4453_v23 = vunpack.c.l.bf16 %v3762_v4 }
 0x227   : > { %4982 = vmatpush.msrb.mxu1 %v4281_v39  ;;  %5002 = vmatpush.msrb.mxu2 %v4313_v42  ;;  %v3749_v39 = vld [vmem:[%s7249_s11 + $0x8f0] sm:$0xff]  ;;  %v4461_v40 = vunpack.c.l.bf16 %v3766_v33  ;;  %v4335_v41 = vunpack.c.l.bf16 %v3703_v34  ;;  %v3778_v22 = vld [vmem:[%s7249_s11 + $0x9d8] sm:$0xff]  ;;  %v3744_v33 = vld [vmem:[%s7249_s11 + $0x8c8] sm:$0xff]  ;;  %v4387_v34 = vunpack.c.l.bf16 %v3729_v9 }
 0x228   : > { %5021 = vmatpush.msrb.mxu3 %v4347_v43  ;;  %4963 = vmatpush.msrb.mxu0 %v4247_v46  ;;  %v3765_v42 = vld [vmem:[%s7249_s11 + $0x970] sm:$0xff]  ;;  %v3782_v43 = vld [vmem:[%s7249_s11 + $0x9f8] sm:$0xff]  ;;  %v4395_v46 = vunpack.c.l.bf16 %v3733_v38  ;;  %v4417_v44 = vunpack.c.l.bf16 %v3744_v33  ;;  %v3724_v9 = vld [vmem:[%s7249_s11 + $0x828] sm:$0xff] }
 0x229   : > { %4983 = vmatpush.msrb.mxu1 %v4279_v47  ;;  %5003 = vmatpush.msrb.mxu2 %v4311_v50  ;;  %v4427_v47 = vunpack.c.l.bf16 %v3749_v39  ;;  %v3731_v50 = vld [vmem:[%s7249_s11 + $0x860] sm:$0xff]  ;;  %v4459_v54 = vunpack.c.l.bf16 %v3765_v42  ;;  %v4493_v55 = vunpack.c.l.bf16 %v3782_v43  ;;  %v3777_v38 = vld [vmem:[%s7249_s11 + $0x9d0] sm:$0xff]  ;;  %v3772_v33 = vld [vmem:[%s7249_s11 + $0x9a8] sm:$0xff] }
 0x22a   : > { %5022 = vmatpush.msrb.mxu3 %v4345_v51  ;;  %4964 = vmatpush.msrb.mxu0 %v4245_v58  ;;  %v3462_v51 = vld [vmem:[%s7343_s23 + $0x30] sm:$0x3]  ;;  %v3747_v58 = vld [vmem:[%s7249_s11 + $0x8e0] sm:$0xff]  ;;  %v3757_v4 = vld [vmem:[%s7249_s11 + $0x930] sm:$0xff] }
 0x22b   : > { %4984 = vmatpush.msrb.mxu1 %v4277_v59  ;;  %5004 = vmatpush.msrb.mxu2 %v4309_v63  ;;  %v3763_v59 = vld [vmem:[%s7249_s11 + $0x960] sm:$0xff]  ;;  %v4425_v63 = vunpack.c.l.bf16 %v3748_v45  ;;  %v4423_v12 = vunpack.c.l.bf16 %v3747_v58 }
 0x22c   : > { %5023 = vmatpush.msrb.mxu3 %v4343_v2  ;;  %4965 = vmatpush.msrb.mxu0 %v4243_v6  ;;  %v3730_v2 = vld [vmem:[%s7249_s11 + $0x858] sm:$0xff]  ;;  %v4457_v6 = vunpack.c.l.bf16 %v3764_v48  ;;  %v3743_v42 = vld [vmem:[%s7249_s11 + $0x8c0] sm:$0xff]  ;;  %v4483_v48 = vunpack.c.l.bf16 %v3777_v38 }
 0x22d   : > { %4985 = vmatpush.msrb.mxu1 %v4275_v7  ;;  %5005 = vmatpush.msrb.mxu2 %v4307_v10  ;;  %v4491_v7 = vunpack.c.l.bf16 %v3781_v49  ;;  %v3745_v10 = vld [vmem:[%s7249_s11 + $0x8d0] sm:$0xff]  ;;  %v3759_v45 = vld [vmem:[%s7249_s11 + $0x940] sm:$0xff]  ;;  %v3726_v49 = vld [vmem:[%s7249_s11 + $0x838] sm:$0xff] }
 0x22e   : > { %5024 = vmatpush.msrb.mxu3 %v4341_v11  ;;  %4966 = vmatpush.msrb.mxu0 %v4241_v14  ;;  %v4391_v11 = vunpack.c.l.bf16 %v3731_v50  ;;  %v7597_v14 = vld.sshfl [vmem:[#allocation1 + $0x10] sm:$0xff pattern:$0x73625140]  ;;  %v3742_v50 = vld [vmem:[%s7249_s11 + $0x8b8] sm:$0xff]  ;;  %v3775_v58 = vld [vmem:[%s7249_s11 + $0x9c0] sm:$0xff] }
 0x22f   : > { %4986 = vmatpush.msrb.mxu1 %v4273_v15  ;;  %5006 = vmatpush.msrb.mxu2 %v4305_v18  ;;  %v4455_v15 = vunpack.c.l.bf16 %v3763_v59  ;;  %v7601_v18 = vld.sshfl [vmem:[#allocation1 + $0x18] sm:$0xff pattern:$0x73625140]  ;;  %v4447_v59 = vunpack.c.l.bf16 %v3759_v45  ;;  %v3738_v38 = vld [vmem:[%s7249_s11 + $0x898] sm:$0xff] }
 0x230   : > { %5025 = vmatpush.msrb.mxu3 %v4339_v19  ;;  %4967 = vmatpush.msrb.mxu0 %v4239_v20  ;;  %v4389_v19 = vunpack.c.l.bf16 %v3730_v2  ;;  %v4421_v20 = vunpack.c.l.bf16 %v3746_v3  ;;  %4683 = vst [vmem:[#allocation1] ss:$4 sm:$0xff] %v3462_v51  ;;  %v4381_v2 = vunpack.c.l.bf16 %v3726_v49  ;;  %v4413_v3 = vunpack.c.l.bf16 %v3742_v50  ;;  %v3721_v45 = vld [vmem:[%s7249_s11 + $0x810] sm:$0xff]  ;;  %v3770_v50 = vld [vmem:[%s7249_s11 + $0x998] sm:$0xff] }
 0x231   : > { %4987 = vmatpush.msrb.mxu1 %v4271_v21  ;;  %5007 = vmatpush.msrb.mxu2 %v4303_v27  ;;  %v3761_v21 = vld [vmem:[%s7249_s11 + $0x950] sm:$0xff]  ;;  %v4487_v27 = vunpack.c.l.bf16 %v3779_v8  ;;  %v4479_v8 = vunpack.c.l.bf16 %v3775_v58  ;;  %v3736_v58 = vld [vmem:[%s7249_s11 + $0x888] sm:$0xff] }
 0x232   : > { %5026 = vmatpush.msrb.mxu3 %v4337_v30  ;;  %4968 = vmatmul.f32.vlgmr.msrb.gmra.mxu0 %v7516_v26  ;;  %v3728_v30 = vld [vmem:[%s7249_s11 + $0x848] sm:$0xff]  ;;  %v4451_v39 = vunpack.c.l.bf16 %v3761_v21  ;;  %v3723_v21 = vld [vmem:[%s7249_s11 + $0x820] sm:$0xff]  ;;  %v3753_v49 = vld [vmem:[%s7249_s11 + $0x910] sm:$0xff] }
 0x233   : > { %5008 = vmatmul.f32.vlgmr.msrb.gmra.mxu2 %v7518_v31  ;;  %5032 = vmatpush.msra.mxu0 %v4397_v35  ;;  %v4419_v35 = vunpack.c.l.bf16 %v3745_v10  ;;  %v4385_v43 = vunpack.c.l.bf16 %v3728_v30  ;;  %v3740_v10 = vld [vmem:[%s7249_s11 + $0x8a8] sm:$0xff]  ;;  %v3755_v30 = vld [vmem:[%s7249_s11 + $0x920] sm:$0xff] }
 0x234   : > { %5052 = vmatpush.msra.mxu1 %v4429_v36  ;;  %5072 = vmatpush.msra.mxu2 %v4461_v40  ;;  %v3760_v36 = vld [vmem:[%s7249_s11 + $0x948] sm:$0xff]  ;;  %v4485_v40 = vunpack.c.l.bf16 %v3778_v22  ;;  %v3739_v22 = vld [vmem:[%s7249_s11 + $0x8a0] sm:$0xff] }
 0x235   : > { %5027 = vmatpush.msrb.mxu3 %v4335_v41  ;;  %4988 = vmatmul.f32.vlgmr.msrb.gmra.mxu1 %v7520_v32  ;;  %v3727_v41 = vld [vmem:[%s7249_s11 + $0x840] sm:$0xff] }
 0x236   : > { %5028 = vmatmul.f32.vlgmr.msrb.gmra.mxu3 %v7524_v37  ;;  %5033 = vmatpush.msra.mxu0 %v4395_v46  ;;  %v3776_v46 = vld [vmem:[%s7249_s11 + $0x9c8] sm:$0xff]  ;;  %v4383_v51 = vunpack.c.l.bf16 %v3727_v41  ;;  %v3754_v41 = vld [vmem:[%s7249_s11 + $0x918] sm:$0xff] }
 0x237   : > { %5053 = vmatpush.msra.mxu1 %v4427_v47  ;;  %5073 = vmatpush.msra.mxu2 %v4459_v54  ;;  %v4449_v47 = vunpack.c.l.bf16 %v3760_v36  ;;  %v4415_v54 = vunpack.c.l.bf16 %v3743_v42  ;;  %v4481_v60 = vunpack.c.l.bf16 %v3776_v46  ;;  %v3722_v36 = vld [vmem:[%s7249_s11 + $0x818] sm:$0xff]  ;;  %v3771_v42 = vld [vmem:[%s7249_s11 + $0x9a0] sm:$0xff]  ;;  %v3737_v46 = vld [vmem:[%s7249_s11 + $0x890] sm:$0xff] }
 0x238   : > { %5092 = vmatpush.msra.mxu3 %v4493_v55  ;;  %5034 = vmatpush.msra.mxu0 %v4393_v61  ;;  %v3758_v55 = vld [vmem:[%s7249_s11 + $0x938] sm:$0xff]  ;;  %v3725_v61 = vld [vmem:[%s7249_s11 + $0x830] sm:$0xff] }
 0x239   : > { %5054 = vmatpush.msra.mxu1 %v4425_v63  ;;  %5074 = vmatpush.msra.mxu2 %v4457_v6  ;;  %v3741_v63 = vld [vmem:[%s7249_s11 + $0x8b0] sm:$0xff]  ;;  %v3774_v6 = vld [vmem:[%s7249_s11 + $0x9b8] sm:$0xff] }
 0x23a   : > { %5093 = vmatpush.msra.mxu3 %v4491_v7  ;;  %5035 = vmatpush.msra.mxu0 %v4391_v11  ;;  %v4445_v7 = vunpack.c.l.bf16 %v3758_v55  ;;  %v4379_v11 = vunpack.c.l.bf16 %v3725_v61  ;;  %v3720_v55 = vld [vmem:[%s7249_s11 + $0x808] sm:$0xff] }
 0x23b   : > { %5055 = vmatpush.msra.mxu1 %v4423_v12  ;;  %5075 = vmatpush.msra.mxu2 %v4455_v15  ;;  %v4411_v12 = vunpack.c.l.bf16 %v3741_v63  ;;  %v3756_v15 = vld [vmem:[%s7249_s11 + $0x928] sm:$0xff]  ;;  %v3769_v63 = vld [vmem:[%s7249_s11 + $0x990] sm:$0xff] }
 0x23c   : > { %5094 = vmatpush.msra.mxu3 %v4489_v16  ;;  %5036 = vmatpush.msra.mxu0 %v4389_v19  ;;  %v3773_v16 = vld [vmem:[%s7249_s11 + $0x9b0] sm:$0xff]  ;;  %v4443_v19 = vunpack.c.l.bf16 %v3757_v4  ;;  %v3752_v61 = vld [vmem:[%s7249_s11 + $0x908] sm:$0xff]  ;;  %v3719_v4 = vld [vmem:[%s7249_s11 + $0x800] sm:$0xff] }
 0x23d   : > { %5056 = vmatpush.msra.mxu1 %v4421_v20  ;;  %5076 = vmatpush.msra.mxu2 %v4453_v23  ;;  %v4477_v20 = vunpack.c.l.bf16 %v3774_v6  ;;  %v4377_v23 = vunpack.c.l.bf16 %v3724_v9  ;;  %v3735_v6 = vld [vmem:[%s7249_s11 + $0x880] sm:$0xff] }
 0x23e   : > { %5095 = vmatpush.msra.mxu3 %v4487_v27  ;;  %5037 = vmatpush.msra.mxu0 %v4387_v34  ;;  %v4409_v27 = vunpack.c.l.bf16 %v3740_v10  ;;  %v4441_v34 = vunpack.c.l.bf16 %v3756_v15  ;;  %v3751_v9 = vld [vmem:[%s7249_s11 + $0x900] sm:$0xff]  ;;  %v3768_v10 = vld [vmem:[%s7249_s11 + $0x988] sm:$0xff]  ;;  %v4367_v15 = vunpack.c.l.bf16 %v3719_v4  ;;  %v3826_v4 = vld [vmem:[%s7249_s11 + $0xb58] sm:$0xff] }
 0x23f   : > { %5057 = vmatpush.msra.mxu1 %v4419_v35  ;;  %5077 = vmatpush.msra.mxu2 %v4451_v39  ;;  %v4475_v35 = vunpack.c.l.bf16 %v3773_v16  ;;  %v4375_v39 = vunpack.c.l.bf16 %v3723_v21  ;;  %v4399_v16 = vunpack.c.l.bf16 %v3735_v6  ;;  %v4431_v21 = vunpack.c.l.bf16 %v3751_v9  ;;  %v3843_v6 = vld [vmem:[%s7249_s11 + $0xbe0] sm:$0xff]  ;;  %v3793_v9 = vld [vmem:[%s7249_s11 + $0xa50] sm:$0xff] }
 0x240   : > { %5096 = vmatpush.msra.mxu3 %v4485_v40  ;;  %5038 = vmatpush.msra.mxu0 %v4385_v43  ;;  %v4407_v40 = vunpack.c.l.bf16 %v3739_v22  ;;  %v4439_v43 = vunpack.c.l.bf16 %v3755_v30  ;;  %v4465_v22 = vunpack.c.l.bf16 %v3768_v10  ;;  %v3809_v10 = vld [vmem:[%s7249_s11 + $0xad0] sm:$0xff] }
 0x241   : > { %5058 = vmatpush.msra.mxu1 %v4417_v44  ;;  %5078 = vmatpush.msra.mxu2 %v4449_v47  ;;  %v4473_v44 = vunpack.c.l.bf16 %v3772_v33  ;;  %v4373_v47 = vunpack.c.l.bf16 %v3722_v36 }
 0x242   : > { %5097 = vmatpush.msra.mxu3 %v4483_v48  ;;  %5039 = vmatpush.msra.mxu0 %v4383_v51  ;;  %v4405_v48 = vunpack.c.l.bf16 %v3738_v38  ;;  %v4437_v51 = vunpack.c.l.bf16 %v3754_v41  ;;  %v3796_v41 = vld [vmem:[%s7249_s11 + $0xa68] sm:$0xff] }
 0x243   : > { %5059 = vmatpush.msra.mxu1 %v4415_v54  ;;  %5079 = vmatpush.msra.mxu2 %v4447_v59  ;;  %v4471_v54 = vunpack.c.l.bf16 %v3771_v42  ;;  %v4371_v59 = vunpack.c.l.bf16 %v3721_v45  ;;  %v3812_v42 = vld [vmem:[%s7249_s11 + $0xae8] sm:$0xff] }
 0x244   : > { %5098 = vmatpush.msra.mxu3 %v4481_v60  ;;  %5040 = vmatpush.msra.mxu0 %v4381_v2  ;;  %v4403_v60 = vunpack.c.l.bf16 %v3737_v46  ;;  %v4435_v2 = vunpack.c.l.bf16 %v3753_v49  ;;  %v3828_v45 = vld [vmem:[%s7249_s11 + $0xb68] sm:$0xff]  ;;  %v3845_v46 = vld [vmem:[%s7249_s11 + $0xbf0] sm:$0xff]  ;;  %v3795_v49 = vld [vmem:[%s7249_s11 + $0xa60] sm:$0xff] }
 0x245   : > { %5060 = vmatpush.msra.mxu1 %v4413_v3  ;;  %5080 = vmatpush.msra.mxu2 %v4445_v7  ;;  %v4469_v3 = vunpack.c.l.bf16 %v3770_v50  ;;  %v4369_v7 = vunpack.c.l.bf16 %v3720_v55  ;;  %v3811_v50 = vld [vmem:[%s7249_s11 + $0xae0] sm:$0xff] }
 0x246   : > { %5099 = vmatpush.msra.mxu3 %v4479_v8  ;;  %5041 = vmatpush.msra.mxu0 %v4379_v11  ;;  %v4401_v8 = vunpack.c.l.bf16 %v3736_v58  ;;  %v4433_v11 = vunpack.c.l.bf16 %v3752_v61  ;;  %v3827_v55 = vld [vmem:[%s7249_s11 + $0xb60] sm:$0xff]  ;;  %v3844_v58 = vld [vmem:[%s7249_s11 + $0xbe8] sm:$0xff]  ;;  %v3794_v61 = vld [vmem:[%s7249_s11 + $0xa58] sm:$0xff] }
 0x247   : > { %5061 = vmatpush.msra.mxu1 %v4411_v12  ;;  %5081 = vmatpush.msra.mxu2 %v4443_v19  ;;  %v4467_v12 = vunpack.c.l.bf16 %v3769_v63  ;;  %v3798_v19 = vld [vmem:[%s7249_s11 + $0xa78] sm:$0xff] }
 0x248   : > { %5100 = vmatpush.msra.mxu3 %v4477_v20  ;;  %5042 = vmatpush.msra.mxu0 %v4377_v23  ;;  %v3814_v20 = vld [vmem:[%s7249_s11 + $0xaf8] sm:$0xff]  ;;  %v4525_v30 = vunpack.c.l.bf16 %v3798_v19  ;;  %v4581_v19 = vunpack.c.l.bf16 %v3826_v4  ;;  %v3788_v4 = vld [vmem:[%s7249_s11 + $0xa28] sm:$0xff] }
 0x249   : > { %5062 = vmatpush.msra.mxu1 %v4409_v27  ;;  %5082 = vmatpush.msra.mxu2 %v4441_v34  ;;  %v3830_v23 = vld [vmem:[%s7249_s11 + $0xb78] sm:$0xff]  ;;  %v3767_v27 = vld [vmem:[%s7249_s11 + $0x980] sm:$0xff]  ;;  %v4557_v33 = vunpack.c.l.bf16 %v3814_v20  ;;  %v3797_v34 = vld [vmem:[%s7249_s11 + $0xa70] sm:$0xff]  ;;  %v4615_v20 = vunpack.c.l.bf16 %v3843_v6 }
 0x24a   : > { %5101 = vmatpush.msra.mxu3 %v4475_v35  ;;  %5043 = vmatpush.msra.mxu0 %v4375_v39  ;;  %v3813_v35 = vld [vmem:[%s7249_s11 + $0xaf0] sm:$0xff]  ;;  %v4589_v36 = vunpack.c.l.bf16 %v3830_v23  ;;  %v4463_v38 = vunpack.c.l.bf16 %v3767_v27  ;;  %v3810_v63 = vld [vmem:[%s7249_s11 + $0xad8] sm:$0xff]  ;;  %v4515_v23 = vunpack.c.l.bf16 %v3793_v9  ;;  %v4547_v27 = vunpack.c.l.bf16 %v3809_v10  ;;  %v3804_v6 = vld [vmem:[%s7249_s11 + $0xaa8] sm:$0xff] }
 0x24b   : > { %5063 = vmatpush.msra.mxu1 %v4407_v40  ;;  %5083 = vmatpush.msra.mxu2 %v4439_v43  ;;  %v3829_v39 = vld [vmem:[%s7249_s11 + $0xb70] sm:$0xff]  ;;  %v3846_v40 = vld [vmem:[%s7249_s11 + $0xbf8] sm:$0xff]  ;;  %v4523_v43 = vunpack.c.l.bf16 %v3797_v34  ;;  %v3820_v9 = vld [vmem:[%s7249_s11 + $0xb28] sm:$0xff] }
 0x24c   : > { %5102 = vmatpush.msra.mxu3 %v4473_v44  ;;  %5044 = vmatpush.msra.mxu0 %v4373_v47  ;;  %v4555_v44 = vunpack.c.l.bf16 %v3813_v35  ;;  %v4587_v47 = vunpack.c.l.bf16 %v3829_v39  ;;  %v3837_v10 = vld [vmem:[%s7249_s11 + $0xbb0] sm:$0xff] }
 0x24d   : > { %5064 = vmatpush.msra.mxu1 %v4405_v48  ;;  %5084 = vmatpush.msra.mxu2 %v4437_v51  ;;  %v4621_v48 = vunpack.c.l.bf16 %v3846_v40  ;;  %v4521_v51 = vunpack.c.l.bf16 %v3796_v41  ;;  %v3823_v41 = vld [vmem:[%s7249_s11 + $0xb40] sm:$0xff] }
 0x24e   : > { %5103 = vmatpush.msra.mxu3 %v4471_v54  ;;  %5045 = vmatpush.msra.mxu0 %v4371_v59  ;;  %v4553_v54 = vunpack.c.l.bf16 %v3812_v42  ;;  %v4585_v59 = vunpack.c.l.bf16 %v3828_v45  ;;  %v3840_v42 = vld [vmem:[%s7249_s11 + $0xbc8] sm:$0xff]  ;;  %v3790_v45 = vld [vmem:[%s7249_s11 + $0xa38] sm:$0xff] }
 0x24f   : > { %5065 = vmatpush.msra.mxu1 %v4403_v60  ;;  %5085 = vmatpush.msra.mxu2 %v4435_v2  ;;  %v4619_v60 = vunpack.c.l.bf16 %v3845_v46  ;;  %v4519_v2 = vunpack.c.l.bf16 %v3795_v49  ;;  %v3806_v46 = vld [vmem:[%s7249_s11 + $0xab8] sm:$0xff] }
 0x250   : > { %5104 = vmatpush.msra.mxu3 %v4469_v3  ;;  %5046 = vmatpush.msra.mxu0 %v4369_v7  ;;  %v4551_v3 = vunpack.c.l.bf16 %v3811_v50  ;;  %v4583_v7 = vunpack.c.l.bf16 %v3827_v55  ;;  %v3822_v49 = vld [vmem:[%s7249_s11 + $0xb38] sm:$0xff]  ;;  %v3839_v50 = vld [vmem:[%s7249_s11 + $0xbc0] sm:$0xff]  ;;  %v3789_v55 = vld [vmem:[%s7249_s11 + $0xa30] sm:$0xff] }
 0x251   : > { %5066 = vmatpush.msra.mxu1 %v4401_v8  ;;  %5086 = vmatpush.msra.mxu2 %v4433_v11  ;;  %v4617_v8 = vunpack.c.l.bf16 %v3844_v58  ;;  %v4517_v11 = vunpack.c.l.bf16 %v3794_v61  ;;  %v3805_v58 = vld [vmem:[%s7249_s11 + $0xab0] sm:$0xff] }
 0x252   : > { %5105 = vmatpush.msra.mxu3 %v4467_v12  ;;  %5047 = vmatpush.msra.mxu0 %v4367_v15  ;;  %v4549_v12 = vunpack.c.l.bf16 %v3810_v63  ;;  %v3825_v15 = vld [vmem:[%s7249_s11 + $0xb50] sm:$0xff]  ;;  %v3838_v63 = vld [vmem:[%s7249_s11 + $0xbb8] sm:$0xff] }
 0x253   : > { %5067 = vmatpush.msra.mxu1 %v4399_v16  ;;  %5087 = vmatpush.msra.mxu2 %v4431_v21  ;;  %v3842_v16 = vld [vmem:[%s7249_s11 + $0xbd8] sm:$0xff]  ;;  %v3792_v21 = vld [vmem:[%s7249_s11 + $0xa48] sm:$0xff]  ;;  %v4579_v34 = vunpack.c.l.bf16 %v3825_v15  ;;  %v3821_v61 = vld [vmem:[%s7249_s11 + $0xb30] sm:$0xff] }
 0x254   : > { %5106 = vmatpush.msra.mxu3 %v4465_v22  ;;  %5048 = vmatmul.f32.vlgmr.msra.gmra.mxu0 %v7595_v13  ;;  %v3808_v22 = vld [vmem:[%s7249_s11 + $0xac8] sm:$0xff]  ;;  %v4613_v35 = vunpack.c.l.bf16 %v3842_v16  ;;  %v4513_v39 = vunpack.c.l.bf16 %v3792_v21  ;;  %v3787_v15 = vld [vmem:[%s7249_s11 + $0xa20] sm:$0xff] }
 0x255   : > { %5088 = vmatmul.f32.vlgmr.msra.gmra.mxu2 %v7597_v14  ;;  %5112 = vmatpush.msrb.mxu0 %v4525_v30  ;;  %v3824_v30 = vld [vmem:[%s7249_s11 + $0xb48] sm:$0xff]  ;;  %v4545_v40 = vunpack.c.l.bf16 %v3808_v22  ;;  %v3803_v16 = vld [vmem:[%s7249_s11 + $0xaa0] sm:$0xff] }
 0x256   : > { %5132 = vmatpush.msrb.mxu1 %v4557_v33  ;;  %5152 = vmatpush.msrb.mxu2 %v4589_v36  ;;  %v3841_v33 = vld [vmem:[%s7249_s11 + $0xbd0] sm:$0xff]  ;;  %v3791_v36 = vld [vmem:[%s7249_s11 + $0xa40] sm:$0xff]  ;;  %v3836_v22 = vld [vmem:[%s7249_s11 + $0xba8] sm:$0xff] }
 0x257   : > { %5107 = vmatpush.msra.mxu3 %v4463_v38  ;;  %5068 = vmatmul.f32.vlgmr.msra.gmra.mxu1 %v7599_v17  ;;  %v3807_v38 = vld [vmem:[%s7249_s11 + $0xac0] sm:$0xff] }
 0x258   : > { %5108 = vmatmul.f32.vlgmr.msra.gmra.mxu3 %v7601_v18  ;;  %5113 = vmatpush.msrb.mxu0 %v4523_v43  ;;  %v4577_v43 = vunpack.c.l.bf16 %v3824_v30  ;;  %v3819_v21 = vld [vmem:[%s7249_s11 + $0xb20] sm:$0xff]  ;;  %v3786_v30 = vld [vmem:[%s7249_s11 + $0xa18] sm:$0xff] }
 0x259   : > { %5133 = vmatpush.msrb.mxu1 %v4555_v44  ;;  %5153 = vmatpush.msrb.mxu2 %v4587_v47  ;;  %v4611_v44 = vunpack.c.l.bf16 %v3841_v33  ;;  %v4511_v47 = vunpack.c.l.bf16 %v3791_v36  ;;  %v3802_v33 = vld [vmem:[%s7249_s11 + $0xa98] sm:$0xff] }
 0x25a   : > { %5172 = vmatpush.msrb.mxu3 %v4621_v48  ;;  %5114 = vmatpush.msrb.mxu0 %v4521_v51  ;;  %v4543_v48 = vunpack.c.l.bf16 %v3807_v38  ;;  %v4575_v51 = vunpack.c.l.bf16 %v3823_v41  ;;  %v3818_v36 = vld [vmem:[%s7249_s11 + $0xb18] sm:$0xff]  ;;  %v3835_v38 = vld [vmem:[%s7249_s11 + $0xba0] sm:$0xff]  ;;  %v3785_v41 = vld [vmem:[%s7249_s11 + $0xa10] sm:$0xff] }
 0x25b   : > { %5134 = vmatpush.msrb.mxu1 %v4553_v54  ;;  %5154 = vmatpush.msrb.mxu2 %v4585_v59  ;;  %v4609_v54 = vunpack.c.l.bf16 %v3840_v42  ;;  %v4509_v59 = vunpack.c.l.bf16 %v3790_v45  ;;  %v3801_v42 = vld [vmem:[%s7249_s11 + $0xa90] sm:$0xff] }
 0x25c   : > { %5173 = vmatpush.msrb.mxu3 %v4619_v60  ;;  %5115 = vmatpush.msrb.mxu0 %v4519_v2  ;;  %v4541_v60 = vunpack.c.l.bf16 %v3806_v46  ;;  %v4573_v2 = vunpack.c.l.bf16 %v3822_v49  ;;  %v3817_v45 = vld [vmem:[%s7249_s11 + $0xb10] sm:$0xff]  ;;  %v3834_v46 = vld [vmem:[%s7249_s11 + $0xb98] sm:$0xff]  ;;  %v3784_v49 = vld [vmem:[%s7249_s11 + $0xa08] sm:$0xff] }
 0x25d   : > { %5135 = vmatpush.msrb.mxu1 %v4551_v3  ;;  %5155 = vmatpush.msrb.mxu2 %v4583_v7  ;;  %v4607_v3 = vunpack.c.l.bf16 %v3839_v50  ;;  %v4507_v7 = vunpack.c.l.bf16 %v3789_v55  ;;  %v3800_v50 = vld [vmem:[%s7249_s11 + $0xa88] sm:$0xff] }
 0x25e   : > { %5174 = vmatpush.msrb.mxu3 %v4617_v8  ;;  %5116 = vmatpush.msrb.mxu0 %v4517_v11  ;;  %v4539_v8 = vunpack.c.l.bf16 %v3805_v58  ;;  %v4571_v11 = vunpack.c.l.bf16 %v3821_v61  ;;  %v3816_v55 = vld [vmem:[%s7249_s11 + $0xb08] sm:$0xff]  ;;  %v3833_v58 = vld [vmem:[%s7249_s11 + $0xb90] sm:$0xff]  ;;  %v3783_v61 = vld [vmem:[%s7249_s11 + $0xa00] sm:$0xff] }
 0x25f   : > { %5136 = vmatpush.msrb.mxu1 %v4549_v12  ;;  %5156 = vmatpush.msrb.mxu2 %v4581_v19  ;;  %v4605_v12 = vunpack.c.l.bf16 %v3838_v63  ;;  %v4505_v19 = vunpack.c.l.bf16 %v3788_v4  ;;  %v3799_v63 = vld [vmem:[%s7249_s11 + $0xa80] sm:$0xff] }
 0x260   : > { %5175 = vmatpush.msrb.mxu3 %v4615_v20  ;;  %5117 = vmatpush.msrb.mxu0 %v4515_v23  ;;  %v4537_v20 = vunpack.c.l.bf16 %v3804_v6  ;;  %v4569_v23 = vunpack.c.l.bf16 %v3820_v9  ;;  %v3815_v4 = vld [vmem:[%s7249_s11 + $0xb00] sm:$0xff]  ;;  %v3832_v6 = vld [vmem:[%s7249_s11 + $0xb88] sm:$0xff]  ;;  %v4495_v9 = vunpack.c.l.bf16 %v3783_v61 }
 0x261   : > { %5137 = vmatpush.msrb.mxu1 %v4547_v27  ;;  %5157 = vmatpush.msrb.mxu2 %v4579_v34  ;;  %v4603_v27 = vunpack.c.l.bf16 %v3837_v10  ;;  %v4503_v34 = vunpack.c.l.bf16 %v3787_v15  ;;  %v4527_v10 = vunpack.c.l.bf16 %v3799_v63  ;;  %v4593_v15 = vunpack.c.l.bf16 %v3832_v6  ;;  %v5934_v63 = vld [vmem:[%s7249_s11 + $0x168] sm:$0xff]  ;;  %v3849_v6 = vld [vmem:[%s7249_s11 + $0xc10] sm:$0xff] }
 0x262   : > { %5176 = vmatpush.msrb.mxu3 %v4613_v35  ;;  %5118 = vmatpush.msrb.mxu0 %v4513_v39  ;;  %v4535_v35 = vunpack.c.l.bf16 %v3803_v16  ;;  %v4567_v39 = vunpack.c.l.bf16 %v3819_v21  ;;  %v3831_v16 = vld [vmem:[%s7249_s11 + $0xb80] sm:$0xff] }
 0x263   : > { %5138 = vmatpush.msrb.mxu1 %v4545_v40  ;;  %5158 = vmatpush.msrb.mxu2 %v4577_v43  ;;  %v4601_v40 = vunpack.c.l.bf16 %v3836_v22  ;;  %v4501_v43 = vunpack.c.l.bf16 %v3786_v30  ;;  %v4681_v22 = vld.sshfl [vmem:[#allocation1 + $0x30] sm:$0xff pattern:$0x73625140]  ;;  %v5926_v30 = vld [vmem:[%s7249_s11 + $0xf8] sm:$0xff] }
 0x264   : > { %5177 = vmatpush.msrb.mxu3 %v4611_v44  ;;  %5119 = vmatpush.msrb.mxu0 %v4511_v47  ;;  %v4533_v44 = vunpack.c.l.bf16 %v3802_v33  ;;  %v4565_v47 = vunpack.c.l.bf16 %v3818_v36  ;;  %v3918_v33 = vunpack.c.h.bf16 %v5926_v30  ;;  %v5927_v36 = vld [vmem:[%s7249_s11 + $0x70] sm:$0xff] }
 0x265   : > { %5139 = vmatpush.msrb.mxu1 %v4543_v48  ;;  %5159 = vmatpush.msrb.mxu2 %v4575_v51  ;;  %v4599_v48 = vunpack.c.l.bf16 %v3835_v38  ;;  %v4499_v51 = vunpack.c.l.bf16 %v3785_v41  ;;  %v3884_v38 = vunpack.c.h.bf16 %v5927_v36 }
 0x266   : > { %5178 = vmatpush.msrb.mxu3 %v4609_v54  ;;  %5120 = vmatpush.msrb.mxu0 %v4509_v59  ;;  %v4531_v54 = vunpack.c.l.bf16 %v3801_v42  ;;  %v4563_v59 = vunpack.c.l.bf16 %v3817_v45  ;;  %v5928_v42 = vld [vmem:[%s7249_s11 + $0x178] sm:$0xff] }
 0x267   : > { %5140 = vmatpush.msrb.mxu1 %v4541_v60  ;;  %5160 = vmatpush.msrb.mxu2 %v4573_v2  ;;  %v4597_v60 = vunpack.c.l.bf16 %v3834_v46  ;;  %v4497_v2 = vunpack.c.l.bf16 %v3784_v49  ;;  %v3851_v46 = vld [vmem:[%s7249_s11 + $0xc20] sm:$0xff] }
 0x268   : > { %5179 = vmatpush.msrb.mxu3 %v4607_v3  ;;  %5121 = vmatpush.msrb.mxu0 %v4507_v7  ;;  %v4529_v3 = vunpack.c.l.bf16 %v3800_v50  ;;  %v4561_v7 = vunpack.c.l.bf16 %v3816_v55  ;;  %v5931_v50 = vld [vmem:[%s7249_s11 + $0x170] sm:$0xff]  ;;  %v4631_v61 = vunpack.c.l.bf16 %v3851_v46 }
 0x269   : > { %5141 = vmatpush.msrb.mxu1 %v4539_v8  ;;  %5161 = vmatpush.msrb.mxu2 %v4571_v11  ;;  %v4595_v8 = vunpack.c.l.bf16 %v3833_v58  ;;  %v3854_v11 = vld [vmem:[%s7249_s11 + $0xc38] sm:$0xff] }
 0x26a   : > { %5180 = vmatpush.msrb.mxu3 %v4605_v12  ;;  %5122 = vmatpush.msrb.mxu0 %v4505_v19  ;;  %v4559_v12 = vunpack.c.l.bf16 %v3815_v4  ;;  %v4679_v19 = vld.sshfl [vmem:[#allocation1 + $0x20] sm:$0xff pattern:$0x73625140] }
 0x26b   : > { %5142 = vmatpush.msrb.mxu1 %v4537_v20  ;;  %5162 = vmatpush.msrb.mxu2 %v4569_v23  ;;  %v5925_v20 = vld [vmem:[%s7249_s11 + $0x78] sm:$0xff]  ;;  %v4637_v23 = vunpack.c.l.bf16 %v3854_v11 }
 0x26c   : > { %5181 = vmatpush.msrb.mxu3 %v4603_v27  ;;  %5123 = vmatpush.msrb.mxu0 %v4503_v34  ;;  %v3886_v21 = vunpack.c.h.bf16 %v5925_v20  ;;  %v3853_v27 = vld [vmem:[%s7249_s11 + $0xc30] sm:$0xff]  ;;  %v4591_v34 = vunpack.c.l.bf16 %v3831_v16  ;;  %v3850_v58 = vld [vmem:[%s7249_s11 + $0xc18] sm:$0xff]  ;;  %v3848_v16 = vld [vmem:[%s7249_s11 + $0xc08] sm:$0xff] }
 0x26d   : > { %5143 = vmatpush.msrb.mxu1 %v4535_v35  ;;  %5163 = vmatpush.msrb.mxu2 %v4567_v39  ;;  %v3852_v35 = vld [vmem:[%s7249_s11 + $0xc28] sm:$0xff]  ;;  %v4680_v39 = vld.sshfl [vmem:[#allocation1 + $0x28] sm:$0xff pattern:$0x73625140]  ;;  %v4635_v41 = vunpack.c.l.bf16 %v3853_v27  ;;  %v5941_v27 = vld [vmem:[%s7249_s11 + $0xd0] sm:$0xff]  ;;  %v4625_v36 = vunpack.c.l.bf16 %v3848_v16 }
 0x26e   : > { %5182 = vmatpush.msrb.mxu3 %v4601_v40  ;;  %5124 = vmatpush.msrb.mxu0 %v4501_v43  ;;  %v4682_v40 = vld.sshfl [vmem:[#allocation1 + $0x38] sm:$0xff pattern:$0x73625140]  ;;  %v3950_v43 = vunpack.c.h.bf16 %v5928_v42  ;;  %v4633_v49 = vunpack.c.l.bf16 %v3852_v35  ;;  %v3908_v30 = vunpack.c.h.bf16 %v5941_v27  ;;  %v5945_v42 = vld [vmem:[%s7249_s11 + $0x40] sm:$0xff]  ;;  %v5958_v16 = vld [vmem:[%s7249_s11 + $0xa8] sm:$0xff] }
 0x26f   : > { %5144 = vmatpush.msrb.mxu1 %v4533_v44  ;;  %5164 = vmatpush.msrb.mxu2 %v4565_v47  ;;  %v5929_v44 = vld [vmem:[%s7249_s11 + $0xf0] sm:$0xff]  ;;  %v5930_v47 = vld [vmem:[%s7249_s11 + $0x68] sm:$0xff]  ;;  %v5961_v27 = vld [vmem:[%s7249_s11 + $0x1e0] sm:$0xff] }
 0x270   : > { %5183 = vmatpush.msrb.mxu3 %v4599_v48  ;;  %5125 = vmatpush.msrb.mxu0 %v4499_v51  ;;  %v3916_v45 = vunpack.c.h.bf16 %v5929_v44  ;;  %v3882_v48 = vunpack.c.h.bf16 %v5930_v47  ;;  %v3948_v51 = vunpack.c.h.bf16 %v5931_v50  ;;  %v5947_v47 = vld [vmem:[%s7249_s11 + $0xc0] sm:$0xff] }
 0x271   : > { %5145 = vmatpush.msrb.mxu1 %v4531_v54  ;;  %5165 = vmatpush.msrb.mxu2 %v4563_v59  ;;  %v5932_v54 = vld [vmem:[%s7249_s11 + $0xe8] sm:$0xff]  ;;  %v5933_v59 = vld [vmem:[%s7249_s11 + $0x60] sm:$0xff] }
 0x272   : > { %5184 = vmatpush.msrb.mxu3 %v4597_v60  ;;  %5126 = vmatpush.msrb.mxu0 %v4497_v2  ;;  %v3914_v55 = vunpack.c.h.bf16 %v5932_v54  ;;  %v3880_v60 = vunpack.c.h.bf16 %v5933_v59  ;;  %v3946_v2 = vunpack.c.h.bf16 %v5934_v63  ;;  %v4684_v59 = vld.sshfl [vmem:[#allocation1] sm:$0xff pattern:$0x73625140]  ;;  %v5952_v63 = vld [vmem:[%s7249_s11 + $0x30] sm:$0xff] }
 0x273   : > { %5146 = vmatpush.msrb.mxu1 %v4529_v3  ;;  %5166 = vmatpush.msrb.mxu2 %v4561_v7  ;;  %v5935_v3 = vld [vmem:[%s7249_s11 + $0xe0] sm:$0xff]  ;;  %v5936_v7 = vld [vmem:[%s7249_s11 + $0x58] sm:$0xff] }
 0x274   : > { %5185 = vmatpush.msrb.mxu3 %v4595_v8  ;;  %5127 = vmatpush.msrb.mxu0 %v4495_v9  ;;  %v3912_v4 = vunpack.c.h.bf16 %v5935_v3  ;;  %v3878_v8 = vunpack.c.h.bf16 %v5936_v7  ;;  %v4629_v9 = vunpack.c.l.bf16 %v3850_v58  ;;  %v5953_v3 = vld [vmem:[%s7249_s11 + $0x1f0] sm:$0xff] }
 0x275   : > { %5147 = vmatpush.msrb.mxu1 %v4527_v10  ;;  %5167 = vmatpush.msrb.mxu2 %v4559_v12  ;;  %v5937_v10 = vld [vmem:[%s7249_s11 + $0x160] sm:$0xff]  ;;  %v5938_v12 = vld [vmem:[%s7249_s11 + $0xd8] sm:$0xff] }
 0x276   : > { %5186 = vmatpush.msrb.mxu3 %v4593_v15  ;;  %5128 = vmatmul.f32.vlgmr.msrb.gmra.mxu0 %v4679_v19  ;;  %v3944_v11 = vunpack.c.h.bf16 %v5937_v10  ;;  %v3910_v15 = vunpack.c.h.bf16 %v5938_v12  ;;  %v5939_v19 = vld [vmem:[%s7249_s11 + $0x50] sm:$0xff]  ;;  %v5956_v10 = vld [vmem:[%s7249_s11 + $0x28] sm:$0xff] }
 0x277   : > { %5168 = vmatmul.f32.vlgmr.msrb.gmra.mxu2 %v4681_v22  ;;  %5200 = vmatpush.msra.mxu0 %v4637_v23  ;;  %v3876_v20 = vunpack.c.h.bf16 %v5939_v19  ;;  %v5940_v22 = vld [vmem:[%s7249_s11 + $0x158] sm:$0xff]  ;;  %v5957_v12 = vld [vmem:[%s7249_s11 + $0x1e8] sm:$0xff]  ;;  %v3898_v19 = vunpack.c.h.bf16 %v5958_v16 }
 0x278   : > { %5212 = vmatpush.msra.mxu1 %v3886_v21  ;;  %5232 = vmatpush.msra.mxu2 %v3918_v33  ;;  %v4627_v21 = vunpack.c.l.bf16 %v3849_v6  ;;  %v3942_v23 = vunpack.c.h.bf16 %v5940_v22  ;;  %v3847_v33 = vld [vmem:[%s7249_s11 + $0xc00] sm:$0xff]  ;;  %v5954_v6 = vld [vmem:[%s7249_s11 + $0xb0] sm:$0xff]  ;;  %v5980_v16 = vld [vmem:[%s7249_s11 + $0x278] sm:$0xff] }
 0x279   : > { %5187 = vmatpush.msrb.mxu3 %v4591_v34  ;;  %5148 = vmatmul.f32.vlgmr.msrb.gmra.mxu1 %v4680_v39  ;;  %v5942_v34 = vld [vmem:[%s7249_s11 + $0x48] sm:$0xff]  ;;  %v4623_v44 = vunpack.c.l.bf16 %v3847_v33  ;;  %v3900_v7 = vunpack.c.h.bf16 %v5954_v6  ;;  %v5960_v22 = vld [vmem:[%s7249_s11 + $0x20] sm:$0xff] }
 0x27a   : > { %5188 = vmatmul.f32.vlgmr.msrb.gmra.mxu3 %v4682_v40  ;;  %5201 = vmatpush.msra.mxu0 %v4635_v41  ;;  %v3874_v35 = vunpack.c.h.bf16 %v5942_v34  ;;  %v5944_v40 = vld [vmem:[%s7249_s11 + $0xc8] sm:$0xff]  ;;  %v5962_v33 = vld [vmem:[%s7249_s11 + $0xa0] sm:$0xff] }
 0x27b   : > { %5213 = vmatpush.msra.mxu1 %v3884_v38  ;;  %5233 = vmatpush.msra.mxu2 %v3916_v45  ;;  %v5943_v38 = vld [vmem:[%s7249_s11 + $0x150] sm:$0xff]  ;;  %v3906_v41 = vunpack.c.h.bf16 %v5944_v40  ;;  %v5946_v45 = vld [vmem:[%s7249_s11 + $0x148] sm:$0xff]  ;;  %v3896_v34 = vunpack.c.h.bf16 %v5962_v33  ;;  %v5965_v40 = vld [vmem:[%s7249_s11 + $0x1d8] sm:$0xff] }
 0x27c   : > { %5252 = vmatpush.msra.mxu3 %v3950_v43  ;;  %5202 = vmatpush.msra.mxu0 %v4633_v49  ;;  %v3940_v39 = vunpack.c.h.bf16 %v5943_v38  ;;  %v3872_v43 = vunpack.c.h.bf16 %v5945_v42  ;;  %v3938_v46 = vunpack.c.h.bf16 %v5946_v45  ;;  %v5948_v49 = vld [vmem:[%s7249_s11 + $0x38] sm:$0xff]  ;;  %v5976_v6 = vld [vmem:[%s7249_s11] sm:$0xff]  ;;  %v5984_v33 = vld [vmem:[%s7249_s11 + $0x270] sm:$0xff] }
 0x27d   : > { %5214 = vmatpush.msra.mxu1 %v3882_v48  ;;  %5234 = vmatpush.msra.mxu2 %v3914_v55  ;;  %v3904_v48 = vunpack.c.h.bf16 %v5947_v47  ;;  %v3870_v50 = vunpack.c.h.bf16 %v5948_v49  ;;  %v5950_v55 = vld [vmem:[%s7249_s11 + $0xb8] sm:$0xff] }
 0x27e   : > { %5253 = vmatpush.msra.mxu3 %v3948_v51  ;;  %5203 = vmatpush.msra.mxu0 %v4631_v61  ;;  %v5949_v51 = vld [vmem:[%s7249_s11 + $0x1f8] sm:$0xff]  ;;  %v3902_v58 = vunpack.c.h.bf16 %v5950_v55 }
 0x27f   : > { %5215 = vmatpush.msra.mxu1 %v3880_v60  ;;  %5235 = vmatpush.msra.mxu2 %v3912_v4  ;;  %v3982_v54 = vunpack.c.h.bf16 %v5949_v51  ;;  %v5951_v60 = vld [vmem:[%s7249_s11 + $0x140] sm:$0xff]  ;;  %v3980_v4 = vunpack.c.h.bf16 %v5953_v3  ;;  %v5964_v38 = vld [vmem:[%s7249_s11 + $0x18] sm:$0xff]  ;;  %v5975_v3 = vld [vmem:[%s7249_s11 + $0x110] sm:$0xff] }
 0x280   : > { %5254 = vmatpush.msra.mxu3 %v3946_v2  ;;  %5204 = vmatpush.msra.mxu0 %v4629_v9  ;;  %v3936_v61 = vunpack.c.h.bf16 %v5951_v60  ;;  %v3868_v2 = vunpack.c.h.bf16 %v5952_v63  ;;  %v5966_v42 = vld [vmem:[%s7249_s11 + $0x98] sm:$0xff]  ;;  %v5973_v60 = vld [vmem:[%s7249_s11 + $0x1c8] sm:$0xff] }
 0x281   : > { %5216 = vmatpush.msra.mxu1 %v3878_v8  ;;  %5236 = vmatpush.msra.mxu2 %v3910_v15  ;;  %v5955_v8 = vld [vmem:[%s7249_s11 + $0x138] sm:$0xff]  ;;  %v3978_v15 = vunpack.c.h.bf16 %v5957_v12  ;;  %v5974_v63 = vld [vmem:[%s7249_s11 + $0x88] sm:$0xff] }
 0x282   : > { %5255 = vmatpush.msra.mxu3 %v3944_v11  ;;  %5205 = vmatpush.msra.mxu0 %v4627_v21  ;;  %v3934_v9 = vunpack.c.h.bf16 %v5955_v8  ;;  %v3866_v11 = vunpack.c.h.bf16 %v5956_v10  ;;  %v5977_v8 = vld [vmem:[%s7249_s11 + $0x1c0] sm:$0xff]  ;;  %v5979_v12 = vld [vmem:[%s7249_s11 + $0x108] sm:$0xff] }
 0x283   : > { %5217 = vmatpush.msra.mxu1 %v3876_v20  ;;  %5237 = vmatpush.msra.mxu2 %v3908_v30  ;;  %v5959_v20 = vld [vmem:[%s7249_s11 + $0x130] sm:$0xff]  ;;  %v3976_v30 = vunpack.c.h.bf16 %v5961_v27  ;;  %v5978_v10 = vld [vmem:[%s7249_s11 + $0x80] sm:$0xff] }
 0x284   : > { %5256 = vmatpush.msra.mxu3 %v3942_v23  ;;  %5206 = vmatpush.msra.mxu0 %v4625_v36  ;;  %v3932_v21 = vunpack.c.h.bf16 %v5959_v20  ;;  %v3864_v23 = vunpack.c.h.bf16 %v5960_v22  ;;  %v5981_v20 = vld [vmem:[%s7249_s11 + $0x1b8] sm:$0xff]  ;;  %v5983_v27 = vld [vmem:[%s7249_s11 + $0x100] sm:$0xff] }
 0x285   : > { %5218 = vmatpush.msra.mxu1 %v3874_v35  ;;  %5238 = vmatpush.msra.mxu2 %v3906_v41  ;;  %v5963_v35 = vld [vmem:[%s7249_s11 + $0x128] sm:$0xff]  ;;  %v3974_v41 = vunpack.c.h.bf16 %v5965_v40  ;;  %v5982_v22 = vld [vmem:[%s7249_s11 + $0x2f8] sm:$0xff] }
 0x286   : > { %5257 = vmatpush.msra.mxu3 %v3940_v39  ;;  %5207 = vmatpush.msra.mxu0 %v4623_v44  ;;  %v3930_v36 = vunpack.c.h.bf16 %v5963_v35  ;;  %v3862_v39 = vunpack.c.h.bf16 %v5964_v38  ;;  %v5967_v44 = vld [vmem:[%s7249_s11 + $0x120] sm:$0xff]  ;;  %v5985_v35 = vld [vmem:[%s7249_s11 + $0x1b0] sm:$0xff]  ;;  %v5987_v40 = vld [vmem:[%s7249_s11 + $0x378] sm:$0xff] }
 0x287   : > { %5219 = vmatpush.msra.mxu1 %v3872_v43  ;;  %5239 = vmatpush.msra.mxu2 %v3904_v48  ;;  %v3894_v43 = vunpack.c.h.bf16 %v5966_v42  ;;  %v3928_v45 = vunpack.c.h.bf16 %v5967_v44  ;;  %v5969_v48 = vld [vmem:[%s7249_s11 + $0x1d0] sm:$0xff]  ;;  %v5988_v42 = vld [vmem:[%s7249_s11 + $0x268] sm:$0xff] }
 0x288   : > { %5258 = vmatpush.msra.mxu3 %v3938_v46  ;;  %5861 = vmatmul.msk.f32.vlgmr.msra.gmra.mxu0 %vm4709_vm0, %v4684_v59  ;;  %v5968_v46 = vld [vmem:[%s7249_s11 + $0x10] sm:$0xff]  ;;  %v3972_v49 = vunpack.c.h.bf16 %v5969_v48  ;;  %v5989_v44 = vld [vmem:[%s7249_s11 + $0x1a8] sm:$0xff] }
 0x289   : > { %5220 = vmatpush.msra.mxu1 %v3870_v50  ;;  %5272 = vmatpush.msrb.mxu0 %v3982_v54  ;;  %v3860_v47 = vunpack.c.h.bf16 %v5968_v46  ;;  %v5970_v50 = vld [vmem:[%s7249_s11 + $0x90] sm:$0xff]  ;;  %v5971_v54 = vld [vmem:[%s7249_s11 + $0x118] sm:$0xff]  ;;  %v5990_v46 = vld [vmem:[%s7249_s11 + $0x2e8] sm:$0xff] }
 0x28a   : > { %5240 = vmatpush.msra.mxu2 %v3902_v58  ;;  %5259 = vmatpush.msra.mxu3 %v3936_v61  ;;  %v3892_v51 = vunpack.c.h.bf16 %v5970_v50  ;;  %v3926_v55 = vunpack.c.h.bf16 %v5971_v54  ;;  %v5972_v58 = vld [vmem:[%s7249_s11 + $0x8] sm:$0xff]  ;;  %v3970_v61 = vunpack.c.h.bf16 %v5973_v60  ;;  %v5986_v38 = vld [vmem:[%s7249_s11 + $0x2f0] sm:$0xff]  ;;  %v5992_v50 = vld [vmem:[%s7249_s11 + $0x260] sm:$0xff] }
 0x28b   : > { %5221 = vmatpush.msra.mxu1 %v3868_v2  ;;  %5273 = vmatpush.msrb.mxu0 %v3980_v4  ;;  %v3858_v59 = vunpack.c.h.bf16 %v5972_v58  ;;  %v3890_v2 = vunpack.c.h.bf16 %v5974_v63  ;;  %v3924_v4 = vunpack.c.h.bf16 %v5975_v3  ;;  %v5991_v48 = vld [vmem:[%s7249_s11 + $0x370] sm:$0xff]  ;;  %v5993_v54 = vld [vmem:[%s7249_s11 + $0x1a0] sm:$0xff]  ;;  %v5995_v60 = vld [vmem:[%s7249_s11 + $0x368] sm:$0xff] }
 0x28c   : > { %5241 = vmatpush.msra.mxu2 %v3900_v7  ;;  %5260 = vmatpush.msra.mxu3 %v3934_v9  ;;  %v3856_v7 = vunpack.c.h.bf16 %v5976_v6  ;;  %v3968_v9 = vunpack.c.h.bf16 %v5977_v8  ;;  %v5994_v58 = vld [vmem:[%s7249_s11 + $0x2e0] sm:$0xff]  ;;  %v5996_v63 = vld [vmem:[%s7249_s11 + $0x258] sm:$0xff] }
 0x28d   : > { %5222 = vmatpush.msra.mxu1 %v3866_v11  ;;  %5274 = vmatpush.msrb.mxu0 %v3978_v15  ;;  %v3888_v11 = vunpack.c.h.bf16 %v5978_v10  ;;  %v3922_v15 = vunpack.c.h.bf16 %v5979_v12  ;;  %v5997_v3 = vld [vmem:[%s7249_s11 + $0x198] sm:$0xff]  ;;  %v5999_v8 = vld [vmem:[%s7249_s11 + $0x360] sm:$0xff]  ;;  %v6000_v10 = vld [vmem:[%s7249_s11 + $0x250] sm:$0xff] }
 0x28e   : > { %5242 = vmatpush.msra.mxu2 %v3898_v19  ;;  %5261 = vmatpush.msra.mxu3 %v3932_v21  ;;  %v4014_v19 = vunpack.c.h.bf16 %v5980_v16  ;;  %v3966_v21 = vunpack.c.h.bf16 %v5981_v20  ;;  %v5998_v6 = vld [vmem:[%s7249_s11 + $0x2d8] sm:$0xff]  ;;  %v6001_v12 = vld [vmem:[%s7249_s11 + $0x190] sm:$0xff] }
 0x28f   : > { %5223 = vmatpush.msra.mxu1 %v3864_v23  ;;  %5275 = vmatpush.msrb.mxu0 %v3976_v30  ;;  %v4046_v23 = vunpack.c.h.bf16 %v5982_v22  ;;  %v3920_v30 = vunpack.c.h.bf16 %v5983_v27  ;;  %v6002_v16 = vld [vmem:[%s7249_s11 + $0x2d0] sm:$0xff]  ;;  %v6003_v20 = vld [vmem:[%s7249_s11 + $0x358] sm:$0xff]  ;;  %v6004_v22 = vld [vmem:[%s7249_s11 + $0x248] sm:$0xff] }
 0x290   : > { %5243 = vmatpush.msra.mxu2 %v3896_v34  ;;  %5262 = vmatpush.msra.mxu3 %v3930_v36  ;;  %v4012_v34 = vunpack.c.h.bf16 %v5984_v33  ;;  %v3964_v36 = vunpack.c.h.bf16 %v5985_v35  ;;  %v6005_v27 = vld [vmem:[%s7249_s11 + $0x188] sm:$0xff]  ;;  %v6007_v35 = vld [vmem:[%s7249_s11 + $0x350] sm:$0xff] }
 0x291   : > { %5224 = vmatpush.msra.mxu1 %v3862_v39  ;;  %5276 = vmatpush.msrb.mxu0 %v3974_v41  ;;  %v4044_v39 = vunpack.c.h.bf16 %v5986_v38  ;;  %v4078_v41 = vunpack.c.h.bf16 %v5987_v40  ;;  %v6006_v33 = vld [vmem:[%s7249_s11 + $0x2c8] sm:$0xff]  ;;  %v6008_v38 = vld [vmem:[%s7249_s11 + $0x240] sm:$0xff] }
 0x292   : > { %5244 = vmatpush.msra.mxu2 %v3894_v43  ;;  %5263 = vmatpush.msra.mxu3 %v3928_v45  ;;  %v4010_v43 = vunpack.c.h.bf16 %v5988_v42  ;;  %v3962_v45 = vunpack.c.h.bf16 %v5989_v44  ;;  %v6009_v40 = vld [vmem:[%s7249_s11 + $0x180] sm:$0xff]  ;;  %v6011_v44 = vld [vmem:[%s7249_s11 + $0x3f8] sm:$0xff] }
 0x293   : > { %5225 = vmatpush.msra.mxu1 %v3860_v47  ;;  %5277 = vmatpush.msrb.mxu0 %v3972_v49  ;;  %v4042_v47 = vunpack.c.h.bf16 %v5990_v46  ;;  %v4076_v49 = vunpack.c.h.bf16 %v5991_v48  ;;  %v6010_v42 = vld [vmem:[%s7249_s11 + $0x2c0] sm:$0xff]  ;;  %v6012_v46 = vld [vmem:[%s7249_s11 + $0x348] sm:$0xff]  ;;  %v6013_v48 = vld [vmem:[%s7249_s11 + $0x238] sm:$0xff] }
 0x294   : > { %5245 = vmatpush.msra.mxu2 %v3892_v51  ;;  %5264 = vmatpush.msra.mxu3 %v3926_v55  ;;  %v4008_v51 = vunpack.c.h.bf16 %v5992_v50  ;;  %v3960_v55 = vunpack.c.h.bf16 %v5993_v54  ;;  %v6014_v50 = vld [vmem:[%s7249_s11 + $0x2b8] sm:$0xff]  ;;  %v6015_v54 = vld [vmem:[%s7249_s11 + $0x3f0] sm:$0xff] }
 0x295   : > { %5226 = vmatpush.msra.mxu1 %v3858_v59  ;;  %5278 = vmatpush.msrb.mxu0 %v3970_v61  ;;  %v4040_v59 = vunpack.c.h.bf16 %v5994_v58  ;;  %v4074_v61 = vunpack.c.h.bf16 %v5995_v60  ;;  %v6016_v58 = vld [vmem:[%s7249_s11 + $0x340] sm:$0xff]  ;;  %v6017_v60 = vld [vmem:[%s7249_s11 + $0x230] sm:$0xff] }
 0x296   : > { %5246 = vmatpush.msra.mxu2 %v3890_v2  ;;  %5265 = vmatpush.msra.mxu3 %v3924_v4  ;;  %v4006_v2 = vunpack.c.h.bf16 %v5996_v63  ;;  %v3958_v4 = vunpack.c.h.bf16 %v5997_v3  ;;  %v6018_v63 = vld [vmem:[%s7249_s11 + $0x2b0] sm:$0xff]  ;;  %v6019_v3 = vld [vmem:[%s7249_s11 + $0x3e8] sm:$0xff] }
 0x297   : > { %5227 = vmatpush.msra.mxu1 %v3856_v7  ;;  %5279 = vmatpush.msrb.mxu0 %v3968_v9  ;;  %v4038_v7 = vunpack.c.h.bf16 %v5998_v6  ;;  %v4072_v9 = vunpack.c.h.bf16 %v5999_v8  ;;  %v6020_v6 = vld [vmem:[%s7249_s11 + $0x338] sm:$0xff]  ;;  %v6021_v8 = vld [vmem:[%s7249_s11 + $0x228] sm:$0xff] }
 0x298   : > { %5247 = vmatpush.msra.mxu2 %v3888_v11  ;;  %5266 = vmatpush.msra.mxu3 %v3922_v15  ;;  %v4004_v11 = vunpack.c.h.bf16 %v6000_v10  ;;  %v3956_v15 = vunpack.c.h.bf16 %v6001_v12  ;;  %v6022_v10 = vld [vmem:[%s7249_s11 + $0x2a8] sm:$0xff]  ;;  %v6023_v12 = vld [vmem:[%s7249_s11 + $0x3e0] sm:$0xff] }
 0x299   : > { %5292 = vmatpush.msrb.mxu1 %v4014_v19  ;;  %5280 = vmatpush.msrb.mxu0 %v3966_v21  ;;  %v4036_v19 = vunpack.c.h.bf16 %v6002_v16  ;;  %v4070_v21 = vunpack.c.h.bf16 %v6003_v20  ;;  %v6024_v16 = vld [vmem:[%s7249_s11 + $0x330] sm:$0xff]  ;;  %v6025_v20 = vld [vmem:[%s7249_s11 + $0x220] sm:$0xff] }
 0x29a   : > { %5312 = vmatpush.msrb.mxu2 %v4046_v23  ;;  %5267 = vmatpush.msra.mxu3 %v3920_v30  ;;  %v4002_v23 = vunpack.c.h.bf16 %v6004_v22  ;;  %v3954_v30 = vunpack.c.h.bf16 %v6005_v27  ;;  %v6026_v22 = vld [vmem:[%s7249_s11 + $0x2a0] sm:$0xff]  ;;  %v6027_v27 = vld [vmem:[%s7249_s11 + $0x3d8] sm:$0xff] }
 0x29b   : > { %5293 = vmatpush.msrb.mxu1 %v4012_v34  ;;  %5281 = vmatpush.msrb.mxu0 %v3964_v36  ;;  %v4034_v34 = vunpack.c.h.bf16 %v6006_v33  ;;  %v4068_v36 = vunpack.c.h.bf16 %v6007_v35  ;;  %v6028_v33 = vld [vmem:[%s7249_s11 + $0x328] sm:$0xff]  ;;  %v6029_v35 = vld [vmem:[%s7249_s11 + $0x218] sm:$0xff] }
 0x29c   : > { %5313 = vmatpush.msrb.mxu2 %v4044_v39  ;;  %5332 = vmatpush.msrb.mxu3 %v4078_v41  ;;  %v4000_v39 = vunpack.c.h.bf16 %v6008_v38  ;;  %v3952_v41 = vunpack.c.h.bf16 %v6009_v40  ;;  %v6030_v38 = vld [vmem:[%s7249_s11 + $0x298] sm:$0xff]  ;;  %v6031_v40 = vld [vmem:[%s7249_s11 + $0x3d0] sm:$0xff] }
 0x29d   : > { %5294 = vmatpush.msrb.mxu1 %v4010_v43  ;;  %5282 = vmatpush.msrb.mxu0 %v3962_v45  ;;  %v4032_v43 = vunpack.c.h.bf16 %v6010_v42  ;;  %v4110_v45 = vunpack.c.h.bf16 %v6011_v44  ;;  %v6032_v42 = vld [vmem:[%s7249_s11 + $0x320] sm:$0xff]  ;;  %v6033_v44 = vld [vmem:[%s7249_s11 + $0x210] sm:$0xff] }
 0x29e   : > { %5314 = vmatpush.msrb.mxu2 %v4042_v47  ;;  %5333 = vmatpush.msrb.mxu3 %v4076_v49  ;;  %v4066_v47 = vunpack.c.h.bf16 %v6012_v46  ;;  %v3998_v49 = vunpack.c.h.bf16 %v6013_v48  ;;  %v6034_v46 = vld [vmem:[%s7249_s11 + $0x290] sm:$0xff]  ;;  %v6035_v48 = vld [vmem:[%s7249_s11 + $0x3c8] sm:$0xff] }
 0x29f   : > { %5295 = vmatpush.msrb.mxu1 %v4008_v51  ;;  %5283 = vmatpush.msrb.mxu0 %v3960_v55  ;;  %v4030_v51 = vunpack.c.h.bf16 %v6014_v50  ;;  %v4108_v55 = vunpack.c.h.bf16 %v6015_v54  ;;  %v6036_v50 = vld [vmem:[%s7249_s11 + $0x318] sm:$0xff]  ;;  %v6037_v54 = vld [vmem:[%s7249_s11 + $0x208] sm:$0xff] }
 0x2a0   : > { %5315 = vmatpush.msrb.mxu2 %v4040_v59  ;;  %5334 = vmatpush.msrb.mxu3 %v4074_v61  ;;  %v4064_v59 = vunpack.c.h.bf16 %v6016_v58  ;;  %v3996_v61 = vunpack.c.h.bf16 %v6017_v60  ;;  %v6038_v58 = vld [vmem:[%s7249_s11 + $0x288] sm:$0xff]  ;;  %v6039_v60 = vld [vmem:[%s7249_s11 + $0x310] sm:$0xff] }
 0x2a1   : > { %5296 = vmatpush.msrb.mxu1 %v4006_v2  ;;  %5284 = vmatpush.msrb.mxu0 %v3958_v4  ;;  %v4028_v2 = vunpack.c.h.bf16 %v6018_v63  ;;  %v4106_v4 = vunpack.c.h.bf16 %v6019_v3  ;;  %v6040_v63 = vld [vmem:[%s7249_s11 + $0x3c0] sm:$0xff] }
 0x2a2   : > { %5316 = vmatpush.msrb.mxu2 %v4038_v7  ;;  %5335 = vmatpush.msrb.mxu3 %v4072_v9  ;;  %v4062_v7 = vunpack.c.h.bf16 %v6020_v6  ;;  %v3994_v9 = vunpack.c.h.bf16 %v6021_v8  ;;  %v6041_v3 = vld [vmem:[%s7249_s11 + $0x200] sm:$0xff]  ;;  %v6042_v6 = vld [vmem:[%s7249_s11 + $0x308] sm:$0xff] }
 0x2a3   : > { %5297 = vmatpush.msrb.mxu1 %v4004_v11  ;;  %5285 = vmatpush.msrb.mxu0 %v3956_v15  ;;  %v4026_v11 = vunpack.c.h.bf16 %v6022_v10  ;;  %v4104_v15 = vunpack.c.h.bf16 %v6023_v12  ;;  %v6043_v8 = vld [vmem:[%s7249_s11 + $0x280] sm:$0xff]  ;;  %v6044_v10 = vld [vmem:[%s7249_s11 + $0x3b8] sm:$0xff] }
 0x2a4   : > { %5317 = vmatpush.msrb.mxu2 %v4036_v19  ;;  %5336 = vmatpush.msrb.mxu3 %v4070_v21  ;;  %v4060_v19 = vunpack.c.h.bf16 %v6024_v16  ;;  %v3992_v21 = vunpack.c.h.bf16 %v6025_v20  ;;  %v6045_v12 = vld [vmem:[%s7249_s11 + $0x478] sm:$0xff]  ;;  %v6046_v16 = vld [vmem:[%s7249_s11 + $0x300] sm:$0xff] }
 0x2a5   : > { %5298 = vmatpush.msrb.mxu1 %v4002_v23  ;;  %5286 = vmatpush.msrb.mxu0 %v3954_v30  ;;  %v4024_v23 = vunpack.c.h.bf16 %v6026_v22  ;;  %v4102_v30 = vunpack.c.h.bf16 %v6027_v27  ;;  %v6047_v20 = vld [vmem:[%s7249_s11 + $0x4f8] sm:$0xff]  ;;  %v6048_v22 = vld [vmem:[%s7249_s11 + $0x3b0] sm:$0xff] }
 0x2a6   : > { %5318 = vmatpush.msrb.mxu2 %v4034_v34  ;;  %5337 = vmatpush.msrb.mxu3 %v4068_v36  ;;  %v4058_v34 = vunpack.c.h.bf16 %v6028_v33  ;;  %v3990_v36 = vunpack.c.h.bf16 %v6029_v35  ;;  %v6049_v27 = vld [vmem:[%s7249_s11 + $0x470] sm:$0xff] }
 0x2a7   : > { %5299 = vmatpush.msrb.mxu1 %v4000_v39  ;;  %5287 = vmatpush.msrb.mxu0 %v3952_v41  ;;  %v4022_v39 = vunpack.c.h.bf16 %v6030_v38  ;;  %v4100_v41 = vunpack.c.h.bf16 %v6031_v40 }
 0x2a8   : > { %5319 = vmatpush.msrb.mxu2 %v4032_v43  ;;  %5338 = vmatpush.msrb.mxu3 %v4066_v47  ;;  %v4056_v43 = vunpack.c.h.bf16 %v6032_v42  ;;  %v4020_v47 = vunpack.c.h.bf16 %v6034_v46  ;;  %v6055_v42 = vld [vmem:[%s7249_s11 + $0x570] sm:$0xff] }
 0x2a9   : > { %5352 = vmatpush.msra.mxu0 %v4110_v45  ;;  %5300 = vmatpush.msrb.mxu1 %v3998_v49  ;;  %v3988_v45 = vunpack.c.h.bf16 %v6033_v44  ;;  %v4098_v49 = vunpack.c.h.bf16 %v6035_v48 }
 0x2aa   : > { %5320 = vmatpush.msrb.mxu2 %v4030_v51  ;;  %5339 = vmatpush.msrb.mxu3 %v4064_v59  ;;  %v4054_v51 = vunpack.c.h.bf16 %v6036_v50  ;;  %v4018_v59 = vunpack.c.h.bf16 %v6038_v58 }
 0x2ab   : > { %5353 = vmatpush.msra.mxu0 %v4108_v55  ;;  %5301 = vmatpush.msrb.mxu1 %v3996_v61  ;;  %v3986_v55 = vunpack.c.h.bf16 %v6037_v54  ;;  %v4052_v61 = vunpack.c.h.bf16 %v6039_v60 }
 0x2ac   : > { %5321 = vmatpush.msrb.mxu2 %v4028_v2  ;;  %5340 = vmatpush.msrb.mxu3 %v4062_v7  ;;  %v4096_v2 = vunpack.c.h.bf16 %v6040_v63  ;;  %v4050_v7 = vunpack.c.h.bf16 %v6042_v6  ;;  %v6066_v6 = vld [vmem:[%s7249_s11 + $0x4d0] sm:$0xff] }
 0x2ad   : > { %5354 = vmatpush.msra.mxu0 %v4106_v4  ;;  %5302 = vmatpush.msrb.mxu1 %v3994_v9  ;;  %v3984_v4 = vunpack.c.h.bf16 %v6041_v3  ;;  %v4016_v9 = vunpack.c.h.bf16 %v6043_v8  ;;  %v6067_v8 = vld [vmem:[%s7249_s11 + $0x558] sm:$0xff] }
 0x2ae   : > { %5322 = vmatpush.msrb.mxu2 %v4026_v11  ;;  %5341 = vmatpush.msrb.mxu3 %v4060_v19  ;;  %v4094_v11 = vunpack.c.h.bf16 %v6044_v10  ;;  %v4048_v19 = vunpack.c.h.bf16 %v6046_v16  ;;  %v6068_v10 = vld [vmem:[%s7249_s11 + $0x388] sm:$0xff]  ;;  %v6071_v16 = vld [vmem:[%s7249_s11 + $0x550] sm:$0xff] }
 0x2af   : > { %5355 = vmatpush.msra.mxu0 %v4104_v15  ;;  %5303 = vmatpush.msrb.mxu1 %v3992_v21  ;;  %v4142_v15 = vunpack.c.h.bf16 %v6045_v12  ;;  %v4174_v21 = vunpack.c.h.bf16 %v6047_v20  ;;  %v6069_v12 = vld [vmem:[%s7249_s11 + $0x448] sm:$0xff]  ;;  %v6072_v20 = vld [vmem:[%s7249_s11 + $0x380] sm:$0xff] }
 0x2b0   : > { %5323 = vmatpush.msrb.mxu2 %v4024_v23  ;;  %5342 = vmatpush.msrb.mxu3 %v4058_v34  ;;  %v4092_v23 = vunpack.c.h.bf16 %v6048_v22  ;;  %v6051_v34 = vld [vmem:[%s7249_s11 + $0x578] sm:$0xff]  ;;  %v6073_v22 = vld [vmem:[%s7249_s11 + $0x440] sm:$0xff] }
 0x2b1   : > { %5356 = vmatpush.msra.mxu0 %v4102_v30  ;;  %5304 = vmatpush.msrb.mxu1 %v3990_v36  ;;  %v4140_v30 = vunpack.c.h.bf16 %v6049_v27  ;;  %v4206_v35 = vunpack.c.h.bf16 %v6051_v34  ;;  %v6052_v36 = vld [vmem:[%s7249_s11 + $0x3a8] sm:$0xff]  ;;  %v6074_v27 = vld [vmem:[%s7249_s11 + $0x4c0] sm:$0xff] }
 0x2b2   : > { %5324 = vmatpush.msrb.mxu2 %v4022_v39  ;;  %5343 = vmatpush.msrb.mxu3 %v4056_v43  ;;  %v4090_v38 = vunpack.c.h.bf16 %v6052_v36  ;;  %v6053_v39 = vld [vmem:[%s7249_s11 + $0x468] sm:$0xff]  ;;  %v6056_v43 = vld [vmem:[%s7249_s11 + $0x3a0] sm:$0xff] }
 0x2b3   : > { %5357 = vmatpush.msra.mxu0 %v4100_v41  ;;  %5305 = vmatpush.msrb.mxu1 %v3988_v45  ;;  %v4138_v40 = vunpack.c.h.bf16 %v6053_v39  ;;  %v6054_v41 = vld [vmem:[%s7249_s11 + $0x4e8] sm:$0xff]  ;;  %v4088_v44 = vunpack.c.h.bf16 %v6056_v43  ;;  %v6057_v45 = vld [vmem:[%s7249_s11 + $0x460] sm:$0xff] }
 0x2b4   : > { %5325 = vmatpush.msrb.mxu2 %v4020_v47  ;;  %5344 = vmatpush.msrb.mxu3 %v4054_v51  ;;  %v4136_v46 = vunpack.c.h.bf16 %v6057_v45  ;;  %v6058_v47 = vld [vmem:[%s7249_s11 + $0x4e0] sm:$0xff]  ;;  %v6060_v51 = vld [vmem:[%s7249_s11 + $0x398] sm:$0xff] }
 0x2b5   : > { %5358 = vmatpush.msra.mxu0 %v4098_v49  ;;  %5306 = vmatpush.msrb.mxu1 %v3986_v55  ;;  %v4168_v48 = vunpack.c.h.bf16 %v6058_v47  ;;  %v6059_v49 = vld [vmem:[%s7249_s11 + $0x568] sm:$0xff]  ;;  %v4086_v54 = vunpack.c.h.bf16 %v6060_v51  ;;  %v6061_v55 = vld [vmem:[%s7249_s11 + $0x458] sm:$0xff] }
 0x2b6   : > { %5326 = vmatpush.msrb.mxu2 %v4018_v59  ;;  %5345 = vmatpush.msrb.mxu3 %v4052_v61  ;;  %v4202_v50 = vunpack.c.h.bf16 %v6059_v49  ;;  %v4134_v58 = vunpack.c.h.bf16 %v6061_v55  ;;  %v6062_v59 = vld [vmem:[%s7249_s11 + $0x4d8] sm:$0xff]  ;;  %v6063_v61 = vld [vmem:[%s7249_s11 + $0x560] sm:$0xff] }
 0x2b7   : > { %5248 = vmatmul.f32.vlgmr.msra.gmra.mxu2 %v7377_v28  ;;  %5359 = vmatpush.msra.mxu0 %v4096_v2  ;;  %v6050_v28 = vld [vmem:[%s7249_s11 + $0x4f0] sm:$0xff]  ;;  %v4166_v60 = vunpack.c.h.bf16 %v6062_v59  ;;  %v4200_v63 = vunpack.c.h.bf16 %v6063_v61 }
 0x2b8   : > { %5307 = vmatpush.msrb.mxu1 %v3984_v4  ;;  %5327 = vmatpush.msrb.mxu2 %v4016_v9  ;;  %v4172_v33 = vunpack.c.h.bf16 %v6050_v28  ;;  %v6064_v2 = vld [vmem:[%s7249_s11 + $0x390] sm:$0xff]  ;;  %v4198_v9 = vunpack.c.h.bf16 %v6067_v8  ;;  %v6075_v28 = vld [vmem:[%s7249_s11 + $0x548] sm:$0xff]  ;;  %v6093_v8 = vld [vmem:[%s7249_s11 + $0x418] sm:$0xff] }
 0x2b9   : > { %5346 = vmatpush.msrb.mxu3 %v4050_v7  ;;  %5228 = vmatmul.f32.vlgmr.msra.gmra.mxu1 %v7375_v25  ;;  %v4170_v25 = vunpack.c.h.bf16 %v6054_v41  ;;  %v4084_v3 = vunpack.c.h.bf16 %v6064_v2  ;;  %v6065_v4 = vld [vmem:[%s7249_s11 + $0x450] sm:$0xff]  ;;  %v4164_v7 = vunpack.c.h.bf16 %v6066_v6  ;;  %v6090_v2 = vld [vmem:[%s7249_s11 + $0x4a0] sm:$0xff]  ;;  %v6092_v6 = vld [vmem:[%s7249_s11 + $0x5d8] sm:$0xff] }
 0x2ba   : > { %5268 = vmatmul.f32.vlgmr.msra.gmra.mxu3 %v7373_v24  ;;  %5360 = vmatpush.msra.mxu0 %v4094_v11  ;;  %v4204_v24 = vunpack.c.h.bf16 %v6055_v42  ;;  %v4082_v11 = vunpack.c.h.bf16 %v6068_v10  ;;  %v6094_v10 = vld [vmem:[%s7249_s11 + $0x498] sm:$0xff] }
 0x2bb   : > { %5372 = vmatpush.msra.mxu1 %v4142_v15  ;;  %5392 = vmatpush.msra.mxu2 %v4174_v21  ;;  %v4080_v21 = vunpack.c.h.bf16 %v6072_v20  ;;  %v6098_v20 = vld [vmem:[%s7249_s11 + $0x490] sm:$0xff] }
 0x2bc   : > { %5347 = vmatpush.msrb.mxu3 %v4048_v19  ;;  %5361 = vmatpush.msra.mxu0 %v4092_v23  ;;  %v4196_v19 = vunpack.c.h.bf16 %v6071_v16  ;;  %v4128_v23 = vunpack.c.h.bf16 %v6073_v22  ;;  %v6097_v16 = vld [vmem:[%s7249_s11 + $0x410] sm:$0xff]  ;;  %v6099_v22 = vld [vmem:[%s7249_s11 + $0x518] sm:$0xff] }
 0x2bd   : > { %5373 = vmatpush.msra.mxu1 %v4140_v30  ;;  %5393 = vmatpush.msra.mxu2 %v4172_v33  ;;  %v4160_v30 = vunpack.c.h.bf16 %v6074_v27  ;;  %v6076_v33 = vld [vmem:[%s7249_s11 + $0x5f8] sm:$0xff]  ;;  %v6100_v27 = vld [vmem:[%s7249_s11 + $0x5c8] sm:$0xff] }
 0x2be   : > { %5412 = vmatpush.msra.mxu3 %v4206_v35  ;;  %5362 = vmatpush.msra.mxu0 %v4090_v38  ;;  %v4238_v34 = vunpack.c.h.bf16 %v6076_v33  ;;  %v6077_v35 = vld [vmem:[%s7249_s11 + $0x438] sm:$0xff]  ;;  %v6102_v33 = vld [vmem:[%s7249_s11 + $0x488] sm:$0xff] }
 0x2bf   : > { %5374 = vmatpush.msra.mxu1 %v4138_v40  ;;  %5394 = vmatpush.msra.mxu2 %v4170_v25  ;;  %v4126_v36 = vunpack.c.h.bf16 %v6077_v35  ;;  %v6078_v38 = vld [vmem:[%s7249_s11 + $0x4b8] sm:$0xff]  ;;  %v6079_v40 = vld [vmem:[%s7249_s11 + $0x540] sm:$0xff]  ;;  %v6080_v25 = vld [vmem:[%s7249_s11 + $0x5f0] sm:$0xff] }
 0x2c0   : > { %5413 = vmatpush.msra.mxu3 %v4204_v24  ;;  %5328 = vmatmul.f32.vlgmr.msrb.gmra.mxu2 %v7399_v57  ;;  %v4132_v57 = vunpack.c.h.bf16 %v6065_v4  ;;  %v4158_v39 = vunpack.c.h.bf16 %v6078_v38  ;;  %v4192_v41 = vunpack.c.h.bf16 %v6079_v40  ;;  %v4236_v42 = vunpack.c.h.bf16 %v6080_v25  ;;  %v6081_v24 = vld [vmem:[%s7249_s11 + $0x430] sm:$0xff]  ;;  %v6091_v4 = vld [vmem:[%s7249_s11 + $0x528] sm:$0xff]  ;;  %v6104_v38 = vld [vmem:[%s7249_s11 + $0x5c0] sm:$0xff] }
 0x2c1   : > { %5363 = vmatpush.msra.mxu0 %v4088_v44  ;;  %5375 = vmatpush.msra.mxu1 %v4136_v46  ;;  %v4124_v43 = vunpack.c.h.bf16 %v6081_v24  ;;  %v6082_v44 = vld [vmem:[%s7249_s11 + $0x4b0] sm:$0xff]  ;;  %v6083_v46 = vld [vmem:[%s7249_s11 + $0x538] sm:$0xff]  ;;  %v6105_v40 = vld [vmem:[%s7249_s11 + $0x400] sm:$0xff] }
 0x2c2   : > { %5395 = vmatpush.msra.mxu2 %v4168_v48  ;;  %5414 = vmatpush.msra.mxu3 %v4202_v50  ;;  %v4156_v45 = vunpack.c.h.bf16 %v6082_v44  ;;  %v4190_v47 = vunpack.c.h.bf16 %v6083_v46  ;;  %v6084_v48 = vld [vmem:[%s7249_s11 + $0x5e8] sm:$0xff]  ;;  %v6103_v35 = vld [vmem:[%s7249_s11 + $0x510] sm:$0xff]  ;;  %v6106_v25 = vld [vmem:[%s7249_s11 + $0x480] sm:$0xff] }
 0x2c3   : > { %5288 = vmatmul.f32.vlgmr.msrb.gmra.mxu0 %v7379_v29  ;;  %5348 = vmatmul.f32.vlgmr.msrb.gmra.mxu3 %v7393_v52  ;;  %v4130_v29 = vunpack.c.h.bf16 %v6069_v12  ;;  %v6070_v52 = vld [vmem:[%s7249_s11 + $0x4c8] sm:$0xff]  ;;  %v4234_v49 = vunpack.c.h.bf16 %v6084_v48  ;;  %v6095_v12 = vld [vmem:[%s7249_s11 + $0x520] sm:$0xff]  ;;  %v6108_v44 = vld [vmem:[%s7249_s11 + $0x5b8] sm:$0xff] }
 0x2c4   : > { %5364 = vmatpush.msra.mxu0 %v4086_v54  ;;  %5376 = vmatpush.msra.mxu1 %v4134_v58  ;;  %v4162_v15 = vunpack.c.h.bf16 %v6070_v52  ;;  %v6085_v50 = vld [vmem:[%s7249_s11 + $0x428] sm:$0xff]  ;;  %v6087_v58 = vld [vmem:[%s7249_s11 + $0x530] sm:$0xff]  ;;  %v6109_v46 = vld [vmem:[%s7249_s11 + $0x678] sm:$0xff] }
 0x2c5   : > { %5396 = vmatpush.msra.mxu2 %v4166_v60  ;;  %5415 = vmatpush.msra.mxu3 %v4200_v63  ;;  %v4122_v51 = vunpack.c.h.bf16 %v6085_v50  ;;  %v6086_v54 = vld [vmem:[%s7249_s11 + $0x4a8] sm:$0xff]  ;;  %v4188_v59 = vunpack.c.h.bf16 %v6087_v58  ;;  %v6088_v60 = vld [vmem:[%s7249_s11 + $0x5e0] sm:$0xff]  ;;  %v6096_v52 = vld [vmem:[%s7249_s11 + $0x5d0] sm:$0xff] }
 0x2c6   : > { %5308 = vmatmul.f32.vlgmr.msrb.gmra.mxu1 %v7395_v53  ;;  %5365 = vmatpush.msra.mxu0 %v4084_v3  ;;  %v4194_v53 = vunpack.c.h.bf16 %v6075_v28  ;;  %v4154_v55 = vunpack.c.h.bf16 %v6086_v54  ;;  %v4232_v61 = vunpack.c.h.bf16 %v6088_v60  ;;  %v6089_v63 = vld [vmem:[%s7249_s11 + $0x420] sm:$0xff]  ;;  %v4152_v3 = vunpack.c.h.bf16 %v6090_v2  ;;  %v6101_v28 = vld [vmem:[%s7249_s11 + $0x408] sm:$0xff]  ;;  %v6110_v48 = vld [vmem:[%s7249_s11 + $0x6f8] sm:$0xff] }
 0x2c7   : > { %5377 = vmatpush.msra.mxu1 %v4132_v57  ;;  %5397 = vmatpush.msra.mxu2 %v4164_v7  ;;  %v4186_v57 = vunpack.c.h.bf16 %v6091_v4  ;;  %v4230_v7 = vunpack.c.h.bf16 %v6092_v6  ;;  %v6107_v24 = vld [vmem:[%s7249_s11 + $0x508] sm:$0xff]  ;;  %v6111_v50 = vld [vmem:[%s7249_s11 + $0x500] sm:$0xff]  ;;  %v6112_v54 = vld [vmem:[%s7249_s11 + $0x5b0] sm:$0xff] }
 0x2c8   : > { %5416 = vmatpush.msra.mxu3 %v4198_v9  ;;  %5366 = vmatpush.msra.mxu0 %v4082_v11  ;;  %v4118_v9 = vunpack.c.h.bf16 %v6093_v8  ;;  %v4150_v11 = vunpack.c.h.bf16 %v6094_v10  ;;  %v6113_v58 = vld [vmem:[%s7249_s11 + $0x670] sm:$0xff]  ;;  %v6116_v2 = vld [vmem:[%s7249_s11 + $0x5a8] sm:$0xff]  ;;  %v6120_v8 = vld [vmem:[%s7249_s11 + $0x5a0] sm:$0xff] }
 0x2c9   : > { %5378 = vmatpush.msra.mxu1 %v4130_v29  ;;  %5398 = vmatpush.msra.mxu2 %v4162_v15  ;;  %v4184_v29 = vunpack.c.h.bf16 %v6095_v12  ;;  %v4228_v15 = vunpack.c.h.bf16 %v6096_v52  ;;  %v6114_v60 = vld [vmem:[%s7249_s11 + $0x6f0] sm:$0xff]  ;;  %v6117_v4 = vld [vmem:[%s7249_s11 + $0x668] sm:$0xff]  ;;  %v6121_v10 = vld [vmem:[%s7249_s11 + $0x660] sm:$0xff] }
 0x2ca   : > { %5417 = vmatpush.msra.mxu3 %v4196_v19  ;;  %5367 = vmatpush.msra.mxu0 %v4080_v21  ;;  %v4116_v19 = vunpack.c.h.bf16 %v6097_v16  ;;  %v4148_v21 = vunpack.c.h.bf16 %v6098_v20  ;;  %v6119_v6 = vld [vmem:[%s7249_s11 + $0x770] sm:$0xff]  ;;  %v6122_v12 = vld [vmem:[%s7249_s11 + $0x6e0] sm:$0xff]  ;;  %v6123_v52 = vld [vmem:[%s7249_s11 + $0x768] sm:$0xff] }
 0x2cb   : > { %5379 = vmatpush.msra.mxu1 %v4128_v23  ;;  %5399 = vmatpush.msra.mxu2 %v4160_v30  ;;  %v4182_v23 = vunpack.c.h.bf16 %v6099_v22  ;;  %v4226_v30 = vunpack.c.h.bf16 %v6100_v27  ;;  %v6124_v16 = vld [vmem:[%s7249_s11 + $0x598] sm:$0xff] }
 0x2cc   : > { %5418 = vmatpush.msra.mxu3 %v4194_v53  ;;  %5432 = vmatpush.msrb.mxu0 %v4238_v34  ;;  %v4114_v53 = vunpack.c.h.bf16 %v6101_v28  ;;  %v4146_v34 = vunpack.c.h.bf16 %v6102_v33 }
 0x2cd   : > { %5380 = vmatpush.msra.mxu1 %v4126_v36  ;;  %5368 = vmatmul.f32.vlgmr.msra.gmra.mxu0 %v7397_v56  ;;  %v4120_v56 = vunpack.c.h.bf16 %v6089_v63  ;;  %v4180_v36 = vunpack.c.h.bf16 %v6103_v35  ;;  %v6115_v63 = vld [vmem:[%s7249_s11 + $0x778] sm:$0xff] }
 0x2ce   : > { %5400 = vmatpush.msra.mxu2 %v4158_v39  ;;  %5419 = vmatpush.msra.mxu3 %v4192_v41  ;;  %v4224_v39 = vunpack.c.h.bf16 %v6104_v38  ;;  %v4112_v41 = vunpack.c.h.bf16 %v6105_v40 }
 0x2cf   : > { %5433 = vmatpush.msrb.mxu0 %v4236_v42  ;;  %5381 = vmatpush.msra.mxu1 %v4124_v43  ;;  %v4144_v42 = vunpack.c.h.bf16 %v6106_v25  ;;  %v4178_v43 = vunpack.c.h.bf16 %v6107_v24 }
 0x2d0   : > { %5401 = vmatpush.msra.mxu2 %v4156_v45  ;;  %5420 = vmatpush.msra.mxu3 %v4190_v47  ;;  %v4222_v45 = vunpack.c.h.bf16 %v6108_v44  ;;  %v4270_v47 = vunpack.c.h.bf16 %v6109_v46 }
 0x2d1   : > { %5434 = vmatpush.msrb.mxu0 %v4234_v49  ;;  %5382 = vmatpush.msra.mxu1 %v4122_v51  ;;  %v4302_v49 = vunpack.c.h.bf16 %v6110_v48  ;;  %v4176_v51 = vunpack.c.h.bf16 %v6111_v50 }
 0x2d2   : > { %5402 = vmatpush.msra.mxu2 %v4154_v55  ;;  %5421 = vmatpush.msra.mxu3 %v4188_v59  ;;  %v4220_v55 = vunpack.c.h.bf16 %v6112_v54  ;;  %v4268_v59 = vunpack.c.h.bf16 %v6113_v58 }
 0x2d3   : > { %5435 = vmatpush.msrb.mxu0 %v4232_v61  ;;  %5383 = vmatpush.msra.mxu1 %v4120_v56  ;;  %v4300_v61 = vunpack.c.h.bf16 %v6114_v60  ;;  %v4334_v56 = vunpack.c.h.bf16 %v6115_v63 }
 0x2d4   : > { %5403 = vmatpush.msra.mxu2 %v4152_v3  ;;  %5422 = vmatpush.msra.mxu3 %v4186_v57  ;;  %v4218_v3 = vunpack.c.h.bf16 %v6116_v2  ;;  %v6118_v57 = vld [vmem:[%s7249_s11 + $0x6e8] sm:$0xff] }
 0x2d5   : > { %5436 = vmatpush.msrb.mxu0 %v4230_v7  ;;  %5384 = vmatpush.msra.mxu1 %v4118_v9  ;;  %v4332_v7 = vunpack.c.h.bf16 %v6119_v6  ;;  %v4216_v9 = vunpack.c.h.bf16 %v6120_v8 }
 0x2d6   : > { %5404 = vmatpush.msra.mxu2 %v4150_v11  ;;  %5423 = vmatpush.msra.mxu3 %v4184_v29  ;;  %v4264_v11 = vunpack.c.h.bf16 %v6121_v10  ;;  %v4296_v29 = vunpack.c.h.bf16 %v6122_v12 }
 0x2d7   : > { %5437 = vmatpush.msrb.mxu0 %v4228_v15  ;;  %5385 = vmatpush.msra.mxu1 %v4116_v19  ;;  %v4330_v15 = vunpack.c.h.bf16 %v6123_v52  ;;  %v6125_v19 = vld [vmem:[%s7249_s11 + $0x658] sm:$0xff] }
 0x2d8   : > { %5405 = vmatpush.msra.mxu2 %v4148_v21  ;;  %5424 = vmatpush.msra.mxu3 %v4182_v23  ;;  %v4262_v20 = vunpack.c.h.bf16 %v6125_v19  ;;  %v6126_v21 = vld [vmem:[%s7249_s11 + $0x6d8] sm:$0xff]  ;;  %v6127_v23 = vld [vmem:[%s7249_s11 + $0x760] sm:$0xff] }
 0x2d9   : > { %5438 = vmatpush.msrb.mxu0 %v4226_v30  ;;  %5386 = vmatpush.msra.mxu1 %v4114_v53  ;;  %v4294_v22 = vunpack.c.h.bf16 %v6126_v21  ;;  %v4328_v27 = vunpack.c.h.bf16 %v6127_v23  ;;  %v6128_v30 = vld [vmem:[%s7249_s11 + $0x590] sm:$0xff]  ;;  %v6153_v19 = vld [vmem:[%s7249_s11 + $0x7e0] sm:$0xff]  ;;  %v6155_v23 = vld [vmem:[%s7249_s11 + $0x728] sm:$0xff] }
 0x2da   : > { %5406 = vmatpush.msra.mxu2 %v4146_v34  ;;  %5425 = vmatpush.msra.mxu3 %v4180_v36  ;;  %v4212_v28 = vunpack.c.h.bf16 %v6128_v30  ;;  %v6129_v53 = vld [vmem:[%s7249_s11 + $0x650] sm:$0xff]  ;;  %v6131_v36 = vld [vmem:[%s7249_s11 + $0x758] sm:$0xff]  ;;  %v6154_v21 = vld [vmem:[%s7249_s11 + $0x6a0] sm:$0xff] }
 0x2db   : > { %5439 = vmatpush.msrb.mxu0 %v4224_v39  ;;  %5387 = vmatpush.msra.mxu1 %v4112_v41  ;;  %v4260_v33 = vunpack.c.h.bf16 %v6129_v53  ;;  %v6130_v34 = vld [vmem:[%s7249_s11 + $0x6d0] sm:$0xff]  ;;  %v4326_v38 = vunpack.c.h.bf16 %v6131_v36  ;;  %v6132_v39 = vld [vmem:[%s7249_s11 + $0x588] sm:$0xff]  ;;  %v6156_v30 = vld [vmem:[%s7249_s11 + $0x618] sm:$0xff] }
 0x2dc   : > { %5407 = vmatpush.msra.mxu2 %v4144_v42  ;;  %5426 = vmatpush.msra.mxu3 %v4178_v43  ;;  %v4292_v35 = vunpack.c.h.bf16 %v6130_v34  ;;  %v4210_v40 = vunpack.c.h.bf16 %v6132_v39  ;;  %v6133_v41 = vld [vmem:[%s7249_s11 + $0x648] sm:$0xff]  ;;  %v6135_v43 = vld [vmem:[%s7249_s11 + $0x750] sm:$0xff]  ;;  %v6157_v53 = vld [vmem:[%s7249_s11 + $0x7d8] sm:$0xff] }
 0x2dd   : > { %5388 = vmatmul.f32.vlgmr.msra.gmra.mxu1 %v7435_v62  ;;  %5408 = vmatmul.f32.vlgmr.msra.gmra.mxu2 %v7439_v1  ;;  %v4266_v62 = vunpack.c.h.bf16 %v6117_v4  ;;  %v4298_v1 = vunpack.c.h.bf16 %v6118_v57  ;;  %v4258_v25 = vunpack.c.h.bf16 %v6133_v41  ;;  %v6134_v42 = vld [vmem:[%s7249_s11 + $0x6c8] sm:$0xff]  ;;  %v4324_v44 = vunpack.c.h.bf16 %v6135_v43  ;;  %v6158_v34 = vld [vmem:[%s7249_s11 + $0x698] sm:$0xff]  ;;  %v6159_v36 = vld [vmem:[%s7249_s11 + $0x720] sm:$0xff] }
 0x2de   : > { %5440 = vmatpush.msrb.mxu0 %v4222_v45  ;;  %5452 = vmatpush.msrb.mxu1 %v4270_v47  ;;  %v4290_v24 = vunpack.c.h.bf16 %v6134_v42  ;;  %v6136_v45 = vld [vmem:[%s7249_s11 + $0x580] sm:$0xff]  ;;  %v6160_v39 = vld [vmem:[%s7249_s11 + $0x610] sm:$0xff]  ;;  %v6163_v43 = vld [vmem:[%s7249_s11 + $0x718] sm:$0xff] }
 0x2df   : > { %5472 = vmatpush.msrb.mxu2 %v4302_v49  ;;  %5427 = vmatpush.msra.mxu3 %v4176_v51  ;;  %v4208_v46 = vunpack.c.h.bf16 %v6136_v45  ;;  %v6137_v47 = vld [vmem:[%s7249_s11 + $0x640] sm:$0xff]  ;;  %v6139_v51 = vld [vmem:[%s7249_s11 + $0x748] sm:$0xff]  ;;  %v6161_v41 = vld [vmem:[%s7249_s11 + $0x7d0] sm:$0xff] }
 0x2e0   : > { %5441 = vmatpush.msrb.mxu0 %v4220_v55  ;;  %5428 = vmatmul.f32.vlgmr.msra.gmra.mxu3 %v7437_v0  ;;  %v4214_v0 = vunpack.c.h.bf16 %v6124_v16  ;;  %v4256_v48 = vunpack.c.h.bf16 %v6137_v47  ;;  %v6138_v49 = vld [vmem:[%s7249_s11 + $0x6c0] sm:$0xff]  ;;  %v4322_v54 = vunpack.c.h.bf16 %v6139_v51  ;;  %v6140_v55 = vld [vmem:[%s7249_s11 + $0x638] sm:$0xff]  ;;  %v6162_v42 = vld [vmem:[%s7249_s11 + $0x690] sm:$0xff] }
 0x2e1   : > { %5453 = vmatpush.msrb.mxu1 %v4268_v59  ;;  %5473 = vmatpush.msrb.mxu2 %v4300_v61  ;;  %v4288_v50 = vunpack.c.h.bf16 %v6138_v49  ;;  %v4254_v58 = vunpack.c.h.bf16 %v6140_v55  ;;  %v6141_v59 = vld [vmem:[%s7249_s11 + $0x7f8] sm:$0xff]  ;;  %v6152_v16 = vld [vmem:[%s7249_s11 + $0x620] sm:$0xff]  ;;  %v6164_v45 = vld [vmem:[%s7249_s11 + $0x608] sm:$0xff] }
 0x2e2   : > { %5492 = vmatpush.msrb.mxu3 %v4334_v56  ;;  %5442 = vmatpush.msrb.mxu0 %v4218_v3  ;;  %v4366_v60 = vunpack.c.h.bf16 %v6141_v59  ;;  %v6142_v61 = vld [vmem:[%s7249_s11 + $0x6b8] sm:$0xff]  ;;  %v6143_v56 = vld [vmem:[%s7249_s11 + $0x740] sm:$0xff]  ;;  %v6144_v3 = vld [vmem:[%s7249_s11 + $0x630] sm:$0xff] }
 0x2e3   : > { %5454 = vmatpush.msrb.mxu1 %v4266_v62  ;;  %5474 = vmatpush.msrb.mxu2 %v4298_v1  ;;  %v4286_v63 = vunpack.c.h.bf16 %v6142_v61  ;;  %v4320_v2 = vunpack.c.h.bf16 %v6143_v56  ;;  %v4252_v4 = vunpack.c.h.bf16 %v6144_v3  ;;  %v6145_v62 = vld [vmem:[%s7249_s11 + $0x7f0] sm:$0xff]  ;;  %v6165_v47 = vld [vmem:[%s7249_s11 + $0x7c8] sm:$0xff]  ;;  %v6168_v55 = vld [vmem:[%s7249_s11 + $0x600] sm:$0xff] }
 0x2e4   : > { %5493 = vmatpush.msrb.mxu3 %v4332_v7  ;;  %5443 = vmatpush.msrb.mxu0 %v4216_v9  ;;  %v4364_v57 = vunpack.c.h.bf16 %v6145_v62  ;;  %v6146_v1 = vld [vmem:[%s7249_s11 + $0x6b0] sm:$0xff]  ;;  %v6147_v7 = vld [vmem:[%s7249_s11 + $0x738] sm:$0xff]  ;;  %v6148_v9 = vld [vmem:[%s7249_s11 + $0x628] sm:$0xff] }
 0x2e5   : > { %5455 = vmatpush.msrb.mxu1 %v4264_v11  ;;  %5475 = vmatpush.msrb.mxu2 %v4296_v29  ;;  %v4284_v6 = vunpack.c.h.bf16 %v6146_v1  ;;  %v4318_v8 = vunpack.c.h.bf16 %v6147_v7  ;;  %v4250_v10 = vunpack.c.h.bf16 %v6148_v9  ;;  %v6149_v11 = vld [vmem:[%s7249_s11 + $0x7e8] sm:$0xff]  ;;  %v6167_v51 = vld [vmem:[%s7249_s11 + $0x710] sm:$0xff]  ;;  %v6169_v59 = vld [vmem:[%s7249_s11 + $0x7c0] sm:$0xff] }
 0x2e6   : > { %5494 = vmatpush.msrb.mxu3 %v4330_v15  ;;  %5444 = vmatpush.msrb.mxu0 %v4214_v0  ;;  %v4362_v12 = vunpack.c.h.bf16 %v6149_v11  ;;  %v6150_v29 = vld [vmem:[%s7249_s11 + $0x6a8] sm:$0xff]  ;;  %v6151_v15 = vld [vmem:[%s7249_s11 + $0x730] sm:$0xff]  ;;  %v4248_v0 = vunpack.c.h.bf16 %v6152_v16  ;;  %v6170_v61 = vld [vmem:[%s7249_s11 + $0x680] sm:$0xff] }
 0x2e7   : > { %5456 = vmatpush.msrb.mxu1 %v4262_v20  ;;  %5476 = vmatpush.msrb.mxu2 %v4294_v22  ;;  %v4282_v52 = vunpack.c.h.bf16 %v6150_v29  ;;  %v4360_v20 = vunpack.c.h.bf16 %v6153_v19  ;;  %v4280_v22 = vunpack.c.h.bf16 %v6154_v21  ;;  %v6166_v49 = vld [vmem:[%s7249_s11 + $0x688] sm:$0xff]  ;;  %v6172_v3 = vld [vmem:[%s7249_s11 + $0x7b8] sm:$0xff]  ;;  %v6175_v7 = vld [vmem:[%s7249_s11 + $0x700] sm:$0xff] }
 0x2e8   : > { %5495 = vmatpush.msrb.mxu3 %v4328_v27  ;;  %5445 = vmatpush.msrb.mxu0 %v4212_v28  ;;  %v4314_v27 = vunpack.c.h.bf16 %v6155_v23  ;;  %v4246_v28 = vunpack.c.h.bf16 %v6156_v30  ;;  %v6171_v56 = vld [vmem:[%s7249_s11 + $0x708] sm:$0xff]  ;;  %v6173_v62 = vld [vmem:[%s7249_s11 + $0x878] sm:$0xff]  ;;  %v6176_v9 = vld [vmem:[%s7249_s11 + $0x7b0] sm:$0xff] }
 0x2e9   : > { %5457 = vmatpush.msrb.mxu1 %v4260_v33  ;;  %5477 = vmatpush.msrb.mxu2 %v4292_v35  ;;  %v4358_v33 = vunpack.c.h.bf16 %v6157_v53  ;;  %v4278_v35 = vunpack.c.h.bf16 %v6158_v34  ;;  %v6174_v1 = vld [vmem:[%s7249_s11 + $0x8f8] sm:$0xff]  ;;  %v6177_v11 = vld [vmem:[%s7249_s11 + $0x870] sm:$0xff]  ;;  %v6180_v16 = vld [vmem:[%s7249_s11 + $0x7a8] sm:$0xff] }
 0x2ea   : > { %5496 = vmatpush.msrb.mxu3 %v4326_v38  ;;  %5446 = vmatpush.msrb.mxu0 %v4210_v40  ;;  %v4312_v38 = vunpack.c.h.bf16 %v6159_v36  ;;  %v4244_v40 = vunpack.c.h.bf16 %v6160_v39  ;;  %v6178_v29 = vld [vmem:[%s7249_s11 + $0x8f0] sm:$0xff]  ;;  %v6181_v19 = vld [vmem:[%s7249_s11 + $0x868] sm:$0xff]  ;;  %v6184_v23 = vld [vmem:[%s7249_s11 + $0x7a0] sm:$0xff] }
 0x2eb   : > { %5458 = vmatpush.msrb.mxu1 %v4258_v25  ;;  %5478 = vmatpush.msrb.mxu2 %v4290_v24  ;;  %v4356_v25 = vunpack.c.h.bf16 %v6161_v41  ;;  %v4276_v24 = vunpack.c.h.bf16 %v6162_v42  ;;  %v6183_v21 = vld [vmem:[%s7249_s11 + $0x970] sm:$0xff]  ;;  %v6185_v30 = vld [vmem:[%s7249_s11 + $0x860] sm:$0xff]  ;;  %v6187_v34 = vld [vmem:[%s7249_s11 + $0x968] sm:$0xff] }
 0x2ec   : > { %5497 = vmatpush.msrb.mxu3 %v4324_v44  ;;  %5447 = vmatpush.msrb.mxu0 %v4208_v46  ;;  %v4310_v44 = vunpack.c.h.bf16 %v6163_v43  ;;  %v4242_v46 = vunpack.c.h.bf16 %v6164_v45  ;;  %v6186_v53 = vld [vmem:[%s7249_s11 + $0x8e0] sm:$0xff]  ;;  %v6188_v36 = vld [vmem:[%s7249_s11 + $0x798] sm:$0xff] }
 0x2ed   : > { %5459 = vmatpush.msrb.mxu1 %v4256_v48  ;;  %5479 = vmatpush.msrb.mxu2 %v4288_v50  ;;  %v4354_v48 = vunpack.c.h.bf16 %v6165_v47  ;;  %v4274_v50 = vunpack.c.h.bf16 %v6166_v49 }
 0x2ee   : > { %5498 = vmatpush.msrb.mxu3 %v4322_v54  ;;  %5448 = vmatmul.f32.vlgmr.msrb.gmra.mxu0 %v7443_v5  ;;  %v4316_v5 = vunpack.c.h.bf16 %v6151_v15  ;;  %v4308_v54 = vunpack.c.h.bf16 %v6167_v51  ;;  %v6179_v15 = vld [vmem:[%s7249_s11 + $0x978] sm:$0xff] }
 0x2ef   : > { %5460 = vmatpush.msrb.mxu1 %v4254_v58  ;;  %5512 = vmatpush.msra.mxu0 %v4366_v60  ;;  %v4240_v58 = vunpack.c.h.bf16 %v6168_v55  ;;  %v4352_v60 = vunpack.c.h.bf16 %v6169_v59 }
 0x2f0   : > { %5480 = vmatpush.msrb.mxu2 %v4286_v63  ;;  %5499 = vmatpush.msrb.mxu3 %v4320_v2  ;;  %v4272_v63 = vunpack.c.h.bf16 %v6170_v61  ;;  %v4306_v2 = vunpack.c.h.bf16 %v6171_v56 }
 0x2f1   : > { %5461 = vmatpush.msrb.mxu1 %v4252_v4  ;;  %5513 = vmatpush.msra.mxu0 %v4364_v57  ;;  %v4350_v4 = vunpack.c.h.bf16 %v6172_v3  ;;  %v4398_v57 = vunpack.c.h.bf16 %v6173_v62 }
 0x2f2   : > { %5481 = vmatpush.msrb.mxu2 %v4284_v6  ;;  %5500 = vmatpush.msrb.mxu3 %v4318_v8  ;;  %v4430_v6 = vunpack.c.h.bf16 %v6174_v1  ;;  %v4304_v8 = vunpack.c.h.bf16 %v6175_v7 }
 0x2f3   : > { %5462 = vmatpush.msrb.mxu1 %v4250_v10  ;;  %5514 = vmatpush.msra.mxu0 %v4362_v12  ;;  %v4348_v10 = vunpack.c.h.bf16 %v6176_v9  ;;  %v4396_v12 = vunpack.c.h.bf16 %v6177_v11 }
 0x2f4   : > { %5482 = vmatpush.msrb.mxu2 %v4282_v52  ;;  %5501 = vmatpush.msrb.mxu3 %v4316_v5  ;;  %v4428_v52 = vunpack.c.h.bf16 %v6178_v29  ;;  %v4462_v5 = vunpack.c.h.bf16 %v6179_v15 }
 0x2f5   : > { %5463 = vmatpush.msrb.mxu1 %v4248_v0  ;;  %5515 = vmatpush.msra.mxu0 %v4360_v20  ;;  %v4346_v0 = vunpack.c.h.bf16 %v6180_v16  ;;  %v6182_v20 = vld [vmem:[%s7249_s11 + $0x8e8] sm:$0xff] }
 0x2f6   : > { %5483 = vmatpush.msrb.mxu2 %v4280_v22  ;;  %5502 = vmatpush.msrb.mxu3 %v4314_v27  ;;  %v4460_v22 = vunpack.c.h.bf16 %v6183_v21  ;;  %v4344_v27 = vunpack.c.h.bf16 %v6184_v23 }
 0x2f7   : > { %5464 = vmatpush.msrb.mxu1 %v4246_v28  ;;  %5516 = vmatpush.msra.mxu0 %v4358_v33  ;;  %v4392_v28 = vunpack.c.h.bf16 %v6185_v30  ;;  %v4424_v33 = vunpack.c.h.bf16 %v6186_v53  ;;  %v6216_v53 = vld [vmem:[%s7249_s11 + $0x820] sm:$0xff] }
 0x2f8   : > { %5484 = vmatpush.msrb.mxu2 %v4278_v35  ;;  %5503 = vmatpush.msrb.mxu3 %v4312_v38  ;;  %v4458_v35 = vunpack.c.h.bf16 %v6187_v34  ;;  %v6189_v38 = vld [vmem:[%s7249_s11 + $0x858] sm:$0xff]  ;;  %v6217_v34 = vld [vmem:[%s7249_s11 + $0x9e0] sm:$0xff] }
 0x2f9   : > { %5465 = vmatpush.msrb.mxu1 %v4244_v40  ;;  %5517 = vmatpush.msra.mxu0 %v4356_v25  ;;  %v4390_v39 = vunpack.c.h.bf16 %v6189_v38  ;;  %v6190_v40 = vld [vmem:[%s7249_s11 + $0x8d8] sm:$0xff]  ;;  %v6191_v25 = vld [vmem:[%s7249_s11 + $0x960] sm:$0xff]  ;;  %v6219_v38 = vld [vmem:[%s7249_s11 + $0x928] sm:$0xff] }
 0x2fa   : > { %5485 = vmatpush.msrb.mxu2 %v4276_v24  ;;  %5504 = vmatpush.msrb.mxu3 %v4310_v44  ;;  %v4422_v41 = vunpack.c.h.bf16 %v6190_v40  ;;  %v4456_v42 = vunpack.c.h.bf16 %v6191_v25  ;;  %v6192_v24 = vld [vmem:[%s7249_s11 + $0x790] sm:$0xff]  ;;  %v6220_v40 = vld [vmem:[%s7249_s11 + $0x818] sm:$0xff] }
 0x2fb   : > { %5466 = vmatpush.msrb.mxu1 %v4242_v46  ;;  %5518 = vmatpush.msra.mxu0 %v4354_v48  ;;  %v4340_v43 = vunpack.c.h.bf16 %v6192_v24  ;;  %v6193_v44 = vld [vmem:[%s7249_s11 + $0x850] sm:$0xff]  ;;  %v6195_v48 = vld [vmem:[%s7249_s11 + $0x958] sm:$0xff] }
 0x2fc   : > { %5486 = vmatpush.msrb.mxu2 %v4274_v50  ;;  %5505 = vmatpush.msrb.mxu3 %v4308_v54  ;;  %v4388_v45 = vunpack.c.h.bf16 %v6193_v44  ;;  %v6194_v46 = vld [vmem:[%s7249_s11 + $0x8d0] sm:$0xff]  ;;  %v4454_v49 = vunpack.c.h.bf16 %v6195_v48  ;;  %v6196_v50 = vld [vmem:[%s7249_s11 + $0x788] sm:$0xff]  ;;  %v6221_v25 = vld [vmem:[%s7249_s11 + $0x9d8] sm:$0xff] }
 0x2fd   : > { %5467 = vmatpush.msrb.mxu1 %v4240_v58  ;;  %5519 = vmatpush.msra.mxu0 %v4352_v60  ;;  %v4420_v47 = vunpack.c.h.bf16 %v6194_v46  ;;  %v4338_v51 = vunpack.c.h.bf16 %v6196_v50  ;;  %v6197_v54 = vld [vmem:[%s7249_s11 + $0x848] sm:$0xff]  ;;  %v6199_v60 = vld [vmem:[%s7249_s11 + $0x950] sm:$0xff]  ;;  %v6222_v24 = vld [vmem:[%s7249_s11 + $0x898] sm:$0xff] }
 0x2fe   : > { %5487 = vmatpush.msrb.mxu2 %v4272_v63  ;;  %5506 = vmatpush.msrb.mxu3 %v4306_v2  ;;  %v4386_v55 = vunpack.c.h.bf16 %v6197_v54  ;;  %v6198_v58 = vld [vmem:[%s7249_s11 + $0x8c8] sm:$0xff]  ;;  %v4452_v61 = vunpack.c.h.bf16 %v6199_v60  ;;  %v6200_v63 = vld [vmem:[%s7249_s11 + $0x780] sm:$0xff]  ;;  %v6224_v46 = vld [vmem:[%s7249_s11 + $0x810] sm:$0xff] }
 0x2ff   : > { %5468 = vmatmul.f32.vlgmr.msrb.gmra.mxu1 %v7516_v26  ;;  %5488 = vmatmul.f32.vlgmr.msrb.gmra.mxu2 %v7520_v32  ;;  %v4394_v26 = vunpack.c.h.bf16 %v6181_v19  ;;  %v4426_v32 = vunpack.c.h.bf16 %v6182_v20  ;;  %v4418_v59 = vunpack.c.h.bf16 %v6198_v58  ;;  %v4336_v56 = vunpack.c.h.bf16 %v6200_v63  ;;  %v6201_v2 = vld [vmem:[%s7249_s11 + $0x840] sm:$0xff]  ;;  %v6225_v48 = vld [vmem:[%s7249_s11 + $0x9d0] sm:$0xff]  ;;  %v6227_v54 = vld [vmem:[%s7249_s11 + $0x918] sm:$0xff] }
 0x300   : > { %5520 = vmatpush.msra.mxu0 %v4350_v4  ;;  %5532 = vmatpush.msra.mxu1 %v4398_v57  ;;  %v4384_v3 = vunpack.c.h.bf16 %v6201_v2  ;;  %v6202_v4 = vld [vmem:[%s7249_s11 + $0x8c0] sm:$0xff]  ;;  %v6203_v57 = vld [vmem:[%s7249_s11 + $0x948] sm:$0xff]  ;;  %v6226_v50 = vld [vmem:[%s7249_s11 + $0x890] sm:$0xff] }
 0x301   : > { %5552 = vmatpush.msra.mxu2 %v4430_v6  ;;  %5507 = vmatpush.msrb.mxu3 %v4304_v8  ;;  %v4416_v62 = vunpack.c.h.bf16 %v6202_v4  ;;  %v4450_v1 = vunpack.c.h.bf16 %v6203_v57  ;;  %v6204_v6 = vld [vmem:[%s7249_s11 + $0x838] sm:$0xff]  ;;  %v6223_v44 = vld [vmem:[%s7249_s11 + $0x920] sm:$0xff]  ;;  %v6228_v58 = vld [vmem:[%s7249_s11 + $0x808] sm:$0xff] }
 0x302   : > { %5521 = vmatpush.msra.mxu0 %v4348_v10  ;;  %5508 = vmatmul.f32.vlgmr.msrb.gmra.mxu3 %v7518_v31  ;;  %v4342_v31 = vunpack.c.h.bf16 %v6188_v36  ;;  %v4382_v7 = vunpack.c.h.bf16 %v6204_v6  ;;  %v6205_v8 = vld [vmem:[%s7249_s11 + $0x9f8] sm:$0xff]  ;;  %v6218_v36 = vld [vmem:[%s7249_s11 + $0x8a0] sm:$0xff]  ;;  %v6229_v60 = vld [vmem:[%s7249_s11 + $0x9c8] sm:$0xff] }
 0x303   : > { %5533 = vmatpush.msra.mxu1 %v4396_v12  ;;  %5553 = vmatpush.msra.mxu2 %v4428_v52  ;;  %v4494_v9 = vunpack.c.h.bf16 %v6205_v8  ;;  %v6206_v10 = vld [vmem:[%s7249_s11 + $0x8b8] sm:$0xff]  ;;  %v6207_v12 = vld [vmem:[%s7249_s11 + $0x940] sm:$0xff]  ;;  %v6208_v52 = vld [vmem:[%s7249_s11 + $0x830] sm:$0xff] }
 0x304   : > { %5572 = vmatpush.msra.mxu3 %v4462_v5  ;;  %5522 = vmatpush.msra.mxu0 %v4346_v0  ;;  %v4414_v11 = vunpack.c.h.bf16 %v6206_v10  ;;  %v4448_v29 = vunpack.c.h.bf16 %v6207_v12  ;;  %v4380_v15 = vunpack.c.h.bf16 %v6208_v52  ;;  %v6209_v5 = vld [vmem:[%s7249_s11 + $0x9f0] sm:$0xff]  ;;  %v6230_v63 = vld [vmem:[%s7249_s11 + $0x888] sm:$0xff]  ;;  %v6232_v4 = vld [vmem:[%s7249_s11 + $0x800] sm:$0xff] }
 0x305   : > { %5534 = vmatpush.msra.mxu1 %v4394_v26  ;;  %5554 = vmatpush.msra.mxu2 %v4426_v32  ;;  %v4492_v16 = vunpack.c.h.bf16 %v6209_v5  ;;  %v6210_v0 = vld [vmem:[%s7249_s11 + $0x8b0] sm:$0xff]  ;;  %v6211_v26 = vld [vmem:[%s7249_s11 + $0x938] sm:$0xff]  ;;  %v6212_v32 = vld [vmem:[%s7249_s11 + $0x828] sm:$0xff] }
 0x306   : > { %5573 = vmatpush.msra.mxu3 %v4460_v22  ;;  %5523 = vmatpush.msra.mxu0 %v4344_v27  ;;  %v4412_v19 = vunpack.c.h.bf16 %v6210_v0  ;;  %v4446_v20 = vunpack.c.h.bf16 %v6211_v26  ;;  %v4378_v21 = vunpack.c.h.bf16 %v6212_v32  ;;  %v6213_v22 = vld [vmem:[%s7249_s11 + $0x9e8] sm:$0xff]  ;;  %v6231_v2 = vld [vmem:[%s7249_s11 + $0x910] sm:$0xff]  ;;  %v6233_v57 = vld [vmem:[%s7249_s11 + $0x9c0] sm:$0xff] }
 0x307   : > { %5535 = vmatpush.msra.mxu1 %v4392_v28  ;;  %5555 = vmatpush.msra.mxu2 %v4424_v33  ;;  %v4490_v23 = vunpack.c.h.bf16 %v6213_v22  ;;  %v6214_v27 = vld [vmem:[%s7249_s11 + $0x8a8] sm:$0xff]  ;;  %v6215_v28 = vld [vmem:[%s7249_s11 + $0x930] sm:$0xff]  ;;  %v4376_v33 = vunpack.c.h.bf16 %v6216_v53  ;;  %v6234_v6 = vld [vmem:[%s7249_s11 + $0x880] sm:$0xff] }
 0x308   : > { %5574 = vmatpush.msra.mxu3 %v4458_v35  ;;  %5524 = vmatpush.msra.mxu0 %v4342_v31  ;;  %v4410_v30 = vunpack.c.h.bf16 %v6214_v27  ;;  %v4488_v35 = vunpack.c.h.bf16 %v6217_v34  ;;  %v4408_v31 = vunpack.c.h.bf16 %v6218_v36  ;;  %v6235_v8 = vld [vmem:[%s7249_s11 + $0x908] sm:$0xff]  ;;  %v6236_v10 = vld [vmem:[%s7249_s11 + $0x9b8] sm:$0xff]  ;;  %v6239_v5 = vld [vmem:[%s7249_s11 + $0x900] sm:$0xff] }
 0x309   : > { %5536 = vmatpush.msra.mxu1 %v4390_v39  ;;  %5556 = vmatpush.msra.mxu2 %v4422_v41  ;;  %v4442_v39 = vunpack.c.h.bf16 %v6219_v38  ;;  %v4374_v41 = vunpack.c.h.bf16 %v6220_v40  ;;  %v6237_v12 = vld [vmem:[%s7249_s11 + $0xa78] sm:$0xff]  ;;  %v6240_v0 = vld [vmem:[%s7249_s11 + $0x9b0] sm:$0xff]  ;;  %v6244_v27 = vld [vmem:[%s7249_s11 + $0x9a8] sm:$0xff] }
 0x30a   : > { %5575 = vmatpush.msra.mxu3 %v4456_v42  ;;  %5525 = vmatpush.msra.mxu0 %v4340_v43  ;;  %v4486_v42 = vunpack.c.h.bf16 %v6221_v25  ;;  %v4406_v43 = vunpack.c.h.bf16 %v6222_v24  ;;  %v6238_v52 = vld [vmem:[%s7249_s11 + $0xaf8] sm:$0xff]  ;;  %v6241_v26 = vld [vmem:[%s7249_s11 + $0xa70] sm:$0xff]  ;;  %v6248_v34 = vld [vmem:[%s7249_s11 + $0x9a0] sm:$0xff] }
 0x30b   : > { %5537 = vmatpush.msra.mxu1 %v4388_v45  ;;  %5557 = vmatpush.msra.mxu2 %v4420_v47  ;;  %v4440_v45 = vunpack.c.h.bf16 %v6223_v44  ;;  %v4372_v47 = vunpack.c.h.bf16 %v6224_v46  ;;  %v6242_v32 = vld [vmem:[%s7249_s11 + $0xaf0] sm:$0xff]  ;;  %v6243_v22 = vld [vmem:[%s7249_s11 + $0xb78] sm:$0xff]  ;;  %v6249_v36 = vld [vmem:[%s7249_s11 + $0xa60] sm:$0xff] }
 0x30c   : > { %5576 = vmatpush.msra.mxu3 %v4454_v49  ;;  %5526 = vmatpush.msra.mxu0 %v4338_v51  ;;  %v4484_v49 = vunpack.c.h.bf16 %v6225_v48  ;;  %v4404_v51 = vunpack.c.h.bf16 %v6226_v50  ;;  %v6247_v53 = vld [vmem:[%s7249_s11 + $0xb70] sm:$0xff]  ;;  %v6250_v38 = vld [vmem:[%s7249_s11 + $0xae0] sm:$0xff]  ;;  %v6251_v40 = vld [vmem:[%s7249_s11 + $0xb68] sm:$0xff] }
 0x30d   : > { %5538 = vmatpush.msra.mxu1 %v4386_v55  ;;  %5558 = vmatpush.msra.mxu2 %v4418_v59  ;;  %v4438_v55 = vunpack.c.h.bf16 %v6227_v54  ;;  %v4370_v59 = vunpack.c.h.bf16 %v6228_v58  ;;  %v6252_v25 = vld [vmem:[%s7249_s11 + $0x998] sm:$0xff] }
 0x30e   : > { %5577 = vmatpush.msra.mxu3 %v4452_v61  ;;  %5527 = vmatpush.msra.mxu0 %v4336_v56  ;;  %v4482_v61 = vunpack.c.h.bf16 %v6229_v60  ;;  %v4402_v56 = vunpack.c.h.bf16 %v6230_v63 }
 0x30f   : > { %5539 = vmatpush.msra.mxu1 %v4384_v3  ;;  %5559 = vmatpush.msra.mxu2 %v4416_v62  ;;  %v4436_v3 = vunpack.c.h.bf16 %v6231_v2  ;;  %v4368_v62 = vunpack.c.h.bf16 %v6232_v4 }
 0x310   : > { %5578 = vmatpush.msra.mxu3 %v4450_v1  ;;  %5528 = vmatmul.f32.vlgmr.msra.gmra.mxu0 %v7524_v37  ;;  %v4444_v37 = vunpack.c.h.bf16 %v6215_v28  ;;  %v4480_v1 = vunpack.c.h.bf16 %v6233_v57  ;;  %v6245_v28 = vld [vmem:[%s7249_s11 + $0xa68] sm:$0xff] }
 0x311   : > { %5540 = vmatpush.msra.mxu1 %v4382_v7  ;;  %5592 = vmatpush.msrb.mxu0 %v4494_v9  ;;  %v4400_v7 = vunpack.c.h.bf16 %v6234_v6  ;;  %v4434_v9 = vunpack.c.h.bf16 %v6235_v8 }
 0x312   : > { %5560 = vmatpush.msra.mxu2 %v4414_v11  ;;  %5579 = vmatpush.msra.mxu3 %v4448_v29  ;;  %v4478_v11 = vunpack.c.h.bf16 %v6236_v10  ;;  %v4526_v29 = vunpack.c.h.bf16 %v6237_v12 }
 0x313   : > { %5541 = vmatpush.msra.mxu1 %v4380_v15  ;;  %5593 = vmatpush.msrb.mxu0 %v4492_v16  ;;  %v4558_v15 = vunpack.c.h.bf16 %v6238_v52  ;;  %v4432_v16 = vunpack.c.h.bf16 %v6239_v5 }
 0x314   : > { %5561 = vmatpush.msra.mxu2 %v4412_v19  ;;  %5580 = vmatpush.msra.mxu3 %v4446_v20  ;;  %v4476_v19 = vunpack.c.h.bf16 %v6240_v0  ;;  %v4524_v20 = vunpack.c.h.bf16 %v6241_v26 }
 0x315   : > { %5542 = vmatpush.msra.mxu1 %v4378_v21  ;;  %5594 = vmatpush.msrb.mxu0 %v4490_v23  ;;  %v4556_v21 = vunpack.c.h.bf16 %v6242_v32  ;;  %v4590_v23 = vunpack.c.h.bf16 %v6243_v22 }
 0x316   : > { %5562 = vmatpush.msra.mxu2 %v4410_v30  ;;  %5581 = vmatpush.msra.mxu3 %v4444_v37  ;;  %v4474_v30 = vunpack.c.h.bf16 %v6244_v27  ;;  %v6246_v37 = vld [vmem:[%s7249_s11 + $0xae8] sm:$0xff] }
 0x317   : > { %5543 = vmatpush.msra.mxu1 %v4376_v33  ;;  %5595 = vmatpush.msrb.mxu0 %v4488_v35  ;;  %v4588_v33 = vunpack.c.h.bf16 %v6247_v53  ;;  %v4472_v35 = vunpack.c.h.bf16 %v6248_v34  ;;  %v6280_v34 = vld [vmem:[%s7249_s11 + $0xa20] sm:$0xff] }
 0x318   : > { %5563 = vmatpush.msra.mxu2 %v4408_v31  ;;  %5582 = vmatpush.msra.mxu3 %v4442_v39  ;;  %v4520_v31 = vunpack.c.h.bf16 %v6249_v36  ;;  %v4552_v39 = vunpack.c.h.bf16 %v6250_v38  ;;  %v6281_v36 = vld [vmem:[%s7249_s11 + $0xbe0] sm:$0xff] }
 0x319   : > { %5544 = vmatpush.msra.mxu1 %v4374_v41  ;;  %5596 = vmatpush.msrb.mxu0 %v4486_v42  ;;  %v4586_v41 = vunpack.c.h.bf16 %v6251_v40  ;;  %v6253_v42 = vld [vmem:[%s7249_s11 + $0xa58] sm:$0xff]  ;;  %v6282_v38 = vld [vmem:[%s7249_s11 + $0xaa0] sm:$0xff]  ;;  %v6283_v40 = vld [vmem:[%s7249_s11 + $0xb28] sm:$0xff] }
 0x31a   : > { %5564 = vmatpush.msra.mxu2 %v4406_v43  ;;  %5583 = vmatpush.msra.mxu3 %v4440_v45  ;;  %v4518_v24 = vunpack.c.h.bf16 %v6253_v42  ;;  %v6254_v43 = vld [vmem:[%s7249_s11 + $0xad8] sm:$0xff]  ;;  %v6255_v45 = vld [vmem:[%s7249_s11 + $0xb60] sm:$0xff] }
 0x31b   : > { %5545 = vmatpush.msra.mxu1 %v4372_v47  ;;  %5597 = vmatpush.msrb.mxu0 %v4484_v49  ;;  %v4550_v44 = vunpack.c.h.bf16 %v6254_v43  ;;  %v4584_v46 = vunpack.c.h.bf16 %v6255_v45  ;;  %v6256_v47 = vld [vmem:[%s7249_s11 + $0x990] sm:$0xff]  ;;  %v6285_v42 = vld [vmem:[%s7249_s11 + $0xbd8] sm:$0xff]  ;;  %v6287_v45 = vld [vmem:[%s7249_s11 + $0xb20] sm:$0xff] }
 0x31c   : > { %5565 = vmatpush.msra.mxu2 %v4404_v51  ;;  %5584 = vmatpush.msra.mxu3 %v4438_v55  ;;  %v4468_v48 = vunpack.c.h.bf16 %v6256_v47  ;;  %v6257_v49 = vld [vmem:[%s7249_s11 + $0xa50] sm:$0xff]  ;;  %v6259_v55 = vld [vmem:[%s7249_s11 + $0xb58] sm:$0xff] }
 0x31d   : > { %5546 = vmatpush.msra.mxu1 %v4370_v59  ;;  %5598 = vmatpush.msrb.mxu0 %v4482_v61  ;;  %v4516_v50 = vunpack.c.h.bf16 %v6257_v49  ;;  %v6258_v51 = vld [vmem:[%s7249_s11 + $0xad0] sm:$0xff]  ;;  %v4582_v58 = vunpack.c.h.bf16 %v6259_v55  ;;  %v6260_v59 = vld [vmem:[%s7249_s11 + $0x988] sm:$0xff]  ;;  %v6286_v43 = vld [vmem:[%s7249_s11 + $0xa98] sm:$0xff] }
 0x31e   : > { %5566 = vmatpush.msra.mxu2 %v4402_v56  ;;  %5585 = vmatpush.msra.mxu3 %v4436_v3  ;;  %v4548_v54 = vunpack.c.h.bf16 %v6258_v51  ;;  %v4466_v60 = vunpack.c.h.bf16 %v6260_v59  ;;  %v6261_v61 = vld [vmem:[%s7249_s11 + $0xa48] sm:$0xff]  ;;  %v6263_v3 = vld [vmem:[%s7249_s11 + $0xb50] sm:$0xff]  ;;  %v6291_v55 = vld [vmem:[%s7249_s11 + $0xb18] sm:$0xff] }
 0x31f   : > { %5547 = vmatpush.msra.mxu1 %v4368_v62  ;;  %5599 = vmatpush.msrb.mxu0 %v4480_v1  ;;  %v4514_v63 = vunpack.c.h.bf16 %v6261_v61  ;;  %v6262_v56 = vld [vmem:[%s7249_s11 + $0xac8] sm:$0xff]  ;;  %v4580_v4 = vunpack.c.h.bf16 %v6263_v3  ;;  %v6264_v62 = vld [vmem:[%s7249_s11 + $0x980] sm:$0xff]  ;;  %v6288_v47 = vld [vmem:[%s7249_s11 + $0xa10] sm:$0xff] }
 0x320   : > { %5567 = vmatpush.msra.mxu2 %v4400_v7  ;;  %5586 = vmatpush.msra.mxu3 %v4434_v9  ;;  %v4546_v2 = vunpack.c.h.bf16 %v6262_v56  ;;  %v4464_v57 = vunpack.c.h.bf16 %v6264_v62  ;;  %v6265_v1 = vld [vmem:[%s7249_s11 + $0xa40] sm:$0xff]  ;;  %v6267_v9 = vld [vmem:[%s7249_s11 + $0xb48] sm:$0xff]  ;;  %v6289_v49 = vld [vmem:[%s7249_s11 + $0xbd0] sm:$0xff] }
 0x321   : > { %5548 = vmatmul.f32.vlgmr.msra.gmra.mxu1 %v7595_v13  ;;  %5568 = vmatmul.f32.vlgmr.msra.gmra.mxu2 %v7599_v17  ;;  %v4522_v13 = vunpack.c.h.bf16 %v6245_v28  ;;  %v4554_v17 = vunpack.c.h.bf16 %v6246_v37  ;;  %v4512_v6 = vunpack.c.h.bf16 %v6265_v1  ;;  %v6266_v7 = vld [vmem:[%s7249_s11 + $0xac0] sm:$0xff]  ;;  %v4578_v10 = vunpack.c.h.bf16 %v6267_v9  ;;  %v6290_v51 = vld [vmem:[%s7249_s11 + $0xa90] sm:$0xff]  ;;  %v6292_v59 = vld [vmem:[%s7249_s11 + $0xa08] sm:$0xff] }
 0x322   : > { %5600 = vmatpush.msrb.mxu0 %v4478_v11  ;;  %5612 = vmatpush.msrb.mxu1 %v4526_v29  ;;  %v4544_v8 = vunpack.c.h.bf16 %v6266_v7  ;;  %v6268_v11 = vld [vmem:[%s7249_s11 + $0xa38] sm:$0xff]  ;;  %v6293_v61 = vld [vmem:[%s7249_s11 + $0xbc8] sm:$0xff]  ;;  %v6295_v3 = vld [vmem:[%s7249_s11 + $0xb10] sm:$0xff] }
 0x323   : > { %5632 = vmatpush.msrb.mxu2 %v4558_v15  ;;  %5587 = vmatpush.msra.mxu3 %v4432_v16  ;;  %v4510_v12 = vunpack.c.h.bf16 %v6268_v11  ;;  %v6269_v29 = vld [vmem:[%s7249_s11 + $0xbf8] sm:$0xff]  ;;  %v6271_v16 = vld [vmem:[%s7249_s11 + $0xb40] sm:$0xff]  ;;  %v6294_v56 = vld [vmem:[%s7249_s11 + $0xa88] sm:$0xff] }
 0x324   : > { %5601 = vmatpush.msrb.mxu0 %v4476_v19  ;;  %5588 = vmatmul.f32.vlgmr.msra.gmra.mxu3 %v7597_v14  ;;  %v4470_v14 = vunpack.c.h.bf16 %v6252_v25  ;;  %v4622_v52 = vunpack.c.h.bf16 %v6269_v29  ;;  %v6270_v15 = vld [vmem:[%s7249_s11 + $0xab8] sm:$0xff]  ;;  %v4576_v0 = vunpack.c.h.bf16 %v6271_v16  ;;  %v6272_v19 = vld [vmem:[%s7249_s11 + $0xa30] sm:$0xff]  ;;  %v6296_v62 = vld [vmem:[%s7249_s11 + $0xa00] sm:$0xff] }
 0x325   : > { %5613 = vmatpush.msrb.mxu1 %v4524_v20  ;;  %5633 = vmatpush.msrb.mxu2 %v4556_v21  ;;  %v4542_v5 = vunpack.c.h.bf16 %v6270_v15  ;;  %v4508_v26 = vunpack.c.h.bf16 %v6272_v19  ;;  %v6273_v20 = vld [vmem:[%s7249_s11 + $0xbf0] sm:$0xff]  ;;  %v6284_v25 = vld [vmem:[%s7249_s11 + $0xa18] sm:$0xff]  ;;  %v6297_v1 = vld [vmem:[%s7249_s11 + $0xbc0] sm:$0xff] }
 0x326   : > { %5652 = vmatpush.msrb.mxu3 %v4590_v23  ;;  %5602 = vmatpush.msrb.mxu0 %v4474_v30  ;;  %v4620_v32 = vunpack.c.h.bf16 %v6273_v20  ;;  %v6274_v21 = vld [vmem:[%s7249_s11 + $0xab0] sm:$0xff]  ;;  %v6275_v23 = vld [vmem:[%s7249_s11 + $0xb38] sm:$0xff]  ;;  %v6276_v30 = vld [vmem:[%s7249_s11 + $0xa28] sm:$0xff] }
 0x327   : > { %5614 = vmatpush.msrb.mxu1 %v4522_v13  ;;  %5634 = vmatpush.msrb.mxu2 %v4554_v17  ;;  %v4540_v22 = vunpack.c.h.bf16 %v6274_v21  ;;  %v4574_v27 = vunpack.c.h.bf16 %v6275_v23  ;;  %v4506_v28 = vunpack.c.h.bf16 %v6276_v30  ;;  %v6277_v13 = vld [vmem:[%s7249_s11 + $0xbe8] sm:$0xff]  ;;  %v6298_v7 = vld [vmem:[%s7249_s11 + $0xa80] sm:$0xff]  ;;  %v6300_v11 = vld [vmem:[%s7249_s11 + $0xbb8] sm:$0xff] }
 0x328   : > { %5653 = vmatpush.msrb.mxu3 %v4588_v33  ;;  %5603 = vmatpush.msrb.mxu0 %v4472_v35  ;;  %v4618_v37 = vunpack.c.h.bf16 %v6277_v13  ;;  %v6278_v17 = vld [vmem:[%s7249_s11 + $0xaa8] sm:$0xff]  ;;  %v6279_v33 = vld [vmem:[%s7249_s11 + $0xb30] sm:$0xff]  ;;  %v4504_v35 = vunpack.c.h.bf16 %v6280_v34  ;;  %v6301_v29 = vld [vmem:[%s7249_s11 + $0xb00] sm:$0xff] }
 0x329   : > { %5615 = vmatpush.msrb.mxu1 %v4520_v31  ;;  %5635 = vmatpush.msrb.mxu2 %v4552_v39  ;;  %v4538_v53 = vunpack.c.h.bf16 %v6278_v17  ;;  %v4616_v31 = vunpack.c.h.bf16 %v6281_v36  ;;  %v4536_v39 = vunpack.c.h.bf16 %v6282_v38  ;;  %v6299_v9 = vld [vmem:[%s7249_s11 + $0xb08] sm:$0xff]  ;;  %v6302_v15 = vld [vmem:[%s7249_s11 + $0xc38] sm:$0xff]  ;;  %v6303_v16 = vld [vmem:[%s7249_s11 + $0xbb0] sm:$0xff] }
 0x32a   : > { %5654 = vmatpush.msrb.mxu3 %v4586_v41  ;;  %5604 = vmatpush.msrb.mxu0 %v4470_v14  ;;  %v4570_v41 = vunpack.c.h.bf16 %v6283_v40  ;;  %v4502_v14 = vunpack.c.h.bf16 %v6284_v25  ;;  %v6304_v19 = vld.sshfl [vmem:[#allocation1 + $0x20] sm:$0xff pattern:$0x73625140]  ;;  %v6307_v21 = vld [vmem:[%s7249_s11 + $0xba8] sm:$0xff] }
 0x32b   : > { %5616 = vmatpush.msrb.mxu1 %v4518_v24  ;;  %5636 = vmatpush.msrb.mxu2 %v4550_v44  ;;  %v4614_v24 = vunpack.c.h.bf16 %v6285_v42  ;;  %v4534_v44 = vunpack.c.h.bf16 %v6286_v43  ;;  %v6308_v23 = vld [vmem:[%s7249_s11 + $0xc28] sm:$0xff] }
 0x32c   : > { %5655 = vmatpush.msrb.mxu3 %v4584_v46  ;;  %5605 = vmatpush.msrb.mxu0 %v4468_v48  ;;  %v4568_v46 = vunpack.c.h.bf16 %v6287_v45  ;;  %v4500_v48 = vunpack.c.h.bf16 %v6288_v47  ;;  %v6309_v30 = vld.sshfl [vmem:[#allocation1 + $0x30] sm:$0xff pattern:$0x73625140]  ;;  %v6321_v45 = vld.sshfl [vmem:[#allocation1] sm:$0xff pattern:$0x73625140]  ;;  %v4729_v47 = vpop.f32.mrf.mxu0 }
 0x32d   : > { %5617 = vmatpush.msrb.mxu1 %v4516_v50  ;;  %5637 = vmatpush.msrb.mxu2 %v4548_v54  ;;  %v4612_v50 = vunpack.c.h.bf16 %v6289_v49  ;;  %v4532_v54 = vunpack.c.h.bf16 %v6290_v51  ;;  %v4789_v49 = vpop.f32.mrf.mxu3 }
 0x32e   : > { %5656 = vmatpush.msrb.mxu3 %v4582_v58  ;;  %5606 = vmatpush.msrb.mxu0 %v4466_v60  ;;  %v4566_v58 = vunpack.c.h.bf16 %v6291_v55  ;;  %v4498_v60 = vunpack.c.h.bf16 %v6292_v59 }
 0x32f   : > { %5618 = vmatpush.msrb.mxu1 %v4514_v63  ;;  %5638 = vmatpush.msrb.mxu2 %v4546_v2  ;;  %v4610_v63 = vunpack.c.h.bf16 %v6293_v61  ;;  %v4530_v2 = vunpack.c.h.bf16 %v6294_v56 }
 0x330   : > { %5657 = vmatpush.msrb.mxu3 %v4580_v4  ;;  %5607 = vmatpush.msrb.mxu0 %v4464_v57  ;;  %v4564_v4 = vunpack.c.h.bf16 %v6295_v3  ;;  %v4496_v57 = vunpack.c.h.bf16 %v6296_v62 }
 0x331   : > { %5619 = vmatpush.msrb.mxu1 %v4512_v6  ;;  %5639 = vmatpush.msrb.mxu2 %v4544_v8  ;;  %v4608_v6 = vunpack.c.h.bf16 %v6297_v1  ;;  %v4528_v8 = vunpack.c.h.bf16 %v6298_v7  ;;  %v4639_v1 = vld [vmem:[%s3444_s30] sm:$0x3] }
 0x332   : > { %5658 = vmatpush.msrb.mxu3 %v4578_v10  ;;  %5608 = vmatmul.f32.vlgmr.msrb.gmra.mxu0 %v7601_v18  ;;  %v4572_v18 = vunpack.c.h.bf16 %v6279_v33  ;;  %v4562_v10 = vunpack.c.h.bf16 %v6299_v9 }
 0x333   : > { %5620 = vmatpush.msrb.mxu1 %v4510_v12  ;;  %5672 = vmatpush.msra.mxu0 %v4622_v52  ;;  %v4606_v12 = vunpack.c.h.bf16 %v6300_v11  ;;  %v4560_v52 = vunpack.c.h.bf16 %v6301_v29 }
 0x334   : > { %5640 = vmatpush.msrb.mxu2 %v4542_v5  ;;  %5659 = vmatpush.msrb.mxu3 %v4576_v0  ;;  %v4638_v5 = vunpack.c.h.bf16 %v6302_v15  ;;  %v4604_v0 = vunpack.c.h.bf16 %v6303_v16  ;;  %v4809_v51 = vpop.f32.mrf.mxu0 }
 0x335   : > { %5621 = vmatpush.msrb.mxu1 %v4508_v26  ;;  %5673 = vmatpush.msra.mxu0 %v4620_v32  ;;  %v6305_v26 = vld [vmem:[%s7249_s11 + $0xc30] sm:$0xff]  ;;  %v6306_v32 = vld.sshfl [vmem:[#allocation1 + $0x28] sm:$0xff pattern:$0x73625140]  ;;  %v4869_v55 = vpop.f32.mrf.mxu3 }
 0x336   : > { %5641 = vmatpush.msrb.mxu2 %v4540_v22  ;;  %5660 = vmatpush.msrb.mxu3 %v4574_v27  ;;  %v4636_v20 = vunpack.c.h.bf16 %v6305_v26  ;;  %v4602_v22 = vunpack.c.h.bf16 %v6307_v21  ;;  %v4634_v27 = vunpack.c.h.bf16 %v6308_v23 }
 0x337   : > { %5622 = vmatpush.msrb.mxu1 %v4506_v28  ;;  %5674 = vmatpush.msra.mxu0 %v4618_v37  ;;  %v6310_v28 = vld [vmem:[%s7249_s11 + $0xba0] sm:$0xff] }
 0x338   : > { %5642 = vmatpush.msrb.mxu2 %v4538_v53  ;;  %5661 = vmatpush.msrb.mxu3 %v4572_v18  ;;  %v4600_v13 = vunpack.c.h.bf16 %v6310_v28  ;;  %v6311_v37 = vld [vmem:[%s7249_s11 + $0xc20] sm:$0xff]  ;;  %v6312_v53 = vld [vmem:[%s7249_s11 + $0xb98] sm:$0xff] }
 0x339   : > { %5623 = vmatpush.msrb.mxu1 %v4504_v35  ;;  %5675 = vmatpush.msra.mxu0 %v4616_v31  ;;  %v4632_v17 = vunpack.c.h.bf16 %v6311_v37  ;;  %v4598_v33 = vunpack.c.h.bf16 %v6312_v53  ;;  %v6313_v18 = vld [vmem:[%s7249_s11 + $0xc18] sm:$0xff]  ;;  %v6314_v35 = vld [vmem:[%s7249_s11 + $0xb90] sm:$0xff] }
 0x33a   : > { %5643 = vmatpush.msrb.mxu2 %v4536_v39  ;;  %5662 = vmatpush.msrb.mxu3 %v4570_v41  ;;  %v4630_v34 = vunpack.c.h.bf16 %v6313_v18  ;;  %v4596_v36 = vunpack.c.h.bf16 %v6314_v35  ;;  %v6315_v31 = vld [vmem:[%s7249_s11 + $0xc10] sm:$0xff]  ;;  %v6316_v39 = vld [vmem:[%s7249_s11 + $0xb88] sm:$0xff] }
 0x33b   : > { %5624 = vmatpush.msrb.mxu1 %v4502_v14  ;;  %5676 = vmatpush.msra.mxu0 %v4614_v24  ;;  %v4628_v38 = vunpack.c.h.bf16 %v6315_v31  ;;  %v4594_v40 = vunpack.c.h.bf16 %v6316_v39  ;;  %v6317_v41 = vld [vmem:[%s7249_s11 + $0xc08] sm:$0xff]  ;;  %v6318_v14 = vld [vmem:[%s7249_s11 + $0xb80] sm:$0xff] }
 0x33c   : > { %5644 = vmatpush.msrb.mxu2 %v4534_v44  ;;  %5663 = vmatpush.msrb.mxu3 %v4568_v46  ;;  %v4626_v25 = vunpack.c.h.bf16 %v6317_v41  ;;  %v4592_v42 = vunpack.c.h.bf16 %v6318_v14  ;;  %v6319_v24 = vld [vmem:[%s7249_s11 + $0xc00] sm:$0xff]  ;;  %v6320_v44 = vld.sshfl [vmem:[#allocation1 + $0x38] sm:$0xff pattern:$0x73625140]  ;;  %v4749_v46 = vpop.f32.mrf.mxu1  ;;  %v4889_v59 = vpop.f32.mrf.mxu0 }
 0x33d   : > { %5625 = vmatpush.msrb.mxu1 %v4500_v48  ;;  %5677 = vmatpush.msra.mxu0 %v4612_v50  ;;  %v4624_v43 = vunpack.c.h.bf16 %v6319_v24  ;;  %v4769_v48 = vpop.f32.mrf.mxu2  ;;  %v4949_v61 = vpop.f32.mrf.mxu3 }
 0x33e   : > { %5645 = vmatpush.msrb.mxu2 %v4532_v54  ;;  %5664 = vmatpush.msrb.mxu3 %v4566_v58 }
 0x33f   : > { %5626 = vmatpush.msrb.mxu1 %v4498_v60  ;;  %5678 = vmatpush.msra.mxu0 %v4610_v63 }
 0x340   : > { %5646 = vmatpush.msrb.mxu2 %v4530_v2  ;;  %5665 = vmatpush.msrb.mxu3 %v4564_v4 }
 0x341   : > { %5627 = vmatpush.msrb.mxu1 %v4496_v57  ;;  %5679 = vmatpush.msra.mxu0 %v4608_v6 }
 0x342   : > { %5647 = vmatpush.msrb.mxu2 %v4528_v8  ;;  %5666 = vmatpush.msrb.mxu3 %v4562_v10  ;;  %v4641_v8 = vperm.slane %v4639_v1, 0 }
 0x343   : > { %5628 = vmatmul.f32.vlgmr.msrb.gmra.mxu1 %v6304_v19  ;;  %5648 = vmatmul.f32.vlgmr.msrb.gmra.mxu2 %v6306_v32 }
 0x344   : > { %5680 = vmatpush.msra.mxu0 %v4606_v12  ;;  %5667 = vmatpush.msrb.mxu3 %v4560_v52  ;;  %v4829_v50 = vpop.f32.mrf.mxu1  ;;  %v4969_v56 = vpop.f32.mrf.mxu0  ;;  %v4730_v11 = vadd.f32 %v4729_v47, %v4641_v8  ;;  %v4642_v12 = vperm.slane %v4639_v1, 1 }
 0x345   : > { %5700 = vmatpush.msra.mxu1 %v4638_v5  ;;  %5668 = vmatmul.f32.vlgmr.msrb.gmra.mxu3 %v6309_v30  ;;  %v4849_v54 = vpop.f32.mrf.mxu2  ;;  %v5029_v3 = vpop.f32.mrf.mxu3 }
 0x346   : > { %5681 = vmatpush.msra.mxu0 %v4604_v0  ;;  %v4750_v15 = vadd.f32 %v4749_v46, %v4730_v11 }
 0x347   : > { %5701 = vmatpush.msra.mxu1 %v4636_v20 }
 0x348   : > { %5682 = vmatpush.msra.mxu0 %v4602_v22  ;;  %v4770_v19 = vadd.f32 %v4769_v48, %v4750_v15 }
 0x349   : > { %5702 = vmatpush.msra.mxu1 %v4634_v27 }
 0x34a   : > { %5683 = vmatpush.msra.mxu0 %v4600_v13  ;;  %v4790_v32 = vadd.f32 %v4789_v49, %v4770_v19 }
 0x34b   : > { %5703 = vmatpush.msra.mxu1 %v4632_v17 }
 0x34c   : > { %5684 = vmatpush.msra.mxu0 %v4598_v33  ;;  %v4909_v58 = vpop.f32.mrf.mxu1  ;;  %v5049_v62 = vpop.f32.mrf.mxu0  ;;  %v4810_v23 = vadd.f32 %v4809_v51, %v4790_v32 }
 0x34d   : > { %5704 = vmatpush.msra.mxu1 %v4630_v34  ;;  %v4929_v60 = vpop.f32.mrf.mxu2  ;;  %v8148_v6 = vpop.f32.mrf.mxu3 }
 0x34e   : > { %5685 = vmatpush.msra.mxu0 %v4596_v36  ;;  %v4830_v28 = vadd.f32 %v4829_v50, %v4810_v23 }
 0x34f   : > { %5705 = vmatpush.msra.mxu1 %v4628_v38 }
 0x350   : > { %5686 = vmatpush.msra.mxu0 %v4594_v40  ;;  %v4850_v17 = vadd.f32 %v4849_v54, %v4830_v28 }
 0x351   : > { %5706 = vmatpush.msra.mxu1 %v4626_v25 }
 0x352   : > { %5687 = vmatpush.msra.mxu0 %v4592_v42  ;;  %v4870_v18 = vadd.f32 %v4869_v55, %v4850_v17 }
 0x353   : > { %5688 = vmatmul.f32.vlgmr.msra.gmra.mxu0 %v6320_v44  ;;  %5707 = vmatpush.msra.mxu1 %v4624_v43 }
 0x354   : > { %5862 = vmatmul.msk.f32.vlgmr.msra.gmra.mxu1 %vm4709_vm0, %v6321_v45  ;;  %v4989_v63 = vpop.f32.mrf.mxu1  ;;  %v8152_v9 = vpop.f32.mrf.mxu0  ;;  %v4890_v34 = vadd.f32 %v4889_v59, %v4870_v18 }
 0x355   : > { %v5009_v2 = vpop.f32.mrf.mxu2  ;;  %v8156_v29 = vpop.f32.mrf.mxu3 }
 0x356   : > { %v4910_v38 = vadd.f32 %v4909_v58, %v4890_v34 }
 0x358   : > { %v4930_v41 = vadd.f32 %v4929_v60, %v4910_v38 }
 0x35a   : > { %v4950_v24 = vadd.f32 %v4949_v61, %v4930_v41 }
 0x35c   : > { %v8140_v4 = vpop.f32.mrf.mxu1  ;;  %v8158_v16 = vpop.f32.mrf.mxu0  ;;  %v4970_v44 = vadd.f32 %v4969_v56, %v4950_v24 }
 0x35d   : > { %v8146_v57 = vpop.f32.mrf.mxu2  ;;  %v5269_v20 = vpop.f32.mrf.mxu3 }
 0x35e   : > { %v4990_v49 = vadd.f32 %v4989_v63, %v4970_v44 }
 0x360   : > { %v5010_v51 = vadd.f32 %v5009_v2, %v4990_v49 }
 0x362   : > { %v5030_v58 = vadd.f32 %v5029_v3, %v5010_v51 }
 0x364   : > { %v8150_v7 = vpop.f32.mrf.mxu1  ;;  %v5289_v22 = vpop.f32.mrf.mxu0  ;;  %v5050_v60 = vadd.f32 %v5049_v62, %v5030_v58 }
 0x365   : > { %v8154_v10 = vpop.f32.mrf.mxu2  ;;  %v5349_v33 = vpop.f32.mrf.mxu3 }
 0x366   : > { %v5070_v61 = vadd.f32 %v8140_v4, %v5050_v60 }
 0x36c   : > { %v5229_v52 = vpop.f32.mrf.mxu1  ;;  %v5369_v36 = vpop.f32.mrf.mxu0 }
 0x36d   : > { %v5230_v5 = vadd.f32 %v5229_v52, %v4642_v12  ;;  %v5249_v0 = vpop.f32.mrf.mxu2  ;;  %v5429_v42 = vpop.f32.mrf.mxu3 }
 0x36f   : > { %v5250_v26 = vadd.f32 %v5249_v0, %v5230_v5  ;;  %v5090_v5 = vadd.f32 %v8146_v57, %v5070_v61 }
 0x371   : > { %v5270_v21 = vadd.f32 %v5269_v20, %v5250_v26  ;;  %v5110_v19 = vadd.f32 %v8148_v6, %v5090_v5 }
 0x373   : > { %v5290_v27 = vadd.f32 %v5289_v22, %v5270_v21  ;;  %v5130_v20 = vadd.f32 %v8152_v9, %v5110_v19 }
 0x374   : > { %v5309_v30 = vpop.f32.mrf.mxu1  ;;  %v5449_v43 = vpop.f32.mrf.mxu0 }
 0x375   : > { %v5310_v13 = vadd.f32 %v5309_v30, %v5290_v27  ;;  %v5329_v37 = vpop.f32.mrf.mxu2  ;;  %v5150_v22 = vadd.f32 %v8150_v7, %v5130_v20 }
 0x377   : > { %v5330_v53 = vadd.f32 %v5329_v37, %v5310_v13  ;;  %v5170_v4 = vadd.f32 %v8154_v10, %v5150_v22 }
 0x379   : > { %v5350_v35 = vadd.f32 %v5349_v33, %v5330_v53  ;;  %v5190_v28 = vadd.f32 %v8156_v29, %v5170_v4 }
 0x37b   : > { %v5370_v39 = vadd.f32 %v5369_v36, %v5350_v35  ;;  %v5210_v6 = vadd.f32 %v8158_v16, %v5190_v28 }
 0x37c   : > { %v5389_v31 = vpop.f32.mrf.mxu1 }
 0x37d   : > { %v5409_v40 = vpop.f32.mrf.mxu2  ;;  %v5390_v25 = vadd.f32 %v5389_v31, %v5370_v39 }
 0x37f   : > { %v5410_v14 = vadd.f32 %v5409_v40, %v5390_v25 }
 0x381   : > { %v5430_v45 = vadd.f32 %v5429_v42, %v5410_v14 }
 0x383   : > { %v5450_v47 = vadd.f32 %v5449_v43, %v5430_v45 }
 0x384   : > { %v5469_v46 = vpop.f32.mrf.mxu1 }
 0x385   : > { %v5489_v48 = vpop.f32.mrf.mxu2  ;;  %v5470_v50 = vadd.f32 %v5469_v46, %v5450_v47  ;;  %v5509_v55 = vpop.f32.mrf.mxu3 }
 0x387   : > { %v5490_v54 = vadd.f32 %v5489_v48, %v5470_v50 }
 0x389   : > { %v5510_v1 = vadd.f32 %v5509_v55, %v5490_v54 }
 0x38d   : > { %v5529_v59 = vpop.f32.mrf.mxu0 }
 0x38e   : > { %v5530_v11 = vadd.f32 %v5529_v59, %v5510_v1 }
 0x39e   : > { %v5549_v8 = vpop.f32.mrf.mxu1 }
 0x39f   : > { %v5550_v52 = vadd.f32 %v5549_v8, %v5530_v11 }
 0x3a4   : > { %v5569_v12 = vpop.f32.mrf.mxu2 }
 0x3a5   : > { %v5570_v56 = vadd.f32 %v5569_v12, %v5550_v52 }
 0x3a7   : > { %v5589_v15 = vpop.f32.mrf.mxu3 }
 0x3a8   : > { %v5590_v63 = vadd.f32 %v5589_v15, %v5570_v56 }
 0x3af   : > { %v5609_v0 = vpop.f32.mrf.mxu0 }
 0x3b0   : > { %v5610_v26 = vadd.f32 %v5609_v0, %v5590_v63 }
 0x3c0   : > { %v5629_v2 = vpop.f32.mrf.mxu1 }
 0x3c1   : > { %v5630_v62 = vadd.f32 %v5629_v2, %v5610_v26 }
 0x3c6   : > { %v5649_v3 = vpop.f32.mrf.mxu2 }
 0x3c7   : > { %v5650_v32 = vadd.f32 %v5649_v3, %v5630_v62 }
 0x3c8   : > { %v5669_v21 = vpop.f32.mrf.mxu3 }
 0x3c9   : > { %v5670_v23 = vadd.f32 %v5669_v21, %v5650_v32 }
 0x3d0   : > { %v5689_v27 = vpop.f32.mrf.mxu0 }
 0x3d1   : > { %v5690_v57 = vadd.f32 %v5689_v27, %v5670_v23  ;;  %v5709_v30 = vpop.f32.mrf.mxu1 }
 0x3d3   : > { %v5710_v13 = vadd.f32 %v5709_v30, %v5690_v57 }
 0x3d5   : > { %v5714_v9 = vrot.slane %v5710_v13, 6 }
 0x3d7   : > { %v5716_v37 = vsel %vm5715_vm1, %v5210_v6, %v5714_v9 }
 0x3d8   : > { %5718 = vst [vmem:[%s3454_s5] sm:$0xf] %v5716_v37 }
 0x3d9 PF: > { %s13_s18 = sadd.s32 1, %s6376_s18   ;;  %s8197_s12 = smov %s6356_s13 }
 0x3da   : > { %p10_p12 = scmp.ge.s32.totalorder %s13_s18, 6   ;;  %s8198_s13 = smov %s6449_s25 }
 0x3db   : > { %s8199_s14 = smov %s6368_s16  ;;  %s8200_s15 = smov %s6372_s17 }
 0x3dc   : > { %s8201_s16 = smov %s8204_s19  ;;  %s8202_s17 = smov %s8208_s20 }
 0x3dd   :  { %12 = sbr.rel (!%p10_p12) target bundleno = 4 (0x4), region = 132 }

</bundles_post_ra>
